<compile_context>
chip_gen: v5e
topology: v5e:2x2
jax: 0.10.0
libtpu: 0.0.40
codegen_flags: <defaults>
</compile_context>

<pallas_src>
from functools import partial

import jax
import jax.numpy as jnp
import numpy as np
from jax.experimental import pallas as pl
from jax.experimental.pallas import tpu as pltpu

N_ODE_STEPS = 4  # fixed RK4 sub-steps per time interval


def ncde_kernel(dt_ref, hdt_ref, dt6_ref, h0_ref, x_ref,
                wih_ref, whh_ref, bih_ref, bhh_ref,
                w1_ref, b1_ref, w2_ref, b2_ref,
                wo_ref, bo_ref,
                out_ref, h_scr, gi_scr,
                *, hidden_dim, batch, n_steps, chunk_steps):
    H = hidden_dim
    B = batch
    c = pl.program_id(0)
    last_chunk = pl.num_programs(0) - 1
    chunk_start = c * chunk_steps

    # Carry h across chunks in VMEM scratch; initialize on the first chunk.
    @pl.when(c == 0)
    def _():
        h_scr[...] = h0_ref[...].astype(jnp.float32)

    # Hoist all constant weight/bias loads out of the time & RK4 loops.
    # Matmul weights are bf16 (single MXU pass); biases stay f32.
    wih = wih_ref[...]          # (I, 3H)  bf16, gates (r|z|n) along lanes
    whh = whh_ref[...]          # (H, 3H)  bf16
    bih = bih_ref[...]          # (1, 3H)  f32
    bhh = bhh_ref[...]          # (1, 3H)  f32
    w1 = w1_ref[...]            # (H, H)   bf16
    b1 = b1_ref[...]            # (1, H)   f32
    w2 = w2_ref[...]            # (H, H)   bf16
    b2 = b2_ref[...]            # (1, H)   f32

    # ---- Chunk-level input projection: one (chunk_steps*B, I) @ (I, 3H) MXU
    # pass instead of chunk_steps tiny (B, I) dots inside the time loop. ----
    x_chunk = x_ref[...].astype(jnp.bfloat16)
    gi_scr[...] = (jnp.dot(x_chunk, wih, preferred_element_type=jnp.float32)
                   + bih)

    def func(v):                # dh/dt = Linear(ReLU(Linear(h)))
        y = jnp.maximum(
            jnp.dot(v.astype(jnp.bfloat16), w1,
                    preferred_element_type=jnp.float32) + b1, 0.0)
        return jnp.dot(y.astype(jnp.bfloat16), w2,
                       preferred_element_type=jnp.float32) + b2

    def time_step(i, h):
        # ---- GRUCell (PyTorch semantics; gate order r, z, n) ----
        gi = gi_scr[pl.ds(i * B, B), :]                              # (B, 3H) f32
        gh = jnp.dot(h.astype(jnp.bfloat16), whh,
                     preferred_element_type=jnp.float32) + bhh       # (B, 3H) f32
        r = jax.nn.sigmoid(gi[:, 0:H] + gh[:, 0:H])
        z = jax.nn.sigmoid(gi[:, H:2 * H] + gh[:, H:2 * H])
        n = jnp.tanh(gi[:, 2 * H:3 * H] + r * gh[:, 2 * H:3 * H])
        h = (1.0 - z) * n + z * h

        # ---- ODE: integrate dh/dt = func(h) over [0, delta_t] with RK4 ----
        t = chunk_start + i
        dt = dt_ref[t]
        half_dt = hdt_ref[t]
        dt_over_6 = dt6_ref[t]

        def rk4_step(_, hh):
            k1 = func(hh)
            k2 = func(hh + half_dt * k1)
            acc = k1 + 2.0 * k2
            k3 = func(hh + half_dt * k2)
            acc = acc + 2.0 * k3
            k4 = func(hh + dt * k3)
            acc = acc + k4
            return hh + dt_over_6 * acc

        return jax.lax.fori_loop(0, N_ODE_STEPS, rk4_step, h, unroll=True)

    if n_steps % chunk_steps == 0:
        # Static trip count — give the scheduler visibility across iterations.
        time_unroll = 2 if chunk_steps % 2 == 0 else (
            True if chunk_steps <= 8 else 1)
        h_final = jax.lax.fori_loop(0, chunk_steps, time_step, h_scr[...],
                                    unroll=time_unroll)
    else:
        steps_here = jnp.minimum(chunk_steps, n_steps - chunk_start)
        h_final = jax.lax.fori_loop(0, steps_here, time_step, h_scr[...])
    h_scr[...] = h_final

    # Final output projection — must happen on the LAST chunk so the resident
    # (constant-index) output block is initialized before write-back.
    # Kept in f32 (runs once per sequence).
    @pl.when(c == last_chunk)
    def _():
        out_ref[...] = (
            jnp.dot(h_final, wo_ref[...], preferred_element_type=jnp.float32)
            + bo_ref[...]).astype(out_ref.dtype)


def simple_ncde_forward(time_points, initial_state, input_series, params,
                        *, chunk_steps=None):
    T = time_points.shape[0]
    B, H = initial_state.shape
    I = input_series.shape[-1]
    O = params["bo"].shape[-1]
    n_steps = T - 1

    if chunk_steps is None:
        chunk_steps = n_steps if n_steps <= 64 else 64
    chunk_steps = max(1, min(chunk_steps, n_steps))
    if chunk_steps < n_steps:
        # Multiple chunks: leading dim of the streamed (chunk_steps*B, I)
        # block must be sublane-aligned (multiple of 8).
        while (chunk_steps * B) % 8 != 0:
            chunk_steps += 1
    n_chunks = pl.cdiv(n_steps, chunk_steps)
    padded_steps = n_chunks * chunk_steps

    # Time-major input flattened to 2-D and zero-padded to whole chunks (the
    # padded rows are never consumed: the loop bound excludes them).
    x2d = input_series.reshape(n_steps * B, I).astype(jnp.float32)
    if padded_steps > n_steps:
        x2d = jnp.pad(x2d, ((0, (padded_steps - n_steps) * B), (0, 0)))

    # Precompute RK4 step scalars in the wrapper (one SMEM read each per step).
    delta_t = (time_points[1:] - time_points[:-1]).astype(jnp.float32)
    dt = delta_t * (1.0 / N_ODE_STEPS)
    if padded_steps > n_steps:
        dt = jnp.pad(dt, (0, padded_steps - n_steps))
    half_dt = 0.5 * dt
    dt_six = dt * (1.0 / 6.0)

    # bf16 matmul weights (single MXU pass, half the DMA); biases stay f32.
    bf16 = jnp.bfloat16
    w_ih = params["w_ih"].astype(bf16)
    w_hh = params["w_hh"].astype(bf16)
    w1 = params["w1"].astype(bf16)
    w2 = params["w2"].astype(bf16)

    # Explicit scoped-VMEM budget: resident weights (x2 for default double
    # buffering) + streamed/scratch blocks + headroom; capped at 32 MiB so it
    # is also safe on v7x (64 MiB physical VMEM).
    bf16b, f32b = 2, 4
    weight_bytes = (bf16b * (I * 3 * H + H * 3 * H + 2 * H * H)
                    + f32b * (2 * 3 * H + 2 * H + H * O + O))
    stream_bytes = f32b * (chunk_steps * B * I + chunk_steps * B * 3 * H
                           + 2 * B * H + B * O)
    vmem_limit = int(min(32 * 2 ** 20,
                         max(8 * 2 ** 20,
                             2 * (weight_bytes + stream_bytes) + 2 * 2 ** 20)))

    def const2(shape):
        return pl.BlockSpec(shape, lambda c: (0, 0))

    smem_spec = pl.BlockSpec(memory_space=pltpu.MemorySpace.SMEM)

    grid_spec = pltpu.PrefetchScalarGridSpec(
        num_scalar_prefetch=0,
        grid=(n_chunks,),
        in_specs=[
            smem_spec,                                                # dt
            smem_spec,                                                # dt/2
            smem_spec,                                                # dt/6
            const2((B, H)),                                           # initial_state
            pl.BlockSpec((chunk_steps * B, I), lambda c: (c, 0)),     # input chunk
            const2((I, 3 * H)),                                       # GRU W_ih (bf16)
            const2((H, 3 * H)),                                       # GRU W_hh (bf16)
            const2((1, 3 * H)),                                       # GRU b_ih
            const2((1, 3 * H)),                                       # GRU b_hh
            const2((H, H)), const2((1, H)),                           # func: Linear1
            const2((H, H)), const2((1, H)),                           # func: Linear2
            const2((H, O)), const2((1, O)),                           # output layer
        ],
        out_specs=pl.BlockSpec((B, O), lambda c: (0, 0)),
        scratch_shapes=[
            pltpu.VMEM((B, H), jnp.float32),                          # h carry
            pltpu.VMEM((chunk_steps * B, 3 * H), jnp.float32),        # gi per chunk
        ],
    )

    kernel = partial(ncde_kernel, hidden_dim=H, batch=B, n_steps=n_steps,
                     chunk_steps=chunk_steps)

    return pl.pallas_call(
        kernel,
        out_shape=jax.ShapeDtypeStruct((B, O), jnp.float32),
        grid_spec=grid_spec,
        compiler_params=pltpu.CompilerParams(
            dimension_semantics=("arbitrary",),
            vmem_limit_bytes=vmem_limit),
    )(dt, half_dt, dt_six, initial_state.astype(jnp.float32), x2d,
      w_ih, w_hh, params["b_ih"], params["b_hh"],
      w1, params["b1"], w2, params["b2"],
      params["wo"], params["bo"])


def init_params(key, input_dim, hidden_dim, output_dim):
    ks = jax.random.split(key, 10)

    def uni(k, shape, bound):
        return jax.random.uniform(k, shape, jnp.float32, -bound, bound)

    kg = 1.0 / float(hidden_dim) ** 0.5   # GRUCell init bound
    kl = 1.0 / float(hidden_dim) ** 0.5   # Linear(hidden, ·) init bound
    return dict(
        # Fused GRU weights, pre-transposed to (in, 3H); gate order (r|z|n)
        # concatenated along the last (lane) dim.
        w_ih=uni(ks[0], (input_dim, 3 * hidden_dim), kg),
        w_hh=uni(ks[1], (hidden_dim, 3 * hidden_dim), kg),
        b_ih=uni(ks[2], (1, 3 * hidden_dim), kg),
        b_hh=uni(ks[3], (1, 3 * hidden_dim), kg),
        # func = Linear(H,H) -> ReLU -> Linear(H,H), weights pre-transposed
        w1=uni(ks[4], (hidden_dim, hidden_dim), kl),
        b1=uni(ks[5], (1, hidden_dim), kl),
        w2=uni(ks[6], (hidden_dim, hidden_dim), kl),
        b2=uni(ks[7], (1, hidden_dim), kl),
        # output layer Linear(H, O), pre-transposed
        wo=uni(ks[8], (hidden_dim, output_dim), kl),
        bo=uni(ks[9], (1, output_dim), kl),
    )


def simple_ncde_reference(time_points, initial_state, input_series, params,
                          matmul_dtype=jnp.float32):
    """Pure-JAX reference of the same fixed-step math.

    matmul_dtype=jnp.bfloat16 mirrors the kernel exactly (bf16 matmul operands,
    f32 accumulate/carry); matmul_dtype=jnp.float32 is the full-precision model.
    """
    H = initial_state.shape[1]
    hp = jax.lax.Precision.HIGHEST

    def mm(a, b):
        prec = hp if matmul_dtype == jnp.float32 else None
        return jnp.dot(a.astype(matmul_dtype), b.astype(matmul_dtype),
                       precision=prec, preferred_element_type=jnp.float32)

    def func(v):
        y = jnp.maximum(mm(v, params["w1"]) + params["b1"], 0.0)
        return mm(y, params["w2"]) + params["b2"]

    h = initial_state.astype(jnp.float32)
    n_steps = time_points.shape[0] - 1
    for t in range(n_steps):
        x = input_series[t]
        gi = mm(x, params["w_ih"]) + params["b_ih"]
        gh = mm(h, params["w_hh"]) + params["b_hh"]
        r = jax.nn.sigmoid(gi[:, :H] + gh[:, :H])
        z = jax.nn.sigmoid(gi[:, H:2 * H] + gh[:, H:2 * H])
        n = jnp.tanh(gi[:, 2 * H:] + r * gh[:, 2 * H:])
        h = (1.0 - z) * n + z * h
        delta_t = time_points[t + 1] - time_points[t]
        dt = delta_t / N_ODE_STEPS
        for _ in range(N_ODE_STEPS):
            k1 = func(h)
            k2 = func(h + 0.5 * dt * k1)
            k3 = func(h + 0.5 * dt * k2)
            k4 = func(h + dt * k3)
            h = h + (dt / 6.0) * (k1 + 2.0 * k2 + 2.0 * k3 + k4)
    # Final projection is kept in f32 in the kernel regardless of matmul_dtype.
    return (jnp.dot(h, params["wo"], precision=hp,
                    preferred_element_type=jnp.float32) + params["bo"])


if __name__ == "__main__":
    B, I, H, O, T = 2, 4, 32, 8, 8

    key = jax.random.PRNGKey(0)
    k_param, k_h0, k_x = jax.random.split(key, 3)

    params = init_params(k_param, I, H, O)
    time_points = jnp.linspace(0.0, 1.0, T, dtype=jnp.float32)          # (T,)
    initial_state = jax.random.normal(k_h0, (B, H), jnp.float32)        # (B, H)
    input_series = jax.random.normal(k_x, (T - 1, B, I), jnp.float32)   # (T-1, B, I)

    out = simple_ncde_forward(time_points, initial_state, input_series, params)
    jax.block_until_ready(out)
    assert out.shape == (B, O)

    # Tight check against a pure-JAX reference of the EXACT kernel math
    # (bf16 matmul operands, f32 accumulate / f32 carry).
    ref_bf16 = simple_ncde_reference(time_points, initial_state, input_series,
                                     params, matmul_dtype=jnp.bfloat16)
    np.testing.assert_allclose(np.asarray(out), np.asarray(ref_bf16),
                               rtol=2e-3, atol=2e-3)

    # Looser sanity check against the full-f32 model (bounds the bf16-operand
    # error for this sequence length).
    ref_f32 = simple_ncde_reference(time_points, initial_state, input_series,
                                    params, matmul_dtype=jnp.float32)
    np.testing.assert_allclose(np.asarray(out), np.asarray(ref_f32),
                               rtol=5e-2, atol=5e-2)
    print("KERNEL_OK")
</pallas_src>

<mosaic_0001>
module attributes {stable_mosaic.version = 11 : i64} {
  func.func @ncde_kernel(%arg0: i32, %arg1: memref<7xf32, #tpu.memory_space<smem>>, %arg2: memref<7xf32, #tpu.memory_space<smem>>, %arg3: memref<7xf32, #tpu.memory_space<smem>>, %arg4: memref<2x32xf32, #tpu.memory_space<vmem>>, %arg5: memref<14x4xf32, #tpu.memory_space<vmem>>, %arg6: memref<4x96xbf16, #tpu.memory_space<vmem>>, %arg7: memref<32x96xbf16, #tpu.memory_space<vmem>>, %arg8: memref<1x96xf32, #tpu.memory_space<vmem>>, %arg9: memref<1x96xf32, #tpu.memory_space<vmem>>, %arg10: memref<32x32xbf16, #tpu.memory_space<vmem>>, %arg11: memref<1x32xf32, #tpu.memory_space<vmem>>, %arg12: memref<32x32xbf16, #tpu.memory_space<vmem>>, %arg13: memref<1x32xf32, #tpu.memory_space<vmem>>, %arg14: memref<32x8xf32, #tpu.memory_space<vmem>>, %arg15: memref<1x8xf32, #tpu.memory_space<vmem>>, %arg16: memref<2x8xf32, #tpu.memory_space<vmem>>, %arg17: memref<2x32xf32, #tpu.memory_space<vmem>>, %arg18: memref<14x96xf32, #tpu.memory_space<vmem>>) attributes {dimension_semantics = [#tpu.dimension_semantics<arbitrary>], iteration_bounds = array<i64: 1>, scalar_prefetch = 0 : i64, scratch_operands = 2 : i64, tpu.core_type = #tpu.core_type<tc>, window_params = [{transform_indices = @transform_0, window_bounds = array<i64: 7>}, {transform_indices = @transform_1, window_bounds = array<i64: 7>}, {transform_indices = @transform_2, window_bounds = array<i64: 7>}, {pipeline_mode = #tpu.pipeline_mode<synchronous>, transform_indices = @transform_3, window_bounds = array<i64: 2, 32>}, {transform_indices = @transform_4, window_bounds = array<i64: 14, 4>}, {pipeline_mode = #tpu.pipeline_mode<synchronous>, transform_indices = @transform_5, window_bounds = array<i64: 4, 96>}, {pipeline_mode = #tpu.pipeline_mode<synchronous>, transform_indices = @transform_6, window_bounds = array<i64: 32, 96>}, {pipeline_mode = #tpu.pipeline_mode<synchronous>, transform_indices = @transform_7, window_bounds = array<i64: 1, 96>}, {pipeline_mode = #tpu.pipeline_mode<synchronous>, transform_indices = @transform_8, window_bounds = array<i64: 1, 96>}, {pipeline_mode = #tpu.pipeline_mode<synchronous>, transform_indices = @transform_9, window_bounds = array<i64: 32, 32>}, {pipeline_mode = #tpu.pipeline_mode<synchronous>, transform_indices = @transform_10, window_bounds = array<i64: 1, 32>}, {pipeline_mode = #tpu.pipeline_mode<synchronous>, transform_indices = @transform_11, window_bounds = array<i64: 32, 32>}, {pipeline_mode = #tpu.pipeline_mode<synchronous>, transform_indices = @transform_12, window_bounds = array<i64: 1, 32>}, {pipeline_mode = #tpu.pipeline_mode<synchronous>, transform_indices = @transform_13, window_bounds = array<i64: 32, 8>}, {pipeline_mode = #tpu.pipeline_mode<synchronous>, transform_indices = @transform_14, window_bounds = array<i64: 1, 8>}, {pipeline_mode = #tpu.pipeline_mode<synchronous>, transform_indices = @transform_15, window_bounds = array<i64: 2, 8>}]} {
    %c7_i32 = arith.constant 7 : i32
    %0 = arith.muli %arg0, %c7_i32 : i32
    %c0_i32 = arith.constant 0 : i32
    %1 = arith.cmpi eq, %arg0, %c0_i32 : i32
    %2 = arith.extui %1 : i1 to i32
    %c0_i32_0 = arith.constant 0 : i32
    %3 = arith.cmpi ne, %2, %c0_i32_0 : i32
    scf.if %3 {
      %c0_490 = arith.constant 0 : index
      %c0_491 = arith.constant 0 : index
      %1955 = vector.load %arg4[%c0_490, %c0_491] : memref<2x32xf32, #tpu.memory_space<vmem>>, vector<2x32xf32>
      %c0_492 = arith.constant 0 : index
      %c0_493 = arith.constant 0 : index
      %1956 = vector.load %arg17[%c0_492, %c0_493] : memref<2x32xf32, #tpu.memory_space<vmem>>, vector<2x32xf32>
      tpu.vector_store %arg17[%c0_492, %c0_493], %1955 {strides = array<i32>} : memref<2x32xf32, #tpu.memory_space<vmem>>, vector<2x32xf32>,
    } else {
    }
    %c0 = arith.constant 0 : index
    %c0_1 = arith.constant 0 : index
    %4 = vector.load %arg6[%c0, %c0_1] : memref<4x96xbf16, #tpu.memory_space<vmem>>, vector<4x96xbf16>
    %c0_2 = arith.constant 0 : index
    %c0_3 = arith.constant 0 : index
    %5 = vector.load %arg7[%c0_2, %c0_3] : memref<32x96xbf16, #tpu.memory_space<vmem>>, vector<32x96xbf16>
    %c0_4 = arith.constant 0 : index
    %c0_5 = arith.constant 0 : index
    %6 = vector.load %arg8[%c0_4, %c0_5] : memref<1x96xf32, #tpu.memory_space<vmem>>, vector<1x96xf32>
    %c0_6 = arith.constant 0 : index
    %c0_7 = arith.constant 0 : index
    %7 = vector.load %arg9[%c0_6, %c0_7] : memref<1x96xf32, #tpu.memory_space<vmem>>, vector<1x96xf32>
    %c0_8 = arith.constant 0 : index
    %c0_9 = arith.constant 0 : index
    %8 = vector.load %arg10[%c0_8, %c0_9] : memref<32x32xbf16, #tpu.memory_space<vmem>>, vector<32x32xbf16>
    %c0_10 = arith.constant 0 : index
    %c0_11 = arith.constant 0 : index
    %9 = vector.load %arg11[%c0_10, %c0_11] : memref<1x32xf32, #tpu.memory_space<vmem>>, vector<1x32xf32>
    %c0_12 = arith.constant 0 : index
    %c0_13 = arith.constant 0 : index
    %10 = vector.load %arg12[%c0_12, %c0_13] : memref<32x32xbf16, #tpu.memory_space<vmem>>, vector<32x32xbf16>
    %c0_14 = arith.constant 0 : index
    %c0_15 = arith.constant 0 : index
    %11 = vector.load %arg13[%c0_14, %c0_15] : memref<1x32xf32, #tpu.memory_space<vmem>>, vector<1x32xf32>
    %c0_16 = arith.constant 0 : index
    %c0_17 = arith.constant 0 : index
    %12 = vector.load %arg5[%c0_16, %c0_17] : memref<14x4xf32, #tpu.memory_space<vmem>>, vector<14x4xf32>
    %13 = arith.truncf %12 : vector<14x4xf32> to vector<14x4xbf16>
    %cst = arith.constant dense<0.000000e+00> : vector<14x96xf32>
    %14 = tpu.matmul %13, %4, %cst {dimension_numbers = #tpu.dot_dimension_numbers<[1], [0], [0], [1], [0, 0, 1, 1], [], []>} : vector<14x4xbf16>, vector<4x96xbf16>, vector<14x96xf32> -> vector<14x96xf32>
    %15 = vector.broadcast %6 : vector<1x96xf32> to vector<14x96xf32>
    %16 = arith.addf %14, %15 : vector<14x96xf32>
    %c0_18 = arith.constant 0 : index
    %c0_19 = arith.constant 0 : index
    %17 = vector.load %arg18[%c0_18, %c0_19] : memref<14x96xf32, #tpu.memory_space<vmem>>, vector<14x96xf32>
    tpu.vector_store %arg18[%c0_18, %c0_19], %16 {strides = array<i32>} : memref<14x96xf32, #tpu.memory_space<vmem>>, vector<14x96xf32>,
    %c0_20 = arith.constant 0 : index
    %c0_21 = arith.constant 0 : index
    %18 = vector.load %arg17[%c0_20, %c0_21] : memref<2x32xf32, #tpu.memory_space<vmem>>, vector<2x32xf32>
    %c0_i32_22 = arith.constant 0 : i32
    %c2_i32 = arith.constant 2 : i32
    %19 = arith.muli %c0_i32_22, %c2_i32 : i32
    %20 = arith.index_cast %19 : i32 to index
    %c0_23 = arith.constant 0 : index
    %21 = vector.load %arg18[%20, %c0_23] : memref<14x96xf32, #tpu.memory_space<vmem>>, vector<2x96xf32>
    %22 = arith.truncf %18 : vector<2x32xf32> to vector<2x32xbf16>
    %cst_24 = arith.constant dense<0.000000e+00> : vector<2x96xf32>
    %23 = tpu.matmul %22, %5, %cst_24 {dimension_numbers = #tpu.dot_dimension_numbers<[1], [0], [0], [1], [0, 0, 1, 1], [], []>} : vector<2x32xbf16>, vector<32x96xbf16>, vector<2x96xf32> -> vector<2x96xf32>
    %24 = vector.broadcast %7 : vector<1x96xf32> to vector<2x96xf32>
    %25 = arith.addf %23, %24 : vector<2x96xf32>
    %26 = vector.extract_strided_slice %21 {offsets = [0, 0], sizes = [2, 32], strides = [1, 1]} : vector<2x96xf32> to vector<2x32xf32>
    %27 = vector.extract_strided_slice %25 {offsets = [0, 0], sizes = [2, 32], strides = [1, 1]} : vector<2x96xf32> to vector<2x32xf32>
    %28 = arith.addf %26, %27 : vector<2x32xf32>
    %29 = arith.negf %28 : vector<2x32xf32>
    %30 = math.exp %29 : vector<2x32xf32>
    %cst_25 = arith.constant 1.000000e+00 : f32
    %31 = vector.broadcast %cst_25 : f32 to vector<2x32xf32>
    %32 = arith.addf %31, %30 : vector<2x32xf32>
    %33 = arith.divf %31, %32 : vector<2x32xf32>
    %34 = vector.extract_strided_slice %21 {offsets = [0, 32], sizes = [2, 32], strides = [1, 1]} : vector<2x96xf32> to vector<2x32xf32>
    %35 = vector.extract_strided_slice %25 {offsets = [0, 32], sizes = [2, 32], strides = [1, 1]} : vector<2x96xf32> to vector<2x32xf32>
    %36 = arith.addf %34, %35 : vector<2x32xf32>
    %37 = arith.negf %36 : vector<2x32xf32>
    %38 = math.exp %37 : vector<2x32xf32>
    %cst_26 = arith.constant 1.000000e+00 : f32
    %39 = vector.broadcast %cst_26 : f32 to vector<2x32xf32>
    %40 = arith.addf %39, %38 : vector<2x32xf32>
    %41 = arith.divf %39, %40 : vector<2x32xf32>
    %42 = vector.extract_strided_slice %21 {offsets = [0, 64], sizes = [2, 32], strides = [1, 1]} : vector<2x96xf32> to vector<2x32xf32>
    %43 = vector.extract_strided_slice %25 {offsets = [0, 64], sizes = [2, 32], strides = [1, 1]} : vector<2x96xf32> to vector<2x32xf32>
    %44 = arith.mulf %33, %43 : vector<2x32xf32>
    %45 = arith.addf %42, %44 : vector<2x32xf32>
    %46 = math.tanh %45 : vector<2x32xf32>
    %cst_27 = arith.constant 1.000000e+00 : f32
    %47 = vector.broadcast %cst_27 : f32 to vector<2x32xf32>
    %48 = arith.subf %47, %41 : vector<2x32xf32>
    %49 = arith.mulf %48, %46 : vector<2x32xf32>
    %50 = arith.mulf %41, %18 : vector<2x32xf32>
    %51 = arith.addf %49, %50 : vector<2x32xf32>
    %52 = arith.addi %0, %c0_i32_22 : i32
    %53 = arith.index_cast %52 : i32 to index
    %54 = memref.load %arg1[%53] : memref<7xf32, #tpu.memory_space<smem>>
    %55 = arith.index_cast %52 : i32 to index
    %56 = memref.load %arg2[%55] : memref<7xf32, #tpu.memory_space<smem>>
    %57 = arith.index_cast %52 : i32 to index
    %58 = memref.load %arg3[%57] : memref<7xf32, #tpu.memory_space<smem>>
    %c0_i32_28 = arith.constant 0 : i32
    %59 = arith.truncf %51 : vector<2x32xf32> to vector<2x32xbf16>
    %cst_29 = arith.constant dense<0.000000e+00> : vector<2x32xf32>
    %60 = tpu.matmul %59, %8, %cst_29 {dimension_numbers = #tpu.dot_dimension_numbers<[1], [0], [0], [1], [0, 0, 1, 1], [], []>} : vector<2x32xbf16>, vector<32x32xbf16>, vector<2x32xf32> -> vector<2x32xf32>
    %61 = vector.broadcast %9 : vector<1x32xf32> to vector<2x32xf32>
    %62 = arith.addf %60, %61 : vector<2x32xf32>
    %cst_30 = arith.constant 0.000000e+00 : f32
    %63 = vector.broadcast %cst_30 : f32 to vector<2x32xf32>
    %64 = arith.maximumf %62, %63 : vector<2x32xf32>
    %65 = arith.truncf %64 : vector<2x32xf32> to vector<2x32xbf16>
    %cst_31 = arith.constant dense<0.000000e+00> : vector<2x32xf32>
    %66 = tpu.matmul %65, %10, %cst_31 {dimension_numbers = #tpu.dot_dimension_numbers<[1], [0], [0], [1], [0, 0, 1, 1], [], []>} : vector<2x32xbf16>, vector<32x32xbf16>, vector<2x32xf32> -> vector<2x32xf32>
    %67 = vector.broadcast %11 : vector<1x32xf32> to vector<2x32xf32>
    %68 = arith.addf %66, %67 : vector<2x32xf32>
    %69 = vector.broadcast %56 : f32 to vector<2x32xf32>
    %70 = arith.mulf %69, %68 : vector<2x32xf32>
    %71 = arith.addf %51, %70 : vector<2x32xf32>
    %72 = arith.truncf %71 : vector<2x32xf32> to vector<2x32xbf16>
    %cst_32 = arith.constant dense<0.000000e+00> : vector<2x32xf32>
    %73 = tpu.matmul %72, %8, %cst_32 {dimension_numbers = #tpu.dot_dimension_numbers<[1], [0], [0], [1], [0, 0, 1, 1], [], []>} : vector<2x32xbf16>, vector<32x32xbf16>, vector<2x32xf32> -> vector<2x32xf32>
    %74 = vector.broadcast %9 : vector<1x32xf32> to vector<2x32xf32>
    %75 = arith.addf %73, %74 : vector<2x32xf32>
    %cst_33 = arith.constant 0.000000e+00 : f32
    %76 = vector.broadcast %cst_33 : f32 to vector<2x32xf32>
    %77 = arith.maximumf %75, %76 : vector<2x32xf32>
    %78 = arith.truncf %77 : vector<2x32xf32> to vector<2x32xbf16>
    %cst_34 = arith.constant dense<0.000000e+00> : vector<2x32xf32>
    %79 = tpu.matmul %78, %10, %cst_34 {dimension_numbers = #tpu.dot_dimension_numbers<[1], [0], [0], [1], [0, 0, 1, 1], [], []>} : vector<2x32xbf16>, vector<32x32xbf16>, vector<2x32xf32> -> vector<2x32xf32>
    %80 = vector.broadcast %11 : vector<1x32xf32> to vector<2x32xf32>
    %81 = arith.addf %79, %80 : vector<2x32xf32>
    %cst_35 = arith.constant 2.000000e+00 : f32
    %82 = vector.broadcast %cst_35 : f32 to vector<2x32xf32>
    %83 = arith.mulf %82, %81 : vector<2x32xf32>
    %84 = arith.addf %68, %83 : vector<2x32xf32>
    %85 = vector.broadcast %56 : f32 to vector<2x32xf32>
    %86 = arith.mulf %85, %81 : vector<2x32xf32>
    %87 = arith.addf %51, %86 : vector<2x32xf32>
    %88 = arith.truncf %87 : vector<2x32xf32> to vector<2x32xbf16>
    %cst_36 = arith.constant dense<0.000000e+00> : vector<2x32xf32>
    %89 = tpu.matmul %88, %8, %cst_36 {dimension_numbers = #tpu.dot_dimension_numbers<[1], [0], [0], [1], [0, 0, 1, 1], [], []>} : vector<2x32xbf16>, vector<32x32xbf16>, vector<2x32xf32> -> vector<2x32xf32>
    %90 = vector.broadcast %9 : vector<1x32xf32> to vector<2x32xf32>
    %91 = arith.addf %89, %90 : vector<2x32xf32>
    %cst_37 = arith.constant 0.000000e+00 : f32
    %92 = vector.broadcast %cst_37 : f32 to vector<2x32xf32>
    %93 = arith.maximumf %91, %92 : vector<2x32xf32>
    %94 = arith.truncf %93 : vector<2x32xf32> to vector<2x32xbf16>
    %cst_38 = arith.constant dense<0.000000e+00> : vector<2x32xf32>
    %95 = tpu.matmul %94, %10, %cst_38 {dimension_numbers = #tpu.dot_dimension_numbers<[1], [0], [0], [1], [0, 0, 1, 1], [], []>} : vector<2x32xbf16>, vector<32x32xbf16>, vector<2x32xf32> -> vector<2x32xf32>
    %96 = vector.broadcast %11 : vector<1x32xf32> to vector<2x32xf32>
    %97 = arith.addf %95, %96 : vector<2x32xf32>
    %cst_39 = arith.constant 2.000000e+00 : f32
    %98 = vector.broadcast %cst_39 : f32 to vector<2x32xf32>
    %99 = arith.mulf %98, %97 : vector<2x32xf32>
    %100 = arith.addf %84, %99 : vector<2x32xf32>
    %101 = vector.broadcast %54 : f32 to vector<2x32xf32>
    %102 = arith.mulf %101, %97 : vector<2x32xf32>
    %103 = arith.addf %51, %102 : vector<2x32xf32>
    %104 = arith.truncf %103 : vector<2x32xf32> to vector<2x32xbf16>
    %cst_40 = arith.constant dense<0.000000e+00> : vector<2x32xf32>
    %105 = tpu.matmul %104, %8, %cst_40 {dimension_numbers = #tpu.dot_dimension_numbers<[1], [0], [0], [1], [0, 0, 1, 1], [], []>} : vector<2x32xbf16>, vector<32x32xbf16>, vector<2x32xf32> -> vector<2x32xf32>
    %106 = vector.broadcast %9 : vector<1x32xf32> to vector<2x32xf32>
    %107 = arith.addf %105, %106 : vector<2x32xf32>
    %cst_41 = arith.constant 0.000000e+00 : f32
    %108 = vector.broadcast %cst_41 : f32 to vector<2x32xf32>
    %109 = arith.maximumf %107, %108 : vector<2x32xf32>
    %110 = arith.truncf %109 : vector<2x32xf32> to vector<2x32xbf16>
    %cst_42 = arith.constant dense<0.000000e+00> : vector<2x32xf32>
    %111 = tpu.matmul %110, %10, %cst_42 {dimension_numbers = #tpu.dot_dimension_numbers<[1], [0], [0], [1], [0, 0, 1, 1], [], []>} : vector<2x32xbf16>, vector<32x32xbf16>, vector<2x32xf32> -> vector<2x32xf32>
    %112 = vector.broadcast %11 : vector<1x32xf32> to vector<2x32xf32>
    %113 = arith.addf %111, %112 : vector<2x32xf32>
    %114 = arith.addf %100, %113 : vector<2x32xf32>
    %115 = vector.broadcast %58 : f32 to vector<2x32xf32>
    %116 = arith.mulf %115, %114 : vector<2x32xf32>
    %117 = arith.addf %51, %116 : vector<2x32xf32>
    %c1_i32 = arith.constant 1 : i32
    %118 = arith.truncf %117 : vector<2x32xf32> to vector<2x32xbf16>
    %cst_43 = arith.constant dense<0.000000e+00> : vector<2x32xf32>
    %119 = tpu.matmul %118, %8, %cst_43 {dimension_numbers = #tpu.dot_dimension_numbers<[1], [0], [0], [1], [0, 0, 1, 1], [], []>} : vector<2x32xbf16>, vector<32x32xbf16>, vector<2x32xf32> -> vector<2x32xf32>
    %120 = vector.broadcast %9 : vector<1x32xf32> to vector<2x32xf32>
    %121 = arith.addf %119, %120 : vector<2x32xf32>
    %cst_44 = arith.constant 0.000000e+00 : f32
    %122 = vector.broadcast %cst_44 : f32 to vector<2x32xf32>
    %123 = arith.maximumf %121, %122 : vector<2x32xf32>
    %124 = arith.truncf %123 : vector<2x32xf32> to vector<2x32xbf16>
    %cst_45 = arith.constant dense<0.000000e+00> : vector<2x32xf32>
    %125 = tpu.matmul %124, %10, %cst_45 {dimension_numbers = #tpu.dot_dimension_numbers<[1], [0], [0], [1], [0, 0, 1, 1], [], []>} : vector<2x32xbf16>, vector<32x32xbf16>, vector<2x32xf32> -> vector<2x32xf32>
    %126 = vector.broadcast %11 : vector<1x32xf32> to vector<2x32xf32>
    %127 = arith.addf %125, %126 : vector<2x32xf32>
    %128 = vector.broadcast %56 : f32 to vector<2x32xf32>
    %129 = arith.mulf %128, %127 : vector<2x32xf32>
    %130 = arith.addf %117, %129 : vector<2x32xf32>
    %131 = arith.truncf %130 : vector<2x32xf32> to vector<2x32xbf16>
    %cst_46 = arith.constant dense<0.000000e+00> : vector<2x32xf32>
    %132 = tpu.matmul %131, %8, %cst_46 {dimension_numbers = #tpu.dot_dimension_numbers<[1], [0], [0], [1], [0, 0, 1, 1], [], []>} : vector<2x32xbf16>, vector<32x32xbf16>, vector<2x32xf32> -> vector<2x32xf32>
    %133 = vector.broadcast %9 : vector<1x32xf32> to vector<2x32xf32>
    %134 = arith.addf %132, %133 : vector<2x32xf32>
    %cst_47 = arith.constant 0.000000e+00 : f32
    %135 = vector.broadcast %cst_47 : f32 to vector<2x32xf32>
    %136 = arith.maximumf %134, %135 : vector<2x32xf32>
    %137 = arith.truncf %136 : vector<2x32xf32> to vector<2x32xbf16>
    %cst_48 = arith.constant dense<0.000000e+00> : vector<2x32xf32>
    %138 = tpu.matmul %137, %10, %cst_48 {dimension_numbers = #tpu.dot_dimension_numbers<[1], [0], [0], [1], [0, 0, 1, 1], [], []>} : vector<2x32xbf16>, vector<32x32xbf16>, vector<2x32xf32> -> vector<2x32xf32>
    %139 = vector.broadcast %11 : vector<1x32xf32> to vector<2x32xf32>
    %140 = arith.addf %138, %139 : vector<2x32xf32>
    %cst_49 = arith.constant 2.000000e+00 : f32
    %141 = vector.broadcast %cst_49 : f32 to vector<2x32xf32>
    %142 = arith.mulf %141, %140 : vector<2x32xf32>
    %143 = arith.addf %127, %142 : vector<2x32xf32>
    %144 = vector.broadcast %56 : f32 to vector<2x32xf32>
    %145 = arith.mulf %144, %140 : vector<2x32xf32>
    %146 = arith.addf %117, %145 : vector<2x32xf32>
    %147 = arith.truncf %146 : vector<2x32xf32> to vector<2x32xbf16>
    %cst_50 = arith.constant dense<0.000000e+00> : vector<2x32xf32>
    %148 = tpu.matmul %147, %8, %cst_50 {dimension_numbers = #tpu.dot_dimension_numbers<[1], [0], [0], [1], [0, 0, 1, 1], [], []>} : vector<2x32xbf16>, vector<32x32xbf16>, vector<2x32xf32> -> vector<2x32xf32>
    %149 = vector.broadcast %9 : vector<1x32xf32> to vector<2x32xf32>
    %150 = arith.addf %148, %149 : vector<2x32xf32>
    %cst_51 = arith.constant 0.000000e+00 : f32
    %151 = vector.broadcast %cst_51 : f32 to vector<2x32xf32>
    %152 = arith.maximumf %150, %151 : vector<2x32xf32>
    %153 = arith.truncf %152 : vector<2x32xf32> to vector<2x32xbf16>
    %cst_52 = arith.constant dense<0.000000e+00> : vector<2x32xf32>
    %154 = tpu.matmul %153, %10, %cst_52 {dimension_numbers = #tpu.dot_dimension_numbers<[1], [0], [0], [1], [0, 0, 1, 1], [], []>} : vector<2x32xbf16>, vector<32x32xbf16>, vector<2x32xf32> -> vector<2x32xf32>
    %155 = vector.broadcast %11 : vector<1x32xf32> to vector<2x32xf32>
    %156 = arith.addf %154, %155 : vector<2x32xf32>
    %cst_53 = arith.constant 2.000000e+00 : f32
    %157 = vector.broadcast %cst_53 : f32 to vector<2x32xf32>
    %158 = arith.mulf %157, %156 : vector<2x32xf32>
    %159 = arith.addf %143, %158 : vector<2x32xf32>
    %160 = vector.broadcast %54 : f32 to vector<2x32xf32>
    %161 = arith.mulf %160, %156 : vector<2x32xf32>
    %162 = arith.addf %117, %161 : vector<2x32xf32>
    %163 = arith.truncf %162 : vector<2x32xf32> to vector<2x32xbf16>
    %cst_54 = arith.constant dense<0.000000e+00> : vector<2x32xf32>
    %164 = tpu.matmul %163, %8, %cst_54 {dimension_numbers = #tpu.dot_dimension_numbers<[1], [0], [0], [1], [0, 0, 1, 1], [], []>} : vector<2x32xbf16>, vector<32x32xbf16>, vector<2x32xf32> -> vector<2x32xf32>
    %165 = vector.broadcast %9 : vector<1x32xf32> to vector<2x32xf32>
    %166 = arith.addf %164, %165 : vector<2x32xf32>
    %cst_55 = arith.constant 0.000000e+00 : f32
    %167 = vector.broadcast %cst_55 : f32 to vector<2x32xf32>
    %168 = arith.maximumf %166, %167 : vector<2x32xf32>
    %169 = arith.truncf %168 : vector<2x32xf32> to vector<2x32xbf16>
    %cst_56 = arith.constant dense<0.000000e+00> : vector<2x32xf32>
    %170 = tpu.matmul %169, %10, %cst_56 {dimension_numbers = #tpu.dot_dimension_numbers<[1], [0], [0], [1], [0, 0, 1, 1], [], []>} : vector<2x32xbf16>, vector<32x32xbf16>, vector<2x32xf32> -> vector<2x32xf32>
    %171 = vector.broadcast %11 : vector<1x32xf32> to vector<2x32xf32>
    %172 = arith.addf %170, %171 : vector<2x32xf32>
    %173 = arith.addf %159, %172 : vector<2x32xf32>
    %174 = vector.broadcast %58 : f32 to vector<2x32xf32>
    %175 = arith.mulf %174, %173 : vector<2x32xf32>
    %176 = arith.addf %117, %175 : vector<2x32xf32>
    %c2_i32_57 = arith.constant 2 : i32
    %177 = arith.truncf %176 : vector<2x32xf32> to vector<2x32xbf16>
    %cst_58 = arith.constant dense<0.000000e+00> : vector<2x32xf32>
    %178 = tpu.matmul %177, %8, %cst_58 {dimension_numbers = #tpu.dot_dimension_numbers<[1], [0], [0], [1], [0, 0, 1, 1], [], []>} : vector<2x32xbf16>, vector<32x32xbf16>, vector<2x32xf32> -> vector<2x32xf32>
    %179 = vector.broadcast %9 : vector<1x32xf32> to vector<2x32xf32>
    %180 = arith.addf %178, %179 : vector<2x32xf32>
    %cst_59 = arith.constant 0.000000e+00 : f32
    %181 = vector.broadcast %cst_59 : f32 to vector<2x32xf32>
    %182 = arith.maximumf %180, %181 : vector<2x32xf32>
    %183 = arith.truncf %182 : vector<2x32xf32> to vector<2x32xbf16>
    %cst_60 = arith.constant dense<0.000000e+00> : vector<2x32xf32>
    %184 = tpu.matmul %183, %10, %cst_60 {dimension_numbers = #tpu.dot_dimension_numbers<[1], [0], [0], [1], [0, 0, 1, 1], [], []>} : vector<2x32xbf16>, vector<32x32xbf16>, vector<2x32xf32> -> vector<2x32xf32>
    %185 = vector.broadcast %11 : vector<1x32xf32> to vector<2x32xf32>
    %186 = arith.addf %184, %185 : vector<2x32xf32>
    %187 = vector.broadcast %56 : f32 to vector<2x32xf32>
    %188 = arith.mulf %187, %186 : vector<2x32xf32>
    %189 = arith.addf %176, %188 : vector<2x32xf32>
    %190 = arith.truncf %189 : vector<2x32xf32> to vector<2x32xbf16>
    %cst_61 = arith.constant dense<0.000000e+00> : vector<2x32xf32>
    %191 = tpu.matmul %190, %8, %cst_61 {dimension_numbers = #tpu.dot_dimension_numbers<[1], [0], [0], [1], [0, 0, 1, 1], [], []>} : vector<2x32xbf16>, vector<32x32xbf16>, vector<2x32xf32> -> vector<2x32xf32>
    %192 = vector.broadcast %9 : vector<1x32xf32> to vector<2x32xf32>
    %193 = arith.addf %191, %192 : vector<2x32xf32>
    %cst_62 = arith.constant 0.000000e+00 : f32
    %194 = vector.broadcast %cst_62 : f32 to vector<2x32xf32>
    %195 = arith.maximumf %193, %194 : vector<2x32xf32>
    %196 = arith.truncf %195 : vector<2x32xf32> to vector<2x32xbf16>
    %cst_63 = arith.constant dense<0.000000e+00> : vector<2x32xf32>
    %197 = tpu.matmul %196, %10, %cst_63 {dimension_numbers = #tpu.dot_dimension_numbers<[1], [0], [0], [1], [0, 0, 1, 1], [], []>} : vector<2x32xbf16>, vector<32x32xbf16>, vector<2x32xf32> -> vector<2x32xf32>
    %198 = vector.broadcast %11 : vector<1x32xf32> to vector<2x32xf32>
    %199 = arith.addf %197, %198 : vector<2x32xf32>
    %cst_64 = arith.constant 2.000000e+00 : f32
    %200 = vector.broadcast %cst_64 : f32 to vector<2x32xf32>
    %201 = arith.mulf %200, %199 : vector<2x32xf32>
    %202 = arith.addf %186, %201 : vector<2x32xf32>
    %203 = vector.broadcast %56 : f32 to vector<2x32xf32>
    %204 = arith.mulf %203, %199 : vector<2x32xf32>
    %205 = arith.addf %176, %204 : vector<2x32xf32>
    %206 = arith.truncf %205 : vector<2x32xf32> to vector<2x32xbf16>
    %cst_65 = arith.constant dense<0.000000e+00> : vector<2x32xf32>
    %207 = tpu.matmul %206, %8, %cst_65 {dimension_numbers = #tpu.dot_dimension_numbers<[1], [0], [0], [1], [0, 0, 1, 1], [], []>} : vector<2x32xbf16>, vector<32x32xbf16>, vector<2x32xf32> -> vector<2x32xf32>
    %208 = vector.broadcast %9 : vector<1x32xf32> to vector<2x32xf32>
    %209 = arith.addf %207, %208 : vector<2x32xf32>
    %cst_66 = arith.constant 0.000000e+00 : f32
    %210 = vector.broadcast %cst_66 : f32 to vector<2x32xf32>
    %211 = arith.maximumf %209, %210 : vector<2x32xf32>
    %212 = arith.truncf %211 : vector<2x32xf32> to vector<2x32xbf16>
    %cst_67 = arith.constant dense<0.000000e+00> : vector<2x32xf32>
    %213 = tpu.matmul %212, %10, %cst_67 {dimension_numbers = #tpu.dot_dimension_numbers<[1], [0], [0], [1], [0, 0, 1, 1], [], []>} : vector<2x32xbf16>, vector<32x32xbf16>, vector<2x32xf32> -> vector<2x32xf32>
    %214 = vector.broadcast %11 : vector<1x32xf32> to vector<2x32xf32>
    %215 = arith.addf %213, %214 : vector<2x32xf32>
    %cst_68 = arith.constant 2.000000e+00 : f32
    %216 = vector.broadcast %cst_68 : f32 to vector<2x32xf32>
    %217 = arith.mulf %216, %215 : vector<2x32xf32>
    %218 = arith.addf %202, %217 : vector<2x32xf32>
    %219 = vector.broadcast %54 : f32 to vector<2x32xf32>
    %220 = arith.mulf %219, %215 : vector<2x32xf32>
    %221 = arith.addf %176, %220 : vector<2x32xf32>
    %222 = arith.truncf %221 : vector<2x32xf32> to vector<2x32xbf16>
    %cst_69 = arith.constant dense<0.000000e+00> : vector<2x32xf32>
    %223 = tpu.matmul %222, %8, %cst_69 {dimension_numbers = #tpu.dot_dimension_numbers<[1], [0], [0], [1], [0, 0, 1, 1], [], []>} : vector<2x32xbf16>, vector<32x32xbf16>, vector<2x32xf32> -> vector<2x32xf32>
    %224 = vector.broadcast %9 : vector<1x32xf32> to vector<2x32xf32>
    %225 = arith.addf %223, %224 : vector<2x32xf32>
    %cst_70 = arith.constant 0.000000e+00 : f32
    %226 = vector.broadcast %cst_70 : f32 to vector<2x32xf32>
    %227 = arith.maximumf %225, %226 : vector<2x32xf32>
    %228 = arith.truncf %227 : vector<2x32xf32> to vector<2x32xbf16>
    %cst_71 = arith.constant dense<0.000000e+00> : vector<2x32xf32>
    %229 = tpu.matmul %228, %10, %cst_71 {dimension_numbers = #tpu.dot_dimension_numbers<[1], [0], [0], [1], [0, 0, 1, 1], [], []>} : vector<2x32xbf16>, vector<32x32xbf16>, vector<2x32xf32> -> vector<2x32xf32>
    %230 = vector.broadcast %11 : vector<1x32xf32> to vector<2x32xf32>
    %231 = arith.addf %229, %230 : vector<2x32xf32>
    %232 = arith.addf %218, %231 : vector<2x32xf32>
    %233 = vector.broadcast %58 : f32 to vector<2x32xf32>
    %234 = arith.mulf %233, %232 : vector<2x32xf32>
    %235 = arith.addf %176, %234 : vector<2x32xf32>
    %c3_i32 = arith.constant 3 : i32
    %236 = arith.truncf %235 : vector<2x32xf32> to vector<2x32xbf16>
    %cst_72 = arith.constant dense<0.000000e+00> : vector<2x32xf32>
    %237 = tpu.matmul %236, %8, %cst_72 {dimension_numbers = #tpu.dot_dimension_numbers<[1], [0], [0], [1], [0, 0, 1, 1], [], []>} : vector<2x32xbf16>, vector<32x32xbf16>, vector<2x32xf32> -> vector<2x32xf32>
    %238 = vector.broadcast %9 : vector<1x32xf32> to vector<2x32xf32>
    %239 = arith.addf %237, %238 : vector<2x32xf32>
    %cst_73 = arith.constant 0.000000e+00 : f32
    %240 = vector.broadcast %cst_73 : f32 to vector<2x32xf32>
    %241 = arith.maximumf %239, %240 : vector<2x32xf32>
    %242 = arith.truncf %241 : vector<2x32xf32> to vector<2x32xbf16>
    %cst_74 = arith.constant dense<0.000000e+00> : vector<2x32xf32>
    %243 = tpu.matmul %242, %10, %cst_74 {dimension_numbers = #tpu.dot_dimension_numbers<[1], [0], [0], [1], [0, 0, 1, 1], [], []>} : vector<2x32xbf16>, vector<32x32xbf16>, vector<2x32xf32> -> vector<2x32xf32>
    %244 = vector.broadcast %11 : vector<1x32xf32> to vector<2x32xf32>
    %245 = arith.addf %243, %244 : vector<2x32xf32>
    %246 = vector.broadcast %56 : f32 to vector<2x32xf32>
    %247 = arith.mulf %246, %245 : vector<2x32xf32>
    %248 = arith.addf %235, %247 : vector<2x32xf32>
    %249 = arith.truncf %248 : vector<2x32xf32> to vector<2x32xbf16>
    %cst_75 = arith.constant dense<0.000000e+00> : vector<2x32xf32>
    %250 = tpu.matmul %249, %8, %cst_75 {dimension_numbers = #tpu.dot_dimension_numbers<[1], [0], [0], [1], [0, 0, 1, 1], [], []>} : vector<2x32xbf16>, vector<32x32xbf16>, vector<2x32xf32> -> vector<2x32xf32>
    %251 = vector.broadcast %9 : vector<1x32xf32> to vector<2x32xf32>
    %252 = arith.addf %250, %251 : vector<2x32xf32>
    %cst_76 = arith.constant 0.000000e+00 : f32
    %253 = vector.broadcast %cst_76 : f32 to vector<2x32xf32>
    %254 = arith.maximumf %252, %253 : vector<2x32xf32>
    %255 = arith.truncf %254 : vector<2x32xf32> to vector<2x32xbf16>
    %cst_77 = arith.constant dense<0.000000e+00> : vector<2x32xf32>
    %256 = tpu.matmul %255, %10, %cst_77 {dimension_numbers = #tpu.dot_dimension_numbers<[1], [0], [0], [1], [0, 0, 1, 1], [], []>} : vector<2x32xbf16>, vector<32x32xbf16>, vector<2x32xf32> -> vector<2x32xf32>
    %257 = vector.broadcast %11 : vector<1x32xf32> to vector<2x32xf32>
    %258 = arith.addf %256, %257 : vector<2x32xf32>
    %cst_78 = arith.constant 2.000000e+00 : f32
    %259 = vector.broadcast %cst_78 : f32 to vector<2x32xf32>
    %260 = arith.mulf %259, %258 : vector<2x32xf32>
    %261 = arith.addf %245, %260 : vector<2x32xf32>
    %262 = vector.broadcast %56 : f32 to vector<2x32xf32>
    %263 = arith.mulf %262, %258 : vector<2x32xf32>
    %264 = arith.addf %235, %263 : vector<2x32xf32>
    %265 = arith.truncf %264 : vector<2x32xf32> to vector<2x32xbf16>
    %cst_79 = arith.constant dense<0.000000e+00> : vector<2x32xf32>
    %266 = tpu.matmul %265, %8, %cst_79 {dimension_numbers = #tpu.dot_dimension_numbers<[1], [0], [0], [1], [0, 0, 1, 1], [], []>} : vector<2x32xbf16>, vector<32x32xbf16>, vector<2x32xf32> -> vector<2x32xf32>
    %267 = vector.broadcast %9 : vector<1x32xf32> to vector<2x32xf32>
    %268 = arith.addf %266, %267 : vector<2x32xf32>
    %cst_80 = arith.constant 0.000000e+00 : f32
    %269 = vector.broadcast %cst_80 : f32 to vector<2x32xf32>
    %270 = arith.maximumf %268, %269 : vector<2x32xf32>
    %271 = arith.truncf %270 : vector<2x32xf32> to vector<2x32xbf16>
    %cst_81 = arith.constant dense<0.000000e+00> : vector<2x32xf32>
    %272 = tpu.matmul %271, %10, %cst_81 {dimension_numbers = #tpu.dot_dimension_numbers<[1], [0], [0], [1], [0, 0, 1, 1], [], []>} : vector<2x32xbf16>, vector<32x32xbf16>, vector<2x32xf32> -> vector<2x32xf32>
    %273 = vector.broadcast %11 : vector<1x32xf32> to vector<2x32xf32>
    %274 = arith.addf %272, %273 : vector<2x32xf32>
    %cst_82 = arith.constant 2.000000e+00 : f32
    %275 = vector.broadcast %cst_82 : f32 to vector<2x32xf32>
    %276 = arith.mulf %275, %274 : vector<2x32xf32>
    %277 = arith.addf %261, %276 : vector<2x32xf32>
    %278 = vector.broadcast %54 : f32 to vector<2x32xf32>
    %279 = arith.mulf %278, %274 : vector<2x32xf32>
    %280 = arith.addf %235, %279 : vector<2x32xf32>
    %281 = arith.truncf %280 : vector<2x32xf32> to vector<2x32xbf16>
    %cst_83 = arith.constant dense<0.000000e+00> : vector<2x32xf32>
    %282 = tpu.matmul %281, %8, %cst_83 {dimension_numbers = #tpu.dot_dimension_numbers<[1], [0], [0], [1], [0, 0, 1, 1], [], []>} : vector<2x32xbf16>, vector<32x32xbf16>, vector<2x32xf32> -> vector<2x32xf32>
    %283 = vector.broadcast %9 : vector<1x32xf32> to vector<2x32xf32>
    %284 = arith.addf %282, %283 : vector<2x32xf32>
    %cst_84 = arith.constant 0.000000e+00 : f32
    %285 = vector.broadcast %cst_84 : f32 to vector<2x32xf32>
    %286 = arith.maximumf %284, %285 : vector<2x32xf32>
    %287 = arith.truncf %286 : vector<2x32xf32> to vector<2x32xbf16>
    %cst_85 = arith.constant dense<0.000000e+00> : vector<2x32xf32>
    %288 = tpu.matmul %287, %10, %cst_85 {dimension_numbers = #tpu.dot_dimension_numbers<[1], [0], [0], [1], [0, 0, 1, 1], [], []>} : vector<2x32xbf16>, vector<32x32xbf16>, vector<2x32xf32> -> vector<2x32xf32>
    %289 = vector.broadcast %11 : vector<1x32xf32> to vector<2x32xf32>
    %290 = arith.addf %288, %289 : vector<2x32xf32>
    %291 = arith.addf %277, %290 : vector<2x32xf32>
    %292 = vector.broadcast %58 : f32 to vector<2x32xf32>
    %293 = arith.mulf %292, %291 : vector<2x32xf32>
    %294 = arith.addf %235, %293 : vector<2x32xf32>
    %c1_i32_86 = arith.constant 1 : i32
    %c2_i32_87 = arith.constant 2 : i32
    %295 = arith.muli %c1_i32_86, %c2_i32_87 : i32
    %296 = arith.index_cast %295 : i32 to index
    %c0_88 = arith.constant 0 : index
    %297 = vector.load %arg18[%296, %c0_88] : memref<14x96xf32, #tpu.memory_space<vmem>>, vector<2x96xf32>
    %298 = arith.truncf %294 : vector<2x32xf32> to vector<2x32xbf16>
    %cst_89 = arith.constant dense<0.000000e+00> : vector<2x96xf32>
    %299 = tpu.matmul %298, %5, %cst_89 {dimension_numbers = #tpu.dot_dimension_numbers<[1], [0], [0], [1], [0, 0, 1, 1], [], []>} : vector<2x32xbf16>, vector<32x96xbf16>, vector<2x96xf32> -> vector<2x96xf32>
    %300 = vector.broadcast %7 : vector<1x96xf32> to vector<2x96xf32>
    %301 = arith.addf %299, %300 : vector<2x96xf32>
    %302 = vector.extract_strided_slice %297 {offsets = [0, 0], sizes = [2, 32], strides = [1, 1]} : vector<2x96xf32> to vector<2x32xf32>
    %303 = vector.extract_strided_slice %301 {offsets = [0, 0], sizes = [2, 32], strides = [1, 1]} : vector<2x96xf32> to vector<2x32xf32>
    %304 = arith.addf %302, %303 : vector<2x32xf32>
    %305 = arith.negf %304 : vector<2x32xf32>
    %306 = math.exp %305 : vector<2x32xf32>
    %cst_90 = arith.constant 1.000000e+00 : f32
    %307 = vector.broadcast %cst_90 : f32 to vector<2x32xf32>
    %308 = arith.addf %307, %306 : vector<2x32xf32>
    %309 = arith.divf %307, %308 : vector<2x32xf32>
    %310 = vector.extract_strided_slice %297 {offsets = [0, 32], sizes = [2, 32], strides = [1, 1]} : vector<2x96xf32> to vector<2x32xf32>
    %311 = vector.extract_strided_slice %301 {offsets = [0, 32], sizes = [2, 32], strides = [1, 1]} : vector<2x96xf32> to vector<2x32xf32>
    %312 = arith.addf %310, %311 : vector<2x32xf32>
    %313 = arith.negf %312 : vector<2x32xf32>
    %314 = math.exp %313 : vector<2x32xf32>
    %cst_91 = arith.constant 1.000000e+00 : f32
    %315 = vector.broadcast %cst_91 : f32 to vector<2x32xf32>
    %316 = arith.addf %315, %314 : vector<2x32xf32>
    %317 = arith.divf %315, %316 : vector<2x32xf32>
    %318 = vector.extract_strided_slice %297 {offsets = [0, 64], sizes = [2, 32], strides = [1, 1]} : vector<2x96xf32> to vector<2x32xf32>
    %319 = vector.extract_strided_slice %301 {offsets = [0, 64], sizes = [2, 32], strides = [1, 1]} : vector<2x96xf32> to vector<2x32xf32>
    %320 = arith.mulf %309, %319 : vector<2x32xf32>
    %321 = arith.addf %318, %320 : vector<2x32xf32>
    %322 = math.tanh %321 : vector<2x32xf32>
    %cst_92 = arith.constant 1.000000e+00 : f32
    %323 = vector.broadcast %cst_92 : f32 to vector<2x32xf32>
    %324 = arith.subf %323, %317 : vector<2x32xf32>
    %325 = arith.mulf %324, %322 : vector<2x32xf32>
    %326 = arith.mulf %317, %294 : vector<2x32xf32>
    %327 = arith.addf %325, %326 : vector<2x32xf32>
    %328 = arith.addi %0, %c1_i32_86 : i32
    %329 = arith.index_cast %328 : i32 to index
    %330 = memref.load %arg1[%329] : memref<7xf32, #tpu.memory_space<smem>>
    %331 = arith.index_cast %328 : i32 to index
    %332 = memref.load %arg2[%331] : memref<7xf32, #tpu.memory_space<smem>>
    %333 = arith.index_cast %328 : i32 to index
    %334 = memref.load %arg3[%333] : memref<7xf32, #tpu.memory_space<smem>>
    %c0_i32_93 = arith.constant 0 : i32
    %335 = arith.truncf %327 : vector<2x32xf32> to vector<2x32xbf16>
    %cst_94 = arith.constant dense<0.000000e+00> : vector<2x32xf32>
    %336 = tpu.matmul %335, %8, %cst_94 {dimension_numbers = #tpu.dot_dimension_numbers<[1], [0], [0], [1], [0, 0, 1, 1], [], []>} : vector<2x32xbf16>, vector<32x32xbf16>, vector<2x32xf32> -> vector<2x32xf32>
    %337 = vector.broadcast %9 : vector<1x32xf32> to vector<2x32xf32>
    %338 = arith.addf %336, %337 : vector<2x32xf32>
    %cst_95 = arith.constant 0.000000e+00 : f32
    %339 = vector.broadcast %cst_95 : f32 to vector<2x32xf32>
    %340 = arith.maximumf %338, %339 : vector<2x32xf32>
    %341 = arith.truncf %340 : vector<2x32xf32> to vector<2x32xbf16>
    %cst_96 = arith.constant dense<0.000000e+00> : vector<2x32xf32>
    %342 = tpu.matmul %341, %10, %cst_96 {dimension_numbers = #tpu.dot_dimension_numbers<[1], [0], [0], [1], [0, 0, 1, 1], [], []>} : vector<2x32xbf16>, vector<32x32xbf16>, vector<2x32xf32> -> vector<2x32xf32>
    %343 = vector.broadcast %11 : vector<1x32xf32> to vector<2x32xf32>
    %344 = arith.addf %342, %343 : vector<2x32xf32>
    %345 = vector.broadcast %332 : f32 to vector<2x32xf32>
    %346 = arith.mulf %345, %344 : vector<2x32xf32>
    %347 = arith.addf %327, %346 : vector<2x32xf32>
    %348 = arith.truncf %347 : vector<2x32xf32> to vector<2x32xbf16>
    %cst_97 = arith.constant dense<0.000000e+00> : vector<2x32xf32>
    %349 = tpu.matmul %348, %8, %cst_97 {dimension_numbers = #tpu.dot_dimension_numbers<[1], [0], [0], [1], [0, 0, 1, 1], [], []>} : vector<2x32xbf16>, vector<32x32xbf16>, vector<2x32xf32> -> vector<2x32xf32>
    %350 = vector.broadcast %9 : vector<1x32xf32> to vector<2x32xf32>
    %351 = arith.addf %349, %350 : vector<2x32xf32>
    %cst_98 = arith.constant 0.000000e+00 : f32
    %352 = vector.broadcast %cst_98 : f32 to vector<2x32xf32>
    %353 = arith.maximumf %351, %352 : vector<2x32xf32>
    %354 = arith.truncf %353 : vector<2x32xf32> to vector<2x32xbf16>
    %cst_99 = arith.constant dense<0.000000e+00> : vector<2x32xf32>
    %355 = tpu.matmul %354, %10, %cst_99 {dimension_numbers = #tpu.dot_dimension_numbers<[1], [0], [0], [1], [0, 0, 1, 1], [], []>} : vector<2x32xbf16>, vector<32x32xbf16>, vector<2x32xf32> -> vector<2x32xf32>
    %356 = vector.broadcast %11 : vector<1x32xf32> to vector<2x32xf32>
    %357 = arith.addf %355, %356 : vector<2x32xf32>
    %cst_100 = arith.constant 2.000000e+00 : f32
    %358 = vector.broadcast %cst_100 : f32 to vector<2x32xf32>
    %359 = arith.mulf %358, %357 : vector<2x32xf32>
    %360 = arith.addf %344, %359 : vector<2x32xf32>
    %361 = vector.broadcast %332 : f32 to vector<2x32xf32>
    %362 = arith.mulf %361, %357 : vector<2x32xf32>
    %363 = arith.addf %327, %362 : vector<2x32xf32>
    %364 = arith.truncf %363 : vector<2x32xf32> to vector<2x32xbf16>
    %cst_101 = arith.constant dense<0.000000e+00> : vector<2x32xf32>
    %365 = tpu.matmul %364, %8, %cst_101 {dimension_numbers = #tpu.dot_dimension_numbers<[1], [0], [0], [1], [0, 0, 1, 1], [], []>} : vector<2x32xbf16>, vector<32x32xbf16>, vector<2x32xf32> -> vector<2x32xf32>
    %366 = vector.broadcast %9 : vector<1x32xf32> to vector<2x32xf32>
    %367 = arith.addf %365, %366 : vector<2x32xf32>
    %cst_102 = arith.constant 0.000000e+00 : f32
    %368 = vector.broadcast %cst_102 : f32 to vector<2x32xf32>
    %369 = arith.maximumf %367, %368 : vector<2x32xf32>
    %370 = arith.truncf %369 : vector<2x32xf32> to vector<2x32xbf16>
    %cst_103 = arith.constant dense<0.000000e+00> : vector<2x32xf32>
    %371 = tpu.matmul %370, %10, %cst_103 {dimension_numbers = #tpu.dot_dimension_numbers<[1], [0], [0], [1], [0, 0, 1, 1], [], []>} : vector<2x32xbf16>, vector<32x32xbf16>, vector<2x32xf32> -> vector<2x32xf32>
    %372 = vector.broadcast %11 : vector<1x32xf32> to vector<2x32xf32>
    %373 = arith.addf %371, %372 : vector<2x32xf32>
    %cst_104 = arith.constant 2.000000e+00 : f32
    %374 = vector.broadcast %cst_104 : f32 to vector<2x32xf32>
    %375 = arith.mulf %374, %373 : vector<2x32xf32>
    %376 = arith.addf %360, %375 : vector<2x32xf32>
    %377 = vector.broadcast %330 : f32 to vector<2x32xf32>
    %378 = arith.mulf %377, %373 : vector<2x32xf32>
    %379 = arith.addf %327, %378 : vector<2x32xf32>
    %380 = arith.truncf %379 : vector<2x32xf32> to vector<2x32xbf16>
    %cst_105 = arith.constant dense<0.000000e+00> : vector<2x32xf32>
    %381 = tpu.matmul %380, %8, %cst_105 {dimension_numbers = #tpu.dot_dimension_numbers<[1], [0], [0], [1], [0, 0, 1, 1], [], []>} : vector<2x32xbf16>, vector<32x32xbf16>, vector<2x32xf32> -> vector<2x32xf32>
    %382 = vector.broadcast %9 : vector<1x32xf32> to vector<2x32xf32>
    %383 = arith.addf %381, %382 : vector<2x32xf32>
    %cst_106 = arith.constant 0.000000e+00 : f32
    %384 = vector.broadcast %cst_106 : f32 to vector<2x32xf32>
    %385 = arith.maximumf %383, %384 : vector<2x32xf32>
    %386 = arith.truncf %385 : vector<2x32xf32> to vector<2x32xbf16>
    %cst_107 = arith.constant dense<0.000000e+00> : vector<2x32xf32>
    %387 = tpu.matmul %386, %10, %cst_107 {dimension_numbers = #tpu.dot_dimension_numbers<[1], [0], [0], [1], [0, 0, 1, 1], [], []>} : vector<2x32xbf16>, vector<32x32xbf16>, vector<2x32xf32> -> vector<2x32xf32>
    %388 = vector.broadcast %11 : vector<1x32xf32> to vector<2x32xf32>
    %389 = arith.addf %387, %388 : vector<2x32xf32>
    %390 = arith.addf %376, %389 : vector<2x32xf32>
    %391 = vector.broadcast %334 : f32 to vector<2x32xf32>
    %392 = arith.mulf %391, %390 : vector<2x32xf32>
    %393 = arith.addf %327, %392 : vector<2x32xf32>
    %c1_i32_108 = arith.constant 1 : i32
    %394 = arith.truncf %393 : vector<2x32xf32> to vector<2x32xbf16>
    %cst_109 = arith.constant dense<0.000000e+00> : vector<2x32xf32>
    %395 = tpu.matmul %394, %8, %cst_109 {dimension_numbers = #tpu.dot_dimension_numbers<[1], [0], [0], [1], [0, 0, 1, 1], [], []>} : vector<2x32xbf16>, vector<32x32xbf16>, vector<2x32xf32> -> vector<2x32xf32>
    %396 = vector.broadcast %9 : vector<1x32xf32> to vector<2x32xf32>
    %397 = arith.addf %395, %396 : vector<2x32xf32>
    %cst_110 = arith.constant 0.000000e+00 : f32
    %398 = vector.broadcast %cst_110 : f32 to vector<2x32xf32>
    %399 = arith.maximumf %397, %398 : vector<2x32xf32>
    %400 = arith.truncf %399 : vector<2x32xf32> to vector<2x32xbf16>
    %cst_111 = arith.constant dense<0.000000e+00> : vector<2x32xf32>
    %401 = tpu.matmul %400, %10, %cst_111 {dimension_numbers = #tpu.dot_dimension_numbers<[1], [0], [0], [1], [0, 0, 1, 1], [], []>} : vector<2x32xbf16>, vector<32x32xbf16>, vector<2x32xf32> -> vector<2x32xf32>
    %402 = vector.broadcast %11 : vector<1x32xf32> to vector<2x32xf32>
    %403 = arith.addf %401, %402 : vector<2x32xf32>
    %404 = vector.broadcast %332 : f32 to vector<2x32xf32>
    %405 = arith.mulf %404, %403 : vector<2x32xf32>
    %406 = arith.addf %393, %405 : vector<2x32xf32>
    %407 = arith.truncf %406 : vector<2x32xf32> to vector<2x32xbf16>
    %cst_112 = arith.constant dense<0.000000e+00> : vector<2x32xf32>
    %408 = tpu.matmul %407, %8, %cst_112 {dimension_numbers = #tpu.dot_dimension_numbers<[1], [0], [0], [1], [0, 0, 1, 1], [], []>} : vector<2x32xbf16>, vector<32x32xbf16>, vector<2x32xf32> -> vector<2x32xf32>
    %409 = vector.broadcast %9 : vector<1x32xf32> to vector<2x32xf32>
    %410 = arith.addf %408, %409 : vector<2x32xf32>
    %cst_113 = arith.constant 0.000000e+00 : f32
    %411 = vector.broadcast %cst_113 : f32 to vector<2x32xf32>
    %412 = arith.maximumf %410, %411 : vector<2x32xf32>
    %413 = arith.truncf %412 : vector<2x32xf32> to vector<2x32xbf16>
    %cst_114 = arith.constant dense<0.000000e+00> : vector<2x32xf32>
    %414 = tpu.matmul %413, %10, %cst_114 {dimension_numbers = #tpu.dot_dimension_numbers<[1], [0], [0], [1], [0, 0, 1, 1], [], []>} : vector<2x32xbf16>, vector<32x32xbf16>, vector<2x32xf32> -> vector<2x32xf32>
    %415 = vector.broadcast %11 : vector<1x32xf32> to vector<2x32xf32>
    %416 = arith.addf %414, %415 : vector<2x32xf32>
    %cst_115 = arith.constant 2.000000e+00 : f32
    %417 = vector.broadcast %cst_115 : f32 to vector<2x32xf32>
    %418 = arith.mulf %417, %416 : vector<2x32xf32>
    %419 = arith.addf %403, %418 : vector<2x32xf32>
    %420 = vector.broadcast %332 : f32 to vector<2x32xf32>
    %421 = arith.mulf %420, %416 : vector<2x32xf32>
    %422 = arith.addf %393, %421 : vector<2x32xf32>
    %423 = arith.truncf %422 : vector<2x32xf32> to vector<2x32xbf16>
    %cst_116 = arith.constant dense<0.000000e+00> : vector<2x32xf32>
    %424 = tpu.matmul %423, %8, %cst_116 {dimension_numbers = #tpu.dot_dimension_numbers<[1], [0], [0], [1], [0, 0, 1, 1], [], []>} : vector<2x32xbf16>, vector<32x32xbf16>, vector<2x32xf32> -> vector<2x32xf32>
    %425 = vector.broadcast %9 : vector<1x32xf32> to vector<2x32xf32>
    %426 = arith.addf %424, %425 : vector<2x32xf32>
    %cst_117 = arith.constant 0.000000e+00 : f32
    %427 = vector.broadcast %cst_117 : f32 to vector<2x32xf32>
    %428 = arith.maximumf %426, %427 : vector<2x32xf32>
    %429 = arith.truncf %428 : vector<2x32xf32> to vector<2x32xbf16>
    %cst_118 = arith.constant dense<0.000000e+00> : vector<2x32xf32>
    %430 = tpu.matmul %429, %10, %cst_118 {dimension_numbers = #tpu.dot_dimension_numbers<[1], [0], [0], [1], [0, 0, 1, 1], [], []>} : vector<2x32xbf16>, vector<32x32xbf16>, vector<2x32xf32> -> vector<2x32xf32>
    %431 = vector.broadcast %11 : vector<1x32xf32> to vector<2x32xf32>
    %432 = arith.addf %430, %431 : vector<2x32xf32>
    %cst_119 = arith.constant 2.000000e+00 : f32
    %433 = vector.broadcast %cst_119 : f32 to vector<2x32xf32>
    %434 = arith.mulf %433, %432 : vector<2x32xf32>
    %435 = arith.addf %419, %434 : vector<2x32xf32>
    %436 = vector.broadcast %330 : f32 to vector<2x32xf32>
    %437 = arith.mulf %436, %432 : vector<2x32xf32>
    %438 = arith.addf %393, %437 : vector<2x32xf32>
    %439 = arith.truncf %438 : vector<2x32xf32> to vector<2x32xbf16>
    %cst_120 = arith.constant dense<0.000000e+00> : vector<2x32xf32>
    %440 = tpu.matmul %439, %8, %cst_120 {dimension_numbers = #tpu.dot_dimension_numbers<[1], [0], [0], [1], [0, 0, 1, 1], [], []>} : vector<2x32xbf16>, vector<32x32xbf16>, vector<2x32xf32> -> vector<2x32xf32>
    %441 = vector.broadcast %9 : vector<1x32xf32> to vector<2x32xf32>
    %442 = arith.addf %440, %441 : vector<2x32xf32>
    %cst_121 = arith.constant 0.000000e+00 : f32
    %443 = vector.broadcast %cst_121 : f32 to vector<2x32xf32>
    %444 = arith.maximumf %442, %443 : vector<2x32xf32>
    %445 = arith.truncf %444 : vector<2x32xf32> to vector<2x32xbf16>
    %cst_122 = arith.constant dense<0.000000e+00> : vector<2x32xf32>
    %446 = tpu.matmul %445, %10, %cst_122 {dimension_numbers = #tpu.dot_dimension_numbers<[1], [0], [0], [1], [0, 0, 1, 1], [], []>} : vector<2x32xbf16>, vector<32x32xbf16>, vector<2x32xf32> -> vector<2x32xf32>
    %447 = vector.broadcast %11 : vector<1x32xf32> to vector<2x32xf32>
    %448 = arith.addf %446, %447 : vector<2x32xf32>
    %449 = arith.addf %435, %448 : vector<2x32xf32>
    %450 = vector.broadcast %334 : f32 to vector<2x32xf32>
    %451 = arith.mulf %450, %449 : vector<2x32xf32>
    %452 = arith.addf %393, %451 : vector<2x32xf32>
    %c2_i32_123 = arith.constant 2 : i32
    %453 = arith.truncf %452 : vector<2x32xf32> to vector<2x32xbf16>
    %cst_124 = arith.constant dense<0.000000e+00> : vector<2x32xf32>
    %454 = tpu.matmul %453, %8, %cst_124 {dimension_numbers = #tpu.dot_dimension_numbers<[1], [0], [0], [1], [0, 0, 1, 1], [], []>} : vector<2x32xbf16>, vector<32x32xbf16>, vector<2x32xf32> -> vector<2x32xf32>
    %455 = vector.broadcast %9 : vector<1x32xf32> to vector<2x32xf32>
    %456 = arith.addf %454, %455 : vector<2x32xf32>
    %cst_125 = arith.constant 0.000000e+00 : f32
    %457 = vector.broadcast %cst_125 : f32 to vector<2x32xf32>
    %458 = arith.maximumf %456, %457 : vector<2x32xf32>
    %459 = arith.truncf %458 : vector<2x32xf32> to vector<2x32xbf16>
    %cst_126 = arith.constant dense<0.000000e+00> : vector<2x32xf32>
    %460 = tpu.matmul %459, %10, %cst_126 {dimension_numbers = #tpu.dot_dimension_numbers<[1], [0], [0], [1], [0, 0, 1, 1], [], []>} : vector<2x32xbf16>, vector<32x32xbf16>, vector<2x32xf32> -> vector<2x32xf32>
    %461 = vector.broadcast %11 : vector<1x32xf32> to vector<2x32xf32>
    %462 = arith.addf %460, %461 : vector<2x32xf32>
    %463 = vector.broadcast %332 : f32 to vector<2x32xf32>
    %464 = arith.mulf %463, %462 : vector<2x32xf32>
    %465 = arith.addf %452, %464 : vector<2x32xf32>
    %466 = arith.truncf %465 : vector<2x32xf32> to vector<2x32xbf16>
    %cst_127 = arith.constant dense<0.000000e+00> : vector<2x32xf32>
    %467 = tpu.matmul %466, %8, %cst_127 {dimension_numbers = #tpu.dot_dimension_numbers<[1], [0], [0], [1], [0, 0, 1, 1], [], []>} : vector<2x32xbf16>, vector<32x32xbf16>, vector<2x32xf32> -> vector<2x32xf32>
    %468 = vector.broadcast %9 : vector<1x32xf32> to vector<2x32xf32>
    %469 = arith.addf %467, %468 : vector<2x32xf32>
    %cst_128 = arith.constant 0.000000e+00 : f32
    %470 = vector.broadcast %cst_128 : f32 to vector<2x32xf32>
    %471 = arith.maximumf %469, %470 : vector<2x32xf32>
    %472 = arith.truncf %471 : vector<2x32xf32> to vector<2x32xbf16>
    %cst_129 = arith.constant dense<0.000000e+00> : vector<2x32xf32>
    %473 = tpu.matmul %472, %10, %cst_129 {dimension_numbers = #tpu.dot_dimension_numbers<[1], [0], [0], [1], [0, 0, 1, 1], [], []>} : vector<2x32xbf16>, vector<32x32xbf16>, vector<2x32xf32> -> vector<2x32xf32>
    %474 = vector.broadcast %11 : vector<1x32xf32> to vector<2x32xf32>
    %475 = arith.addf %473, %474 : vector<2x32xf32>
    %cst_130 = arith.constant 2.000000e+00 : f32
    %476 = vector.broadcast %cst_130 : f32 to vector<2x32xf32>
    %477 = arith.mulf %476, %475 : vector<2x32xf32>
    %478 = arith.addf %462, %477 : vector<2x32xf32>
    %479 = vector.broadcast %332 : f32 to vector<2x32xf32>
    %480 = arith.mulf %479, %475 : vector<2x32xf32>
    %481 = arith.addf %452, %480 : vector<2x32xf32>
    %482 = arith.truncf %481 : vector<2x32xf32> to vector<2x32xbf16>
    %cst_131 = arith.constant dense<0.000000e+00> : vector<2x32xf32>
    %483 = tpu.matmul %482, %8, %cst_131 {dimension_numbers = #tpu.dot_dimension_numbers<[1], [0], [0], [1], [0, 0, 1, 1], [], []>} : vector<2x32xbf16>, vector<32x32xbf16>, vector<2x32xf32> -> vector<2x32xf32>
    %484 = vector.broadcast %9 : vector<1x32xf32> to vector<2x32xf32>
    %485 = arith.addf %483, %484 : vector<2x32xf32>
    %cst_132 = arith.constant 0.000000e+00 : f32
    %486 = vector.broadcast %cst_132 : f32 to vector<2x32xf32>
    %487 = arith.maximumf %485, %486 : vector<2x32xf32>
    %488 = arith.truncf %487 : vector<2x32xf32> to vector<2x32xbf16>
    %cst_133 = arith.constant dense<0.000000e+00> : vector<2x32xf32>
    %489 = tpu.matmul %488, %10, %cst_133 {dimension_numbers = #tpu.dot_dimension_numbers<[1], [0], [0], [1], [0, 0, 1, 1], [], []>} : vector<2x32xbf16>, vector<32x32xbf16>, vector<2x32xf32> -> vector<2x32xf32>
    %490 = vector.broadcast %11 : vector<1x32xf32> to vector<2x32xf32>
    %491 = arith.addf %489, %490 : vector<2x32xf32>
    %cst_134 = arith.constant 2.000000e+00 : f32
    %492 = vector.broadcast %cst_134 : f32 to vector<2x32xf32>
    %493 = arith.mulf %492, %491 : vector<2x32xf32>
    %494 = arith.addf %478, %493 : vector<2x32xf32>
    %495 = vector.broadcast %330 : f32 to vector<2x32xf32>
    %496 = arith.mulf %495, %491 : vector<2x32xf32>
    %497 = arith.addf %452, %496 : vector<2x32xf32>
    %498 = arith.truncf %497 : vector<2x32xf32> to vector<2x32xbf16>
    %cst_135 = arith.constant dense<0.000000e+00> : vector<2x32xf32>
    %499 = tpu.matmul %498, %8, %cst_135 {dimension_numbers = #tpu.dot_dimension_numbers<[1], [0], [0], [1], [0, 0, 1, 1], [], []>} : vector<2x32xbf16>, vector<32x32xbf16>, vector<2x32xf32> -> vector<2x32xf32>
    %500 = vector.broadcast %9 : vector<1x32xf32> to vector<2x32xf32>
    %501 = arith.addf %499, %500 : vector<2x32xf32>
    %cst_136 = arith.constant 0.000000e+00 : f32
    %502 = vector.broadcast %cst_136 : f32 to vector<2x32xf32>
    %503 = arith.maximumf %501, %502 : vector<2x32xf32>
    %504 = arith.truncf %503 : vector<2x32xf32> to vector<2x32xbf16>
    %cst_137 = arith.constant dense<0.000000e+00> : vector<2x32xf32>
    %505 = tpu.matmul %504, %10, %cst_137 {dimension_numbers = #tpu.dot_dimension_numbers<[1], [0], [0], [1], [0, 0, 1, 1], [], []>} : vector<2x32xbf16>, vector<32x32xbf16>, vector<2x32xf32> -> vector<2x32xf32>
    %506 = vector.broadcast %11 : vector<1x32xf32> to vector<2x32xf32>
    %507 = arith.addf %505, %506 : vector<2x32xf32>
    %508 = arith.addf %494, %507 : vector<2x32xf32>
    %509 = vector.broadcast %334 : f32 to vector<2x32xf32>
    %510 = arith.mulf %509, %508 : vector<2x32xf32>
    %511 = arith.addf %452, %510 : vector<2x32xf32>
    %c3_i32_138 = arith.constant 3 : i32
    %512 = arith.truncf %511 : vector<2x32xf32> to vector<2x32xbf16>
    %cst_139 = arith.constant dense<0.000000e+00> : vector<2x32xf32>
    %513 = tpu.matmul %512, %8, %cst_139 {dimension_numbers = #tpu.dot_dimension_numbers<[1], [0], [0], [1], [0, 0, 1, 1], [], []>} : vector<2x32xbf16>, vector<32x32xbf16>, vector<2x32xf32> -> vector<2x32xf32>
    %514 = vector.broadcast %9 : vector<1x32xf32> to vector<2x32xf32>
    %515 = arith.addf %513, %514 : vector<2x32xf32>
    %cst_140 = arith.constant 0.000000e+00 : f32
    %516 = vector.broadcast %cst_140 : f32 to vector<2x32xf32>
    %517 = arith.maximumf %515, %516 : vector<2x32xf32>
    %518 = arith.truncf %517 : vector<2x32xf32> to vector<2x32xbf16>
    %cst_141 = arith.constant dense<0.000000e+00> : vector<2x32xf32>
    %519 = tpu.matmul %518, %10, %cst_141 {dimension_numbers = #tpu.dot_dimension_numbers<[1], [0], [0], [1], [0, 0, 1, 1], [], []>} : vector<2x32xbf16>, vector<32x32xbf16>, vector<2x32xf32> -> vector<2x32xf32>
    %520 = vector.broadcast %11 : vector<1x32xf32> to vector<2x32xf32>
    %521 = arith.addf %519, %520 : vector<2x32xf32>
    %522 = vector.broadcast %332 : f32 to vector<2x32xf32>
    %523 = arith.mulf %522, %521 : vector<2x32xf32>
    %524 = arith.addf %511, %523 : vector<2x32xf32>
    %525 = arith.truncf %524 : vector<2x32xf32> to vector<2x32xbf16>
    %cst_142 = arith.constant dense<0.000000e+00> : vector<2x32xf32>
    %526 = tpu.matmul %525, %8, %cst_142 {dimension_numbers = #tpu.dot_dimension_numbers<[1], [0], [0], [1], [0, 0, 1, 1], [], []>} : vector<2x32xbf16>, vector<32x32xbf16>, vector<2x32xf32> -> vector<2x32xf32>
    %527 = vector.broadcast %9 : vector<1x32xf32> to vector<2x32xf32>
    %528 = arith.addf %526, %527 : vector<2x32xf32>
    %cst_143 = arith.constant 0.000000e+00 : f32
    %529 = vector.broadcast %cst_143 : f32 to vector<2x32xf32>
    %530 = arith.maximumf %528, %529 : vector<2x32xf32>
    %531 = arith.truncf %530 : vector<2x32xf32> to vector<2x32xbf16>
    %cst_144 = arith.constant dense<0.000000e+00> : vector<2x32xf32>
    %532 = tpu.matmul %531, %10, %cst_144 {dimension_numbers = #tpu.dot_dimension_numbers<[1], [0], [0], [1], [0, 0, 1, 1], [], []>} : vector<2x32xbf16>, vector<32x32xbf16>, vector<2x32xf32> -> vector<2x32xf32>
    %533 = vector.broadcast %11 : vector<1x32xf32> to vector<2x32xf32>
    %534 = arith.addf %532, %533 : vector<2x32xf32>
    %cst_145 = arith.constant 2.000000e+00 : f32
    %535 = vector.broadcast %cst_145 : f32 to vector<2x32xf32>
    %536 = arith.mulf %535, %534 : vector<2x32xf32>
    %537 = arith.addf %521, %536 : vector<2x32xf32>
    %538 = vector.broadcast %332 : f32 to vector<2x32xf32>
    %539 = arith.mulf %538, %534 : vector<2x32xf32>
    %540 = arith.addf %511, %539 : vector<2x32xf32>
    %541 = arith.truncf %540 : vector<2x32xf32> to vector<2x32xbf16>
    %cst_146 = arith.constant dense<0.000000e+00> : vector<2x32xf32>
    %542 = tpu.matmul %541, %8, %cst_146 {dimension_numbers = #tpu.dot_dimension_numbers<[1], [0], [0], [1], [0, 0, 1, 1], [], []>} : vector<2x32xbf16>, vector<32x32xbf16>, vector<2x32xf32> -> vector<2x32xf32>
    %543 = vector.broadcast %9 : vector<1x32xf32> to vector<2x32xf32>
    %544 = arith.addf %542, %543 : vector<2x32xf32>
    %cst_147 = arith.constant 0.000000e+00 : f32
    %545 = vector.broadcast %cst_147 : f32 to vector<2x32xf32>
    %546 = arith.maximumf %544, %545 : vector<2x32xf32>
    %547 = arith.truncf %546 : vector<2x32xf32> to vector<2x32xbf16>
    %cst_148 = arith.constant dense<0.000000e+00> : vector<2x32xf32>
    %548 = tpu.matmul %547, %10, %cst_148 {dimension_numbers = #tpu.dot_dimension_numbers<[1], [0], [0], [1], [0, 0, 1, 1], [], []>} : vector<2x32xbf16>, vector<32x32xbf16>, vector<2x32xf32> -> vector<2x32xf32>
    %549 = vector.broadcast %11 : vector<1x32xf32> to vector<2x32xf32>
    %550 = arith.addf %548, %549 : vector<2x32xf32>
    %cst_149 = arith.constant 2.000000e+00 : f32
    %551 = vector.broadcast %cst_149 : f32 to vector<2x32xf32>
    %552 = arith.mulf %551, %550 : vector<2x32xf32>
    %553 = arith.addf %537, %552 : vector<2x32xf32>
    %554 = vector.broadcast %330 : f32 to vector<2x32xf32>
    %555 = arith.mulf %554, %550 : vector<2x32xf32>
    %556 = arith.addf %511, %555 : vector<2x32xf32>
    %557 = arith.truncf %556 : vector<2x32xf32> to vector<2x32xbf16>
    %cst_150 = arith.constant dense<0.000000e+00> : vector<2x32xf32>
    %558 = tpu.matmul %557, %8, %cst_150 {dimension_numbers = #tpu.dot_dimension_numbers<[1], [0], [0], [1], [0, 0, 1, 1], [], []>} : vector<2x32xbf16>, vector<32x32xbf16>, vector<2x32xf32> -> vector<2x32xf32>
    %559 = vector.broadcast %9 : vector<1x32xf32> to vector<2x32xf32>
    %560 = arith.addf %558, %559 : vector<2x32xf32>
    %cst_151 = arith.constant 0.000000e+00 : f32
    %561 = vector.broadcast %cst_151 : f32 to vector<2x32xf32>
    %562 = arith.maximumf %560, %561 : vector<2x32xf32>
    %563 = arith.truncf %562 : vector<2x32xf32> to vector<2x32xbf16>
    %cst_152 = arith.constant dense<0.000000e+00> : vector<2x32xf32>
    %564 = tpu.matmul %563, %10, %cst_152 {dimension_numbers = #tpu.dot_dimension_numbers<[1], [0], [0], [1], [0, 0, 1, 1], [], []>} : vector<2x32xbf16>, vector<32x32xbf16>, vector<2x32xf32> -> vector<2x32xf32>
    %565 = vector.broadcast %11 : vector<1x32xf32> to vector<2x32xf32>
    %566 = arith.addf %564, %565 : vector<2x32xf32>
    %567 = arith.addf %553, %566 : vector<2x32xf32>
    %568 = vector.broadcast %334 : f32 to vector<2x32xf32>
    %569 = arith.mulf %568, %567 : vector<2x32xf32>
    %570 = arith.addf %511, %569 : vector<2x32xf32>
    %c2_i32_153 = arith.constant 2 : i32
    %c2_i32_154 = arith.constant 2 : i32
    %571 = arith.muli %c2_i32_153, %c2_i32_154 : i32
    %572 = arith.index_cast %571 : i32 to index
    %c0_155 = arith.constant 0 : index
    %573 = vector.load %arg18[%572, %c0_155] : memref<14x96xf32, #tpu.memory_space<vmem>>, vector<2x96xf32>
    %574 = arith.truncf %570 : vector<2x32xf32> to vector<2x32xbf16>
    %cst_156 = arith.constant dense<0.000000e+00> : vector<2x96xf32>
    %575 = tpu.matmul %574, %5, %cst_156 {dimension_numbers = #tpu.dot_dimension_numbers<[1], [0], [0], [1], [0, 0, 1, 1], [], []>} : vector<2x32xbf16>, vector<32x96xbf16>, vector<2x96xf32> -> vector<2x96xf32>
    %576 = vector.broadcast %7 : vector<1x96xf32> to vector<2x96xf32>
    %577 = arith.addf %575, %576 : vector<2x96xf32>
    %578 = vector.extract_strided_slice %573 {offsets = [0, 0], sizes = [2, 32], strides = [1, 1]} : vector<2x96xf32> to vector<2x32xf32>
    %579 = vector.extract_strided_slice %577 {offsets = [0, 0], sizes = [2, 32], strides = [1, 1]} : vector<2x96xf32> to vector<2x32xf32>
    %580 = arith.addf %578, %579 : vector<2x32xf32>
    %581 = arith.negf %580 : vector<2x32xf32>
    %582 = math.exp %581 : vector<2x32xf32>
    %cst_157 = arith.constant 1.000000e+00 : f32
    %583 = vector.broadcast %cst_157 : f32 to vector<2x32xf32>
    %584 = arith.addf %583, %582 : vector<2x32xf32>
    %585 = arith.divf %583, %584 : vector<2x32xf32>
    %586 = vector.extract_strided_slice %573 {offsets = [0, 32], sizes = [2, 32], strides = [1, 1]} : vector<2x96xf32> to vector<2x32xf32>
    %587 = vector.extract_strided_slice %577 {offsets = [0, 32], sizes = [2, 32], strides = [1, 1]} : vector<2x96xf32> to vector<2x32xf32>
    %588 = arith.addf %586, %587 : vector<2x32xf32>
    %589 = arith.negf %588 : vector<2x32xf32>
    %590 = math.exp %589 : vector<2x32xf32>
    %cst_158 = arith.constant 1.000000e+00 : f32
    %591 = vector.broadcast %cst_158 : f32 to vector<2x32xf32>
    %592 = arith.addf %591, %590 : vector<2x32xf32>
    %593 = arith.divf %591, %592 : vector<2x32xf32>
    %594 = vector.extract_strided_slice %573 {offsets = [0, 64], sizes = [2, 32], strides = [1, 1]} : vector<2x96xf32> to vector<2x32xf32>
    %595 = vector.extract_strided_slice %577 {offsets = [0, 64], sizes = [2, 32], strides = [1, 1]} : vector<2x96xf32> to vector<2x32xf32>
    %596 = arith.mulf %585, %595 : vector<2x32xf32>
    %597 = arith.addf %594, %596 : vector<2x32xf32>
    %598 = math.tanh %597 : vector<2x32xf32>
    %cst_159 = arith.constant 1.000000e+00 : f32
    %599 = vector.broadcast %cst_159 : f32 to vector<2x32xf32>
    %600 = arith.subf %599, %593 : vector<2x32xf32>
    %601 = arith.mulf %600, %598 : vector<2x32xf32>
    %602 = arith.mulf %593, %570 : vector<2x32xf32>
    %603 = arith.addf %601, %602 : vector<2x32xf32>
    %604 = arith.addi %0, %c2_i32_153 : i32
    %605 = arith.index_cast %604 : i32 to index
    %606 = memref.load %arg1[%605] : memref<7xf32, #tpu.memory_space<smem>>
    %607 = arith.index_cast %604 : i32 to index
    %608 = memref.load %arg2[%607] : memref<7xf32, #tpu.memory_space<smem>>
    %609 = arith.index_cast %604 : i32 to index
    %610 = memref.load %arg3[%609] : memref<7xf32, #tpu.memory_space<smem>>
    %c0_i32_160 = arith.constant 0 : i32
    %611 = arith.truncf %603 : vector<2x32xf32> to vector<2x32xbf16>
    %cst_161 = arith.constant dense<0.000000e+00> : vector<2x32xf32>
    %612 = tpu.matmul %611, %8, %cst_161 {dimension_numbers = #tpu.dot_dimension_numbers<[1], [0], [0], [1], [0, 0, 1, 1], [], []>} : vector<2x32xbf16>, vector<32x32xbf16>, vector<2x32xf32> -> vector<2x32xf32>
    %613 = vector.broadcast %9 : vector<1x32xf32> to vector<2x32xf32>
    %614 = arith.addf %612, %613 : vector<2x32xf32>
    %cst_162 = arith.constant 0.000000e+00 : f32
    %615 = vector.broadcast %cst_162 : f32 to vector<2x32xf32>
    %616 = arith.maximumf %614, %615 : vector<2x32xf32>
    %617 = arith.truncf %616 : vector<2x32xf32> to vector<2x32xbf16>
    %cst_163 = arith.constant dense<0.000000e+00> : vector<2x32xf32>
    %618 = tpu.matmul %617, %10, %cst_163 {dimension_numbers = #tpu.dot_dimension_numbers<[1], [0], [0], [1], [0, 0, 1, 1], [], []>} : vector<2x32xbf16>, vector<32x32xbf16>, vector<2x32xf32> -> vector<2x32xf32>
    %619 = vector.broadcast %11 : vector<1x32xf32> to vector<2x32xf32>
    %620 = arith.addf %618, %619 : vector<2x32xf32>
    %621 = vector.broadcast %608 : f32 to vector<2x32xf32>
    %622 = arith.mulf %621, %620 : vector<2x32xf32>
    %623 = arith.addf %603, %622 : vector<2x32xf32>
    %624 = arith.truncf %623 : vector<2x32xf32> to vector<2x32xbf16>
    %cst_164 = arith.constant dense<0.000000e+00> : vector<2x32xf32>
    %625 = tpu.matmul %624, %8, %cst_164 {dimension_numbers = #tpu.dot_dimension_numbers<[1], [0], [0], [1], [0, 0, 1, 1], [], []>} : vector<2x32xbf16>, vector<32x32xbf16>, vector<2x32xf32> -> vector<2x32xf32>
    %626 = vector.broadcast %9 : vector<1x32xf32> to vector<2x32xf32>
    %627 = arith.addf %625, %626 : vector<2x32xf32>
    %cst_165 = arith.constant 0.000000e+00 : f32
    %628 = vector.broadcast %cst_165 : f32 to vector<2x32xf32>
    %629 = arith.maximumf %627, %628 : vector<2x32xf32>
    %630 = arith.truncf %629 : vector<2x32xf32> to vector<2x32xbf16>
    %cst_166 = arith.constant dense<0.000000e+00> : vector<2x32xf32>
    %631 = tpu.matmul %630, %10, %cst_166 {dimension_numbers = #tpu.dot_dimension_numbers<[1], [0], [0], [1], [0, 0, 1, 1], [], []>} : vector<2x32xbf16>, vector<32x32xbf16>, vector<2x32xf32> -> vector<2x32xf32>
    %632 = vector.broadcast %11 : vector<1x32xf32> to vector<2x32xf32>
    %633 = arith.addf %631, %632 : vector<2x32xf32>
    %cst_167 = arith.constant 2.000000e+00 : f32
    %634 = vector.broadcast %cst_167 : f32 to vector<2x32xf32>
    %635 = arith.mulf %634, %633 : vector<2x32xf32>
    %636 = arith.addf %620, %635 : vector<2x32xf32>
    %637 = vector.broadcast %608 : f32 to vector<2x32xf32>
    %638 = arith.mulf %637, %633 : vector<2x32xf32>
    %639 = arith.addf %603, %638 : vector<2x32xf32>
    %640 = arith.truncf %639 : vector<2x32xf32> to vector<2x32xbf16>
    %cst_168 = arith.constant dense<0.000000e+00> : vector<2x32xf32>
    %641 = tpu.matmul %640, %8, %cst_168 {dimension_numbers = #tpu.dot_dimension_numbers<[1], [0], [0], [1], [0, 0, 1, 1], [], []>} : vector<2x32xbf16>, vector<32x32xbf16>, vector<2x32xf32> -> vector<2x32xf32>
    %642 = vector.broadcast %9 : vector<1x32xf32> to vector<2x32xf32>
    %643 = arith.addf %641, %642 : vector<2x32xf32>
    %cst_169 = arith.constant 0.000000e+00 : f32
    %644 = vector.broadcast %cst_169 : f32 to vector<2x32xf32>
    %645 = arith.maximumf %643, %644 : vector<2x32xf32>
    %646 = arith.truncf %645 : vector<2x32xf32> to vector<2x32xbf16>
    %cst_170 = arith.constant dense<0.000000e+00> : vector<2x32xf32>
    %647 = tpu.matmul %646, %10, %cst_170 {dimension_numbers = #tpu.dot_dimension_numbers<[1], [0], [0], [1], [0, 0, 1, 1], [], []>} : vector<2x32xbf16>, vector<32x32xbf16>, vector<2x32xf32> -> vector<2x32xf32>
    %648 = vector.broadcast %11 : vector<1x32xf32> to vector<2x32xf32>
    %649 = arith.addf %647, %648 : vector<2x32xf32>
    %cst_171 = arith.constant 2.000000e+00 : f32
    %650 = vector.broadcast %cst_171 : f32 to vector<2x32xf32>
    %651 = arith.mulf %650, %649 : vector<2x32xf32>
    %652 = arith.addf %636, %651 : vector<2x32xf32>
    %653 = vector.broadcast %606 : f32 to vector<2x32xf32>
    %654 = arith.mulf %653, %649 : vector<2x32xf32>
    %655 = arith.addf %603, %654 : vector<2x32xf32>
    %656 = arith.truncf %655 : vector<2x32xf32> to vector<2x32xbf16>
    %cst_172 = arith.constant dense<0.000000e+00> : vector<2x32xf32>
    %657 = tpu.matmul %656, %8, %cst_172 {dimension_numbers = #tpu.dot_dimension_numbers<[1], [0], [0], [1], [0, 0, 1, 1], [], []>} : vector<2x32xbf16>, vector<32x32xbf16>, vector<2x32xf32> -> vector<2x32xf32>
    %658 = vector.broadcast %9 : vector<1x32xf32> to vector<2x32xf32>
    %659 = arith.addf %657, %658 : vector<2x32xf32>
    %cst_173 = arith.constant 0.000000e+00 : f32
    %660 = vector.broadcast %cst_173 : f32 to vector<2x32xf32>
    %661 = arith.maximumf %659, %660 : vector<2x32xf32>
    %662 = arith.truncf %661 : vector<2x32xf32> to vector<2x32xbf16>
    %cst_174 = arith.constant dense<0.000000e+00> : vector<2x32xf32>
    %663 = tpu.matmul %662, %10, %cst_174 {dimension_numbers = #tpu.dot_dimension_numbers<[1], [0], [0], [1], [0, 0, 1, 1], [], []>} : vector<2x32xbf16>, vector<32x32xbf16>, vector<2x32xf32> -> vector<2x32xf32>
    %664 = vector.broadcast %11 : vector<1x32xf32> to vector<2x32xf32>
    %665 = arith.addf %663, %664 : vector<2x32xf32>
    %666 = arith.addf %652, %665 : vector<2x32xf32>
    %667 = vector.broadcast %610 : f32 to vector<2x32xf32>
    %668 = arith.mulf %667, %666 : vector<2x32xf32>
    %669 = arith.addf %603, %668 : vector<2x32xf32>
    %c1_i32_175 = arith.constant 1 : i32
    %670 = arith.truncf %669 : vector<2x32xf32> to vector<2x32xbf16>
    %cst_176 = arith.constant dense<0.000000e+00> : vector<2x32xf32>
    %671 = tpu.matmul %670, %8, %cst_176 {dimension_numbers = #tpu.dot_dimension_numbers<[1], [0], [0], [1], [0, 0, 1, 1], [], []>} : vector<2x32xbf16>, vector<32x32xbf16>, vector<2x32xf32> -> vector<2x32xf32>
    %672 = vector.broadcast %9 : vector<1x32xf32> to vector<2x32xf32>
    %673 = arith.addf %671, %672 : vector<2x32xf32>
    %cst_177 = arith.constant 0.000000e+00 : f32
    %674 = vector.broadcast %cst_177 : f32 to vector<2x32xf32>
    %675 = arith.maximumf %673, %674 : vector<2x32xf32>
    %676 = arith.truncf %675 : vector<2x32xf32> to vector<2x32xbf16>
    %cst_178 = arith.constant dense<0.000000e+00> : vector<2x32xf32>
    %677 = tpu.matmul %676, %10, %cst_178 {dimension_numbers = #tpu.dot_dimension_numbers<[1], [0], [0], [1], [0, 0, 1, 1], [], []>} : vector<2x32xbf16>, vector<32x32xbf16>, vector<2x32xf32> -> vector<2x32xf32>
    %678 = vector.broadcast %11 : vector<1x32xf32> to vector<2x32xf32>
    %679 = arith.addf %677, %678 : vector<2x32xf32>
    %680 = vector.broadcast %608 : f32 to vector<2x32xf32>
    %681 = arith.mulf %680, %679 : vector<2x32xf32>
    %682 = arith.addf %669, %681 : vector<2x32xf32>
    %683 = arith.truncf %682 : vector<2x32xf32> to vector<2x32xbf16>
    %cst_179 = arith.constant dense<0.000000e+00> : vector<2x32xf32>
    %684 = tpu.matmul %683, %8, %cst_179 {dimension_numbers = #tpu.dot_dimension_numbers<[1], [0], [0], [1], [0, 0, 1, 1], [], []>} : vector<2x32xbf16>, vector<32x32xbf16>, vector<2x32xf32> -> vector<2x32xf32>
    %685 = vector.broadcast %9 : vector<1x32xf32> to vector<2x32xf32>
    %686 = arith.addf %684, %685 : vector<2x32xf32>
    %cst_180 = arith.constant 0.000000e+00 : f32
    %687 = vector.broadcast %cst_180 : f32 to vector<2x32xf32>
    %688 = arith.maximumf %686, %687 : vector<2x32xf32>
    %689 = arith.truncf %688 : vector<2x32xf32> to vector<2x32xbf16>
    %cst_181 = arith.constant dense<0.000000e+00> : vector<2x32xf32>
    %690 = tpu.matmul %689, %10, %cst_181 {dimension_numbers = #tpu.dot_dimension_numbers<[1], [0], [0], [1], [0, 0, 1, 1], [], []>} : vector<2x32xbf16>, vector<32x32xbf16>, vector<2x32xf32> -> vector<2x32xf32>
    %691 = vector.broadcast %11 : vector<1x32xf32> to vector<2x32xf32>
    %692 = arith.addf %690, %691 : vector<2x32xf32>
    %cst_182 = arith.constant 2.000000e+00 : f32
    %693 = vector.broadcast %cst_182 : f32 to vector<2x32xf32>
    %694 = arith.mulf %693, %692 : vector<2x32xf32>
    %695 = arith.addf %679, %694 : vector<2x32xf32>
    %696 = vector.broadcast %608 : f32 to vector<2x32xf32>
    %697 = arith.mulf %696, %692 : vector<2x32xf32>
    %698 = arith.addf %669, %697 : vector<2x32xf32>
    %699 = arith.truncf %698 : vector<2x32xf32> to vector<2x32xbf16>
    %cst_183 = arith.constant dense<0.000000e+00> : vector<2x32xf32>
    %700 = tpu.matmul %699, %8, %cst_183 {dimension_numbers = #tpu.dot_dimension_numbers<[1], [0], [0], [1], [0, 0, 1, 1], [], []>} : vector<2x32xbf16>, vector<32x32xbf16>, vector<2x32xf32> -> vector<2x32xf32>
    %701 = vector.broadcast %9 : vector<1x32xf32> to vector<2x32xf32>
    %702 = arith.addf %700, %701 : vector<2x32xf32>
    %cst_184 = arith.constant 0.000000e+00 : f32
    %703 = vector.broadcast %cst_184 : f32 to vector<2x32xf32>
    %704 = arith.maximumf %702, %703 : vector<2x32xf32>
    %705 = arith.truncf %704 : vector<2x32xf32> to vector<2x32xbf16>
    %cst_185 = arith.constant dense<0.000000e+00> : vector<2x32xf32>
    %706 = tpu.matmul %705, %10, %cst_185 {dimension_numbers = #tpu.dot_dimension_numbers<[1], [0], [0], [1], [0, 0, 1, 1], [], []>} : vector<2x32xbf16>, vector<32x32xbf16>, vector<2x32xf32> -> vector<2x32xf32>
    %707 = vector.broadcast %11 : vector<1x32xf32> to vector<2x32xf32>
    %708 = arith.addf %706, %707 : vector<2x32xf32>
    %cst_186 = arith.constant 2.000000e+00 : f32
    %709 = vector.broadcast %cst_186 : f32 to vector<2x32xf32>
    %710 = arith.mulf %709, %708 : vector<2x32xf32>
    %711 = arith.addf %695, %710 : vector<2x32xf32>
    %712 = vector.broadcast %606 : f32 to vector<2x32xf32>
    %713 = arith.mulf %712, %708 : vector<2x32xf32>
    %714 = arith.addf %669, %713 : vector<2x32xf32>
    %715 = arith.truncf %714 : vector<2x32xf32> to vector<2x32xbf16>
    %cst_187 = arith.constant dense<0.000000e+00> : vector<2x32xf32>
    %716 = tpu.matmul %715, %8, %cst_187 {dimension_numbers = #tpu.dot_dimension_numbers<[1], [0], [0], [1], [0, 0, 1, 1], [], []>} : vector<2x32xbf16>, vector<32x32xbf16>, vector<2x32xf32> -> vector<2x32xf32>
    %717 = vector.broadcast %9 : vector<1x32xf32> to vector<2x32xf32>
    %718 = arith.addf %716, %717 : vector<2x32xf32>
    %cst_188 = arith.constant 0.000000e+00 : f32
    %719 = vector.broadcast %cst_188 : f32 to vector<2x32xf32>
    %720 = arith.maximumf %718, %719 : vector<2x32xf32>
    %721 = arith.truncf %720 : vector<2x32xf32> to vector<2x32xbf16>
    %cst_189 = arith.constant dense<0.000000e+00> : vector<2x32xf32>
    %722 = tpu.matmul %721, %10, %cst_189 {dimension_numbers = #tpu.dot_dimension_numbers<[1], [0], [0], [1], [0, 0, 1, 1], [], []>} : vector<2x32xbf16>, vector<32x32xbf16>, vector<2x32xf32> -> vector<2x32xf32>
    %723 = vector.broadcast %11 : vector<1x32xf32> to vector<2x32xf32>
    %724 = arith.addf %722, %723 : vector<2x32xf32>
    %725 = arith.addf %711, %724 : vector<2x32xf32>
    %726 = vector.broadcast %610 : f32 to vector<2x32xf32>
    %727 = arith.mulf %726, %725 : vector<2x32xf32>
    %728 = arith.addf %669, %727 : vector<2x32xf32>
    %c2_i32_190 = arith.constant 2 : i32
    %729 = arith.truncf %728 : vector<2x32xf32> to vector<2x32xbf16>
    %cst_191 = arith.constant dense<0.000000e+00> : vector<2x32xf32>
    %730 = tpu.matmul %729, %8, %cst_191 {dimension_numbers = #tpu.dot_dimension_numbers<[1], [0], [0], [1], [0, 0, 1, 1], [], []>} : vector<2x32xbf16>, vector<32x32xbf16>, vector<2x32xf32> -> vector<2x32xf32>
    %731 = vector.broadcast %9 : vector<1x32xf32> to vector<2x32xf32>
    %732 = arith.addf %730, %731 : vector<2x32xf32>
    %cst_192 = arith.constant 0.000000e+00 : f32
    %733 = vector.broadcast %cst_192 : f32 to vector<2x32xf32>
    %734 = arith.maximumf %732, %733 : vector<2x32xf32>
    %735 = arith.truncf %734 : vector<2x32xf32> to vector<2x32xbf16>
    %cst_193 = arith.constant dense<0.000000e+00> : vector<2x32xf32>
    %736 = tpu.matmul %735, %10, %cst_193 {dimension_numbers = #tpu.dot_dimension_numbers<[1], [0], [0], [1], [0, 0, 1, 1], [], []>} : vector<2x32xbf16>, vector<32x32xbf16>, vector<2x32xf32> -> vector<2x32xf32>
    %737 = vector.broadcast %11 : vector<1x32xf32> to vector<2x32xf32>
    %738 = arith.addf %736, %737 : vector<2x32xf32>
    %739 = vector.broadcast %608 : f32 to vector<2x32xf32>
    %740 = arith.mulf %739, %738 : vector<2x32xf32>
    %741 = arith.addf %728, %740 : vector<2x32xf32>
    %742 = arith.truncf %741 : vector<2x32xf32> to vector<2x32xbf16>
    %cst_194 = arith.constant dense<0.000000e+00> : vector<2x32xf32>
    %743 = tpu.matmul %742, %8, %cst_194 {dimension_numbers = #tpu.dot_dimension_numbers<[1], [0], [0], [1], [0, 0, 1, 1], [], []>} : vector<2x32xbf16>, vector<32x32xbf16>, vector<2x32xf32> -> vector<2x32xf32>
    %744 = vector.broadcast %9 : vector<1x32xf32> to vector<2x32xf32>
    %745 = arith.addf %743, %744 : vector<2x32xf32>
    %cst_195 = arith.constant 0.000000e+00 : f32
    %746 = vector.broadcast %cst_195 : f32 to vector<2x32xf32>
    %747 = arith.maximumf %745, %746 : vector<2x32xf32>
    %748 = arith.truncf %747 : vector<2x32xf32> to vector<2x32xbf16>
    %cst_196 = arith.constant dense<0.000000e+00> : vector<2x32xf32>
    %749 = tpu.matmul %748, %10, %cst_196 {dimension_numbers = #tpu.dot_dimension_numbers<[1], [0], [0], [1], [0, 0, 1, 1], [], []>} : vector<2x32xbf16>, vector<32x32xbf16>, vector<2x32xf32> -> vector<2x32xf32>
    %750 = vector.broadcast %11 : vector<1x32xf32> to vector<2x32xf32>
    %751 = arith.addf %749, %750 : vector<2x32xf32>
    %cst_197 = arith.constant 2.000000e+00 : f32
    %752 = vector.broadcast %cst_197 : f32 to vector<2x32xf32>
    %753 = arith.mulf %752, %751 : vector<2x32xf32>
    %754 = arith.addf %738, %753 : vector<2x32xf32>
    %755 = vector.broadcast %608 : f32 to vector<2x32xf32>
    %756 = arith.mulf %755, %751 : vector<2x32xf32>
    %757 = arith.addf %728, %756 : vector<2x32xf32>
    %758 = arith.truncf %757 : vector<2x32xf32> to vector<2x32xbf16>
    %cst_198 = arith.constant dense<0.000000e+00> : vector<2x32xf32>
    %759 = tpu.matmul %758, %8, %cst_198 {dimension_numbers = #tpu.dot_dimension_numbers<[1], [0], [0], [1], [0, 0, 1, 1], [], []>} : vector<2x32xbf16>, vector<32x32xbf16>, vector<2x32xf32> -> vector<2x32xf32>
    %760 = vector.broadcast %9 : vector<1x32xf32> to vector<2x32xf32>
    %761 = arith.addf %759, %760 : vector<2x32xf32>
    %cst_199 = arith.constant 0.000000e+00 : f32
    %762 = vector.broadcast %cst_199 : f32 to vector<2x32xf32>
    %763 = arith.maximumf %761, %762 : vector<2x32xf32>
    %764 = arith.truncf %763 : vector<2x32xf32> to vector<2x32xbf16>
    %cst_200 = arith.constant dense<0.000000e+00> : vector<2x32xf32>
    %765 = tpu.matmul %764, %10, %cst_200 {dimension_numbers = #tpu.dot_dimension_numbers<[1], [0], [0], [1], [0, 0, 1, 1], [], []>} : vector<2x32xbf16>, vector<32x32xbf16>, vector<2x32xf32> -> vector<2x32xf32>
    %766 = vector.broadcast %11 : vector<1x32xf32> to vector<2x32xf32>
    %767 = arith.addf %765, %766 : vector<2x32xf32>
    %cst_201 = arith.constant 2.000000e+00 : f32
    %768 = vector.broadcast %cst_201 : f32 to vector<2x32xf32>
    %769 = arith.mulf %768, %767 : vector<2x32xf32>
    %770 = arith.addf %754, %769 : vector<2x32xf32>
    %771 = vector.broadcast %606 : f32 to vector<2x32xf32>
    %772 = arith.mulf %771, %767 : vector<2x32xf32>
    %773 = arith.addf %728, %772 : vector<2x32xf32>
    %774 = arith.truncf %773 : vector<2x32xf32> to vector<2x32xbf16>
    %cst_202 = arith.constant dense<0.000000e+00> : vector<2x32xf32>
    %775 = tpu.matmul %774, %8, %cst_202 {dimension_numbers = #tpu.dot_dimension_numbers<[1], [0], [0], [1], [0, 0, 1, 1], [], []>} : vector<2x32xbf16>, vector<32x32xbf16>, vector<2x32xf32> -> vector<2x32xf32>
    %776 = vector.broadcast %9 : vector<1x32xf32> to vector<2x32xf32>
    %777 = arith.addf %775, %776 : vector<2x32xf32>
    %cst_203 = arith.constant 0.000000e+00 : f32
    %778 = vector.broadcast %cst_203 : f32 to vector<2x32xf32>
    %779 = arith.maximumf %777, %778 : vector<2x32xf32>
    %780 = arith.truncf %779 : vector<2x32xf32> to vector<2x32xbf16>
    %cst_204 = arith.constant dense<0.000000e+00> : vector<2x32xf32>
    %781 = tpu.matmul %780, %10, %cst_204 {dimension_numbers = #tpu.dot_dimension_numbers<[1], [0], [0], [1], [0, 0, 1, 1], [], []>} : vector<2x32xbf16>, vector<32x32xbf16>, vector<2x32xf32> -> vector<2x32xf32>
    %782 = vector.broadcast %11 : vector<1x32xf32> to vector<2x32xf32>
    %783 = arith.addf %781, %782 : vector<2x32xf32>
    %784 = arith.addf %770, %783 : vector<2x32xf32>
    %785 = vector.broadcast %610 : f32 to vector<2x32xf32>
    %786 = arith.mulf %785, %784 : vector<2x32xf32>
    %787 = arith.addf %728, %786 : vector<2x32xf32>
    %c3_i32_205 = arith.constant 3 : i32
    %788 = arith.truncf %787 : vector<2x32xf32> to vector<2x32xbf16>
    %cst_206 = arith.constant dense<0.000000e+00> : vector<2x32xf32>
    %789 = tpu.matmul %788, %8, %cst_206 {dimension_numbers = #tpu.dot_dimension_numbers<[1], [0], [0], [1], [0, 0, 1, 1], [], []>} : vector<2x32xbf16>, vector<32x32xbf16>, vector<2x32xf32> -> vector<2x32xf32>
    %790 = vector.broadcast %9 : vector<1x32xf32> to vector<2x32xf32>
    %791 = arith.addf %789, %790 : vector<2x32xf32>
    %cst_207 = arith.constant 0.000000e+00 : f32
    %792 = vector.broadcast %cst_207 : f32 to vector<2x32xf32>
    %793 = arith.maximumf %791, %792 : vector<2x32xf32>
    %794 = arith.truncf %793 : vector<2x32xf32> to vector<2x32xbf16>
    %cst_208 = arith.constant dense<0.000000e+00> : vector<2x32xf32>
    %795 = tpu.matmul %794, %10, %cst_208 {dimension_numbers = #tpu.dot_dimension_numbers<[1], [0], [0], [1], [0, 0, 1, 1], [], []>} : vector<2x32xbf16>, vector<32x32xbf16>, vector<2x32xf32> -> vector<2x32xf32>
    %796 = vector.broadcast %11 : vector<1x32xf32> to vector<2x32xf32>
    %797 = arith.addf %795, %796 : vector<2x32xf32>
    %798 = vector.broadcast %608 : f32 to vector<2x32xf32>
    %799 = arith.mulf %798, %797 : vector<2x32xf32>
    %800 = arith.addf %787, %799 : vector<2x32xf32>
    %801 = arith.truncf %800 : vector<2x32xf32> to vector<2x32xbf16>
    %cst_209 = arith.constant dense<0.000000e+00> : vector<2x32xf32>
    %802 = tpu.matmul %801, %8, %cst_209 {dimension_numbers = #tpu.dot_dimension_numbers<[1], [0], [0], [1], [0, 0, 1, 1], [], []>} : vector<2x32xbf16>, vector<32x32xbf16>, vector<2x32xf32> -> vector<2x32xf32>
    %803 = vector.broadcast %9 : vector<1x32xf32> to vector<2x32xf32>
    %804 = arith.addf %802, %803 : vector<2x32xf32>
    %cst_210 = arith.constant 0.000000e+00 : f32
    %805 = vector.broadcast %cst_210 : f32 to vector<2x32xf32>
    %806 = arith.maximumf %804, %805 : vector<2x32xf32>
    %807 = arith.truncf %806 : vector<2x32xf32> to vector<2x32xbf16>
    %cst_211 = arith.constant dense<0.000000e+00> : vector<2x32xf32>
    %808 = tpu.matmul %807, %10, %cst_211 {dimension_numbers = #tpu.dot_dimension_numbers<[1], [0], [0], [1], [0, 0, 1, 1], [], []>} : vector<2x32xbf16>, vector<32x32xbf16>, vector<2x32xf32> -> vector<2x32xf32>
    %809 = vector.broadcast %11 : vector<1x32xf32> to vector<2x32xf32>
    %810 = arith.addf %808, %809 : vector<2x32xf32>
    %cst_212 = arith.constant 2.000000e+00 : f32
    %811 = vector.broadcast %cst_212 : f32 to vector<2x32xf32>
    %812 = arith.mulf %811, %810 : vector<2x32xf32>
    %813 = arith.addf %797, %812 : vector<2x32xf32>
    %814 = vector.broadcast %608 : f32 to vector<2x32xf32>
    %815 = arith.mulf %814, %810 : vector<2x32xf32>
    %816 = arith.addf %787, %815 : vector<2x32xf32>
    %817 = arith.truncf %816 : vector<2x32xf32> to vector<2x32xbf16>
    %cst_213 = arith.constant dense<0.000000e+00> : vector<2x32xf32>
    %818 = tpu.matmul %817, %8, %cst_213 {dimension_numbers = #tpu.dot_dimension_numbers<[1], [0], [0], [1], [0, 0, 1, 1], [], []>} : vector<2x32xbf16>, vector<32x32xbf16>, vector<2x32xf32> -> vector<2x32xf32>
    %819 = vector.broadcast %9 : vector<1x32xf32> to vector<2x32xf32>
    %820 = arith.addf %818, %819 : vector<2x32xf32>
    %cst_214 = arith.constant 0.000000e+00 : f32
    %821 = vector.broadcast %cst_214 : f32 to vector<2x32xf32>
    %822 = arith.maximumf %820, %821 : vector<2x32xf32>
    %823 = arith.truncf %822 : vector<2x32xf32> to vector<2x32xbf16>
    %cst_215 = arith.constant dense<0.000000e+00> : vector<2x32xf32>
    %824 = tpu.matmul %823, %10, %cst_215 {dimension_numbers = #tpu.dot_dimension_numbers<[1], [0], [0], [1], [0, 0, 1, 1], [], []>} : vector<2x32xbf16>, vector<32x32xbf16>, vector<2x32xf32> -> vector<2x32xf32>
    %825 = vector.broadcast %11 : vector<1x32xf32> to vector<2x32xf32>
    %826 = arith.addf %824, %825 : vector<2x32xf32>
    %cst_216 = arith.constant 2.000000e+00 : f32
    %827 = vector.broadcast %cst_216 : f32 to vector<2x32xf32>
    %828 = arith.mulf %827, %826 : vector<2x32xf32>
    %829 = arith.addf %813, %828 : vector<2x32xf32>
    %830 = vector.broadcast %606 : f32 to vector<2x32xf32>
    %831 = arith.mulf %830, %826 : vector<2x32xf32>
    %832 = arith.addf %787, %831 : vector<2x32xf32>
    %833 = arith.truncf %832 : vector<2x32xf32> to vector<2x32xbf16>
    %cst_217 = arith.constant dense<0.000000e+00> : vector<2x32xf32>
    %834 = tpu.matmul %833, %8, %cst_217 {dimension_numbers = #tpu.dot_dimension_numbers<[1], [0], [0], [1], [0, 0, 1, 1], [], []>} : vector<2x32xbf16>, vector<32x32xbf16>, vector<2x32xf32> -> vector<2x32xf32>
    %835 = vector.broadcast %9 : vector<1x32xf32> to vector<2x32xf32>
    %836 = arith.addf %834, %835 : vector<2x32xf32>
    %cst_218 = arith.constant 0.000000e+00 : f32
    %837 = vector.broadcast %cst_218 : f32 to vector<2x32xf32>
    %838 = arith.maximumf %836, %837 : vector<2x32xf32>
    %839 = arith.truncf %838 : vector<2x32xf32> to vector<2x32xbf16>
    %cst_219 = arith.constant dense<0.000000e+00> : vector<2x32xf32>
    %840 = tpu.matmul %839, %10, %cst_219 {dimension_numbers = #tpu.dot_dimension_numbers<[1], [0], [0], [1], [0, 0, 1, 1], [], []>} : vector<2x32xbf16>, vector<32x32xbf16>, vector<2x32xf32> -> vector<2x32xf32>
    %841 = vector.broadcast %11 : vector<1x32xf32> to vector<2x32xf32>
    %842 = arith.addf %840, %841 : vector<2x32xf32>
    %843 = arith.addf %829, %842 : vector<2x32xf32>
    %844 = vector.broadcast %610 : f32 to vector<2x32xf32>
    %845 = arith.mulf %844, %843 : vector<2x32xf32>
    %846 = arith.addf %787, %845 : vector<2x32xf32>
    %c3_i32_220 = arith.constant 3 : i32
    %c2_i32_221 = arith.constant 2 : i32
    %847 = arith.muli %c3_i32_220, %c2_i32_221 : i32
    %848 = arith.index_cast %847 : i32 to index
    %c0_222 = arith.constant 0 : index
    %849 = vector.load %arg18[%848, %c0_222] : memref<14x96xf32, #tpu.memory_space<vmem>>, vector<2x96xf32>
    %850 = arith.truncf %846 : vector<2x32xf32> to vector<2x32xbf16>
    %cst_223 = arith.constant dense<0.000000e+00> : vector<2x96xf32>
    %851 = tpu.matmul %850, %5, %cst_223 {dimension_numbers = #tpu.dot_dimension_numbers<[1], [0], [0], [1], [0, 0, 1, 1], [], []>} : vector<2x32xbf16>, vector<32x96xbf16>, vector<2x96xf32> -> vector<2x96xf32>
    %852 = vector.broadcast %7 : vector<1x96xf32> to vector<2x96xf32>
    %853 = arith.addf %851, %852 : vector<2x96xf32>
    %854 = vector.extract_strided_slice %849 {offsets = [0, 0], sizes = [2, 32], strides = [1, 1]} : vector<2x96xf32> to vector<2x32xf32>
    %855 = vector.extract_strided_slice %853 {offsets = [0, 0], sizes = [2, 32], strides = [1, 1]} : vector<2x96xf32> to vector<2x32xf32>
    %856 = arith.addf %854, %855 : vector<2x32xf32>
    %857 = arith.negf %856 : vector<2x32xf32>
    %858 = math.exp %857 : vector<2x32xf32>
    %cst_224 = arith.constant 1.000000e+00 : f32
    %859 = vector.broadcast %cst_224 : f32 to vector<2x32xf32>
    %860 = arith.addf %859, %858 : vector<2x32xf32>
    %861 = arith.divf %859, %860 : vector<2x32xf32>
    %862 = vector.extract_strided_slice %849 {offsets = [0, 32], sizes = [2, 32], strides = [1, 1]} : vector<2x96xf32> to vector<2x32xf32>
    %863 = vector.extract_strided_slice %853 {offsets = [0, 32], sizes = [2, 32], strides = [1, 1]} : vector<2x96xf32> to vector<2x32xf32>
    %864 = arith.addf %862, %863 : vector<2x32xf32>
    %865 = arith.negf %864 : vector<2x32xf32>
    %866 = math.exp %865 : vector<2x32xf32>
    %cst_225 = arith.constant 1.000000e+00 : f32
    %867 = vector.broadcast %cst_225 : f32 to vector<2x32xf32>
    %868 = arith.addf %867, %866 : vector<2x32xf32>
    %869 = arith.divf %867, %868 : vector<2x32xf32>
    %870 = vector.extract_strided_slice %849 {offsets = [0, 64], sizes = [2, 32], strides = [1, 1]} : vector<2x96xf32> to vector<2x32xf32>
    %871 = vector.extract_strided_slice %853 {offsets = [0, 64], sizes = [2, 32], strides = [1, 1]} : vector<2x96xf32> to vector<2x32xf32>
    %872 = arith.mulf %861, %871 : vector<2x32xf32>
    %873 = arith.addf %870, %872 : vector<2x32xf32>
    %874 = math.tanh %873 : vector<2x32xf32>
    %cst_226 = arith.constant 1.000000e+00 : f32
    %875 = vector.broadcast %cst_226 : f32 to vector<2x32xf32>
    %876 = arith.subf %875, %869 : vector<2x32xf32>
    %877 = arith.mulf %876, %874 : vector<2x32xf32>
    %878 = arith.mulf %869, %846 : vector<2x32xf32>
    %879 = arith.addf %877, %878 : vector<2x32xf32>
    %880 = arith.addi %0, %c3_i32_220 : i32
    %881 = arith.index_cast %880 : i32 to index
    %882 = memref.load %arg1[%881] : memref<7xf32, #tpu.memory_space<smem>>
    %883 = arith.index_cast %880 : i32 to index
    %884 = memref.load %arg2[%883] : memref<7xf32, #tpu.memory_space<smem>>
    %885 = arith.index_cast %880 : i32 to index
    %886 = memref.load %arg3[%885] : memref<7xf32, #tpu.memory_space<smem>>
    %c0_i32_227 = arith.constant 0 : i32
    %887 = arith.truncf %879 : vector<2x32xf32> to vector<2x32xbf16>
    %cst_228 = arith.constant dense<0.000000e+00> : vector<2x32xf32>
    %888 = tpu.matmul %887, %8, %cst_228 {dimension_numbers = #tpu.dot_dimension_numbers<[1], [0], [0], [1], [0, 0, 1, 1], [], []>} : vector<2x32xbf16>, vector<32x32xbf16>, vector<2x32xf32> -> vector<2x32xf32>
    %889 = vector.broadcast %9 : vector<1x32xf32> to vector<2x32xf32>
    %890 = arith.addf %888, %889 : vector<2x32xf32>
    %cst_229 = arith.constant 0.000000e+00 : f32
    %891 = vector.broadcast %cst_229 : f32 to vector<2x32xf32>
    %892 = arith.maximumf %890, %891 : vector<2x32xf32>
    %893 = arith.truncf %892 : vector<2x32xf32> to vector<2x32xbf16>
    %cst_230 = arith.constant dense<0.000000e+00> : vector<2x32xf32>
    %894 = tpu.matmul %893, %10, %cst_230 {dimension_numbers = #tpu.dot_dimension_numbers<[1], [0], [0], [1], [0, 0, 1, 1], [], []>} : vector<2x32xbf16>, vector<32x32xbf16>, vector<2x32xf32> -> vector<2x32xf32>
    %895 = vector.broadcast %11 : vector<1x32xf32> to vector<2x32xf32>
    %896 = arith.addf %894, %895 : vector<2x32xf32>
    %897 = vector.broadcast %884 : f32 to vector<2x32xf32>
    %898 = arith.mulf %897, %896 : vector<2x32xf32>
    %899 = arith.addf %879, %898 : vector<2x32xf32>
    %900 = arith.truncf %899 : vector<2x32xf32> to vector<2x32xbf16>
    %cst_231 = arith.constant dense<0.000000e+00> : vector<2x32xf32>
    %901 = tpu.matmul %900, %8, %cst_231 {dimension_numbers = #tpu.dot_dimension_numbers<[1], [0], [0], [1], [0, 0, 1, 1], [], []>} : vector<2x32xbf16>, vector<32x32xbf16>, vector<2x32xf32> -> vector<2x32xf32>
    %902 = vector.broadcast %9 : vector<1x32xf32> to vector<2x32xf32>
    %903 = arith.addf %901, %902 : vector<2x32xf32>
    %cst_232 = arith.constant 0.000000e+00 : f32
    %904 = vector.broadcast %cst_232 : f32 to vector<2x32xf32>
    %905 = arith.maximumf %903, %904 : vector<2x32xf32>
    %906 = arith.truncf %905 : vector<2x32xf32> to vector<2x32xbf16>
    %cst_233 = arith.constant dense<0.000000e+00> : vector<2x32xf32>
    %907 = tpu.matmul %906, %10, %cst_233 {dimension_numbers = #tpu.dot_dimension_numbers<[1], [0], [0], [1], [0, 0, 1, 1], [], []>} : vector<2x32xbf16>, vector<32x32xbf16>, vector<2x32xf32> -> vector<2x32xf32>
    %908 = vector.broadcast %11 : vector<1x32xf32> to vector<2x32xf32>
    %909 = arith.addf %907, %908 : vector<2x32xf32>
    %cst_234 = arith.constant 2.000000e+00 : f32
    %910 = vector.broadcast %cst_234 : f32 to vector<2x32xf32>
    %911 = arith.mulf %910, %909 : vector<2x32xf32>
    %912 = arith.addf %896, %911 : vector<2x32xf32>
    %913 = vector.broadcast %884 : f32 to vector<2x32xf32>
    %914 = arith.mulf %913, %909 : vector<2x32xf32>
    %915 = arith.addf %879, %914 : vector<2x32xf32>
    %916 = arith.truncf %915 : vector<2x32xf32> to vector<2x32xbf16>
    %cst_235 = arith.constant dense<0.000000e+00> : vector<2x32xf32>
    %917 = tpu.matmul %916, %8, %cst_235 {dimension_numbers = #tpu.dot_dimension_numbers<[1], [0], [0], [1], [0, 0, 1, 1], [], []>} : vector<2x32xbf16>, vector<32x32xbf16>, vector<2x32xf32> -> vector<2x32xf32>
    %918 = vector.broadcast %9 : vector<1x32xf32> to vector<2x32xf32>
    %919 = arith.addf %917, %918 : vector<2x32xf32>
    %cst_236 = arith.constant 0.000000e+00 : f32
    %920 = vector.broadcast %cst_236 : f32 to vector<2x32xf32>
    %921 = arith.maximumf %919, %920 : vector<2x32xf32>
    %922 = arith.truncf %921 : vector<2x32xf32> to vector<2x32xbf16>
    %cst_237 = arith.constant dense<0.000000e+00> : vector<2x32xf32>
    %923 = tpu.matmul %922, %10, %cst_237 {dimension_numbers = #tpu.dot_dimension_numbers<[1], [0], [0], [1], [0, 0, 1, 1], [], []>} : vector<2x32xbf16>, vector<32x32xbf16>, vector<2x32xf32> -> vector<2x32xf32>
    %924 = vector.broadcast %11 : vector<1x32xf32> to vector<2x32xf32>
    %925 = arith.addf %923, %924 : vector<2x32xf32>
    %cst_238 = arith.constant 2.000000e+00 : f32
    %926 = vector.broadcast %cst_238 : f32 to vector<2x32xf32>
    %927 = arith.mulf %926, %925 : vector<2x32xf32>
    %928 = arith.addf %912, %927 : vector<2x32xf32>
    %929 = vector.broadcast %882 : f32 to vector<2x32xf32>
    %930 = arith.mulf %929, %925 : vector<2x32xf32>
    %931 = arith.addf %879, %930 : vector<2x32xf32>
    %932 = arith.truncf %931 : vector<2x32xf32> to vector<2x32xbf16>
    %cst_239 = arith.constant dense<0.000000e+00> : vector<2x32xf32>
    %933 = tpu.matmul %932, %8, %cst_239 {dimension_numbers = #tpu.dot_dimension_numbers<[1], [0], [0], [1], [0, 0, 1, 1], [], []>} : vector<2x32xbf16>, vector<32x32xbf16>, vector<2x32xf32> -> vector<2x32xf32>
    %934 = vector.broadcast %9 : vector<1x32xf32> to vector<2x32xf32>
    %935 = arith.addf %933, %934 : vector<2x32xf32>
    %cst_240 = arith.constant 0.000000e+00 : f32
    %936 = vector.broadcast %cst_240 : f32 to vector<2x32xf32>
    %937 = arith.maximumf %935, %936 : vector<2x32xf32>
    %938 = arith.truncf %937 : vector<2x32xf32> to vector<2x32xbf16>
    %cst_241 = arith.constant dense<0.000000e+00> : vector<2x32xf32>
    %939 = tpu.matmul %938, %10, %cst_241 {dimension_numbers = #tpu.dot_dimension_numbers<[1], [0], [0], [1], [0, 0, 1, 1], [], []>} : vector<2x32xbf16>, vector<32x32xbf16>, vector<2x32xf32> -> vector<2x32xf32>
    %940 = vector.broadcast %11 : vector<1x32xf32> to vector<2x32xf32>
    %941 = arith.addf %939, %940 : vector<2x32xf32>
    %942 = arith.addf %928, %941 : vector<2x32xf32>
    %943 = vector.broadcast %886 : f32 to vector<2x32xf32>
    %944 = arith.mulf %943, %942 : vector<2x32xf32>
    %945 = arith.addf %879, %944 : vector<2x32xf32>
    %c1_i32_242 = arith.constant 1 : i32
    %946 = arith.truncf %945 : vector<2x32xf32> to vector<2x32xbf16>
    %cst_243 = arith.constant dense<0.000000e+00> : vector<2x32xf32>
    %947 = tpu.matmul %946, %8, %cst_243 {dimension_numbers = #tpu.dot_dimension_numbers<[1], [0], [0], [1], [0, 0, 1, 1], [], []>} : vector<2x32xbf16>, vector<32x32xbf16>, vector<2x32xf32> -> vector<2x32xf32>
    %948 = vector.broadcast %9 : vector<1x32xf32> to vector<2x32xf32>
    %949 = arith.addf %947, %948 : vector<2x32xf32>
    %cst_244 = arith.constant 0.000000e+00 : f32
    %950 = vector.broadcast %cst_244 : f32 to vector<2x32xf32>
    %951 = arith.maximumf %949, %950 : vector<2x32xf32>
    %952 = arith.truncf %951 : vector<2x32xf32> to vector<2x32xbf16>
    %cst_245 = arith.constant dense<0.000000e+00> : vector<2x32xf32>
    %953 = tpu.matmul %952, %10, %cst_245 {dimension_numbers = #tpu.dot_dimension_numbers<[1], [0], [0], [1], [0, 0, 1, 1], [], []>} : vector<2x32xbf16>, vector<32x32xbf16>, vector<2x32xf32> -> vector<2x32xf32>
    %954 = vector.broadcast %11 : vector<1x32xf32> to vector<2x32xf32>
    %955 = arith.addf %953, %954 : vector<2x32xf32>
    %956 = vector.broadcast %884 : f32 to vector<2x32xf32>
    %957 = arith.mulf %956, %955 : vector<2x32xf32>
    %958 = arith.addf %945, %957 : vector<2x32xf32>
    %959 = arith.truncf %958 : vector<2x32xf32> to vector<2x32xbf16>
    %cst_246 = arith.constant dense<0.000000e+00> : vector<2x32xf32>
    %960 = tpu.matmul %959, %8, %cst_246 {dimension_numbers = #tpu.dot_dimension_numbers<[1], [0], [0], [1], [0, 0, 1, 1], [], []>} : vector<2x32xbf16>, vector<32x32xbf16>, vector<2x32xf32> -> vector<2x32xf32>
    %961 = vector.broadcast %9 : vector<1x32xf32> to vector<2x32xf32>
    %962 = arith.addf %960, %961 : vector<2x32xf32>
    %cst_247 = arith.constant 0.000000e+00 : f32
    %963 = vector.broadcast %cst_247 : f32 to vector<2x32xf32>
    %964 = arith.maximumf %962, %963 : vector<2x32xf32>
    %965 = arith.truncf %964 : vector<2x32xf32> to vector<2x32xbf16>
    %cst_248 = arith.constant dense<0.000000e+00> : vector<2x32xf32>
    %966 = tpu.matmul %965, %10, %cst_248 {dimension_numbers = #tpu.dot_dimension_numbers<[1], [0], [0], [1], [0, 0, 1, 1], [], []>} : vector<2x32xbf16>, vector<32x32xbf16>, vector<2x32xf32> -> vector<2x32xf32>
    %967 = vector.broadcast %11 : vector<1x32xf32> to vector<2x32xf32>
    %968 = arith.addf %966, %967 : vector<2x32xf32>
    %cst_249 = arith.constant 2.000000e+00 : f32
    %969 = vector.broadcast %cst_249 : f32 to vector<2x32xf32>
    %970 = arith.mulf %969, %968 : vector<2x32xf32>
    %971 = arith.addf %955, %970 : vector<2x32xf32>
    %972 = vector.broadcast %884 : f32 to vector<2x32xf32>
    %973 = arith.mulf %972, %968 : vector<2x32xf32>
    %974 = arith.addf %945, %973 : vector<2x32xf32>
    %975 = arith.truncf %974 : vector<2x32xf32> to vector<2x32xbf16>
    %cst_250 = arith.constant dense<0.000000e+00> : vector<2x32xf32>
    %976 = tpu.matmul %975, %8, %cst_250 {dimension_numbers = #tpu.dot_dimension_numbers<[1], [0], [0], [1], [0, 0, 1, 1], [], []>} : vector<2x32xbf16>, vector<32x32xbf16>, vector<2x32xf32> -> vector<2x32xf32>
    %977 = vector.broadcast %9 : vector<1x32xf32> to vector<2x32xf32>
    %978 = arith.addf %976, %977 : vector<2x32xf32>
    %cst_251 = arith.constant 0.000000e+00 : f32
    %979 = vector.broadcast %cst_251 : f32 to vector<2x32xf32>
    %980 = arith.maximumf %978, %979 : vector<2x32xf32>
    %981 = arith.truncf %980 : vector<2x32xf32> to vector<2x32xbf16>
    %cst_252 = arith.constant dense<0.000000e+00> : vector<2x32xf32>
    %982 = tpu.matmul %981, %10, %cst_252 {dimension_numbers = #tpu.dot_dimension_numbers<[1], [0], [0], [1], [0, 0, 1, 1], [], []>} : vector<2x32xbf16>, vector<32x32xbf16>, vector<2x32xf32> -> vector<2x32xf32>
    %983 = vector.broadcast %11 : vector<1x32xf32> to vector<2x32xf32>
    %984 = arith.addf %982, %983 : vector<2x32xf32>
    %cst_253 = arith.constant 2.000000e+00 : f32
    %985 = vector.broadcast %cst_253 : f32 to vector<2x32xf32>
    %986 = arith.mulf %985, %984 : vector<2x32xf32>
    %987 = arith.addf %971, %986 : vector<2x32xf32>
    %988 = vector.broadcast %882 : f32 to vector<2x32xf32>
    %989 = arith.mulf %988, %984 : vector<2x32xf32>
    %990 = arith.addf %945, %989 : vector<2x32xf32>
    %991 = arith.truncf %990 : vector<2x32xf32> to vector<2x32xbf16>
    %cst_254 = arith.constant dense<0.000000e+00> : vector<2x32xf32>
    %992 = tpu.matmul %991, %8, %cst_254 {dimension_numbers = #tpu.dot_dimension_numbers<[1], [0], [0], [1], [0, 0, 1, 1], [], []>} : vector<2x32xbf16>, vector<32x32xbf16>, vector<2x32xf32> -> vector<2x32xf32>
    %993 = vector.broadcast %9 : vector<1x32xf32> to vector<2x32xf32>
    %994 = arith.addf %992, %993 : vector<2x32xf32>
    %cst_255 = arith.constant 0.000000e+00 : f32
    %995 = vector.broadcast %cst_255 : f32 to vector<2x32xf32>
    %996 = arith.maximumf %994, %995 : vector<2x32xf32>
    %997 = arith.truncf %996 : vector<2x32xf32> to vector<2x32xbf16>
    %cst_256 = arith.constant dense<0.000000e+00> : vector<2x32xf32>
    %998 = tpu.matmul %997, %10, %cst_256 {dimension_numbers = #tpu.dot_dimension_numbers<[1], [0], [0], [1], [0, 0, 1, 1], [], []>} : vector<2x32xbf16>, vector<32x32xbf16>, vector<2x32xf32> -> vector<2x32xf32>
    %999 = vector.broadcast %11 : vector<1x32xf32> to vector<2x32xf32>
    %1000 = arith.addf %998, %999 : vector<2x32xf32>
    %1001 = arith.addf %987, %1000 : vector<2x32xf32>
    %1002 = vector.broadcast %886 : f32 to vector<2x32xf32>
    %1003 = arith.mulf %1002, %1001 : vector<2x32xf32>
    %1004 = arith.addf %945, %1003 : vector<2x32xf32>
    %c2_i32_257 = arith.constant 2 : i32
    %1005 = arith.truncf %1004 : vector<2x32xf32> to vector<2x32xbf16>
    %cst_258 = arith.constant dense<0.000000e+00> : vector<2x32xf32>
    %1006 = tpu.matmul %1005, %8, %cst_258 {dimension_numbers = #tpu.dot_dimension_numbers<[1], [0], [0], [1], [0, 0, 1, 1], [], []>} : vector<2x32xbf16>, vector<32x32xbf16>, vector<2x32xf32> -> vector<2x32xf32>
    %1007 = vector.broadcast %9 : vector<1x32xf32> to vector<2x32xf32>
    %1008 = arith.addf %1006, %1007 : vector<2x32xf32>
    %cst_259 = arith.constant 0.000000e+00 : f32
    %1009 = vector.broadcast %cst_259 : f32 to vector<2x32xf32>
    %1010 = arith.maximumf %1008, %1009 : vector<2x32xf32>
    %1011 = arith.truncf %1010 : vector<2x32xf32> to vector<2x32xbf16>
    %cst_260 = arith.constant dense<0.000000e+00> : vector<2x32xf32>
    %1012 = tpu.matmul %1011, %10, %cst_260 {dimension_numbers = #tpu.dot_dimension_numbers<[1], [0], [0], [1], [0, 0, 1, 1], [], []>} : vector<2x32xbf16>, vector<32x32xbf16>, vector<2x32xf32> -> vector<2x32xf32>
    %1013 = vector.broadcast %11 : vector<1x32xf32> to vector<2x32xf32>
    %1014 = arith.addf %1012, %1013 : vector<2x32xf32>
    %1015 = vector.broadcast %884 : f32 to vector<2x32xf32>
    %1016 = arith.mulf %1015, %1014 : vector<2x32xf32>
    %1017 = arith.addf %1004, %1016 : vector<2x32xf32>
    %1018 = arith.truncf %1017 : vector<2x32xf32> to vector<2x32xbf16>
    %cst_261 = arith.constant dense<0.000000e+00> : vector<2x32xf32>
    %1019 = tpu.matmul %1018, %8, %cst_261 {dimension_numbers = #tpu.dot_dimension_numbers<[1], [0], [0], [1], [0, 0, 1, 1], [], []>} : vector<2x32xbf16>, vector<32x32xbf16>, vector<2x32xf32> -> vector<2x32xf32>
    %1020 = vector.broadcast %9 : vector<1x32xf32> to vector<2x32xf32>
    %1021 = arith.addf %1019, %1020 : vector<2x32xf32>
    %cst_262 = arith.constant 0.000000e+00 : f32
    %1022 = vector.broadcast %cst_262 : f32 to vector<2x32xf32>
    %1023 = arith.maximumf %1021, %1022 : vector<2x32xf32>
    %1024 = arith.truncf %1023 : vector<2x32xf32> to vector<2x32xbf16>
    %cst_263 = arith.constant dense<0.000000e+00> : vector<2x32xf32>
    %1025 = tpu.matmul %1024, %10, %cst_263 {dimension_numbers = #tpu.dot_dimension_numbers<[1], [0], [0], [1], [0, 0, 1, 1], [], []>} : vector<2x32xbf16>, vector<32x32xbf16>, vector<2x32xf32> -> vector<2x32xf32>
    %1026 = vector.broadcast %11 : vector<1x32xf32> to vector<2x32xf32>
    %1027 = arith.addf %1025, %1026 : vector<2x32xf32>
    %cst_264 = arith.constant 2.000000e+00 : f32
    %1028 = vector.broadcast %cst_264 : f32 to vector<2x32xf32>
    %1029 = arith.mulf %1028, %1027 : vector<2x32xf32>
    %1030 = arith.addf %1014, %1029 : vector<2x32xf32>
    %1031 = vector.broadcast %884 : f32 to vector<2x32xf32>
    %1032 = arith.mulf %1031, %1027 : vector<2x32xf32>
    %1033 = arith.addf %1004, %1032 : vector<2x32xf32>
    %1034 = arith.truncf %1033 : vector<2x32xf32> to vector<2x32xbf16>
    %cst_265 = arith.constant dense<0.000000e+00> : vector<2x32xf32>
    %1035 = tpu.matmul %1034, %8, %cst_265 {dimension_numbers = #tpu.dot_dimension_numbers<[1], [0], [0], [1], [0, 0, 1, 1], [], []>} : vector<2x32xbf16>, vector<32x32xbf16>, vector<2x32xf32> -> vector<2x32xf32>
    %1036 = vector.broadcast %9 : vector<1x32xf32> to vector<2x32xf32>
    %1037 = arith.addf %1035, %1036 : vector<2x32xf32>
    %cst_266 = arith.constant 0.000000e+00 : f32
    %1038 = vector.broadcast %cst_266 : f32 to vector<2x32xf32>
    %1039 = arith.maximumf %1037, %1038 : vector<2x32xf32>
    %1040 = arith.truncf %1039 : vector<2x32xf32> to vector<2x32xbf16>
    %cst_267 = arith.constant dense<0.000000e+00> : vector<2x32xf32>
    %1041 = tpu.matmul %1040, %10, %cst_267 {dimension_numbers = #tpu.dot_dimension_numbers<[1], [0], [0], [1], [0, 0, 1, 1], [], []>} : vector<2x32xbf16>, vector<32x32xbf16>, vector<2x32xf32> -> vector<2x32xf32>
    %1042 = vector.broadcast %11 : vector<1x32xf32> to vector<2x32xf32>
    %1043 = arith.addf %1041, %1042 : vector<2x32xf32>
    %cst_268 = arith.constant 2.000000e+00 : f32
    %1044 = vector.broadcast %cst_268 : f32 to vector<2x32xf32>
    %1045 = arith.mulf %1044, %1043 : vector<2x32xf32>
    %1046 = arith.addf %1030, %1045 : vector<2x32xf32>
    %1047 = vector.broadcast %882 : f32 to vector<2x32xf32>
    %1048 = arith.mulf %1047, %1043 : vector<2x32xf32>
    %1049 = arith.addf %1004, %1048 : vector<2x32xf32>
    %1050 = arith.truncf %1049 : vector<2x32xf32> to vector<2x32xbf16>
    %cst_269 = arith.constant dense<0.000000e+00> : vector<2x32xf32>
    %1051 = tpu.matmul %1050, %8, %cst_269 {dimension_numbers = #tpu.dot_dimension_numbers<[1], [0], [0], [1], [0, 0, 1, 1], [], []>} : vector<2x32xbf16>, vector<32x32xbf16>, vector<2x32xf32> -> vector<2x32xf32>
    %1052 = vector.broadcast %9 : vector<1x32xf32> to vector<2x32xf32>
    %1053 = arith.addf %1051, %1052 : vector<2x32xf32>
    %cst_270 = arith.constant 0.000000e+00 : f32
    %1054 = vector.broadcast %cst_270 : f32 to vector<2x32xf32>
    %1055 = arith.maximumf %1053, %1054 : vector<2x32xf32>
    %1056 = arith.truncf %1055 : vector<2x32xf32> to vector<2x32xbf16>
    %cst_271 = arith.constant dense<0.000000e+00> : vector<2x32xf32>
    %1057 = tpu.matmul %1056, %10, %cst_271 {dimension_numbers = #tpu.dot_dimension_numbers<[1], [0], [0], [1], [0, 0, 1, 1], [], []>} : vector<2x32xbf16>, vector<32x32xbf16>, vector<2x32xf32> -> vector<2x32xf32>
    %1058 = vector.broadcast %11 : vector<1x32xf32> to vector<2x32xf32>
    %1059 = arith.addf %1057, %1058 : vector<2x32xf32>
    %1060 = arith.addf %1046, %1059 : vector<2x32xf32>
    %1061 = vector.broadcast %886 : f32 to vector<2x32xf32>
    %1062 = arith.mulf %1061, %1060 : vector<2x32xf32>
    %1063 = arith.addf %1004, %1062 : vector<2x32xf32>
    %c3_i32_272 = arith.constant 3 : i32
    %1064 = arith.truncf %1063 : vector<2x32xf32> to vector<2x32xbf16>
    %cst_273 = arith.constant dense<0.000000e+00> : vector<2x32xf32>
    %1065 = tpu.matmul %1064, %8, %cst_273 {dimension_numbers = #tpu.dot_dimension_numbers<[1], [0], [0], [1], [0, 0, 1, 1], [], []>} : vector<2x32xbf16>, vector<32x32xbf16>, vector<2x32xf32> -> vector<2x32xf32>
    %1066 = vector.broadcast %9 : vector<1x32xf32> to vector<2x32xf32>
    %1067 = arith.addf %1065, %1066 : vector<2x32xf32>
    %cst_274 = arith.constant 0.000000e+00 : f32
    %1068 = vector.broadcast %cst_274 : f32 to vector<2x32xf32>
    %1069 = arith.maximumf %1067, %1068 : vector<2x32xf32>
    %1070 = arith.truncf %1069 : vector<2x32xf32> to vector<2x32xbf16>
    %cst_275 = arith.constant dense<0.000000e+00> : vector<2x32xf32>
    %1071 = tpu.matmul %1070, %10, %cst_275 {dimension_numbers = #tpu.dot_dimension_numbers<[1], [0], [0], [1], [0, 0, 1, 1], [], []>} : vector<2x32xbf16>, vector<32x32xbf16>, vector<2x32xf32> -> vector<2x32xf32>
    %1072 = vector.broadcast %11 : vector<1x32xf32> to vector<2x32xf32>
    %1073 = arith.addf %1071, %1072 : vector<2x32xf32>
    %1074 = vector.broadcast %884 : f32 to vector<2x32xf32>
    %1075 = arith.mulf %1074, %1073 : vector<2x32xf32>
    %1076 = arith.addf %1063, %1075 : vector<2x32xf32>
    %1077 = arith.truncf %1076 : vector<2x32xf32> to vector<2x32xbf16>
    %cst_276 = arith.constant dense<0.000000e+00> : vector<2x32xf32>
    %1078 = tpu.matmul %1077, %8, %cst_276 {dimension_numbers = #tpu.dot_dimension_numbers<[1], [0], [0], [1], [0, 0, 1, 1], [], []>} : vector<2x32xbf16>, vector<32x32xbf16>, vector<2x32xf32> -> vector<2x32xf32>
    %1079 = vector.broadcast %9 : vector<1x32xf32> to vector<2x32xf32>
    %1080 = arith.addf %1078, %1079 : vector<2x32xf32>
    %cst_277 = arith.constant 0.000000e+00 : f32
    %1081 = vector.broadcast %cst_277 : f32 to vector<2x32xf32>
    %1082 = arith.maximumf %1080, %1081 : vector<2x32xf32>
    %1083 = arith.truncf %1082 : vector<2x32xf32> to vector<2x32xbf16>
    %cst_278 = arith.constant dense<0.000000e+00> : vector<2x32xf32>
    %1084 = tpu.matmul %1083, %10, %cst_278 {dimension_numbers = #tpu.dot_dimension_numbers<[1], [0], [0], [1], [0, 0, 1, 1], [], []>} : vector<2x32xbf16>, vector<32x32xbf16>, vector<2x32xf32> -> vector<2x32xf32>
    %1085 = vector.broadcast %11 : vector<1x32xf32> to vector<2x32xf32>
    %1086 = arith.addf %1084, %1085 : vector<2x32xf32>
    %cst_279 = arith.constant 2.000000e+00 : f32
    %1087 = vector.broadcast %cst_279 : f32 to vector<2x32xf32>
    %1088 = arith.mulf %1087, %1086 : vector<2x32xf32>
    %1089 = arith.addf %1073, %1088 : vector<2x32xf32>
    %1090 = vector.broadcast %884 : f32 to vector<2x32xf32>
    %1091 = arith.mulf %1090, %1086 : vector<2x32xf32>
    %1092 = arith.addf %1063, %1091 : vector<2x32xf32>
    %1093 = arith.truncf %1092 : vector<2x32xf32> to vector<2x32xbf16>
    %cst_280 = arith.constant dense<0.000000e+00> : vector<2x32xf32>
    %1094 = tpu.matmul %1093, %8, %cst_280 {dimension_numbers = #tpu.dot_dimension_numbers<[1], [0], [0], [1], [0, 0, 1, 1], [], []>} : vector<2x32xbf16>, vector<32x32xbf16>, vector<2x32xf32> -> vector<2x32xf32>
    %1095 = vector.broadcast %9 : vector<1x32xf32> to vector<2x32xf32>
    %1096 = arith.addf %1094, %1095 : vector<2x32xf32>
    %cst_281 = arith.constant 0.000000e+00 : f32
    %1097 = vector.broadcast %cst_281 : f32 to vector<2x32xf32>
    %1098 = arith.maximumf %1096, %1097 : vector<2x32xf32>
    %1099 = arith.truncf %1098 : vector<2x32xf32> to vector<2x32xbf16>
    %cst_282 = arith.constant dense<0.000000e+00> : vector<2x32xf32>
    %1100 = tpu.matmul %1099, %10, %cst_282 {dimension_numbers = #tpu.dot_dimension_numbers<[1], [0], [0], [1], [0, 0, 1, 1], [], []>} : vector<2x32xbf16>, vector<32x32xbf16>, vector<2x32xf32> -> vector<2x32xf32>
    %1101 = vector.broadcast %11 : vector<1x32xf32> to vector<2x32xf32>
    %1102 = arith.addf %1100, %1101 : vector<2x32xf32>
    %cst_283 = arith.constant 2.000000e+00 : f32
    %1103 = vector.broadcast %cst_283 : f32 to vector<2x32xf32>
    %1104 = arith.mulf %1103, %1102 : vector<2x32xf32>
    %1105 = arith.addf %1089, %1104 : vector<2x32xf32>
    %1106 = vector.broadcast %882 : f32 to vector<2x32xf32>
    %1107 = arith.mulf %1106, %1102 : vector<2x32xf32>
    %1108 = arith.addf %1063, %1107 : vector<2x32xf32>
    %1109 = arith.truncf %1108 : vector<2x32xf32> to vector<2x32xbf16>
    %cst_284 = arith.constant dense<0.000000e+00> : vector<2x32xf32>
    %1110 = tpu.matmul %1109, %8, %cst_284 {dimension_numbers = #tpu.dot_dimension_numbers<[1], [0], [0], [1], [0, 0, 1, 1], [], []>} : vector<2x32xbf16>, vector<32x32xbf16>, vector<2x32xf32> -> vector<2x32xf32>
    %1111 = vector.broadcast %9 : vector<1x32xf32> to vector<2x32xf32>
    %1112 = arith.addf %1110, %1111 : vector<2x32xf32>
    %cst_285 = arith.constant 0.000000e+00 : f32
    %1113 = vector.broadcast %cst_285 : f32 to vector<2x32xf32>
    %1114 = arith.maximumf %1112, %1113 : vector<2x32xf32>
    %1115 = arith.truncf %1114 : vector<2x32xf32> to vector<2x32xbf16>
    %cst_286 = arith.constant dense<0.000000e+00> : vector<2x32xf32>
    %1116 = tpu.matmul %1115, %10, %cst_286 {dimension_numbers = #tpu.dot_dimension_numbers<[1], [0], [0], [1], [0, 0, 1, 1], [], []>} : vector<2x32xbf16>, vector<32x32xbf16>, vector<2x32xf32> -> vector<2x32xf32>
    %1117 = vector.broadcast %11 : vector<1x32xf32> to vector<2x32xf32>
    %1118 = arith.addf %1116, %1117 : vector<2x32xf32>
    %1119 = arith.addf %1105, %1118 : vector<2x32xf32>
    %1120 = vector.broadcast %886 : f32 to vector<2x32xf32>
    %1121 = arith.mulf %1120, %1119 : vector<2x32xf32>
    %1122 = arith.addf %1063, %1121 : vector<2x32xf32>
    %c4_i32 = arith.constant 4 : i32
    %c2_i32_287 = arith.constant 2 : i32
    %1123 = arith.muli %c4_i32, %c2_i32_287 : i32
    %1124 = arith.index_cast %1123 : i32 to index
    %c0_288 = arith.constant 0 : index
    %1125 = vector.load %arg18[%1124, %c0_288] : memref<14x96xf32, #tpu.memory_space<vmem>>, vector<2x96xf32>
    %1126 = arith.truncf %1122 : vector<2x32xf32> to vector<2x32xbf16>
    %cst_289 = arith.constant dense<0.000000e+00> : vector<2x96xf32>
    %1127 = tpu.matmul %1126, %5, %cst_289 {dimension_numbers = #tpu.dot_dimension_numbers<[1], [0], [0], [1], [0, 0, 1, 1], [], []>} : vector<2x32xbf16>, vector<32x96xbf16>, vector<2x96xf32> -> vector<2x96xf32>
    %1128 = vector.broadcast %7 : vector<1x96xf32> to vector<2x96xf32>
    %1129 = arith.addf %1127, %1128 : vector<2x96xf32>
    %1130 = vector.extract_strided_slice %1125 {offsets = [0, 0], sizes = [2, 32], strides = [1, 1]} : vector<2x96xf32> to vector<2x32xf32>
    %1131 = vector.extract_strided_slice %1129 {offsets = [0, 0], sizes = [2, 32], strides = [1, 1]} : vector<2x96xf32> to vector<2x32xf32>
    %1132 = arith.addf %1130, %1131 : vector<2x32xf32>
    %1133 = arith.negf %1132 : vector<2x32xf32>
    %1134 = math.exp %1133 : vector<2x32xf32>
    %cst_290 = arith.constant 1.000000e+00 : f32
    %1135 = vector.broadcast %cst_290 : f32 to vector<2x32xf32>
    %1136 = arith.addf %1135, %1134 : vector<2x32xf32>
    %1137 = arith.divf %1135, %1136 : vector<2x32xf32>
    %1138 = vector.extract_strided_slice %1125 {offsets = [0, 32], sizes = [2, 32], strides = [1, 1]} : vector<2x96xf32> to vector<2x32xf32>
    %1139 = vector.extract_strided_slice %1129 {offsets = [0, 32], sizes = [2, 32], strides = [1, 1]} : vector<2x96xf32> to vector<2x32xf32>
    %1140 = arith.addf %1138, %1139 : vector<2x32xf32>
    %1141 = arith.negf %1140 : vector<2x32xf32>
    %1142 = math.exp %1141 : vector<2x32xf32>
    %cst_291 = arith.constant 1.000000e+00 : f32
    %1143 = vector.broadcast %cst_291 : f32 to vector<2x32xf32>
    %1144 = arith.addf %1143, %1142 : vector<2x32xf32>
    %1145 = arith.divf %1143, %1144 : vector<2x32xf32>
    %1146 = vector.extract_strided_slice %1125 {offsets = [0, 64], sizes = [2, 32], strides = [1, 1]} : vector<2x96xf32> to vector<2x32xf32>
    %1147 = vector.extract_strided_slice %1129 {offsets = [0, 64], sizes = [2, 32], strides = [1, 1]} : vector<2x96xf32> to vector<2x32xf32>
    %1148 = arith.mulf %1137, %1147 : vector<2x32xf32>
    %1149 = arith.addf %1146, %1148 : vector<2x32xf32>
    %1150 = math.tanh %1149 : vector<2x32xf32>
    %cst_292 = arith.constant 1.000000e+00 : f32
    %1151 = vector.broadcast %cst_292 : f32 to vector<2x32xf32>
    %1152 = arith.subf %1151, %1145 : vector<2x32xf32>
    %1153 = arith.mulf %1152, %1150 : vector<2x32xf32>
    %1154 = arith.mulf %1145, %1122 : vector<2x32xf32>
    %1155 = arith.addf %1153, %1154 : vector<2x32xf32>
    %1156 = arith.addi %0, %c4_i32 : i32
    %1157 = arith.index_cast %1156 : i32 to index
    %1158 = memref.load %arg1[%1157] : memref<7xf32, #tpu.memory_space<smem>>
    %1159 = arith.index_cast %1156 : i32 to index
    %1160 = memref.load %arg2[%1159] : memref<7xf32, #tpu.memory_space<smem>>
    %1161 = arith.index_cast %1156 : i32 to index
    %1162 = memref.load %arg3[%1161] : memref<7xf32, #tpu.memory_space<smem>>
    %c0_i32_293 = arith.constant 0 : i32
    %1163 = arith.truncf %1155 : vector<2x32xf32> to vector<2x32xbf16>
    %cst_294 = arith.constant dense<0.000000e+00> : vector<2x32xf32>
    %1164 = tpu.matmul %1163, %8, %cst_294 {dimension_numbers = #tpu.dot_dimension_numbers<[1], [0], [0], [1], [0, 0, 1, 1], [], []>} : vector<2x32xbf16>, vector<32x32xbf16>, vector<2x32xf32> -> vector<2x32xf32>
    %1165 = vector.broadcast %9 : vector<1x32xf32> to vector<2x32xf32>
    %1166 = arith.addf %1164, %1165 : vector<2x32xf32>
    %cst_295 = arith.constant 0.000000e+00 : f32
    %1167 = vector.broadcast %cst_295 : f32 to vector<2x32xf32>
    %1168 = arith.maximumf %1166, %1167 : vector<2x32xf32>
    %1169 = arith.truncf %1168 : vector<2x32xf32> to vector<2x32xbf16>
    %cst_296 = arith.constant dense<0.000000e+00> : vector<2x32xf32>
    %1170 = tpu.matmul %1169, %10, %cst_296 {dimension_numbers = #tpu.dot_dimension_numbers<[1], [0], [0], [1], [0, 0, 1, 1], [], []>} : vector<2x32xbf16>, vector<32x32xbf16>, vector<2x32xf32> -> vector<2x32xf32>
    %1171 = vector.broadcast %11 : vector<1x32xf32> to vector<2x32xf32>
    %1172 = arith.addf %1170, %1171 : vector<2x32xf32>
    %1173 = vector.broadcast %1160 : f32 to vector<2x32xf32>
    %1174 = arith.mulf %1173, %1172 : vector<2x32xf32>
    %1175 = arith.addf %1155, %1174 : vector<2x32xf32>
    %1176 = arith.truncf %1175 : vector<2x32xf32> to vector<2x32xbf16>
    %cst_297 = arith.constant dense<0.000000e+00> : vector<2x32xf32>
    %1177 = tpu.matmul %1176, %8, %cst_297 {dimension_numbers = #tpu.dot_dimension_numbers<[1], [0], [0], [1], [0, 0, 1, 1], [], []>} : vector<2x32xbf16>, vector<32x32xbf16>, vector<2x32xf32> -> vector<2x32xf32>
    %1178 = vector.broadcast %9 : vector<1x32xf32> to vector<2x32xf32>
    %1179 = arith.addf %1177, %1178 : vector<2x32xf32>
    %cst_298 = arith.constant 0.000000e+00 : f32
    %1180 = vector.broadcast %cst_298 : f32 to vector<2x32xf32>
    %1181 = arith.maximumf %1179, %1180 : vector<2x32xf32>
    %1182 = arith.truncf %1181 : vector<2x32xf32> to vector<2x32xbf16>
    %cst_299 = arith.constant dense<0.000000e+00> : vector<2x32xf32>
    %1183 = tpu.matmul %1182, %10, %cst_299 {dimension_numbers = #tpu.dot_dimension_numbers<[1], [0], [0], [1], [0, 0, 1, 1], [], []>} : vector<2x32xbf16>, vector<32x32xbf16>, vector<2x32xf32> -> vector<2x32xf32>
    %1184 = vector.broadcast %11 : vector<1x32xf32> to vector<2x32xf32>
    %1185 = arith.addf %1183, %1184 : vector<2x32xf32>
    %cst_300 = arith.constant 2.000000e+00 : f32
    %1186 = vector.broadcast %cst_300 : f32 to vector<2x32xf32>
    %1187 = arith.mulf %1186, %1185 : vector<2x32xf32>
    %1188 = arith.addf %1172, %1187 : vector<2x32xf32>
    %1189 = vector.broadcast %1160 : f32 to vector<2x32xf32>
    %1190 = arith.mulf %1189, %1185 : vector<2x32xf32>
    %1191 = arith.addf %1155, %1190 : vector<2x32xf32>
    %1192 = arith.truncf %1191 : vector<2x32xf32> to vector<2x32xbf16>
    %cst_301 = arith.constant dense<0.000000e+00> : vector<2x32xf32>
    %1193 = tpu.matmul %1192, %8, %cst_301 {dimension_numbers = #tpu.dot_dimension_numbers<[1], [0], [0], [1], [0, 0, 1, 1], [], []>} : vector<2x32xbf16>, vector<32x32xbf16>, vector<2x32xf32> -> vector<2x32xf32>
    %1194 = vector.broadcast %9 : vector<1x32xf32> to vector<2x32xf32>
    %1195 = arith.addf %1193, %1194 : vector<2x32xf32>
    %cst_302 = arith.constant 0.000000e+00 : f32
    %1196 = vector.broadcast %cst_302 : f32 to vector<2x32xf32>
    %1197 = arith.maximumf %1195, %1196 : vector<2x32xf32>
    %1198 = arith.truncf %1197 : vector<2x32xf32> to vector<2x32xbf16>
    %cst_303 = arith.constant dense<0.000000e+00> : vector<2x32xf32>
    %1199 = tpu.matmul %1198, %10, %cst_303 {dimension_numbers = #tpu.dot_dimension_numbers<[1], [0], [0], [1], [0, 0, 1, 1], [], []>} : vector<2x32xbf16>, vector<32x32xbf16>, vector<2x32xf32> -> vector<2x32xf32>
    %1200 = vector.broadcast %11 : vector<1x32xf32> to vector<2x32xf32>
    %1201 = arith.addf %1199, %1200 : vector<2x32xf32>
    %cst_304 = arith.constant 2.000000e+00 : f32
    %1202 = vector.broadcast %cst_304 : f32 to vector<2x32xf32>
    %1203 = arith.mulf %1202, %1201 : vector<2x32xf32>
    %1204 = arith.addf %1188, %1203 : vector<2x32xf32>
    %1205 = vector.broadcast %1158 : f32 to vector<2x32xf32>
    %1206 = arith.mulf %1205, %1201 : vector<2x32xf32>
    %1207 = arith.addf %1155, %1206 : vector<2x32xf32>
    %1208 = arith.truncf %1207 : vector<2x32xf32> to vector<2x32xbf16>
    %cst_305 = arith.constant dense<0.000000e+00> : vector<2x32xf32>
    %1209 = tpu.matmul %1208, %8, %cst_305 {dimension_numbers = #tpu.dot_dimension_numbers<[1], [0], [0], [1], [0, 0, 1, 1], [], []>} : vector<2x32xbf16>, vector<32x32xbf16>, vector<2x32xf32> -> vector<2x32xf32>
    %1210 = vector.broadcast %9 : vector<1x32xf32> to vector<2x32xf32>
    %1211 = arith.addf %1209, %1210 : vector<2x32xf32>
    %cst_306 = arith.constant 0.000000e+00 : f32
    %1212 = vector.broadcast %cst_306 : f32 to vector<2x32xf32>
    %1213 = arith.maximumf %1211, %1212 : vector<2x32xf32>
    %1214 = arith.truncf %1213 : vector<2x32xf32> to vector<2x32xbf16>
    %cst_307 = arith.constant dense<0.000000e+00> : vector<2x32xf32>
    %1215 = tpu.matmul %1214, %10, %cst_307 {dimension_numbers = #tpu.dot_dimension_numbers<[1], [0], [0], [1], [0, 0, 1, 1], [], []>} : vector<2x32xbf16>, vector<32x32xbf16>, vector<2x32xf32> -> vector<2x32xf32>
    %1216 = vector.broadcast %11 : vector<1x32xf32> to vector<2x32xf32>
    %1217 = arith.addf %1215, %1216 : vector<2x32xf32>
    %1218 = arith.addf %1204, %1217 : vector<2x32xf32>
    %1219 = vector.broadcast %1162 : f32 to vector<2x32xf32>
    %1220 = arith.mulf %1219, %1218 : vector<2x32xf32>
    %1221 = arith.addf %1155, %1220 : vector<2x32xf32>
    %c1_i32_308 = arith.constant 1 : i32
    %1222 = arith.truncf %1221 : vector<2x32xf32> to vector<2x32xbf16>
    %cst_309 = arith.constant dense<0.000000e+00> : vector<2x32xf32>
    %1223 = tpu.matmul %1222, %8, %cst_309 {dimension_numbers = #tpu.dot_dimension_numbers<[1], [0], [0], [1], [0, 0, 1, 1], [], []>} : vector<2x32xbf16>, vector<32x32xbf16>, vector<2x32xf32> -> vector<2x32xf32>
    %1224 = vector.broadcast %9 : vector<1x32xf32> to vector<2x32xf32>
    %1225 = arith.addf %1223, %1224 : vector<2x32xf32>
    %cst_310 = arith.constant 0.000000e+00 : f32
    %1226 = vector.broadcast %cst_310 : f32 to vector<2x32xf32>
    %1227 = arith.maximumf %1225, %1226 : vector<2x32xf32>
    %1228 = arith.truncf %1227 : vector<2x32xf32> to vector<2x32xbf16>
    %cst_311 = arith.constant dense<0.000000e+00> : vector<2x32xf32>
    %1229 = tpu.matmul %1228, %10, %cst_311 {dimension_numbers = #tpu.dot_dimension_numbers<[1], [0], [0], [1], [0, 0, 1, 1], [], []>} : vector<2x32xbf16>, vector<32x32xbf16>, vector<2x32xf32> -> vector<2x32xf32>
    %1230 = vector.broadcast %11 : vector<1x32xf32> to vector<2x32xf32>
    %1231 = arith.addf %1229, %1230 : vector<2x32xf32>
    %1232 = vector.broadcast %1160 : f32 to vector<2x32xf32>
    %1233 = arith.mulf %1232, %1231 : vector<2x32xf32>
    %1234 = arith.addf %1221, %1233 : vector<2x32xf32>
    %1235 = arith.truncf %1234 : vector<2x32xf32> to vector<2x32xbf16>
    %cst_312 = arith.constant dense<0.000000e+00> : vector<2x32xf32>
    %1236 = tpu.matmul %1235, %8, %cst_312 {dimension_numbers = #tpu.dot_dimension_numbers<[1], [0], [0], [1], [0, 0, 1, 1], [], []>} : vector<2x32xbf16>, vector<32x32xbf16>, vector<2x32xf32> -> vector<2x32xf32>
    %1237 = vector.broadcast %9 : vector<1x32xf32> to vector<2x32xf32>
    %1238 = arith.addf %1236, %1237 : vector<2x32xf32>
    %cst_313 = arith.constant 0.000000e+00 : f32
    %1239 = vector.broadcast %cst_313 : f32 to vector<2x32xf32>
    %1240 = arith.maximumf %1238, %1239 : vector<2x32xf32>
    %1241 = arith.truncf %1240 : vector<2x32xf32> to vector<2x32xbf16>
    %cst_314 = arith.constant dense<0.000000e+00> : vector<2x32xf32>
    %1242 = tpu.matmul %1241, %10, %cst_314 {dimension_numbers = #tpu.dot_dimension_numbers<[1], [0], [0], [1], [0, 0, 1, 1], [], []>} : vector<2x32xbf16>, vector<32x32xbf16>, vector<2x32xf32> -> vector<2x32xf32>
    %1243 = vector.broadcast %11 : vector<1x32xf32> to vector<2x32xf32>
    %1244 = arith.addf %1242, %1243 : vector<2x32xf32>
    %cst_315 = arith.constant 2.000000e+00 : f32
    %1245 = vector.broadcast %cst_315 : f32 to vector<2x32xf32>
    %1246 = arith.mulf %1245, %1244 : vector<2x32xf32>
    %1247 = arith.addf %1231, %1246 : vector<2x32xf32>
    %1248 = vector.broadcast %1160 : f32 to vector<2x32xf32>
    %1249 = arith.mulf %1248, %1244 : vector<2x32xf32>
    %1250 = arith.addf %1221, %1249 : vector<2x32xf32>
    %1251 = arith.truncf %1250 : vector<2x32xf32> to vector<2x32xbf16>
    %cst_316 = arith.constant dense<0.000000e+00> : vector<2x32xf32>
    %1252 = tpu.matmul %1251, %8, %cst_316 {dimension_numbers = #tpu.dot_dimension_numbers<[1], [0], [0], [1], [0, 0, 1, 1], [], []>} : vector<2x32xbf16>, vector<32x32xbf16>, vector<2x32xf32> -> vector<2x32xf32>
    %1253 = vector.broadcast %9 : vector<1x32xf32> to vector<2x32xf32>
    %1254 = arith.addf %1252, %1253 : vector<2x32xf32>
    %cst_317 = arith.constant 0.000000e+00 : f32
    %1255 = vector.broadcast %cst_317 : f32 to vector<2x32xf32>
    %1256 = arith.maximumf %1254, %1255 : vector<2x32xf32>
    %1257 = arith.truncf %1256 : vector<2x32xf32> to vector<2x32xbf16>
    %cst_318 = arith.constant dense<0.000000e+00> : vector<2x32xf32>
    %1258 = tpu.matmul %1257, %10, %cst_318 {dimension_numbers = #tpu.dot_dimension_numbers<[1], [0], [0], [1], [0, 0, 1, 1], [], []>} : vector<2x32xbf16>, vector<32x32xbf16>, vector<2x32xf32> -> vector<2x32xf32>
    %1259 = vector.broadcast %11 : vector<1x32xf32> to vector<2x32xf32>
    %1260 = arith.addf %1258, %1259 : vector<2x32xf32>
    %cst_319 = arith.constant 2.000000e+00 : f32
    %1261 = vector.broadcast %cst_319 : f32 to vector<2x32xf32>
    %1262 = arith.mulf %1261, %1260 : vector<2x32xf32>
    %1263 = arith.addf %1247, %1262 : vector<2x32xf32>
    %1264 = vector.broadcast %1158 : f32 to vector<2x32xf32>
    %1265 = arith.mulf %1264, %1260 : vector<2x32xf32>
    %1266 = arith.addf %1221, %1265 : vector<2x32xf32>
    %1267 = arith.truncf %1266 : vector<2x32xf32> to vector<2x32xbf16>
    %cst_320 = arith.constant dense<0.000000e+00> : vector<2x32xf32>
    %1268 = tpu.matmul %1267, %8, %cst_320 {dimension_numbers = #tpu.dot_dimension_numbers<[1], [0], [0], [1], [0, 0, 1, 1], [], []>} : vector<2x32xbf16>, vector<32x32xbf16>, vector<2x32xf32> -> vector<2x32xf32>
    %1269 = vector.broadcast %9 : vector<1x32xf32> to vector<2x32xf32>
    %1270 = arith.addf %1268, %1269 : vector<2x32xf32>
    %cst_321 = arith.constant 0.000000e+00 : f32
    %1271 = vector.broadcast %cst_321 : f32 to vector<2x32xf32>
    %1272 = arith.maximumf %1270, %1271 : vector<2x32xf32>
    %1273 = arith.truncf %1272 : vector<2x32xf32> to vector<2x32xbf16>
    %cst_322 = arith.constant dense<0.000000e+00> : vector<2x32xf32>
    %1274 = tpu.matmul %1273, %10, %cst_322 {dimension_numbers = #tpu.dot_dimension_numbers<[1], [0], [0], [1], [0, 0, 1, 1], [], []>} : vector<2x32xbf16>, vector<32x32xbf16>, vector<2x32xf32> -> vector<2x32xf32>
    %1275 = vector.broadcast %11 : vector<1x32xf32> to vector<2x32xf32>
    %1276 = arith.addf %1274, %1275 : vector<2x32xf32>
    %1277 = arith.addf %1263, %1276 : vector<2x32xf32>
    %1278 = vector.broadcast %1162 : f32 to vector<2x32xf32>
    %1279 = arith.mulf %1278, %1277 : vector<2x32xf32>
    %1280 = arith.addf %1221, %1279 : vector<2x32xf32>
    %c2_i32_323 = arith.constant 2 : i32
    %1281 = arith.truncf %1280 : vector<2x32xf32> to vector<2x32xbf16>
    %cst_324 = arith.constant dense<0.000000e+00> : vector<2x32xf32>
    %1282 = tpu.matmul %1281, %8, %cst_324 {dimension_numbers = #tpu.dot_dimension_numbers<[1], [0], [0], [1], [0, 0, 1, 1], [], []>} : vector<2x32xbf16>, vector<32x32xbf16>, vector<2x32xf32> -> vector<2x32xf32>
    %1283 = vector.broadcast %9 : vector<1x32xf32> to vector<2x32xf32>
    %1284 = arith.addf %1282, %1283 : vector<2x32xf32>
    %cst_325 = arith.constant 0.000000e+00 : f32
    %1285 = vector.broadcast %cst_325 : f32 to vector<2x32xf32>
    %1286 = arith.maximumf %1284, %1285 : vector<2x32xf32>
    %1287 = arith.truncf %1286 : vector<2x32xf32> to vector<2x32xbf16>
    %cst_326 = arith.constant dense<0.000000e+00> : vector<2x32xf32>
    %1288 = tpu.matmul %1287, %10, %cst_326 {dimension_numbers = #tpu.dot_dimension_numbers<[1], [0], [0], [1], [0, 0, 1, 1], [], []>} : vector<2x32xbf16>, vector<32x32xbf16>, vector<2x32xf32> -> vector<2x32xf32>
    %1289 = vector.broadcast %11 : vector<1x32xf32> to vector<2x32xf32>
    %1290 = arith.addf %1288, %1289 : vector<2x32xf32>
    %1291 = vector.broadcast %1160 : f32 to vector<2x32xf32>
    %1292 = arith.mulf %1291, %1290 : vector<2x32xf32>
    %1293 = arith.addf %1280, %1292 : vector<2x32xf32>
    %1294 = arith.truncf %1293 : vector<2x32xf32> to vector<2x32xbf16>
    %cst_327 = arith.constant dense<0.000000e+00> : vector<2x32xf32>
    %1295 = tpu.matmul %1294, %8, %cst_327 {dimension_numbers = #tpu.dot_dimension_numbers<[1], [0], [0], [1], [0, 0, 1, 1], [], []>} : vector<2x32xbf16>, vector<32x32xbf16>, vector<2x32xf32> -> vector<2x32xf32>
    %1296 = vector.broadcast %9 : vector<1x32xf32> to vector<2x32xf32>
    %1297 = arith.addf %1295, %1296 : vector<2x32xf32>
    %cst_328 = arith.constant 0.000000e+00 : f32
    %1298 = vector.broadcast %cst_328 : f32 to vector<2x32xf32>
    %1299 = arith.maximumf %1297, %1298 : vector<2x32xf32>
    %1300 = arith.truncf %1299 : vector<2x32xf32> to vector<2x32xbf16>
    %cst_329 = arith.constant dense<0.000000e+00> : vector<2x32xf32>
    %1301 = tpu.matmul %1300, %10, %cst_329 {dimension_numbers = #tpu.dot_dimension_numbers<[1], [0], [0], [1], [0, 0, 1, 1], [], []>} : vector<2x32xbf16>, vector<32x32xbf16>, vector<2x32xf32> -> vector<2x32xf32>
    %1302 = vector.broadcast %11 : vector<1x32xf32> to vector<2x32xf32>
    %1303 = arith.addf %1301, %1302 : vector<2x32xf32>
    %cst_330 = arith.constant 2.000000e+00 : f32
    %1304 = vector.broadcast %cst_330 : f32 to vector<2x32xf32>
    %1305 = arith.mulf %1304, %1303 : vector<2x32xf32>
    %1306 = arith.addf %1290, %1305 : vector<2x32xf32>
    %1307 = vector.broadcast %1160 : f32 to vector<2x32xf32>
    %1308 = arith.mulf %1307, %1303 : vector<2x32xf32>
    %1309 = arith.addf %1280, %1308 : vector<2x32xf32>
    %1310 = arith.truncf %1309 : vector<2x32xf32> to vector<2x32xbf16>
    %cst_331 = arith.constant dense<0.000000e+00> : vector<2x32xf32>
    %1311 = tpu.matmul %1310, %8, %cst_331 {dimension_numbers = #tpu.dot_dimension_numbers<[1], [0], [0], [1], [0, 0, 1, 1], [], []>} : vector<2x32xbf16>, vector<32x32xbf16>, vector<2x32xf32> -> vector<2x32xf32>
    %1312 = vector.broadcast %9 : vector<1x32xf32> to vector<2x32xf32>
    %1313 = arith.addf %1311, %1312 : vector<2x32xf32>
    %cst_332 = arith.constant 0.000000e+00 : f32
    %1314 = vector.broadcast %cst_332 : f32 to vector<2x32xf32>
    %1315 = arith.maximumf %1313, %1314 : vector<2x32xf32>
    %1316 = arith.truncf %1315 : vector<2x32xf32> to vector<2x32xbf16>
    %cst_333 = arith.constant dense<0.000000e+00> : vector<2x32xf32>
    %1317 = tpu.matmul %1316, %10, %cst_333 {dimension_numbers = #tpu.dot_dimension_numbers<[1], [0], [0], [1], [0, 0, 1, 1], [], []>} : vector<2x32xbf16>, vector<32x32xbf16>, vector<2x32xf32> -> vector<2x32xf32>
    %1318 = vector.broadcast %11 : vector<1x32xf32> to vector<2x32xf32>
    %1319 = arith.addf %1317, %1318 : vector<2x32xf32>
    %cst_334 = arith.constant 2.000000e+00 : f32
    %1320 = vector.broadcast %cst_334 : f32 to vector<2x32xf32>
    %1321 = arith.mulf %1320, %1319 : vector<2x32xf32>
    %1322 = arith.addf %1306, %1321 : vector<2x32xf32>
    %1323 = vector.broadcast %1158 : f32 to vector<2x32xf32>
    %1324 = arith.mulf %1323, %1319 : vector<2x32xf32>
    %1325 = arith.addf %1280, %1324 : vector<2x32xf32>
    %1326 = arith.truncf %1325 : vector<2x32xf32> to vector<2x32xbf16>
    %cst_335 = arith.constant dense<0.000000e+00> : vector<2x32xf32>
    %1327 = tpu.matmul %1326, %8, %cst_335 {dimension_numbers = #tpu.dot_dimension_numbers<[1], [0], [0], [1], [0, 0, 1, 1], [], []>} : vector<2x32xbf16>, vector<32x32xbf16>, vector<2x32xf32> -> vector<2x32xf32>
    %1328 = vector.broadcast %9 : vector<1x32xf32> to vector<2x32xf32>
    %1329 = arith.addf %1327, %1328 : vector<2x32xf32>
    %cst_336 = arith.constant 0.000000e+00 : f32
    %1330 = vector.broadcast %cst_336 : f32 to vector<2x32xf32>
    %1331 = arith.maximumf %1329, %1330 : vector<2x32xf32>
    %1332 = arith.truncf %1331 : vector<2x32xf32> to vector<2x32xbf16>
    %cst_337 = arith.constant dense<0.000000e+00> : vector<2x32xf32>
    %1333 = tpu.matmul %1332, %10, %cst_337 {dimension_numbers = #tpu.dot_dimension_numbers<[1], [0], [0], [1], [0, 0, 1, 1], [], []>} : vector<2x32xbf16>, vector<32x32xbf16>, vector<2x32xf32> -> vector<2x32xf32>
    %1334 = vector.broadcast %11 : vector<1x32xf32> to vector<2x32xf32>
    %1335 = arith.addf %1333, %1334 : vector<2x32xf32>
    %1336 = arith.addf %1322, %1335 : vector<2x32xf32>
    %1337 = vector.broadcast %1162 : f32 to vector<2x32xf32>
    %1338 = arith.mulf %1337, %1336 : vector<2x32xf32>
    %1339 = arith.addf %1280, %1338 : vector<2x32xf32>
    %c3_i32_338 = arith.constant 3 : i32
    %1340 = arith.truncf %1339 : vector<2x32xf32> to vector<2x32xbf16>
    %cst_339 = arith.constant dense<0.000000e+00> : vector<2x32xf32>
    %1341 = tpu.matmul %1340, %8, %cst_339 {dimension_numbers = #tpu.dot_dimension_numbers<[1], [0], [0], [1], [0, 0, 1, 1], [], []>} : vector<2x32xbf16>, vector<32x32xbf16>, vector<2x32xf32> -> vector<2x32xf32>
    %1342 = vector.broadcast %9 : vector<1x32xf32> to vector<2x32xf32>
    %1343 = arith.addf %1341, %1342 : vector<2x32xf32>
    %cst_340 = arith.constant 0.000000e+00 : f32
    %1344 = vector.broadcast %cst_340 : f32 to vector<2x32xf32>
    %1345 = arith.maximumf %1343, %1344 : vector<2x32xf32>
    %1346 = arith.truncf %1345 : vector<2x32xf32> to vector<2x32xbf16>
    %cst_341 = arith.constant dense<0.000000e+00> : vector<2x32xf32>
    %1347 = tpu.matmul %1346, %10, %cst_341 {dimension_numbers = #tpu.dot_dimension_numbers<[1], [0], [0], [1], [0, 0, 1, 1], [], []>} : vector<2x32xbf16>, vector<32x32xbf16>, vector<2x32xf32> -> vector<2x32xf32>
    %1348 = vector.broadcast %11 : vector<1x32xf32> to vector<2x32xf32>
    %1349 = arith.addf %1347, %1348 : vector<2x32xf32>
    %1350 = vector.broadcast %1160 : f32 to vector<2x32xf32>
    %1351 = arith.mulf %1350, %1349 : vector<2x32xf32>
    %1352 = arith.addf %1339, %1351 : vector<2x32xf32>
    %1353 = arith.truncf %1352 : vector<2x32xf32> to vector<2x32xbf16>
    %cst_342 = arith.constant dense<0.000000e+00> : vector<2x32xf32>
    %1354 = tpu.matmul %1353, %8, %cst_342 {dimension_numbers = #tpu.dot_dimension_numbers<[1], [0], [0], [1], [0, 0, 1, 1], [], []>} : vector<2x32xbf16>, vector<32x32xbf16>, vector<2x32xf32> -> vector<2x32xf32>
    %1355 = vector.broadcast %9 : vector<1x32xf32> to vector<2x32xf32>
    %1356 = arith.addf %1354, %1355 : vector<2x32xf32>
    %cst_343 = arith.constant 0.000000e+00 : f32
    %1357 = vector.broadcast %cst_343 : f32 to vector<2x32xf32>
    %1358 = arith.maximumf %1356, %1357 : vector<2x32xf32>
    %1359 = arith.truncf %1358 : vector<2x32xf32> to vector<2x32xbf16>
    %cst_344 = arith.constant dense<0.000000e+00> : vector<2x32xf32>
    %1360 = tpu.matmul %1359, %10, %cst_344 {dimension_numbers = #tpu.dot_dimension_numbers<[1], [0], [0], [1], [0, 0, 1, 1], [], []>} : vector<2x32xbf16>, vector<32x32xbf16>, vector<2x32xf32> -> vector<2x32xf32>
    %1361 = vector.broadcast %11 : vector<1x32xf32> to vector<2x32xf32>
    %1362 = arith.addf %1360, %1361 : vector<2x32xf32>
    %cst_345 = arith.constant 2.000000e+00 : f32
    %1363 = vector.broadcast %cst_345 : f32 to vector<2x32xf32>
    %1364 = arith.mulf %1363, %1362 : vector<2x32xf32>
    %1365 = arith.addf %1349, %1364 : vector<2x32xf32>
    %1366 = vector.broadcast %1160 : f32 to vector<2x32xf32>
    %1367 = arith.mulf %1366, %1362 : vector<2x32xf32>
    %1368 = arith.addf %1339, %1367 : vector<2x32xf32>
    %1369 = arith.truncf %1368 : vector<2x32xf32> to vector<2x32xbf16>
    %cst_346 = arith.constant dense<0.000000e+00> : vector<2x32xf32>
    %1370 = tpu.matmul %1369, %8, %cst_346 {dimension_numbers = #tpu.dot_dimension_numbers<[1], [0], [0], [1], [0, 0, 1, 1], [], []>} : vector<2x32xbf16>, vector<32x32xbf16>, vector<2x32xf32> -> vector<2x32xf32>
    %1371 = vector.broadcast %9 : vector<1x32xf32> to vector<2x32xf32>
    %1372 = arith.addf %1370, %1371 : vector<2x32xf32>
    %cst_347 = arith.constant 0.000000e+00 : f32
    %1373 = vector.broadcast %cst_347 : f32 to vector<2x32xf32>
    %1374 = arith.maximumf %1372, %1373 : vector<2x32xf32>
    %1375 = arith.truncf %1374 : vector<2x32xf32> to vector<2x32xbf16>
    %cst_348 = arith.constant dense<0.000000e+00> : vector<2x32xf32>
    %1376 = tpu.matmul %1375, %10, %cst_348 {dimension_numbers = #tpu.dot_dimension_numbers<[1], [0], [0], [1], [0, 0, 1, 1], [], []>} : vector<2x32xbf16>, vector<32x32xbf16>, vector<2x32xf32> -> vector<2x32xf32>
    %1377 = vector.broadcast %11 : vector<1x32xf32> to vector<2x32xf32>
    %1378 = arith.addf %1376, %1377 : vector<2x32xf32>
    %cst_349 = arith.constant 2.000000e+00 : f32
    %1379 = vector.broadcast %cst_349 : f32 to vector<2x32xf32>
    %1380 = arith.mulf %1379, %1378 : vector<2x32xf32>
    %1381 = arith.addf %1365, %1380 : vector<2x32xf32>
    %1382 = vector.broadcast %1158 : f32 to vector<2x32xf32>
    %1383 = arith.mulf %1382, %1378 : vector<2x32xf32>
    %1384 = arith.addf %1339, %1383 : vector<2x32xf32>
    %1385 = arith.truncf %1384 : vector<2x32xf32> to vector<2x32xbf16>
    %cst_350 = arith.constant dense<0.000000e+00> : vector<2x32xf32>
    %1386 = tpu.matmul %1385, %8, %cst_350 {dimension_numbers = #tpu.dot_dimension_numbers<[1], [0], [0], [1], [0, 0, 1, 1], [], []>} : vector<2x32xbf16>, vector<32x32xbf16>, vector<2x32xf32> -> vector<2x32xf32>
    %1387 = vector.broadcast %9 : vector<1x32xf32> to vector<2x32xf32>
    %1388 = arith.addf %1386, %1387 : vector<2x32xf32>
    %cst_351 = arith.constant 0.000000e+00 : f32
    %1389 = vector.broadcast %cst_351 : f32 to vector<2x32xf32>
    %1390 = arith.maximumf %1388, %1389 : vector<2x32xf32>
    %1391 = arith.truncf %1390 : vector<2x32xf32> to vector<2x32xbf16>
    %cst_352 = arith.constant dense<0.000000e+00> : vector<2x32xf32>
    %1392 = tpu.matmul %1391, %10, %cst_352 {dimension_numbers = #tpu.dot_dimension_numbers<[1], [0], [0], [1], [0, 0, 1, 1], [], []>} : vector<2x32xbf16>, vector<32x32xbf16>, vector<2x32xf32> -> vector<2x32xf32>
    %1393 = vector.broadcast %11 : vector<1x32xf32> to vector<2x32xf32>
    %1394 = arith.addf %1392, %1393 : vector<2x32xf32>
    %1395 = arith.addf %1381, %1394 : vector<2x32xf32>
    %1396 = vector.broadcast %1162 : f32 to vector<2x32xf32>
    %1397 = arith.mulf %1396, %1395 : vector<2x32xf32>
    %1398 = arith.addf %1339, %1397 : vector<2x32xf32>
    %c5_i32 = arith.constant 5 : i32
    %c2_i32_353 = arith.constant 2 : i32
    %1399 = arith.muli %c5_i32, %c2_i32_353 : i32
    %1400 = arith.index_cast %1399 : i32 to index
    %c0_354 = arith.constant 0 : index
    %1401 = vector.load %arg18[%1400, %c0_354] : memref<14x96xf32, #tpu.memory_space<vmem>>, vector<2x96xf32>
    %1402 = arith.truncf %1398 : vector<2x32xf32> to vector<2x32xbf16>
    %cst_355 = arith.constant dense<0.000000e+00> : vector<2x96xf32>
    %1403 = tpu.matmul %1402, %5, %cst_355 {dimension_numbers = #tpu.dot_dimension_numbers<[1], [0], [0], [1], [0, 0, 1, 1], [], []>} : vector<2x32xbf16>, vector<32x96xbf16>, vector<2x96xf32> -> vector<2x96xf32>
    %1404 = vector.broadcast %7 : vector<1x96xf32> to vector<2x96xf32>
    %1405 = arith.addf %1403, %1404 : vector<2x96xf32>
    %1406 = vector.extract_strided_slice %1401 {offsets = [0, 0], sizes = [2, 32], strides = [1, 1]} : vector<2x96xf32> to vector<2x32xf32>
    %1407 = vector.extract_strided_slice %1405 {offsets = [0, 0], sizes = [2, 32], strides = [1, 1]} : vector<2x96xf32> to vector<2x32xf32>
    %1408 = arith.addf %1406, %1407 : vector<2x32xf32>
    %1409 = arith.negf %1408 : vector<2x32xf32>
    %1410 = math.exp %1409 : vector<2x32xf32>
    %cst_356 = arith.constant 1.000000e+00 : f32
    %1411 = vector.broadcast %cst_356 : f32 to vector<2x32xf32>
    %1412 = arith.addf %1411, %1410 : vector<2x32xf32>
    %1413 = arith.divf %1411, %1412 : vector<2x32xf32>
    %1414 = vector.extract_strided_slice %1401 {offsets = [0, 32], sizes = [2, 32], strides = [1, 1]} : vector<2x96xf32> to vector<2x32xf32>
    %1415 = vector.extract_strided_slice %1405 {offsets = [0, 32], sizes = [2, 32], strides = [1, 1]} : vector<2x96xf32> to vector<2x32xf32>
    %1416 = arith.addf %1414, %1415 : vector<2x32xf32>
    %1417 = arith.negf %1416 : vector<2x32xf32>
    %1418 = math.exp %1417 : vector<2x32xf32>
    %cst_357 = arith.constant 1.000000e+00 : f32
    %1419 = vector.broadcast %cst_357 : f32 to vector<2x32xf32>
    %1420 = arith.addf %1419, %1418 : vector<2x32xf32>
    %1421 = arith.divf %1419, %1420 : vector<2x32xf32>
    %1422 = vector.extract_strided_slice %1401 {offsets = [0, 64], sizes = [2, 32], strides = [1, 1]} : vector<2x96xf32> to vector<2x32xf32>
    %1423 = vector.extract_strided_slice %1405 {offsets = [0, 64], sizes = [2, 32], strides = [1, 1]} : vector<2x96xf32> to vector<2x32xf32>
    %1424 = arith.mulf %1413, %1423 : vector<2x32xf32>
    %1425 = arith.addf %1422, %1424 : vector<2x32xf32>
    %1426 = math.tanh %1425 : vector<2x32xf32>
    %cst_358 = arith.constant 1.000000e+00 : f32
    %1427 = vector.broadcast %cst_358 : f32 to vector<2x32xf32>
    %1428 = arith.subf %1427, %1421 : vector<2x32xf32>
    %1429 = arith.mulf %1428, %1426 : vector<2x32xf32>
    %1430 = arith.mulf %1421, %1398 : vector<2x32xf32>
    %1431 = arith.addf %1429, %1430 : vector<2x32xf32>
    %1432 = arith.addi %0, %c5_i32 : i32
    %1433 = arith.index_cast %1432 : i32 to index
    %1434 = memref.load %arg1[%1433] : memref<7xf32, #tpu.memory_space<smem>>
    %1435 = arith.index_cast %1432 : i32 to index
    %1436 = memref.load %arg2[%1435] : memref<7xf32, #tpu.memory_space<smem>>
    %1437 = arith.index_cast %1432 : i32 to index
    %1438 = memref.load %arg3[%1437] : memref<7xf32, #tpu.memory_space<smem>>
    %c0_i32_359 = arith.constant 0 : i32
    %1439 = arith.truncf %1431 : vector<2x32xf32> to vector<2x32xbf16>
    %cst_360 = arith.constant dense<0.000000e+00> : vector<2x32xf32>
    %1440 = tpu.matmul %1439, %8, %cst_360 {dimension_numbers = #tpu.dot_dimension_numbers<[1], [0], [0], [1], [0, 0, 1, 1], [], []>} : vector<2x32xbf16>, vector<32x32xbf16>, vector<2x32xf32> -> vector<2x32xf32>
    %1441 = vector.broadcast %9 : vector<1x32xf32> to vector<2x32xf32>
    %1442 = arith.addf %1440, %1441 : vector<2x32xf32>
    %cst_361 = arith.constant 0.000000e+00 : f32
    %1443 = vector.broadcast %cst_361 : f32 to vector<2x32xf32>
    %1444 = arith.maximumf %1442, %1443 : vector<2x32xf32>
    %1445 = arith.truncf %1444 : vector<2x32xf32> to vector<2x32xbf16>
    %cst_362 = arith.constant dense<0.000000e+00> : vector<2x32xf32>
    %1446 = tpu.matmul %1445, %10, %cst_362 {dimension_numbers = #tpu.dot_dimension_numbers<[1], [0], [0], [1], [0, 0, 1, 1], [], []>} : vector<2x32xbf16>, vector<32x32xbf16>, vector<2x32xf32> -> vector<2x32xf32>
    %1447 = vector.broadcast %11 : vector<1x32xf32> to vector<2x32xf32>
    %1448 = arith.addf %1446, %1447 : vector<2x32xf32>
    %1449 = vector.broadcast %1436 : f32 to vector<2x32xf32>
    %1450 = arith.mulf %1449, %1448 : vector<2x32xf32>
    %1451 = arith.addf %1431, %1450 : vector<2x32xf32>
    %1452 = arith.truncf %1451 : vector<2x32xf32> to vector<2x32xbf16>
    %cst_363 = arith.constant dense<0.000000e+00> : vector<2x32xf32>
    %1453 = tpu.matmul %1452, %8, %cst_363 {dimension_numbers = #tpu.dot_dimension_numbers<[1], [0], [0], [1], [0, 0, 1, 1], [], []>} : vector<2x32xbf16>, vector<32x32xbf16>, vector<2x32xf32> -> vector<2x32xf32>
    %1454 = vector.broadcast %9 : vector<1x32xf32> to vector<2x32xf32>
    %1455 = arith.addf %1453, %1454 : vector<2x32xf32>
    %cst_364 = arith.constant 0.000000e+00 : f32
    %1456 = vector.broadcast %cst_364 : f32 to vector<2x32xf32>
    %1457 = arith.maximumf %1455, %1456 : vector<2x32xf32>
    %1458 = arith.truncf %1457 : vector<2x32xf32> to vector<2x32xbf16>
    %cst_365 = arith.constant dense<0.000000e+00> : vector<2x32xf32>
    %1459 = tpu.matmul %1458, %10, %cst_365 {dimension_numbers = #tpu.dot_dimension_numbers<[1], [0], [0], [1], [0, 0, 1, 1], [], []>} : vector<2x32xbf16>, vector<32x32xbf16>, vector<2x32xf32> -> vector<2x32xf32>
    %1460 = vector.broadcast %11 : vector<1x32xf32> to vector<2x32xf32>
    %1461 = arith.addf %1459, %1460 : vector<2x32xf32>
    %cst_366 = arith.constant 2.000000e+00 : f32
    %1462 = vector.broadcast %cst_366 : f32 to vector<2x32xf32>
    %1463 = arith.mulf %1462, %1461 : vector<2x32xf32>
    %1464 = arith.addf %1448, %1463 : vector<2x32xf32>
    %1465 = vector.broadcast %1436 : f32 to vector<2x32xf32>
    %1466 = arith.mulf %1465, %1461 : vector<2x32xf32>
    %1467 = arith.addf %1431, %1466 : vector<2x32xf32>
    %1468 = arith.truncf %1467 : vector<2x32xf32> to vector<2x32xbf16>
    %cst_367 = arith.constant dense<0.000000e+00> : vector<2x32xf32>
    %1469 = tpu.matmul %1468, %8, %cst_367 {dimension_numbers = #tpu.dot_dimension_numbers<[1], [0], [0], [1], [0, 0, 1, 1], [], []>} : vector<2x32xbf16>, vector<32x32xbf16>, vector<2x32xf32> -> vector<2x32xf32>
    %1470 = vector.broadcast %9 : vector<1x32xf32> to vector<2x32xf32>
    %1471 = arith.addf %1469, %1470 : vector<2x32xf32>
    %cst_368 = arith.constant 0.000000e+00 : f32
    %1472 = vector.broadcast %cst_368 : f32 to vector<2x32xf32>
    %1473 = arith.maximumf %1471, %1472 : vector<2x32xf32>
    %1474 = arith.truncf %1473 : vector<2x32xf32> to vector<2x32xbf16>
    %cst_369 = arith.constant dense<0.000000e+00> : vector<2x32xf32>
    %1475 = tpu.matmul %1474, %10, %cst_369 {dimension_numbers = #tpu.dot_dimension_numbers<[1], [0], [0], [1], [0, 0, 1, 1], [], []>} : vector<2x32xbf16>, vector<32x32xbf16>, vector<2x32xf32> -> vector<2x32xf32>
    %1476 = vector.broadcast %11 : vector<1x32xf32> to vector<2x32xf32>
    %1477 = arith.addf %1475, %1476 : vector<2x32xf32>
    %cst_370 = arith.constant 2.000000e+00 : f32
    %1478 = vector.broadcast %cst_370 : f32 to vector<2x32xf32>
    %1479 = arith.mulf %1478, %1477 : vector<2x32xf32>
    %1480 = arith.addf %1464, %1479 : vector<2x32xf32>
    %1481 = vector.broadcast %1434 : f32 to vector<2x32xf32>
    %1482 = arith.mulf %1481, %1477 : vector<2x32xf32>
    %1483 = arith.addf %1431, %1482 : vector<2x32xf32>
    %1484 = arith.truncf %1483 : vector<2x32xf32> to vector<2x32xbf16>
    %cst_371 = arith.constant dense<0.000000e+00> : vector<2x32xf32>
    %1485 = tpu.matmul %1484, %8, %cst_371 {dimension_numbers = #tpu.dot_dimension_numbers<[1], [0], [0], [1], [0, 0, 1, 1], [], []>} : vector<2x32xbf16>, vector<32x32xbf16>, vector<2x32xf32> -> vector<2x32xf32>
    %1486 = vector.broadcast %9 : vector<1x32xf32> to vector<2x32xf32>
    %1487 = arith.addf %1485, %1486 : vector<2x32xf32>
    %cst_372 = arith.constant 0.000000e+00 : f32
    %1488 = vector.broadcast %cst_372 : f32 to vector<2x32xf32>
    %1489 = arith.maximumf %1487, %1488 : vector<2x32xf32>
    %1490 = arith.truncf %1489 : vector<2x32xf32> to vector<2x32xbf16>
    %cst_373 = arith.constant dense<0.000000e+00> : vector<2x32xf32>
    %1491 = tpu.matmul %1490, %10, %cst_373 {dimension_numbers = #tpu.dot_dimension_numbers<[1], [0], [0], [1], [0, 0, 1, 1], [], []>} : vector<2x32xbf16>, vector<32x32xbf16>, vector<2x32xf32> -> vector<2x32xf32>
    %1492 = vector.broadcast %11 : vector<1x32xf32> to vector<2x32xf32>
    %1493 = arith.addf %1491, %1492 : vector<2x32xf32>
    %1494 = arith.addf %1480, %1493 : vector<2x32xf32>
    %1495 = vector.broadcast %1438 : f32 to vector<2x32xf32>
    %1496 = arith.mulf %1495, %1494 : vector<2x32xf32>
    %1497 = arith.addf %1431, %1496 : vector<2x32xf32>
    %c1_i32_374 = arith.constant 1 : i32
    %1498 = arith.truncf %1497 : vector<2x32xf32> to vector<2x32xbf16>
    %cst_375 = arith.constant dense<0.000000e+00> : vector<2x32xf32>
    %1499 = tpu.matmul %1498, %8, %cst_375 {dimension_numbers = #tpu.dot_dimension_numbers<[1], [0], [0], [1], [0, 0, 1, 1], [], []>} : vector<2x32xbf16>, vector<32x32xbf16>, vector<2x32xf32> -> vector<2x32xf32>
    %1500 = vector.broadcast %9 : vector<1x32xf32> to vector<2x32xf32>
    %1501 = arith.addf %1499, %1500 : vector<2x32xf32>
    %cst_376 = arith.constant 0.000000e+00 : f32
    %1502 = vector.broadcast %cst_376 : f32 to vector<2x32xf32>
    %1503 = arith.maximumf %1501, %1502 : vector<2x32xf32>
    %1504 = arith.truncf %1503 : vector<2x32xf32> to vector<2x32xbf16>
    %cst_377 = arith.constant dense<0.000000e+00> : vector<2x32xf32>
    %1505 = tpu.matmul %1504, %10, %cst_377 {dimension_numbers = #tpu.dot_dimension_numbers<[1], [0], [0], [1], [0, 0, 1, 1], [], []>} : vector<2x32xbf16>, vector<32x32xbf16>, vector<2x32xf32> -> vector<2x32xf32>
    %1506 = vector.broadcast %11 : vector<1x32xf32> to vector<2x32xf32>
    %1507 = arith.addf %1505, %1506 : vector<2x32xf32>
    %1508 = vector.broadcast %1436 : f32 to vector<2x32xf32>
    %1509 = arith.mulf %1508, %1507 : vector<2x32xf32>
    %1510 = arith.addf %1497, %1509 : vector<2x32xf32>
    %1511 = arith.truncf %1510 : vector<2x32xf32> to vector<2x32xbf16>
    %cst_378 = arith.constant dense<0.000000e+00> : vector<2x32xf32>
    %1512 = tpu.matmul %1511, %8, %cst_378 {dimension_numbers = #tpu.dot_dimension_numbers<[1], [0], [0], [1], [0, 0, 1, 1], [], []>} : vector<2x32xbf16>, vector<32x32xbf16>, vector<2x32xf32> -> vector<2x32xf32>
    %1513 = vector.broadcast %9 : vector<1x32xf32> to vector<2x32xf32>
    %1514 = arith.addf %1512, %1513 : vector<2x32xf32>
    %cst_379 = arith.constant 0.000000e+00 : f32
    %1515 = vector.broadcast %cst_379 : f32 to vector<2x32xf32>
    %1516 = arith.maximumf %1514, %1515 : vector<2x32xf32>
    %1517 = arith.truncf %1516 : vector<2x32xf32> to vector<2x32xbf16>
    %cst_380 = arith.constant dense<0.000000e+00> : vector<2x32xf32>
    %1518 = tpu.matmul %1517, %10, %cst_380 {dimension_numbers = #tpu.dot_dimension_numbers<[1], [0], [0], [1], [0, 0, 1, 1], [], []>} : vector<2x32xbf16>, vector<32x32xbf16>, vector<2x32xf32> -> vector<2x32xf32>
    %1519 = vector.broadcast %11 : vector<1x32xf32> to vector<2x32xf32>
    %1520 = arith.addf %1518, %1519 : vector<2x32xf32>
    %cst_381 = arith.constant 2.000000e+00 : f32
    %1521 = vector.broadcast %cst_381 : f32 to vector<2x32xf32>
    %1522 = arith.mulf %1521, %1520 : vector<2x32xf32>
    %1523 = arith.addf %1507, %1522 : vector<2x32xf32>
    %1524 = vector.broadcast %1436 : f32 to vector<2x32xf32>
    %1525 = arith.mulf %1524, %1520 : vector<2x32xf32>
    %1526 = arith.addf %1497, %1525 : vector<2x32xf32>
    %1527 = arith.truncf %1526 : vector<2x32xf32> to vector<2x32xbf16>
    %cst_382 = arith.constant dense<0.000000e+00> : vector<2x32xf32>
    %1528 = tpu.matmul %1527, %8, %cst_382 {dimension_numbers = #tpu.dot_dimension_numbers<[1], [0], [0], [1], [0, 0, 1, 1], [], []>} : vector<2x32xbf16>, vector<32x32xbf16>, vector<2x32xf32> -> vector<2x32xf32>
    %1529 = vector.broadcast %9 : vector<1x32xf32> to vector<2x32xf32>
    %1530 = arith.addf %1528, %1529 : vector<2x32xf32>
    %cst_383 = arith.constant 0.000000e+00 : f32
    %1531 = vector.broadcast %cst_383 : f32 to vector<2x32xf32>
    %1532 = arith.maximumf %1530, %1531 : vector<2x32xf32>
    %1533 = arith.truncf %1532 : vector<2x32xf32> to vector<2x32xbf16>
    %cst_384 = arith.constant dense<0.000000e+00> : vector<2x32xf32>
    %1534 = tpu.matmul %1533, %10, %cst_384 {dimension_numbers = #tpu.dot_dimension_numbers<[1], [0], [0], [1], [0, 0, 1, 1], [], []>} : vector<2x32xbf16>, vector<32x32xbf16>, vector<2x32xf32> -> vector<2x32xf32>
    %1535 = vector.broadcast %11 : vector<1x32xf32> to vector<2x32xf32>
    %1536 = arith.addf %1534, %1535 : vector<2x32xf32>
    %cst_385 = arith.constant 2.000000e+00 : f32
    %1537 = vector.broadcast %cst_385 : f32 to vector<2x32xf32>
    %1538 = arith.mulf %1537, %1536 : vector<2x32xf32>
    %1539 = arith.addf %1523, %1538 : vector<2x32xf32>
    %1540 = vector.broadcast %1434 : f32 to vector<2x32xf32>
    %1541 = arith.mulf %1540, %1536 : vector<2x32xf32>
    %1542 = arith.addf %1497, %1541 : vector<2x32xf32>
    %1543 = arith.truncf %1542 : vector<2x32xf32> to vector<2x32xbf16>
    %cst_386 = arith.constant dense<0.000000e+00> : vector<2x32xf32>
    %1544 = tpu.matmul %1543, %8, %cst_386 {dimension_numbers = #tpu.dot_dimension_numbers<[1], [0], [0], [1], [0, 0, 1, 1], [], []>} : vector<2x32xbf16>, vector<32x32xbf16>, vector<2x32xf32> -> vector<2x32xf32>
    %1545 = vector.broadcast %9 : vector<1x32xf32> to vector<2x32xf32>
    %1546 = arith.addf %1544, %1545 : vector<2x32xf32>
    %cst_387 = arith.constant 0.000000e+00 : f32
    %1547 = vector.broadcast %cst_387 : f32 to vector<2x32xf32>
    %1548 = arith.maximumf %1546, %1547 : vector<2x32xf32>
    %1549 = arith.truncf %1548 : vector<2x32xf32> to vector<2x32xbf16>
    %cst_388 = arith.constant dense<0.000000e+00> : vector<2x32xf32>
    %1550 = tpu.matmul %1549, %10, %cst_388 {dimension_numbers = #tpu.dot_dimension_numbers<[1], [0], [0], [1], [0, 0, 1, 1], [], []>} : vector<2x32xbf16>, vector<32x32xbf16>, vector<2x32xf32> -> vector<2x32xf32>
    %1551 = vector.broadcast %11 : vector<1x32xf32> to vector<2x32xf32>
    %1552 = arith.addf %1550, %1551 : vector<2x32xf32>
    %1553 = arith.addf %1539, %1552 : vector<2x32xf32>
    %1554 = vector.broadcast %1438 : f32 to vector<2x32xf32>
    %1555 = arith.mulf %1554, %1553 : vector<2x32xf32>
    %1556 = arith.addf %1497, %1555 : vector<2x32xf32>
    %c2_i32_389 = arith.constant 2 : i32
    %1557 = arith.truncf %1556 : vector<2x32xf32> to vector<2x32xbf16>
    %cst_390 = arith.constant dense<0.000000e+00> : vector<2x32xf32>
    %1558 = tpu.matmul %1557, %8, %cst_390 {dimension_numbers = #tpu.dot_dimension_numbers<[1], [0], [0], [1], [0, 0, 1, 1], [], []>} : vector<2x32xbf16>, vector<32x32xbf16>, vector<2x32xf32> -> vector<2x32xf32>
    %1559 = vector.broadcast %9 : vector<1x32xf32> to vector<2x32xf32>
    %1560 = arith.addf %1558, %1559 : vector<2x32xf32>
    %cst_391 = arith.constant 0.000000e+00 : f32
    %1561 = vector.broadcast %cst_391 : f32 to vector<2x32xf32>
    %1562 = arith.maximumf %1560, %1561 : vector<2x32xf32>
    %1563 = arith.truncf %1562 : vector<2x32xf32> to vector<2x32xbf16>
    %cst_392 = arith.constant dense<0.000000e+00> : vector<2x32xf32>
    %1564 = tpu.matmul %1563, %10, %cst_392 {dimension_numbers = #tpu.dot_dimension_numbers<[1], [0], [0], [1], [0, 0, 1, 1], [], []>} : vector<2x32xbf16>, vector<32x32xbf16>, vector<2x32xf32> -> vector<2x32xf32>
    %1565 = vector.broadcast %11 : vector<1x32xf32> to vector<2x32xf32>
    %1566 = arith.addf %1564, %1565 : vector<2x32xf32>
    %1567 = vector.broadcast %1436 : f32 to vector<2x32xf32>
    %1568 = arith.mulf %1567, %1566 : vector<2x32xf32>
    %1569 = arith.addf %1556, %1568 : vector<2x32xf32>
    %1570 = arith.truncf %1569 : vector<2x32xf32> to vector<2x32xbf16>
    %cst_393 = arith.constant dense<0.000000e+00> : vector<2x32xf32>
    %1571 = tpu.matmul %1570, %8, %cst_393 {dimension_numbers = #tpu.dot_dimension_numbers<[1], [0], [0], [1], [0, 0, 1, 1], [], []>} : vector<2x32xbf16>, vector<32x32xbf16>, vector<2x32xf32> -> vector<2x32xf32>
    %1572 = vector.broadcast %9 : vector<1x32xf32> to vector<2x32xf32>
    %1573 = arith.addf %1571, %1572 : vector<2x32xf32>
    %cst_394 = arith.constant 0.000000e+00 : f32
    %1574 = vector.broadcast %cst_394 : f32 to vector<2x32xf32>
    %1575 = arith.maximumf %1573, %1574 : vector<2x32xf32>
    %1576 = arith.truncf %1575 : vector<2x32xf32> to vector<2x32xbf16>
    %cst_395 = arith.constant dense<0.000000e+00> : vector<2x32xf32>
    %1577 = tpu.matmul %1576, %10, %cst_395 {dimension_numbers = #tpu.dot_dimension_numbers<[1], [0], [0], [1], [0, 0, 1, 1], [], []>} : vector<2x32xbf16>, vector<32x32xbf16>, vector<2x32xf32> -> vector<2x32xf32>
    %1578 = vector.broadcast %11 : vector<1x32xf32> to vector<2x32xf32>
    %1579 = arith.addf %1577, %1578 : vector<2x32xf32>
    %cst_396 = arith.constant 2.000000e+00 : f32
    %1580 = vector.broadcast %cst_396 : f32 to vector<2x32xf32>
    %1581 = arith.mulf %1580, %1579 : vector<2x32xf32>
    %1582 = arith.addf %1566, %1581 : vector<2x32xf32>
    %1583 = vector.broadcast %1436 : f32 to vector<2x32xf32>
    %1584 = arith.mulf %1583, %1579 : vector<2x32xf32>
    %1585 = arith.addf %1556, %1584 : vector<2x32xf32>
    %1586 = arith.truncf %1585 : vector<2x32xf32> to vector<2x32xbf16>
    %cst_397 = arith.constant dense<0.000000e+00> : vector<2x32xf32>
    %1587 = tpu.matmul %1586, %8, %cst_397 {dimension_numbers = #tpu.dot_dimension_numbers<[1], [0], [0], [1], [0, 0, 1, 1], [], []>} : vector<2x32xbf16>, vector<32x32xbf16>, vector<2x32xf32> -> vector<2x32xf32>
    %1588 = vector.broadcast %9 : vector<1x32xf32> to vector<2x32xf32>
    %1589 = arith.addf %1587, %1588 : vector<2x32xf32>
    %cst_398 = arith.constant 0.000000e+00 : f32
    %1590 = vector.broadcast %cst_398 : f32 to vector<2x32xf32>
    %1591 = arith.maximumf %1589, %1590 : vector<2x32xf32>
    %1592 = arith.truncf %1591 : vector<2x32xf32> to vector<2x32xbf16>
    %cst_399 = arith.constant dense<0.000000e+00> : vector<2x32xf32>
    %1593 = tpu.matmul %1592, %10, %cst_399 {dimension_numbers = #tpu.dot_dimension_numbers<[1], [0], [0], [1], [0, 0, 1, 1], [], []>} : vector<2x32xbf16>, vector<32x32xbf16>, vector<2x32xf32> -> vector<2x32xf32>
    %1594 = vector.broadcast %11 : vector<1x32xf32> to vector<2x32xf32>
    %1595 = arith.addf %1593, %1594 : vector<2x32xf32>
    %cst_400 = arith.constant 2.000000e+00 : f32
    %1596 = vector.broadcast %cst_400 : f32 to vector<2x32xf32>
    %1597 = arith.mulf %1596, %1595 : vector<2x32xf32>
    %1598 = arith.addf %1582, %1597 : vector<2x32xf32>
    %1599 = vector.broadcast %1434 : f32 to vector<2x32xf32>
    %1600 = arith.mulf %1599, %1595 : vector<2x32xf32>
    %1601 = arith.addf %1556, %1600 : vector<2x32xf32>
    %1602 = arith.truncf %1601 : vector<2x32xf32> to vector<2x32xbf16>
    %cst_401 = arith.constant dense<0.000000e+00> : vector<2x32xf32>
    %1603 = tpu.matmul %1602, %8, %cst_401 {dimension_numbers = #tpu.dot_dimension_numbers<[1], [0], [0], [1], [0, 0, 1, 1], [], []>} : vector<2x32xbf16>, vector<32x32xbf16>, vector<2x32xf32> -> vector<2x32xf32>
    %1604 = vector.broadcast %9 : vector<1x32xf32> to vector<2x32xf32>
    %1605 = arith.addf %1603, %1604 : vector<2x32xf32>
    %cst_402 = arith.constant 0.000000e+00 : f32
    %1606 = vector.broadcast %cst_402 : f32 to vector<2x32xf32>
    %1607 = arith.maximumf %1605, %1606 : vector<2x32xf32>
    %1608 = arith.truncf %1607 : vector<2x32xf32> to vector<2x32xbf16>
    %cst_403 = arith.constant dense<0.000000e+00> : vector<2x32xf32>
    %1609 = tpu.matmul %1608, %10, %cst_403 {dimension_numbers = #tpu.dot_dimension_numbers<[1], [0], [0], [1], [0, 0, 1, 1], [], []>} : vector<2x32xbf16>, vector<32x32xbf16>, vector<2x32xf32> -> vector<2x32xf32>
    %1610 = vector.broadcast %11 : vector<1x32xf32> to vector<2x32xf32>
    %1611 = arith.addf %1609, %1610 : vector<2x32xf32>
    %1612 = arith.addf %1598, %1611 : vector<2x32xf32>
    %1613 = vector.broadcast %1438 : f32 to vector<2x32xf32>
    %1614 = arith.mulf %1613, %1612 : vector<2x32xf32>
    %1615 = arith.addf %1556, %1614 : vector<2x32xf32>
    %c3_i32_404 = arith.constant 3 : i32
    %1616 = arith.truncf %1615 : vector<2x32xf32> to vector<2x32xbf16>
    %cst_405 = arith.constant dense<0.000000e+00> : vector<2x32xf32>
    %1617 = tpu.matmul %1616, %8, %cst_405 {dimension_numbers = #tpu.dot_dimension_numbers<[1], [0], [0], [1], [0, 0, 1, 1], [], []>} : vector<2x32xbf16>, vector<32x32xbf16>, vector<2x32xf32> -> vector<2x32xf32>
    %1618 = vector.broadcast %9 : vector<1x32xf32> to vector<2x32xf32>
    %1619 = arith.addf %1617, %1618 : vector<2x32xf32>
    %cst_406 = arith.constant 0.000000e+00 : f32
    %1620 = vector.broadcast %cst_406 : f32 to vector<2x32xf32>
    %1621 = arith.maximumf %1619, %1620 : vector<2x32xf32>
    %1622 = arith.truncf %1621 : vector<2x32xf32> to vector<2x32xbf16>
    %cst_407 = arith.constant dense<0.000000e+00> : vector<2x32xf32>
    %1623 = tpu.matmul %1622, %10, %cst_407 {dimension_numbers = #tpu.dot_dimension_numbers<[1], [0], [0], [1], [0, 0, 1, 1], [], []>} : vector<2x32xbf16>, vector<32x32xbf16>, vector<2x32xf32> -> vector<2x32xf32>
    %1624 = vector.broadcast %11 : vector<1x32xf32> to vector<2x32xf32>
    %1625 = arith.addf %1623, %1624 : vector<2x32xf32>
    %1626 = vector.broadcast %1436 : f32 to vector<2x32xf32>
    %1627 = arith.mulf %1626, %1625 : vector<2x32xf32>
    %1628 = arith.addf %1615, %1627 : vector<2x32xf32>
    %1629 = arith.truncf %1628 : vector<2x32xf32> to vector<2x32xbf16>
    %cst_408 = arith.constant dense<0.000000e+00> : vector<2x32xf32>
    %1630 = tpu.matmul %1629, %8, %cst_408 {dimension_numbers = #tpu.dot_dimension_numbers<[1], [0], [0], [1], [0, 0, 1, 1], [], []>} : vector<2x32xbf16>, vector<32x32xbf16>, vector<2x32xf32> -> vector<2x32xf32>
    %1631 = vector.broadcast %9 : vector<1x32xf32> to vector<2x32xf32>
    %1632 = arith.addf %1630, %1631 : vector<2x32xf32>
    %cst_409 = arith.constant 0.000000e+00 : f32
    %1633 = vector.broadcast %cst_409 : f32 to vector<2x32xf32>
    %1634 = arith.maximumf %1632, %1633 : vector<2x32xf32>
    %1635 = arith.truncf %1634 : vector<2x32xf32> to vector<2x32xbf16>
    %cst_410 = arith.constant dense<0.000000e+00> : vector<2x32xf32>
    %1636 = tpu.matmul %1635, %10, %cst_410 {dimension_numbers = #tpu.dot_dimension_numbers<[1], [0], [0], [1], [0, 0, 1, 1], [], []>} : vector<2x32xbf16>, vector<32x32xbf16>, vector<2x32xf32> -> vector<2x32xf32>
    %1637 = vector.broadcast %11 : vector<1x32xf32> to vector<2x32xf32>
    %1638 = arith.addf %1636, %1637 : vector<2x32xf32>
    %cst_411 = arith.constant 2.000000e+00 : f32
    %1639 = vector.broadcast %cst_411 : f32 to vector<2x32xf32>
    %1640 = arith.mulf %1639, %1638 : vector<2x32xf32>
    %1641 = arith.addf %1625, %1640 : vector<2x32xf32>
    %1642 = vector.broadcast %1436 : f32 to vector<2x32xf32>
    %1643 = arith.mulf %1642, %1638 : vector<2x32xf32>
    %1644 = arith.addf %1615, %1643 : vector<2x32xf32>
    %1645 = arith.truncf %1644 : vector<2x32xf32> to vector<2x32xbf16>
    %cst_412 = arith.constant dense<0.000000e+00> : vector<2x32xf32>
    %1646 = tpu.matmul %1645, %8, %cst_412 {dimension_numbers = #tpu.dot_dimension_numbers<[1], [0], [0], [1], [0, 0, 1, 1], [], []>} : vector<2x32xbf16>, vector<32x32xbf16>, vector<2x32xf32> -> vector<2x32xf32>
    %1647 = vector.broadcast %9 : vector<1x32xf32> to vector<2x32xf32>
    %1648 = arith.addf %1646, %1647 : vector<2x32xf32>
    %cst_413 = arith.constant 0.000000e+00 : f32
    %1649 = vector.broadcast %cst_413 : f32 to vector<2x32xf32>
    %1650 = arith.maximumf %1648, %1649 : vector<2x32xf32>
    %1651 = arith.truncf %1650 : vector<2x32xf32> to vector<2x32xbf16>
    %cst_414 = arith.constant dense<0.000000e+00> : vector<2x32xf32>
    %1652 = tpu.matmul %1651, %10, %cst_414 {dimension_numbers = #tpu.dot_dimension_numbers<[1], [0], [0], [1], [0, 0, 1, 1], [], []>} : vector<2x32xbf16>, vector<32x32xbf16>, vector<2x32xf32> -> vector<2x32xf32>
    %1653 = vector.broadcast %11 : vector<1x32xf32> to vector<2x32xf32>
    %1654 = arith.addf %1652, %1653 : vector<2x32xf32>
    %cst_415 = arith.constant 2.000000e+00 : f32
    %1655 = vector.broadcast %cst_415 : f32 to vector<2x32xf32>
    %1656 = arith.mulf %1655, %1654 : vector<2x32xf32>
    %1657 = arith.addf %1641, %1656 : vector<2x32xf32>
    %1658 = vector.broadcast %1434 : f32 to vector<2x32xf32>
    %1659 = arith.mulf %1658, %1654 : vector<2x32xf32>
    %1660 = arith.addf %1615, %1659 : vector<2x32xf32>
    %1661 = arith.truncf %1660 : vector<2x32xf32> to vector<2x32xbf16>
    %cst_416 = arith.constant dense<0.000000e+00> : vector<2x32xf32>
    %1662 = tpu.matmul %1661, %8, %cst_416 {dimension_numbers = #tpu.dot_dimension_numbers<[1], [0], [0], [1], [0, 0, 1, 1], [], []>} : vector<2x32xbf16>, vector<32x32xbf16>, vector<2x32xf32> -> vector<2x32xf32>
    %1663 = vector.broadcast %9 : vector<1x32xf32> to vector<2x32xf32>
    %1664 = arith.addf %1662, %1663 : vector<2x32xf32>
    %cst_417 = arith.constant 0.000000e+00 : f32
    %1665 = vector.broadcast %cst_417 : f32 to vector<2x32xf32>
    %1666 = arith.maximumf %1664, %1665 : vector<2x32xf32>
    %1667 = arith.truncf %1666 : vector<2x32xf32> to vector<2x32xbf16>
    %cst_418 = arith.constant dense<0.000000e+00> : vector<2x32xf32>
    %1668 = tpu.matmul %1667, %10, %cst_418 {dimension_numbers = #tpu.dot_dimension_numbers<[1], [0], [0], [1], [0, 0, 1, 1], [], []>} : vector<2x32xbf16>, vector<32x32xbf16>, vector<2x32xf32> -> vector<2x32xf32>
    %1669 = vector.broadcast %11 : vector<1x32xf32> to vector<2x32xf32>
    %1670 = arith.addf %1668, %1669 : vector<2x32xf32>
    %1671 = arith.addf %1657, %1670 : vector<2x32xf32>
    %1672 = vector.broadcast %1438 : f32 to vector<2x32xf32>
    %1673 = arith.mulf %1672, %1671 : vector<2x32xf32>
    %1674 = arith.addf %1615, %1673 : vector<2x32xf32>
    %c6_i32 = arith.constant 6 : i32
    %c2_i32_419 = arith.constant 2 : i32
    %1675 = arith.muli %c6_i32, %c2_i32_419 : i32
    %1676 = arith.index_cast %1675 : i32 to index
    %c0_420 = arith.constant 0 : index
    %1677 = vector.load %arg18[%1676, %c0_420] : memref<14x96xf32, #tpu.memory_space<vmem>>, vector<2x96xf32>
    %1678 = arith.truncf %1674 : vector<2x32xf32> to vector<2x32xbf16>
    %cst_421 = arith.constant dense<0.000000e+00> : vector<2x96xf32>
    %1679 = tpu.matmul %1678, %5, %cst_421 {dimension_numbers = #tpu.dot_dimension_numbers<[1], [0], [0], [1], [0, 0, 1, 1], [], []>} : vector<2x32xbf16>, vector<32x96xbf16>, vector<2x96xf32> -> vector<2x96xf32>
    %1680 = vector.broadcast %7 : vector<1x96xf32> to vector<2x96xf32>
    %1681 = arith.addf %1679, %1680 : vector<2x96xf32>
    %1682 = vector.extract_strided_slice %1677 {offsets = [0, 0], sizes = [2, 32], strides = [1, 1]} : vector<2x96xf32> to vector<2x32xf32>
    %1683 = vector.extract_strided_slice %1681 {offsets = [0, 0], sizes = [2, 32], strides = [1, 1]} : vector<2x96xf32> to vector<2x32xf32>
    %1684 = arith.addf %1682, %1683 : vector<2x32xf32>
    %1685 = arith.negf %1684 : vector<2x32xf32>
    %1686 = math.exp %1685 : vector<2x32xf32>
    %cst_422 = arith.constant 1.000000e+00 : f32
    %1687 = vector.broadcast %cst_422 : f32 to vector<2x32xf32>
    %1688 = arith.addf %1687, %1686 : vector<2x32xf32>
    %1689 = arith.divf %1687, %1688 : vector<2x32xf32>
    %1690 = vector.extract_strided_slice %1677 {offsets = [0, 32], sizes = [2, 32], strides = [1, 1]} : vector<2x96xf32> to vector<2x32xf32>
    %1691 = vector.extract_strided_slice %1681 {offsets = [0, 32], sizes = [2, 32], strides = [1, 1]} : vector<2x96xf32> to vector<2x32xf32>
    %1692 = arith.addf %1690, %1691 : vector<2x32xf32>
    %1693 = arith.negf %1692 : vector<2x32xf32>
    %1694 = math.exp %1693 : vector<2x32xf32>
    %cst_423 = arith.constant 1.000000e+00 : f32
    %1695 = vector.broadcast %cst_423 : f32 to vector<2x32xf32>
    %1696 = arith.addf %1695, %1694 : vector<2x32xf32>
    %1697 = arith.divf %1695, %1696 : vector<2x32xf32>
    %1698 = vector.extract_strided_slice %1677 {offsets = [0, 64], sizes = [2, 32], strides = [1, 1]} : vector<2x96xf32> to vector<2x32xf32>
    %1699 = vector.extract_strided_slice %1681 {offsets = [0, 64], sizes = [2, 32], strides = [1, 1]} : vector<2x96xf32> to vector<2x32xf32>
    %1700 = arith.mulf %1689, %1699 : vector<2x32xf32>
    %1701 = arith.addf %1698, %1700 : vector<2x32xf32>
    %1702 = math.tanh %1701 : vector<2x32xf32>
    %cst_424 = arith.constant 1.000000e+00 : f32
    %1703 = vector.broadcast %cst_424 : f32 to vector<2x32xf32>
    %1704 = arith.subf %1703, %1697 : vector<2x32xf32>
    %1705 = arith.mulf %1704, %1702 : vector<2x32xf32>
    %1706 = arith.mulf %1697, %1674 : vector<2x32xf32>
    %1707 = arith.addf %1705, %1706 : vector<2x32xf32>
    %1708 = arith.addi %0, %c6_i32 : i32
    %1709 = arith.index_cast %1708 : i32 to index
    %1710 = memref.load %arg1[%1709] : memref<7xf32, #tpu.memory_space<smem>>
    %1711 = arith.index_cast %1708 : i32 to index
    %1712 = memref.load %arg2[%1711] : memref<7xf32, #tpu.memory_space<smem>>
    %1713 = arith.index_cast %1708 : i32 to index
    %1714 = memref.load %arg3[%1713] : memref<7xf32, #tpu.memory_space<smem>>
    %c0_i32_425 = arith.constant 0 : i32
    %1715 = arith.truncf %1707 : vector<2x32xf32> to vector<2x32xbf16>
    %cst_426 = arith.constant dense<0.000000e+00> : vector<2x32xf32>
    %1716 = tpu.matmul %1715, %8, %cst_426 {dimension_numbers = #tpu.dot_dimension_numbers<[1], [0], [0], [1], [0, 0, 1, 1], [], []>} : vector<2x32xbf16>, vector<32x32xbf16>, vector<2x32xf32> -> vector<2x32xf32>
    %1717 = vector.broadcast %9 : vector<1x32xf32> to vector<2x32xf32>
    %1718 = arith.addf %1716, %1717 : vector<2x32xf32>
    %cst_427 = arith.constant 0.000000e+00 : f32
    %1719 = vector.broadcast %cst_427 : f32 to vector<2x32xf32>
    %1720 = arith.maximumf %1718, %1719 : vector<2x32xf32>
    %1721 = arith.truncf %1720 : vector<2x32xf32> to vector<2x32xbf16>
    %cst_428 = arith.constant dense<0.000000e+00> : vector<2x32xf32>
    %1722 = tpu.matmul %1721, %10, %cst_428 {dimension_numbers = #tpu.dot_dimension_numbers<[1], [0], [0], [1], [0, 0, 1, 1], [], []>} : vector<2x32xbf16>, vector<32x32xbf16>, vector<2x32xf32> -> vector<2x32xf32>
    %1723 = vector.broadcast %11 : vector<1x32xf32> to vector<2x32xf32>
    %1724 = arith.addf %1722, %1723 : vector<2x32xf32>
    %1725 = vector.broadcast %1712 : f32 to vector<2x32xf32>
    %1726 = arith.mulf %1725, %1724 : vector<2x32xf32>
    %1727 = arith.addf %1707, %1726 : vector<2x32xf32>
    %1728 = arith.truncf %1727 : vector<2x32xf32> to vector<2x32xbf16>
    %cst_429 = arith.constant dense<0.000000e+00> : vector<2x32xf32>
    %1729 = tpu.matmul %1728, %8, %cst_429 {dimension_numbers = #tpu.dot_dimension_numbers<[1], [0], [0], [1], [0, 0, 1, 1], [], []>} : vector<2x32xbf16>, vector<32x32xbf16>, vector<2x32xf32> -> vector<2x32xf32>
    %1730 = vector.broadcast %9 : vector<1x32xf32> to vector<2x32xf32>
    %1731 = arith.addf %1729, %1730 : vector<2x32xf32>
    %cst_430 = arith.constant 0.000000e+00 : f32
    %1732 = vector.broadcast %cst_430 : f32 to vector<2x32xf32>
    %1733 = arith.maximumf %1731, %1732 : vector<2x32xf32>
    %1734 = arith.truncf %1733 : vector<2x32xf32> to vector<2x32xbf16>
    %cst_431 = arith.constant dense<0.000000e+00> : vector<2x32xf32>
    %1735 = tpu.matmul %1734, %10, %cst_431 {dimension_numbers = #tpu.dot_dimension_numbers<[1], [0], [0], [1], [0, 0, 1, 1], [], []>} : vector<2x32xbf16>, vector<32x32xbf16>, vector<2x32xf32> -> vector<2x32xf32>
    %1736 = vector.broadcast %11 : vector<1x32xf32> to vector<2x32xf32>
    %1737 = arith.addf %1735, %1736 : vector<2x32xf32>
    %cst_432 = arith.constant 2.000000e+00 : f32
    %1738 = vector.broadcast %cst_432 : f32 to vector<2x32xf32>
    %1739 = arith.mulf %1738, %1737 : vector<2x32xf32>
    %1740 = arith.addf %1724, %1739 : vector<2x32xf32>
    %1741 = vector.broadcast %1712 : f32 to vector<2x32xf32>
    %1742 = arith.mulf %1741, %1737 : vector<2x32xf32>
    %1743 = arith.addf %1707, %1742 : vector<2x32xf32>
    %1744 = arith.truncf %1743 : vector<2x32xf32> to vector<2x32xbf16>
    %cst_433 = arith.constant dense<0.000000e+00> : vector<2x32xf32>
    %1745 = tpu.matmul %1744, %8, %cst_433 {dimension_numbers = #tpu.dot_dimension_numbers<[1], [0], [0], [1], [0, 0, 1, 1], [], []>} : vector<2x32xbf16>, vector<32x32xbf16>, vector<2x32xf32> -> vector<2x32xf32>
    %1746 = vector.broadcast %9 : vector<1x32xf32> to vector<2x32xf32>
    %1747 = arith.addf %1745, %1746 : vector<2x32xf32>
    %cst_434 = arith.constant 0.000000e+00 : f32
    %1748 = vector.broadcast %cst_434 : f32 to vector<2x32xf32>
    %1749 = arith.maximumf %1747, %1748 : vector<2x32xf32>
    %1750 = arith.truncf %1749 : vector<2x32xf32> to vector<2x32xbf16>
    %cst_435 = arith.constant dense<0.000000e+00> : vector<2x32xf32>
    %1751 = tpu.matmul %1750, %10, %cst_435 {dimension_numbers = #tpu.dot_dimension_numbers<[1], [0], [0], [1], [0, 0, 1, 1], [], []>} : vector<2x32xbf16>, vector<32x32xbf16>, vector<2x32xf32> -> vector<2x32xf32>
    %1752 = vector.broadcast %11 : vector<1x32xf32> to vector<2x32xf32>
    %1753 = arith.addf %1751, %1752 : vector<2x32xf32>
    %cst_436 = arith.constant 2.000000e+00 : f32
    %1754 = vector.broadcast %cst_436 : f32 to vector<2x32xf32>
    %1755 = arith.mulf %1754, %1753 : vector<2x32xf32>
    %1756 = arith.addf %1740, %1755 : vector<2x32xf32>
    %1757 = vector.broadcast %1710 : f32 to vector<2x32xf32>
    %1758 = arith.mulf %1757, %1753 : vector<2x32xf32>
    %1759 = arith.addf %1707, %1758 : vector<2x32xf32>
    %1760 = arith.truncf %1759 : vector<2x32xf32> to vector<2x32xbf16>
    %cst_437 = arith.constant dense<0.000000e+00> : vector<2x32xf32>
    %1761 = tpu.matmul %1760, %8, %cst_437 {dimension_numbers = #tpu.dot_dimension_numbers<[1], [0], [0], [1], [0, 0, 1, 1], [], []>} : vector<2x32xbf16>, vector<32x32xbf16>, vector<2x32xf32> -> vector<2x32xf32>
    %1762 = vector.broadcast %9 : vector<1x32xf32> to vector<2x32xf32>
    %1763 = arith.addf %1761, %1762 : vector<2x32xf32>
    %cst_438 = arith.constant 0.000000e+00 : f32
    %1764 = vector.broadcast %cst_438 : f32 to vector<2x32xf32>
    %1765 = arith.maximumf %1763, %1764 : vector<2x32xf32>
    %1766 = arith.truncf %1765 : vector<2x32xf32> to vector<2x32xbf16>
    %cst_439 = arith.constant dense<0.000000e+00> : vector<2x32xf32>
    %1767 = tpu.matmul %1766, %10, %cst_439 {dimension_numbers = #tpu.dot_dimension_numbers<[1], [0], [0], [1], [0, 0, 1, 1], [], []>} : vector<2x32xbf16>, vector<32x32xbf16>, vector<2x32xf32> -> vector<2x32xf32>
    %1768 = vector.broadcast %11 : vector<1x32xf32> to vector<2x32xf32>
    %1769 = arith.addf %1767, %1768 : vector<2x32xf32>
    %1770 = arith.addf %1756, %1769 : vector<2x32xf32>
    %1771 = vector.broadcast %1714 : f32 to vector<2x32xf32>
    %1772 = arith.mulf %1771, %1770 : vector<2x32xf32>
    %1773 = arith.addf %1707, %1772 : vector<2x32xf32>
    %c1_i32_440 = arith.constant 1 : i32
    %1774 = arith.truncf %1773 : vector<2x32xf32> to vector<2x32xbf16>
    %cst_441 = arith.constant dense<0.000000e+00> : vector<2x32xf32>
    %1775 = tpu.matmul %1774, %8, %cst_441 {dimension_numbers = #tpu.dot_dimension_numbers<[1], [0], [0], [1], [0, 0, 1, 1], [], []>} : vector<2x32xbf16>, vector<32x32xbf16>, vector<2x32xf32> -> vector<2x32xf32>
    %1776 = vector.broadcast %9 : vector<1x32xf32> to vector<2x32xf32>
    %1777 = arith.addf %1775, %1776 : vector<2x32xf32>
    %cst_442 = arith.constant 0.000000e+00 : f32
    %1778 = vector.broadcast %cst_442 : f32 to vector<2x32xf32>
    %1779 = arith.maximumf %1777, %1778 : vector<2x32xf32>
    %1780 = arith.truncf %1779 : vector<2x32xf32> to vector<2x32xbf16>
    %cst_443 = arith.constant dense<0.000000e+00> : vector<2x32xf32>
    %1781 = tpu.matmul %1780, %10, %cst_443 {dimension_numbers = #tpu.dot_dimension_numbers<[1], [0], [0], [1], [0, 0, 1, 1], [], []>} : vector<2x32xbf16>, vector<32x32xbf16>, vector<2x32xf32> -> vector<2x32xf32>
    %1782 = vector.broadcast %11 : vector<1x32xf32> to vector<2x32xf32>
    %1783 = arith.addf %1781, %1782 : vector<2x32xf32>
    %1784 = vector.broadcast %1712 : f32 to vector<2x32xf32>
    %1785 = arith.mulf %1784, %1783 : vector<2x32xf32>
    %1786 = arith.addf %1773, %1785 : vector<2x32xf32>
    %1787 = arith.truncf %1786 : vector<2x32xf32> to vector<2x32xbf16>
    %cst_444 = arith.constant dense<0.000000e+00> : vector<2x32xf32>
    %1788 = tpu.matmul %1787, %8, %cst_444 {dimension_numbers = #tpu.dot_dimension_numbers<[1], [0], [0], [1], [0, 0, 1, 1], [], []>} : vector<2x32xbf16>, vector<32x32xbf16>, vector<2x32xf32> -> vector<2x32xf32>
    %1789 = vector.broadcast %9 : vector<1x32xf32> to vector<2x32xf32>
    %1790 = arith.addf %1788, %1789 : vector<2x32xf32>
    %cst_445 = arith.constant 0.000000e+00 : f32
    %1791 = vector.broadcast %cst_445 : f32 to vector<2x32xf32>
    %1792 = arith.maximumf %1790, %1791 : vector<2x32xf32>
    %1793 = arith.truncf %1792 : vector<2x32xf32> to vector<2x32xbf16>
    %cst_446 = arith.constant dense<0.000000e+00> : vector<2x32xf32>
    %1794 = tpu.matmul %1793, %10, %cst_446 {dimension_numbers = #tpu.dot_dimension_numbers<[1], [0], [0], [1], [0, 0, 1, 1], [], []>} : vector<2x32xbf16>, vector<32x32xbf16>, vector<2x32xf32> -> vector<2x32xf32>
    %1795 = vector.broadcast %11 : vector<1x32xf32> to vector<2x32xf32>
    %1796 = arith.addf %1794, %1795 : vector<2x32xf32>
    %cst_447 = arith.constant 2.000000e+00 : f32
    %1797 = vector.broadcast %cst_447 : f32 to vector<2x32xf32>
    %1798 = arith.mulf %1797, %1796 : vector<2x32xf32>
    %1799 = arith.addf %1783, %1798 : vector<2x32xf32>
    %1800 = vector.broadcast %1712 : f32 to vector<2x32xf32>
    %1801 = arith.mulf %1800, %1796 : vector<2x32xf32>
    %1802 = arith.addf %1773, %1801 : vector<2x32xf32>
    %1803 = arith.truncf %1802 : vector<2x32xf32> to vector<2x32xbf16>
    %cst_448 = arith.constant dense<0.000000e+00> : vector<2x32xf32>
    %1804 = tpu.matmul %1803, %8, %cst_448 {dimension_numbers = #tpu.dot_dimension_numbers<[1], [0], [0], [1], [0, 0, 1, 1], [], []>} : vector<2x32xbf16>, vector<32x32xbf16>, vector<2x32xf32> -> vector<2x32xf32>
    %1805 = vector.broadcast %9 : vector<1x32xf32> to vector<2x32xf32>
    %1806 = arith.addf %1804, %1805 : vector<2x32xf32>
    %cst_449 = arith.constant 0.000000e+00 : f32
    %1807 = vector.broadcast %cst_449 : f32 to vector<2x32xf32>
    %1808 = arith.maximumf %1806, %1807 : vector<2x32xf32>
    %1809 = arith.truncf %1808 : vector<2x32xf32> to vector<2x32xbf16>
    %cst_450 = arith.constant dense<0.000000e+00> : vector<2x32xf32>
    %1810 = tpu.matmul %1809, %10, %cst_450 {dimension_numbers = #tpu.dot_dimension_numbers<[1], [0], [0], [1], [0, 0, 1, 1], [], []>} : vector<2x32xbf16>, vector<32x32xbf16>, vector<2x32xf32> -> vector<2x32xf32>
    %1811 = vector.broadcast %11 : vector<1x32xf32> to vector<2x32xf32>
    %1812 = arith.addf %1810, %1811 : vector<2x32xf32>
    %cst_451 = arith.constant 2.000000e+00 : f32
    %1813 = vector.broadcast %cst_451 : f32 to vector<2x32xf32>
    %1814 = arith.mulf %1813, %1812 : vector<2x32xf32>
    %1815 = arith.addf %1799, %1814 : vector<2x32xf32>
    %1816 = vector.broadcast %1710 : f32 to vector<2x32xf32>
    %1817 = arith.mulf %1816, %1812 : vector<2x32xf32>
    %1818 = arith.addf %1773, %1817 : vector<2x32xf32>
    %1819 = arith.truncf %1818 : vector<2x32xf32> to vector<2x32xbf16>
    %cst_452 = arith.constant dense<0.000000e+00> : vector<2x32xf32>
    %1820 = tpu.matmul %1819, %8, %cst_452 {dimension_numbers = #tpu.dot_dimension_numbers<[1], [0], [0], [1], [0, 0, 1, 1], [], []>} : vector<2x32xbf16>, vector<32x32xbf16>, vector<2x32xf32> -> vector<2x32xf32>
    %1821 = vector.broadcast %9 : vector<1x32xf32> to vector<2x32xf32>
    %1822 = arith.addf %1820, %1821 : vector<2x32xf32>
    %cst_453 = arith.constant 0.000000e+00 : f32
    %1823 = vector.broadcast %cst_453 : f32 to vector<2x32xf32>
    %1824 = arith.maximumf %1822, %1823 : vector<2x32xf32>
    %1825 = arith.truncf %1824 : vector<2x32xf32> to vector<2x32xbf16>
    %cst_454 = arith.constant dense<0.000000e+00> : vector<2x32xf32>
    %1826 = tpu.matmul %1825, %10, %cst_454 {dimension_numbers = #tpu.dot_dimension_numbers<[1], [0], [0], [1], [0, 0, 1, 1], [], []>} : vector<2x32xbf16>, vector<32x32xbf16>, vector<2x32xf32> -> vector<2x32xf32>
    %1827 = vector.broadcast %11 : vector<1x32xf32> to vector<2x32xf32>
    %1828 = arith.addf %1826, %1827 : vector<2x32xf32>
    %1829 = arith.addf %1815, %1828 : vector<2x32xf32>
    %1830 = vector.broadcast %1714 : f32 to vector<2x32xf32>
    %1831 = arith.mulf %1830, %1829 : vector<2x32xf32>
    %1832 = arith.addf %1773, %1831 : vector<2x32xf32>
    %c2_i32_455 = arith.constant 2 : i32
    %1833 = arith.truncf %1832 : vector<2x32xf32> to vector<2x32xbf16>
    %cst_456 = arith.constant dense<0.000000e+00> : vector<2x32xf32>
    %1834 = tpu.matmul %1833, %8, %cst_456 {dimension_numbers = #tpu.dot_dimension_numbers<[1], [0], [0], [1], [0, 0, 1, 1], [], []>} : vector<2x32xbf16>, vector<32x32xbf16>, vector<2x32xf32> -> vector<2x32xf32>
    %1835 = vector.broadcast %9 : vector<1x32xf32> to vector<2x32xf32>
    %1836 = arith.addf %1834, %1835 : vector<2x32xf32>
    %cst_457 = arith.constant 0.000000e+00 : f32
    %1837 = vector.broadcast %cst_457 : f32 to vector<2x32xf32>
    %1838 = arith.maximumf %1836, %1837 : vector<2x32xf32>
    %1839 = arith.truncf %1838 : vector<2x32xf32> to vector<2x32xbf16>
    %cst_458 = arith.constant dense<0.000000e+00> : vector<2x32xf32>
    %1840 = tpu.matmul %1839, %10, %cst_458 {dimension_numbers = #tpu.dot_dimension_numbers<[1], [0], [0], [1], [0, 0, 1, 1], [], []>} : vector<2x32xbf16>, vector<32x32xbf16>, vector<2x32xf32> -> vector<2x32xf32>
    %1841 = vector.broadcast %11 : vector<1x32xf32> to vector<2x32xf32>
    %1842 = arith.addf %1840, %1841 : vector<2x32xf32>
    %1843 = vector.broadcast %1712 : f32 to vector<2x32xf32>
    %1844 = arith.mulf %1843, %1842 : vector<2x32xf32>
    %1845 = arith.addf %1832, %1844 : vector<2x32xf32>
    %1846 = arith.truncf %1845 : vector<2x32xf32> to vector<2x32xbf16>
    %cst_459 = arith.constant dense<0.000000e+00> : vector<2x32xf32>
    %1847 = tpu.matmul %1846, %8, %cst_459 {dimension_numbers = #tpu.dot_dimension_numbers<[1], [0], [0], [1], [0, 0, 1, 1], [], []>} : vector<2x32xbf16>, vector<32x32xbf16>, vector<2x32xf32> -> vector<2x32xf32>
    %1848 = vector.broadcast %9 : vector<1x32xf32> to vector<2x32xf32>
    %1849 = arith.addf %1847, %1848 : vector<2x32xf32>
    %cst_460 = arith.constant 0.000000e+00 : f32
    %1850 = vector.broadcast %cst_460 : f32 to vector<2x32xf32>
    %1851 = arith.maximumf %1849, %1850 : vector<2x32xf32>
    %1852 = arith.truncf %1851 : vector<2x32xf32> to vector<2x32xbf16>
    %cst_461 = arith.constant dense<0.000000e+00> : vector<2x32xf32>
    %1853 = tpu.matmul %1852, %10, %cst_461 {dimension_numbers = #tpu.dot_dimension_numbers<[1], [0], [0], [1], [0, 0, 1, 1], [], []>} : vector<2x32xbf16>, vector<32x32xbf16>, vector<2x32xf32> -> vector<2x32xf32>
    %1854 = vector.broadcast %11 : vector<1x32xf32> to vector<2x32xf32>
    %1855 = arith.addf %1853, %1854 : vector<2x32xf32>
    %cst_462 = arith.constant 2.000000e+00 : f32
    %1856 = vector.broadcast %cst_462 : f32 to vector<2x32xf32>
    %1857 = arith.mulf %1856, %1855 : vector<2x32xf32>
    %1858 = arith.addf %1842, %1857 : vector<2x32xf32>
    %1859 = vector.broadcast %1712 : f32 to vector<2x32xf32>
    %1860 = arith.mulf %1859, %1855 : vector<2x32xf32>
    %1861 = arith.addf %1832, %1860 : vector<2x32xf32>
    %1862 = arith.truncf %1861 : vector<2x32xf32> to vector<2x32xbf16>
    %cst_463 = arith.constant dense<0.000000e+00> : vector<2x32xf32>
    %1863 = tpu.matmul %1862, %8, %cst_463 {dimension_numbers = #tpu.dot_dimension_numbers<[1], [0], [0], [1], [0, 0, 1, 1], [], []>} : vector<2x32xbf16>, vector<32x32xbf16>, vector<2x32xf32> -> vector<2x32xf32>
    %1864 = vector.broadcast %9 : vector<1x32xf32> to vector<2x32xf32>
    %1865 = arith.addf %1863, %1864 : vector<2x32xf32>
    %cst_464 = arith.constant 0.000000e+00 : f32
    %1866 = vector.broadcast %cst_464 : f32 to vector<2x32xf32>
    %1867 = arith.maximumf %1865, %1866 : vector<2x32xf32>
    %1868 = arith.truncf %1867 : vector<2x32xf32> to vector<2x32xbf16>
    %cst_465 = arith.constant dense<0.000000e+00> : vector<2x32xf32>
    %1869 = tpu.matmul %1868, %10, %cst_465 {dimension_numbers = #tpu.dot_dimension_numbers<[1], [0], [0], [1], [0, 0, 1, 1], [], []>} : vector<2x32xbf16>, vector<32x32xbf16>, vector<2x32xf32> -> vector<2x32xf32>
    %1870 = vector.broadcast %11 : vector<1x32xf32> to vector<2x32xf32>
    %1871 = arith.addf %1869, %1870 : vector<2x32xf32>
    %cst_466 = arith.constant 2.000000e+00 : f32
    %1872 = vector.broadcast %cst_466 : f32 to vector<2x32xf32>
    %1873 = arith.mulf %1872, %1871 : vector<2x32xf32>
    %1874 = arith.addf %1858, %1873 : vector<2x32xf32>
    %1875 = vector.broadcast %1710 : f32 to vector<2x32xf32>
    %1876 = arith.mulf %1875, %1871 : vector<2x32xf32>
    %1877 = arith.addf %1832, %1876 : vector<2x32xf32>
    %1878 = arith.truncf %1877 : vector<2x32xf32> to vector<2x32xbf16>
    %cst_467 = arith.constant dense<0.000000e+00> : vector<2x32xf32>
    %1879 = tpu.matmul %1878, %8, %cst_467 {dimension_numbers = #tpu.dot_dimension_numbers<[1], [0], [0], [1], [0, 0, 1, 1], [], []>} : vector<2x32xbf16>, vector<32x32xbf16>, vector<2x32xf32> -> vector<2x32xf32>
    %1880 = vector.broadcast %9 : vector<1x32xf32> to vector<2x32xf32>
    %1881 = arith.addf %1879, %1880 : vector<2x32xf32>
    %cst_468 = arith.constant 0.000000e+00 : f32
    %1882 = vector.broadcast %cst_468 : f32 to vector<2x32xf32>
    %1883 = arith.maximumf %1881, %1882 : vector<2x32xf32>
    %1884 = arith.truncf %1883 : vector<2x32xf32> to vector<2x32xbf16>
    %cst_469 = arith.constant dense<0.000000e+00> : vector<2x32xf32>
    %1885 = tpu.matmul %1884, %10, %cst_469 {dimension_numbers = #tpu.dot_dimension_numbers<[1], [0], [0], [1], [0, 0, 1, 1], [], []>} : vector<2x32xbf16>, vector<32x32xbf16>, vector<2x32xf32> -> vector<2x32xf32>
    %1886 = vector.broadcast %11 : vector<1x32xf32> to vector<2x32xf32>
    %1887 = arith.addf %1885, %1886 : vector<2x32xf32>
    %1888 = arith.addf %1874, %1887 : vector<2x32xf32>
    %1889 = vector.broadcast %1714 : f32 to vector<2x32xf32>
    %1890 = arith.mulf %1889, %1888 : vector<2x32xf32>
    %1891 = arith.addf %1832, %1890 : vector<2x32xf32>
    %c3_i32_470 = arith.constant 3 : i32
    %1892 = arith.truncf %1891 : vector<2x32xf32> to vector<2x32xbf16>
    %cst_471 = arith.constant dense<0.000000e+00> : vector<2x32xf32>
    %1893 = tpu.matmul %1892, %8, %cst_471 {dimension_numbers = #tpu.dot_dimension_numbers<[1], [0], [0], [1], [0, 0, 1, 1], [], []>} : vector<2x32xbf16>, vector<32x32xbf16>, vector<2x32xf32> -> vector<2x32xf32>
    %1894 = vector.broadcast %9 : vector<1x32xf32> to vector<2x32xf32>
    %1895 = arith.addf %1893, %1894 : vector<2x32xf32>
    %cst_472 = arith.constant 0.000000e+00 : f32
    %1896 = vector.broadcast %cst_472 : f32 to vector<2x32xf32>
    %1897 = arith.maximumf %1895, %1896 : vector<2x32xf32>
    %1898 = arith.truncf %1897 : vector<2x32xf32> to vector<2x32xbf16>
    %cst_473 = arith.constant dense<0.000000e+00> : vector<2x32xf32>
    %1899 = tpu.matmul %1898, %10, %cst_473 {dimension_numbers = #tpu.dot_dimension_numbers<[1], [0], [0], [1], [0, 0, 1, 1], [], []>} : vector<2x32xbf16>, vector<32x32xbf16>, vector<2x32xf32> -> vector<2x32xf32>
    %1900 = vector.broadcast %11 : vector<1x32xf32> to vector<2x32xf32>
    %1901 = arith.addf %1899, %1900 : vector<2x32xf32>
    %1902 = vector.broadcast %1712 : f32 to vector<2x32xf32>
    %1903 = arith.mulf %1902, %1901 : vector<2x32xf32>
    %1904 = arith.addf %1891, %1903 : vector<2x32xf32>
    %1905 = arith.truncf %1904 : vector<2x32xf32> to vector<2x32xbf16>
    %cst_474 = arith.constant dense<0.000000e+00> : vector<2x32xf32>
    %1906 = tpu.matmul %1905, %8, %cst_474 {dimension_numbers = #tpu.dot_dimension_numbers<[1], [0], [0], [1], [0, 0, 1, 1], [], []>} : vector<2x32xbf16>, vector<32x32xbf16>, vector<2x32xf32> -> vector<2x32xf32>
    %1907 = vector.broadcast %9 : vector<1x32xf32> to vector<2x32xf32>
    %1908 = arith.addf %1906, %1907 : vector<2x32xf32>
    %cst_475 = arith.constant 0.000000e+00 : f32
    %1909 = vector.broadcast %cst_475 : f32 to vector<2x32xf32>
    %1910 = arith.maximumf %1908, %1909 : vector<2x32xf32>
    %1911 = arith.truncf %1910 : vector<2x32xf32> to vector<2x32xbf16>
    %cst_476 = arith.constant dense<0.000000e+00> : vector<2x32xf32>
    %1912 = tpu.matmul %1911, %10, %cst_476 {dimension_numbers = #tpu.dot_dimension_numbers<[1], [0], [0], [1], [0, 0, 1, 1], [], []>} : vector<2x32xbf16>, vector<32x32xbf16>, vector<2x32xf32> -> vector<2x32xf32>
    %1913 = vector.broadcast %11 : vector<1x32xf32> to vector<2x32xf32>
    %1914 = arith.addf %1912, %1913 : vector<2x32xf32>
    %cst_477 = arith.constant 2.000000e+00 : f32
    %1915 = vector.broadcast %cst_477 : f32 to vector<2x32xf32>
    %1916 = arith.mulf %1915, %1914 : vector<2x32xf32>
    %1917 = arith.addf %1901, %1916 : vector<2x32xf32>
    %1918 = vector.broadcast %1712 : f32 to vector<2x32xf32>
    %1919 = arith.mulf %1918, %1914 : vector<2x32xf32>
    %1920 = arith.addf %1891, %1919 : vector<2x32xf32>
    %1921 = arith.truncf %1920 : vector<2x32xf32> to vector<2x32xbf16>
    %cst_478 = arith.constant dense<0.000000e+00> : vector<2x32xf32>
    %1922 = tpu.matmul %1921, %8, %cst_478 {dimension_numbers = #tpu.dot_dimension_numbers<[1], [0], [0], [1], [0, 0, 1, 1], [], []>} : vector<2x32xbf16>, vector<32x32xbf16>, vector<2x32xf32> -> vector<2x32xf32>
    %1923 = vector.broadcast %9 : vector<1x32xf32> to vector<2x32xf32>
    %1924 = arith.addf %1922, %1923 : vector<2x32xf32>
    %cst_479 = arith.constant 0.000000e+00 : f32
    %1925 = vector.broadcast %cst_479 : f32 to vector<2x32xf32>
    %1926 = arith.maximumf %1924, %1925 : vector<2x32xf32>
    %1927 = arith.truncf %1926 : vector<2x32xf32> to vector<2x32xbf16>
    %cst_480 = arith.constant dense<0.000000e+00> : vector<2x32xf32>
    %1928 = tpu.matmul %1927, %10, %cst_480 {dimension_numbers = #tpu.dot_dimension_numbers<[1], [0], [0], [1], [0, 0, 1, 1], [], []>} : vector<2x32xbf16>, vector<32x32xbf16>, vector<2x32xf32> -> vector<2x32xf32>
    %1929 = vector.broadcast %11 : vector<1x32xf32> to vector<2x32xf32>
    %1930 = arith.addf %1928, %1929 : vector<2x32xf32>
    %cst_481 = arith.constant 2.000000e+00 : f32
    %1931 = vector.broadcast %cst_481 : f32 to vector<2x32xf32>
    %1932 = arith.mulf %1931, %1930 : vector<2x32xf32>
    %1933 = arith.addf %1917, %1932 : vector<2x32xf32>
    %1934 = vector.broadcast %1710 : f32 to vector<2x32xf32>
    %1935 = arith.mulf %1934, %1930 : vector<2x32xf32>
    %1936 = arith.addf %1891, %1935 : vector<2x32xf32>
    %1937 = arith.truncf %1936 : vector<2x32xf32> to vector<2x32xbf16>
    %cst_482 = arith.constant dense<0.000000e+00> : vector<2x32xf32>
    %1938 = tpu.matmul %1937, %8, %cst_482 {dimension_numbers = #tpu.dot_dimension_numbers<[1], [0], [0], [1], [0, 0, 1, 1], [], []>} : vector<2x32xbf16>, vector<32x32xbf16>, vector<2x32xf32> -> vector<2x32xf32>
    %1939 = vector.broadcast %9 : vector<1x32xf32> to vector<2x32xf32>
    %1940 = arith.addf %1938, %1939 : vector<2x32xf32>
    %cst_483 = arith.constant 0.000000e+00 : f32
    %1941 = vector.broadcast %cst_483 : f32 to vector<2x32xf32>
    %1942 = arith.maximumf %1940, %1941 : vector<2x32xf32>
    %1943 = arith.truncf %1942 : vector<2x32xf32> to vector<2x32xbf16>
    %cst_484 = arith.constant dense<0.000000e+00> : vector<2x32xf32>
    %1944 = tpu.matmul %1943, %10, %cst_484 {dimension_numbers = #tpu.dot_dimension_numbers<[1], [0], [0], [1], [0, 0, 1, 1], [], []>} : vector<2x32xbf16>, vector<32x32xbf16>, vector<2x32xf32> -> vector<2x32xf32>
    %1945 = vector.broadcast %11 : vector<1x32xf32> to vector<2x32xf32>
    %1946 = arith.addf %1944, %1945 : vector<2x32xf32>
    %1947 = arith.addf %1933, %1946 : vector<2x32xf32>
    %1948 = vector.broadcast %1714 : f32 to vector<2x32xf32>
    %1949 = arith.mulf %1948, %1947 : vector<2x32xf32>
    %1950 = arith.addf %1891, %1949 : vector<2x32xf32>
    %c7_i32_485 = arith.constant 7 : i32
    %c0_486 = arith.constant 0 : index
    %c0_487 = arith.constant 0 : index
    %1951 = vector.load %arg17[%c0_486, %c0_487] : memref<2x32xf32, #tpu.memory_space<vmem>>, vector<2x32xf32>
    tpu.vector_store %arg17[%c0_486, %c0_487], %1950 {strides = array<i32>} : memref<2x32xf32, #tpu.memory_space<vmem>>, vector<2x32xf32>,
    %c0_i32_488 = arith.constant 0 : i32
    %1952 = arith.cmpi eq, %arg0, %c0_i32_488 : i32
    %1953 = arith.extui %1952 : i1 to i32
    %c0_i32_489 = arith.constant 0 : i32
    %1954 = arith.cmpi ne, %1953, %c0_i32_489 : i32
    scf.if %1954 {
      %c0_490 = arith.constant 0 : index
      %c0_491 = arith.constant 0 : index
      %1955 = vector.load %arg14[%c0_490, %c0_491] : memref<32x8xf32, #tpu.memory_space<vmem>>, vector<32x8xf32>
      %cst_492 = arith.constant dense<0.000000e+00> : vector<2x8xf32>
      %1956 = tpu.matmul %1950, %1955, %cst_492 {dimension_numbers = #tpu.dot_dimension_numbers<[1], [0], [0], [1], [0, 0, 1, 1], [], []>} : vector<2x32xf32>, vector<32x8xf32>, vector<2x8xf32> -> vector<2x8xf32>
      %c0_493 = arith.constant 0 : index
      %c0_494 = arith.constant 0 : index
      %1957 = vector.load %arg15[%c0_493, %c0_494] : memref<1x8xf32, #tpu.memory_space<vmem>>, vector<1x8xf32>
      %1958 = vector.broadcast %1957 : vector<1x8xf32> to vector<2x8xf32>
      %1959 = arith.addf %1956, %1958 : vector<2x8xf32>
      %c0_495 = arith.constant 0 : index
      %c0_496 = arith.constant 0 : index
      %1960 = vector.load %arg16[%c0_495, %c0_496] : memref<2x8xf32, #tpu.memory_space<vmem>>, vector<2x8xf32>
      tpu.vector_store %arg16[%c0_495, %c0_496], %1959 {strides = array<i32>} : memref<2x8xf32, #tpu.memory_space<vmem>>, vector<2x8xf32>,
    } else {
    }
    return
  }
  func.func @transform_0(%arg0: i32) -> i32 {
    %c0_i32 = arith.constant 0 : i32
    %c0_i32_0 = arith.constant 0 : i32
    return %c0_i32 : i32
  }
  func.func @transform_1(%arg0: i32) -> i32 {
    %c0_i32 = arith.constant 0 : i32
    %c0_i32_0 = arith.constant 0 : i32
    return %c0_i32 : i32
  }
  func.func @transform_2(%arg0: i32) -> i32 {
    %c0_i32 = arith.constant 0 : i32
    %c0_i32_0 = arith.constant 0 : i32
    return %c0_i32 : i32
  }
  func.func @transform_3(%arg0: i32) -> (i32, i32) {
    %c0_i32 = arith.constant 0 : i32
    %c0_i32_0 = arith.constant 0 : i32
    %c0_i32_1 = arith.constant 0 : i32
    return %c0_i32, %c0_i32_0 : i32, i32
  }
  func.func @transform_4(%arg0: i32) -> (i32, i32) {
    %c0_i32 = arith.constant 0 : i32
    %c0_i32_0 = arith.constant 0 : i32
    return %arg0, %c0_i32 : i32, i32
  }
  func.func @transform_5(%arg0: i32) -> (i32, i32) {
    %c0_i32 = arith.constant 0 : i32
    %c0_i32_0 = arith.constant 0 : i32
    %c0_i32_1 = arith.constant 0 : i32
    return %c0_i32, %c0_i32_0 : i32, i32
  }
  func.func @transform_6(%arg0: i32) -> (i32, i32) {
    %c0_i32 = arith.constant 0 : i32
    %c0_i32_0 = arith.constant 0 : i32
    %c0_i32_1 = arith.constant 0 : i32
    return %c0_i32, %c0_i32_0 : i32, i32
  }
  func.func @transform_7(%arg0: i32) -> (i32, i32) {
    %c0_i32 = arith.constant 0 : i32
    %c0_i32_0 = arith.constant 0 : i32
    %c0_i32_1 = arith.constant 0 : i32
    return %c0_i32, %c0_i32_0 : i32, i32
  }
  func.func @transform_8(%arg0: i32) -> (i32, i32) {
    %c0_i32 = arith.constant 0 : i32
    %c0_i32_0 = arith.constant 0 : i32
    %c0_i32_1 = arith.constant 0 : i32
    return %c0_i32, %c0_i32_0 : i32, i32
  }
  func.func @transform_9(%arg0: i32) -> (i32, i32) {
    %c0_i32 = arith.constant 0 : i32
    %c0_i32_0 = arith.constant 0 : i32
    %c0_i32_1 = arith.constant 0 : i32
    return %c0_i32, %c0_i32_0 : i32, i32
  }
  func.func @transform_10(%arg0: i32) -> (i32, i32) {
    %c0_i32 = arith.constant 0 : i32
    %c0_i32_0 = arith.constant 0 : i32
    %c0_i32_1 = arith.constant 0 : i32
    return %c0_i32, %c0_i32_0 : i32, i32
  }
  func.func @transform_11(%arg0: i32) -> (i32, i32) {
    %c0_i32 = arith.constant 0 : i32
    %c0_i32_0 = arith.constant 0 : i32
    %c0_i32_1 = arith.constant 0 : i32
    return %c0_i32, %c0_i32_0 : i32, i32
  }
  func.func @transform_12(%arg0: i32) -> (i32, i32) {
    %c0_i32 = arith.constant 0 : i32
    %c0_i32_0 = arith.constant 0 : i32
    %c0_i32_1 = arith.constant 0 : i32
    return %c0_i32, %c0_i32_0 : i32, i32
  }
  func.func @transform_13(%arg0: i32) -> (i32, i32) {
    %c0_i32 = arith.constant 0 : i32
    %c0_i32_0 = arith.constant 0 : i32
    %c0_i32_1 = arith.constant 0 : i32
    return %c0_i32, %c0_i32_0 : i32, i32
  }
  func.func @transform_14(%arg0: i32) -> (i32, i32) {
    %c0_i32 = arith.constant 0 : i32
    %c0_i32_0 = arith.constant 0 : i32
    %c0_i32_1 = arith.constant 0 : i32
    return %c0_i32, %c0_i32_0 : i32, i32
  }
  func.func @transform_15(%arg0: i32) -> (i32, i32) {
    %c0_i32 = arith.constant 0 : i32
    %c0_i32_0 = arith.constant 0 : i32
    %c0_i32_1 = arith.constant 0 : i32
    return %c0_i32, %c0_i32_0 : i32, i32
  }
}

</mosaic_0001>

<bundles_post_ra>
// kernel: tpu_custom_call.1
= control target key start
LH: loop header
LB: loop body
LE: loop exit
PB: predicated region body
PF: predicated region fallthrough
CT: control target
= control target key end

     0   :  { %20 = vsyncpa [#allocation6], 0  ;;  %s8157_s0 = inlined_call_operand.hbm [shape: f32[7], index: 0, kind: input, shape index: {}]   ;;  %s8158_s1 = inlined_call_operand.hbm [shape: f32[7], index: 1, kind: input, shape index: {}]   ;;  %s8159_s2 = inlined_call_operand.vmem [shape: f32[7], index: 2, kind: input, shape index: {}]   ;;  %s8160_s3 = inlined_call_operand.vmem [shape: f32[2,32], index: 3, kind: input, shape index: {}]   ;;  %s8161_s4 = inlined_call_operand.vmem [shape: f32[14,4], index: 4, kind: input, shape index: {}]   ;;  %s8162_s5 = inlined_call_operand.vmem [shape: bf16[4,96], index: 5, kind: input, shape index: {}]   ;;  %s8163_s6 = inlined_call_operand.vmem [shape: bf16[32,96], index: 6, kind: input, shape index: {}]   ;;  %s8164_s7 = inlined_call_operand.vmem [shape: f32[1,96], index: 7, kind: input, shape index: {}]   ;;  %s8165_s8 = inlined_call_operand.vmem [shape: f32[1,96], index: 8, kind: input, shape index: {}]   ;;  %s8166_s9 = inlined_call_operand.vmem [shape: bf16[32,32], index: 9, kind: input, shape index: {}]   ;;  %s8167_s10 = inlined_call_operand.vmem [shape: f32[1,32], index: 10, kind: input, shape index: {}]   ;;  %s8168_s11 = inlined_call_operand.vmem [shape: bf16[32,32], index: 11, kind: input, shape index: {}]   ;;  %s8169_s12 = inlined_call_operand.vmem [shape: f32[1,32], index: 12, kind: input, shape index: {}]   ;;  %s8170_s13 = inlined_call_operand.vmem [shape: f32[32,8], index: 13, kind: input, shape index: {}]   ;;  %s8171_s14 = inlined_call_operand.vmem [shape: f32[1,8], index: 14, kind: input, shape index: {}]   ;;  %s8172_s15 = inlined_call_operand.hbm [shape: f32[2,8], index: 15, kind: output, shape index: {}]  }
   0x1   :  { %21 = vsyncpa [#allocation9], 0 }
   0x2   :  { %22 = vsyncpa [#allocation7], 0 }
   0x3   :  { %23 = vsyncpa [#allocation5], 0  ;;  %s29_s20 = sshll.u32 %s8157_s0, 4  ;;  %s38_s23 = sshll.u32 %s8158_s1, 4  ;;  %s30_s20 = int_to_ptr.hbm [resolvable:$true] %s29_s20  ;;  %s39_s23 = int_to_ptr.hbm [resolvable:$true] %s38_s23 }
   0x4   :  { %s6239_s24 = smov [#allocation4]   ;;  %s6240_s25 = smov [#allocation8]  }
   0x5   :  { %32 = dma.hbm_to_smem %s30_s20, 16, %s6239_s24, [#allocation6]  }
   0x6   :  { %41 = dma.hbm_to_smem %s39_s23, 16, %s6240_s25, [#allocation9]  }
   0x7   :  { %s47_s28 = sshll.u32 %s8159_s2, 4  ;;  %s6241_s29 = smov [#allocation10]   ;;  %s48_s28 = int_to_ptr.vmem [resolvable:$true] %s47_s28 }
   0x8   :  { %50 = dma.vmem_to_smem %s48_s28, 16, %s6241_s29, [#allocation7]  }
   0x9   :  { %6231 = dma.done.wait [#allocation6], 16  }
   0xa   :  { %6232 = vsyncadd [#allocation6], 4294967280 }
   0xb   :  { %6233 = dma.done.wait [#allocation9], 16  }
   0xc   :  { %6234 = vsyncadd [#allocation9], 4294967280 }
   0xd   :  { %6235 = dma.done.wait [#allocation7], 16  }
   0xe   :  { %6236 = vsyncadd [#allocation7], 4294967280 }
   0xf   :  { %87 = sfence }
  0x10   :  { %v97_v0 = vld [vmem:[%s8162_s5] sm:$0x3]  ;;  %vm124_vm0 = vcmask 1041408   ;;  %v6341_v1 = vld [vmem:[%s8163_s6 + $0x8] sm:$0xff]  ;;  %vm120_vm1 = vcmask 31744   ;;  %vm95_vm2 = vcmask 254976  }
  0x11   :  { %v114_v2 = vld [vmem:[%s8161_s4] sm:$0xff]  ;;  %v126_v3 = vsel %vm124_vm0, %v97_v0, 0  ;;  %v115_v4 = vld [vmem:[%s8161_s4 + $0x8] sm:$0x3f]  ;;  %174 = vmatpush.bf16.msra.mxu1 %v6341_v1  ;;  %vm164_vm3 = vcmask 261120   ;;  %vm142_vm4 = vcmask 785408  }
  0x12   :  { %v94_v5 = vld [vmem:[%s8160_s3] sm:$0x3]  ;;  %135 = vmatpush.bf16.msra.mxu0 %v126_v3  ;;  %v116_v6 = vpack.c.bf16 %v115_v4, %v114_v2  ;;  %vm144_vm5 = vcmask 783360   ;;  %s6242_s25 = smov 64   ;;  %s6244_s26 = smov 32   ;;  %v6377_v39 = vld [vmem:[%s8166_s9 + $0x8] sm:$0xff] }
  0x13   :  { %v6356_v7 = vld [vmem:[%s8163_s6] sm:$0xff]  ;;  %96 = vst.msk [vmem:[#allocation2] sm:$0x3] %vm95_vm2, %v94_v5  ;;  %255 = vmatpush.bf16.msra.mxu2 %v6377_v39  ;;  %v6403_v49 = vld [vmem:[%s8168_s11 + $0x8] sm:$0xff]  ;;  %s225_s19 = sld [smem:[#allocation8]] }
  0x14   :  { %v6085_v10 = vld [vmem:[%s8164_s7] ss:$0 sm:$0xff]  ;;  %s6243_s7 = smov 96   ;;  %288 = vmatpush.bf16.msra.mxu3 %v6403_v49  ;;  %s224_s5 = sld [smem:[#allocation4]] }
  0x15   :  { %5790 = vmatmul.msk.bf16.vlgmr.msra.gmra.mxu0 %vm120_vm1, %v116_v6  ;;  %175 = vmatpush.bf16.msra.mxu1 %v6356_v7  ;;  %v6367_v13 = vld [vmem:[%s8165_s8] ss:$0 sm:$0xff]  ;;  %s226_s22 = sld [smem:[#allocation10]] }
  0x16   :  { %v6383_v40 = vld [vmem:[%s8166_s9] sm:$0xff]  ;;  %315 = vmatpush.bf16.msrb.mxu0 %v6377_v39  ;;  %s5852_s3 = sld [smem:[#allocation8 + $0x1]] }
  0x17   :  { %256 = vmatpush.bf16.msra.mxu2 %v6383_v40  ;;  %v6410_v50 = vld [vmem:[%s8168_s11] sm:$0xff]  ;;  %s5851_s4 = sld [smem:[#allocation4 + $0x1]] }
  0x18   :  { %289 = vmatpush.bf16.msra.mxu3 %v6410_v50  ;;  %v6421_v51 = vld [vmem:[%s8167_s10] ss:$0 sm:$0xff]  ;;  %s5853_s23 = sld [smem:[#allocation10 + $0x1]] }
  0x19   :  { %333 = vmatpush.bf16.msrb.mxu1 %v6403_v49  ;;  %v6430_v57 = vld [vmem:[%s8169_s12] ss:$0 sm:$0xff]  ;;  %v6432_v59 = vstv %s225_s19  ;;  %s5888_s24 = sld [smem:[#allocation4 + $0x2]] }
  0x1a   :  { %v146_v8 = vld [vmem:[#allocation2] sm:$0x3]  ;;  %316 = vmatpush.bf16.msrb.mxu0 %v6383_v40  ;;  %s5890_s27 = sld [smem:[#allocation10 + $0x2]] }
  0x1b   :  { %v148_v9 = vpack.c.bf16 %v146_v8, %v146_v8  ;;  %361 = vmatpush.bf16.msrb.mxu2 %v6377_v39  ;;  %s5999_s19 = sld [smem:[#allocation4 + $0x5]] }
  0x1c   :  { %379 = vmatpush.bf16.msrb.mxu3 %v6403_v49 }
  0x1d   :  { %5799 = vmatmul.msk.bf16.vlgmr.msra.gmra.mxu1 %vm164_vm3, %v148_v9 }
  0x1e   :  { %408 = vmatpush.bf16.msra.mxu0 %v6377_v39  ;;  %334 = vmatpush.bf16.msrb.mxu1 %v6410_v50 }
  0x1f   :  { %362 = vmatpush.bf16.msrb.mxu2 %v6383_v40 }
  0x20   :  { %380 = vmatpush.bf16.msrb.mxu3 %v6410_v50 }
  0x22   :  { %409 = vmatpush.bf16.msra.mxu0 %v6383_v40  ;;  %426 = vmatpush.bf16.msra.mxu1 %v6403_v49 }
  0x26   :  { %427 = vmatpush.bf16.msra.mxu1 %v6410_v50 }
  0x92   :  { %v137_v11 = vpop.f32.mrf.mxu0 }
  0x93   :  { %v138_v12 = vadd.f32 %v6085_v10, %v137_v11 }
  0x95   :  { %143 = vst.msk [vmem:[#allocation3] sm:$0xff] %vm142_vm4, %v138_v12 }
  0x9a   :  { %v177_v14 = vpop.f32.mrf.mxu1  ;;  %v139_v15 = vpop.f32.mrf.mxu0 }
  0x9b   :  { %v178_v16 = vadd.f32 %v6367_v13, %v177_v14  ;;  %v140_v17 = vadd.f32 %v6085_v10, %v139_v15 }
  0x9c   :  { %v147_v19 = vld [vmem:[#allocation3] sm:$0x3] }
  0x9d   :  { %202 = vrot.lane.b32.xlu0 %v178_v16, %s6242_s25  ;;  %145 = vst.msk [vmem:[#allocation3 + $0x8] sm:$0x3f] %vm144_vm5, %v140_v17  ;;  %v181_v20 = vadd.f32 %v178_v16, %v147_v19 }
  0x9f   :  { %v5800_v21 = vmul.f32 -1.442695, %v181_v20 }
  0xa1   :  { %6090 = vpow2.f32 %v5800_v21 }
  0xa2   :  { %v179_v18 = vpop.f32.mrf.mxu1 }
  0xa7   :  { %v6091_v22 = vpop.eup %6090 }
  0xa8   :  { %v185_v23 = vadd.f32 1.0, %v6091_v22 }
  0xaa   :  { %6092 = vrcp.f32 %v185_v23  ;;  %v197_v29 = vand.u32 2147483648, %v185_v23  ;;  %vm191_vm7 = vweird.f32 %v185_v23  ;;  %v195_v30 = vand.u32 2147483647, %v185_v23 }
  0xac   :  { %v198_v32 = vor.u32 1.1754944e-38, %v197_v29  ;;  %vm196_vm9 = vcmp.eq.f32.partialorder %v195_v30, 8.507059e+37 }
  0xb0   :  { %v6093_v24 = vpop.eup %6092 }
  0xb1   :  { %v187_v25 = vmul.f32 %v6093_v24, %v185_v23  ;;  %vm192_vm6 = vweird.f32 %v6093_v24 }
  0xb2   :  { %vm193_vm8 = vmor %vm191_vm7, %vm192_vm6 }
  0xb3   :  { %v188_v26 = vsub.f32 1.0, %v187_v25 }
  0xb5   :  { %v189_v27 = vmul.f32 %v6093_v24, %v188_v26  ;;  %v6458_v26 = vstv %s224_s5  ;;  %s5926_s5 = sld [smem:[#allocation8 + $0x3]] }
  0xb7   :  { %v190_v28 = vadd.f32 %v6093_v24, %v189_v27 }
  0xb9   :  { %v194_v31 = vsel %vm193_vm8, %v6093_v24, %v190_v28 }
  0xba   :  { %v199_v34 = vsel %vm196_vm9, %v198_v32, %v194_v31 }
  0xbb   :  { %v212_v42 = vsub.f32 1.0, %v199_v34 }
 0x10f   :  { %v203_v33 = vpop.permute.xlu0 %202 }
 0x110   :  { %v205_v35 = vmul.f32 %v203_v33, %v199_v34 }
 0x112   :  { %207 = vrot.lane.b32.xlu0 %v205_v35, %s6242_s25 }
 0x184   :  { %v208_v36 = vpop.permute.xlu0 %207 }
 0x185   :  { %v210_v37 = vadd.f32 %v208_v36, %v147_v19 }
 0x187   :  { %6094 = vtanh.f32 %v210_v37 }
 0x18d   :  { %v6095_v38 = vpop.eup %6094 }
 0x18e   :  { %214 = vrot.lane.b32.xlu1 %v6095_v38, %s6243_s7 }
 0x196   :  { %219 = vrot.lane.b32.xlu1 %v146_v8, %s6244_s26 }
 0x200   :  { %v215_v41 = vpop.permute.xlu1 %214 }
 0x201   :  { %v217_v44 = vmul.f32 %v215_v41, %v212_v42 }
 0x208   :  { %v220_v43 = vpop.permute.xlu1 %219 }
 0x209   :  { %v222_v45 = vmul.f32 %v220_v43, %v199_v34 }
 0x20b   :  { %v6392_v46 = vadd.f32 %v222_v45, %v217_v44 }
 0x20d   :  { %v227_v47 = vpack.c.bf16 %v6392_v46, %v6392_v46 }
 0x20f   :  { %232 = vrot.lane.b32.xlu2 %v227_v47, %s6243_s7  ;;  %v6473_v47 = vstv %s226_s22  ;;  %s5925_s22 = sld [smem:[#allocation4 + $0x3]] }
 0x269   :  { %v233_v48 = vpop.permute.xlu2 %232 }
 0x26a   :  { %5809 = vmatmul.msk.bf16.vlgmr.msra.gmra.mxu2 %vm164_vm3, %v233_v48 }
 0x26b   :  { %454 = vmatpush.bf16.msra.mxu2 %v6377_v39 }
 0x26f   :  { %455 = vmatpush.bf16.msra.mxu2 %v6383_v40 }
 0x2ed   :  { %v258_v52 = vpop.f32.mrf.mxu2 }
 0x2ee   :  { %v259_v53 = vadd.f32 %v6421_v51, %v258_v52 }
 0x2f0   :  { %v262_v54 = vmax.f32 %v259_v53, 0.0 }
 0x2f2   :  { %v263_v55 = vpack.c.bf16 %v262_v54, %v262_v54 }
 0x2f4   :  { %5818 = vmatmul.msk.bf16.vlgmr.msra.gmra.mxu3 %vm164_vm3, %v263_v55 }
 0x2f5   :  { %v260_v56 = vpop.f32.mrf.mxu2  ;;  %472 = vmatpush.bf16.msra.mxu3 %v6403_v49 }
 0x2f9   :  { %473 = vmatpush.bf16.msra.mxu3 %v6410_v50 }
 0x377   :  { %v291_v58 = vpop.f32.mrf.mxu3 }
 0x378   :  { %v292_v60 = vadd.f32 %v6430_v57, %v291_v58 }
 0x37a   :  { %v296_v61 = vmul.f32 %v6432_v59, %v292_v60 }
 0x37c   :  { %298 = vrot.lane.b32.xlu2 %v296_v61, %s6244_s26 }
 0x37f   :  { %v293_v62 = vpop.f32.mrf.mxu3 }
 0x3d6   :  { %v299_v63 = vpop.permute.xlu2 %298 }
 0x3d7   :  { %v301_v0 = vadd.f32 %v299_v63, %v6392_v46 }
 0x3d9   :  { %v302_v2 = vpack.c.bf16 %v301_v0, %v301_v0 }
 0x3db   :  { %304 = vrot.lane.b32.xlu0 %v302_v2, %s6243_s7 }
 0x44d   :  { %v305_v3 = vpop.permute.xlu0 %304 }
 0x44e   :  { %5819 = vmatmul.msk.bf16.vlgmr.msrb.gmra.mxu0 %vm164_vm3, %v305_v3 }
 0x44f   :  { %498 = vmatpush.bf16.msrb.mxu0 %v6377_v39 }
 0x453   :  { %499 = vmatpush.bf16.msrb.mxu0 %v6383_v40 }
 0x4cb   :  { %v318_v4 = vpop.f32.mrf.mxu0 }
 0x4cc   :  { %v319_v5 = vadd.f32 %v6421_v51, %v318_v4 }
 0x4ce   :  { %v322_v6 = vmax.f32 %v319_v5, 0.0 }
 0x4d0   :  { %v323_v8 = vpack.c.bf16 %v322_v6, %v322_v6 }
 0x4d2   :  { %5820 = vmatmul.msk.bf16.vlgmr.msrb.gmra.mxu1 %vm164_vm3, %v323_v8 }
 0x4d3   :  { %v320_v9 = vpop.f32.mrf.mxu0  ;;  %516 = vmatpush.bf16.msrb.mxu1 %v6403_v49 }
 0x4d7   :  { %517 = vmatpush.bf16.msrb.mxu1 %v6410_v50 }
 0x54f   :  { %v336_v10 = vpop.f32.mrf.mxu1 }
 0x550   :  { %v337_v11 = vadd.f32 %v6430_v57, %v336_v10 }
 0x552   :  { %v342_v12 = vmul.f32 %v337_v11, %v6432_v59  ;;  %v340_v24 = vmul.f32 2.0, %v337_v11 }
 0x554   :  { %344 = vrot.lane.b32.xlu1 %v342_v12, %s6244_s26  ;;  %v341_v28 = vadd.f32 %v340_v24, %v292_v60 }
 0x557   :  { %v338_v14 = vpop.f32.mrf.mxu1 }
 0x5c6   :  { %v345_v15 = vpop.permute.xlu1 %344 }
 0x5c7   :  { %v347_v16 = vadd.f32 %v345_v15, %v6392_v46 }
 0x5c9   :  { %v348_v17 = vpack.c.bf16 %v347_v16, %v347_v16 }
 0x5cb   :  { %350 = vrot.lane.b32.xlu2 %v348_v17, %s6243_s7 }
 0x625   :  { %v351_v18 = vpop.permute.xlu2 %350 }
 0x626   :  { %5821 = vmatmul.msk.bf16.vlgmr.msrb.gmra.mxu2 %vm164_vm3, %v351_v18 }
 0x627   :  { %544 = vmatpush.bf16.msrb.mxu2 %v6377_v39 }
 0x62b   :  { %545 = vmatpush.bf16.msrb.mxu2 %v6383_v40 }
 0x6a9   :  { %v364_v19 = vpop.f32.mrf.mxu2 }
 0x6aa   :  { %v365_v20 = vadd.f32 %v6421_v51, %v364_v19 }
 0x6ac   :  { %v368_v21 = vmax.f32 %v365_v20, 0.0 }
 0x6ae   :  { %v369_v22 = vpack.c.bf16 %v368_v21, %v368_v21 }
 0x6b0   :  { %5822 = vmatmul.msk.bf16.vlgmr.msrb.gmra.mxu3 %vm164_vm3, %v369_v22 }
 0x6b1   :  { %v366_v23 = vpop.f32.mrf.mxu2  ;;  %562 = vmatpush.bf16.msrb.mxu3 %v6403_v49 }
 0x6b5   :  { %563 = vmatpush.bf16.msrb.mxu3 %v6410_v50 }
 0x733   :  { %v382_v25 = vpop.f32.mrf.mxu3 }
 0x734   :  { %v383_v27 = vadd.f32 %v6430_v57, %v382_v25 }
 0x736   :  { %v386_v29 = vmul.f32 2.0, %v383_v27  ;;  %v389_v30 = vmul.f32 %v6458_v26, %v383_v27 }
 0x738   :  { %391 = vrot.lane.b32.xlu0 %v389_v30, %s6244_s26  ;;  %v387_v31 = vadd.f32 %v386_v29, %v341_v28 }
 0x73b   :  { %v384_v32 = vpop.f32.mrf.mxu3 }
 0x7aa   :  { %v392_v33 = vpop.permute.xlu0 %391 }
 0x7ab   :  { %v394_v34 = vadd.f32 %v392_v33, %v6392_v46 }
 0x7ad   :  { %v395_v35 = vpack.c.bf16 %v394_v34, %v394_v34 }
 0x7af   :  { %397 = vrot.lane.b32.xlu1 %v395_v35, %s6243_s7 }
 0x821   :  { %v398_v36 = vpop.permute.xlu1 %397 }
 0x822   :  { %5823 = vmatmul.msk.bf16.vlgmr.msra.gmra.mxu0 %vm164_vm3, %v398_v36 }
 0x823   :  { %590 = vmatpush.bf16.msra.mxu0 %v6377_v39 }
 0x827   :  { %591 = vmatpush.bf16.msra.mxu0 %v6383_v40 }
 0x89f   :  { %v411_v37 = vpop.f32.mrf.mxu0 }
 0x8a0   :  { %v412_v38 = vadd.f32 %v6421_v51, %v411_v37 }
 0x8a2   :  { %v415_v41 = vmax.f32 %v412_v38, 0.0 }
 0x8a4   :  { %v416_v42 = vpack.c.bf16 %v415_v41, %v415_v41 }
 0x8a6   :  { %5824 = vmatmul.msk.bf16.vlgmr.msra.gmra.mxu1 %vm164_vm3, %v416_v42 }
 0x8a7   :  { %v413_v43 = vpop.f32.mrf.mxu0  ;;  %608 = vmatpush.bf16.msra.mxu1 %v6403_v49 }
 0x8ab   :  { %609 = vmatpush.bf16.msra.mxu1 %v6410_v50 }
 0x923   :  { %v429_v44 = vpop.f32.mrf.mxu1 }
 0x924   :  { %v430_v45 = vadd.f32 %v6430_v57, %v429_v44 }
 0x926   :  { %v433_v48 = vadd.f32 %v430_v45, %v387_v31 }
 0x928   :  { %v435_v52 = vmul.f32 %v6473_v47, %v433_v48 }
 0x92a   :  { %437 = vrot.lane.b32.xlu2 %v435_v52, %s6244_s26 }
 0x92b   :  { %v431_v53 = vpop.f32.mrf.mxu1 }
 0x984   :  { %v438_v54 = vpop.permute.xlu2 %437 }
 0x985   :  { %v6478_v55 = vadd.f32 %v438_v54, %v6392_v46 }
 0x987   :  { %v441_v56 = vpack.c.bf16 %v6478_v55, %v6478_v55 }
 0x989   :  { %443 = vrot.lane.b32.xlu0 %v441_v56, %s6243_s7 }
 0x9fb   :  { %v444_v58 = vpop.permute.xlu0 %443 }
 0x9fc   :  { %5825 = vmatmul.msk.bf16.vlgmr.msra.gmra.mxu2 %vm164_vm3, %v444_v58 }
 0x9fd   :  { %635 = vmatpush.bf16.msra.mxu2 %v6377_v39 }
 0xa01   :  { %636 = vmatpush.bf16.msra.mxu2 %v6383_v40 }
 0xa7f   :  { %v457_v60 = vpop.f32.mrf.mxu2 }
 0xa80   :  { %v458_v61 = vadd.f32 %v6421_v51, %v457_v60 }
 0xa82   :  { %v461_v62 = vmax.f32 %v458_v61, 0.0 }
 0xa84   :  { %v462_v63 = vpack.c.bf16 %v461_v62, %v461_v62 }
 0xa86   :  { %5826 = vmatmul.msk.bf16.vlgmr.msra.gmra.mxu3 %vm164_vm3, %v462_v63 }
 0xa87   :  { %v459_v46 = vpop.f32.mrf.mxu2  ;;  %653 = vmatpush.bf16.msra.mxu3 %v6403_v49 }
 0xa8b   :  { %654 = vmatpush.bf16.msra.mxu3 %v6410_v50 }
 0xb09   :  { %v475_v0 = vpop.f32.mrf.mxu3 }
 0xb0a   :  { %v476_v2 = vadd.f32 %v6430_v57, %v475_v0 }
 0xb0c   :  { %v479_v3 = vmul.f32 %v476_v2, %v6432_v59 }
 0xb0e   :  { %481 = vrot.lane.b32.xlu1 %v479_v3, %s6244_s26 }
 0xb11   :  { %v477_v4 = vpop.f32.mrf.mxu3 }
 0xb80   :  { %v482_v5 = vpop.permute.xlu1 %481 }
 0xb81   :  { %v484_v6 = vadd.f32 %v482_v5, %v6478_v55 }
 0xb83   :  { %v485_v8 = vpack.c.bf16 %v484_v6, %v484_v6 }
 0xb85   :  { %487 = vrot.lane.b32.xlu2 %v485_v8, %s6243_s7 }
 0xbdf   :  { %v488_v9 = vpop.permute.xlu2 %487 }
 0xbe0   :  { %5827 = vmatmul.msk.bf16.vlgmr.msrb.gmra.mxu0 %vm164_vm3, %v488_v9 }
 0xbe1   :  { %679 = vmatpush.bf16.msrb.mxu0 %v6377_v39 }
 0xbe5   :  { %680 = vmatpush.bf16.msrb.mxu0 %v6383_v40 }
 0xc5d   :  { %v501_v10 = vpop.f32.mrf.mxu0 }
 0xc5e   :  { %v502_v11 = vadd.f32 %v6421_v51, %v501_v10 }
 0xc60   :  { %v505_v12 = vmax.f32 %v502_v11, 0.0 }
 0xc62   :  { %v506_v14 = vpack.c.bf16 %v505_v12, %v505_v12 }
 0xc64   :  { %5828 = vmatmul.msk.bf16.vlgmr.msrb.gmra.mxu1 %vm164_vm3, %v506_v14 }
 0xc65   :  { %v503_v15 = vpop.f32.mrf.mxu0  ;;  %697 = vmatpush.bf16.msrb.mxu1 %v6403_v49 }
 0xc69   :  { %698 = vmatpush.bf16.msrb.mxu1 %v6410_v50 }
 0xce1   :  { %v519_v16 = vpop.f32.mrf.mxu1 }
 0xce2   :  { %v520_v17 = vadd.f32 %v6430_v57, %v519_v16 }
 0xce4   :  { %v525_v18 = vmul.f32 %v520_v17, %v6432_v59  ;;  %v523_v30 = vmul.f32 2.0, %v520_v17 }
 0xce6   :  { %527 = vrot.lane.b32.xlu0 %v525_v18, %s6244_s26  ;;  %v524_v33 = vadd.f32 %v523_v30, %v476_v2 }
 0xce9   :  { %v521_v19 = vpop.f32.mrf.mxu1 }
 0xd58   :  { %v528_v20 = vpop.permute.xlu0 %527 }
 0xd59   :  { %v530_v21 = vadd.f32 %v528_v20, %v6478_v55 }
 0xd5b   :  { %v531_v22 = vpack.c.bf16 %v530_v21, %v530_v21 }
 0xd5d   :  { %533 = vrot.lane.b32.xlu1 %v531_v22, %s6243_s7 }
 0xdcf   :  { %v534_v23 = vpop.permute.xlu1 %533 }
 0xdd0   :  { %5829 = vmatmul.msk.bf16.vlgmr.msrb.gmra.mxu2 %vm164_vm3, %v534_v23 }
 0xdd1   :  { %725 = vmatpush.bf16.msrb.mxu2 %v6377_v39 }
 0xdd5   :  { %726 = vmatpush.bf16.msrb.mxu2 %v6383_v40 }
 0xe53   :  { %v547_v24 = vpop.f32.mrf.mxu2 }
 0xe54   :  { %v548_v25 = vadd.f32 %v6421_v51, %v547_v24 }
 0xe56   :  { %v551_v27 = vmax.f32 %v548_v25, 0.0 }
 0xe58   :  { %v552_v28 = vpack.c.bf16 %v551_v27, %v551_v27 }
 0xe5a   :  { %5830 = vmatmul.msk.bf16.vlgmr.msrb.gmra.mxu3 %vm164_vm3, %v552_v28 }
 0xe5b   :  { %v549_v29 = vpop.f32.mrf.mxu2  ;;  %743 = vmatpush.bf16.msrb.mxu3 %v6403_v49 }
 0xe5f   :  { %744 = vmatpush.bf16.msrb.mxu3 %v6410_v50 }
 0xedd   :  { %v565_v31 = vpop.f32.mrf.mxu3 }
 0xede   :  { %v566_v32 = vadd.f32 %v6430_v57, %v565_v31 }
 0xee0   :  { %v569_v34 = vmul.f32 2.0, %v566_v32  ;;  %v571_v35 = vmul.f32 %v566_v32, %v6458_v26 }
 0xee2   :  { %573 = vrot.lane.b32.xlu2 %v571_v35, %s6244_s26  ;;  %v570_v36 = vadd.f32 %v569_v34, %v524_v33 }
 0xee5   :  { %v567_v37 = vpop.f32.mrf.mxu3 }
 0xf3c   :  { %v574_v38 = vpop.permute.xlu2 %573 }
 0xf3d   :  { %v576_v41 = vadd.f32 %v574_v38, %v6478_v55 }
 0xf3f   :  { %v577_v42 = vpack.c.bf16 %v576_v41, %v576_v41 }
 0xf41   :  { %579 = vrot.lane.b32.xlu0 %v577_v42, %s6243_s7 }
 0xfb3   :  { %v580_v43 = vpop.permute.xlu0 %579 }
 0xfb4   :  { %5831 = vmatmul.msk.bf16.vlgmr.msra.gmra.mxu0 %vm164_vm3, %v580_v43 }
 0xfb5   :  { %771 = vmatpush.bf16.msra.mxu0 %v6377_v39 }
 0xfb9   :  { %772 = vmatpush.bf16.msra.mxu0 %v6383_v40 }
0x1031   :  { %v593_v44 = vpop.f32.mrf.mxu0 }
0x1032   :  { %v594_v45 = vadd.f32 %v6421_v51, %v593_v44 }
0x1034   :  { %v597_v48 = vmax.f32 %v594_v45, 0.0 }
0x1036   :  { %v598_v52 = vpack.c.bf16 %v597_v48, %v597_v48 }
0x1038   :  { %5832 = vmatmul.msk.bf16.vlgmr.msra.gmra.mxu1 %vm164_vm3, %v598_v52 }
0x1039   :  { %v595_v53 = vpop.f32.mrf.mxu0  ;;  %789 = vmatpush.bf16.msra.mxu1 %v6403_v49 }
0x103d   :  { %790 = vmatpush.bf16.msra.mxu1 %v6410_v50 }
0x10b5   :  { %v611_v54 = vpop.f32.mrf.mxu1 }
0x10b6   :  { %v612_v56 = vadd.f32 %v6430_v57, %v611_v54 }
0x10b8   :  { %v615_v58 = vadd.f32 %v612_v56, %v570_v36 }
0x10ba   :  { %v616_v60 = vmul.f32 %v615_v58, %v6473_v47 }
0x10bc   :  { %618 = vrot.lane.b32.xlu1 %v616_v60, %s6244_s26 }
0x10bd   :  { %v613_v61 = vpop.f32.mrf.mxu1 }
0x112e   :  { %v619_v62 = vpop.permute.xlu1 %618 }
0x112f   :  { %v6530_v63 = vadd.f32 %v619_v62, %v6478_v55 }
0x1131   :  { %v622_v46 = vpack.c.bf16 %v6530_v63, %v6530_v63 }
0x1133   :  { %624 = vrot.lane.b32.xlu2 %v622_v46, %s6243_s7 }
0x118d   :  { %v625_v0 = vpop.permute.xlu2 %624 }
0x118e   :  { %5833 = vmatmul.msk.bf16.vlgmr.msra.gmra.mxu2 %vm164_vm3, %v625_v0 }
0x118f   :  { %816 = vmatpush.bf16.msra.mxu2 %v6377_v39 }
0x1193   :  { %817 = vmatpush.bf16.msra.mxu2 %v6383_v40 }
0x1211   :  { %v638_v2 = vpop.f32.mrf.mxu2 }
0x1212   :  { %v639_v3 = vadd.f32 %v6421_v51, %v638_v2 }
0x1214   :  { %v642_v4 = vmax.f32 %v639_v3, 0.0 }
0x1216   :  { %v643_v5 = vpack.c.bf16 %v642_v4, %v642_v4 }
0x1218   :  { %5834 = vmatmul.msk.bf16.vlgmr.msra.gmra.mxu3 %vm164_vm3, %v643_v5 }
0x1219   :  { %v640_v55 = vpop.f32.mrf.mxu2  ;;  %834 = vmatpush.bf16.msra.mxu3 %v6403_v49 }
0x121d   :  { %835 = vmatpush.bf16.msra.mxu3 %v6410_v50 }
0x129b   :  { %v656_v6 = vpop.f32.mrf.mxu3 }
0x129c   :  { %v657_v8 = vadd.f32 %v6430_v57, %v656_v6 }
0x129e   :  { %v660_v9 = vmul.f32 %v657_v8, %v6432_v59 }
0x12a0   :  { %662 = vrot.lane.b32.xlu0 %v660_v9, %s6244_s26 }
0x12a3   :  { %v658_v10 = vpop.f32.mrf.mxu3 }
0x1312   :  { %v663_v11 = vpop.permute.xlu0 %662 }
0x1313   :  { %v665_v12 = vadd.f32 %v663_v11, %v6530_v63 }
0x1315   :  { %v666_v14 = vpack.c.bf16 %v665_v12, %v665_v12 }
0x1317   :  { %668 = vrot.lane.b32.xlu1 %v666_v14, %s6243_s7 }
0x1389   :  { %v669_v15 = vpop.permute.xlu1 %668 }
0x138a   :  { %5835 = vmatmul.msk.bf16.vlgmr.msrb.gmra.mxu0 %vm164_vm3, %v669_v15 }
0x138b   :  { %860 = vmatpush.bf16.msrb.mxu0 %v6377_v39 }
0x138f   :  { %861 = vmatpush.bf16.msrb.mxu0 %v6383_v40 }
0x1407   :  { %v682_v16 = vpop.f32.mrf.mxu0 }
0x1408   :  { %v683_v17 = vadd.f32 %v6421_v51, %v682_v16 }
0x140a   :  { %v686_v18 = vmax.f32 %v683_v17, 0.0 }
0x140c   :  { %v687_v19 = vpack.c.bf16 %v686_v18, %v686_v18 }
0x140e   :  { %5836 = vmatmul.msk.bf16.vlgmr.msrb.gmra.mxu1 %vm164_vm3, %v687_v19 }
0x140f   :  { %v684_v20 = vpop.f32.mrf.mxu0  ;;  %878 = vmatpush.bf16.msrb.mxu1 %v6403_v49 }
0x1413   :  { %879 = vmatpush.bf16.msrb.mxu1 %v6410_v50 }
0x148b   :  { %v700_v21 = vpop.f32.mrf.mxu1 }
0x148c   :  { %v701_v22 = vadd.f32 %v6430_v57, %v700_v21 }
0x148e   :  { %v706_v23 = vmul.f32 %v701_v22, %v6432_v59  ;;  %v704_v35 = vmul.f32 2.0, %v701_v22 }
0x1490   :  { %708 = vrot.lane.b32.xlu2 %v706_v23, %s6244_s26  ;;  %v705_v38 = vadd.f32 %v704_v35, %v657_v8 }
0x1493   :  { %v702_v24 = vpop.f32.mrf.mxu1 }
0x14ea   :  { %v709_v25 = vpop.permute.xlu2 %708 }
0x14eb   :  { %v711_v27 = vadd.f32 %v709_v25, %v6530_v63 }
0x14ed   :  { %v712_v28 = vpack.c.bf16 %v711_v27, %v711_v27 }
0x14ef   :  { %714 = vrot.lane.b32.xlu0 %v712_v28, %s6243_s7 }
0x1561   :  { %v715_v29 = vpop.permute.xlu0 %714 }
0x1562   :  { %5837 = vmatmul.msk.bf16.vlgmr.msrb.gmra.mxu2 %vm164_vm3, %v715_v29 }
0x1563   :  { %906 = vmatpush.bf16.msrb.mxu2 %v6377_v39 }
0x1567   :  { %907 = vmatpush.bf16.msrb.mxu2 %v6383_v40 }
0x15e5   :  { %v728_v30 = vpop.f32.mrf.mxu2 }
0x15e6   :  { %v729_v31 = vadd.f32 %v6421_v51, %v728_v30 }
0x15e8   :  { %v732_v32 = vmax.f32 %v729_v31, 0.0 }
0x15ea   :  { %v733_v33 = vpack.c.bf16 %v732_v32, %v732_v32 }
0x15ec   :  { %5838 = vmatmul.msk.bf16.vlgmr.msrb.gmra.mxu3 %vm164_vm3, %v733_v33 }
0x15ed   :  { %v730_v34 = vpop.f32.mrf.mxu2  ;;  %924 = vmatpush.bf16.msrb.mxu3 %v6403_v49 }
0x15f1   :  { %925 = vmatpush.bf16.msrb.mxu3 %v6410_v50 }
0x166f   :  { %v746_v36 = vpop.f32.mrf.mxu3 }
0x1670   :  { %v747_v37 = vadd.f32 %v6430_v57, %v746_v36 }
0x1672   :  { %v750_v41 = vmul.f32 2.0, %v747_v37  ;;  %v752_v42 = vmul.f32 %v747_v37, %v6458_v26 }
0x1674   :  { %754 = vrot.lane.b32.xlu1 %v752_v42, %s6244_s26  ;;  %v751_v43 = vadd.f32 %v750_v41, %v705_v38 }
0x1677   :  { %v748_v44 = vpop.f32.mrf.mxu3 }
0x16e6   :  { %v755_v45 = vpop.permute.xlu1 %754 }
0x16e7   :  { %v757_v48 = vadd.f32 %v755_v45, %v6530_v63 }
0x16e9   :  { %v758_v52 = vpack.c.bf16 %v757_v48, %v757_v48 }
0x16eb   :  { %760 = vrot.lane.b32.xlu2 %v758_v52, %s6243_s7 }
0x1745   :  { %v761_v53 = vpop.permute.xlu2 %760 }
0x1746   :  { %5839 = vmatmul.msk.bf16.vlgmr.msra.gmra.mxu0 %vm164_vm3, %v761_v53 }
0x1747   :  { %952 = vmatpush.bf16.msra.mxu0 %v6377_v39 }
0x174b   :  { %953 = vmatpush.bf16.msra.mxu0 %v6383_v40 }
0x17c3   :  { %v774_v54 = vpop.f32.mrf.mxu0 }
0x17c4   :  { %v775_v56 = vadd.f32 %v6421_v51, %v774_v54 }
0x17c6   :  { %v778_v58 = vmax.f32 %v775_v56, 0.0 }
0x17c8   :  { %v779_v60 = vpack.c.bf16 %v778_v58, %v778_v58 }
0x17ca   :  { %5840 = vmatmul.msk.bf16.vlgmr.msra.gmra.mxu1 %vm164_vm3, %v779_v60 }
0x17cb   :  { %v776_v61 = vpop.f32.mrf.mxu0  ;;  %970 = vmatpush.bf16.msra.mxu1 %v6403_v49 }
0x17cf   :  { %971 = vmatpush.bf16.msra.mxu1 %v6410_v50 }
0x1847   :  { %v792_v62 = vpop.f32.mrf.mxu1 }
0x1848   :  { %v793_v46 = vadd.f32 %v6430_v57, %v792_v62 }
0x184a   :  { %v796_v0 = vadd.f32 %v793_v46, %v751_v43 }
0x184c   :  { %v797_v2 = vmul.f32 %v796_v0, %v6473_v47 }
0x184e   :  { %799 = vrot.lane.b32.xlu0 %v797_v2, %s6244_s26 }
0x184f   :  { %v794_v3 = vpop.f32.mrf.mxu1 }
0x18c0   :  { %v800_v4 = vpop.permute.xlu0 %799 }
0x18c1   :  { %v6582_v5 = vadd.f32 %v800_v4, %v6530_v63 }
0x18c3   :  { %v803_v55 = vpack.c.bf16 %v6582_v5, %v6582_v5 }
0x18c5   :  { %805 = vrot.lane.b32.xlu1 %v803_v55, %s6243_s7 }
0x1937   :  { %v806_v6 = vpop.permute.xlu1 %805 }
0x1938   :  { %5841 = vmatmul.msk.bf16.vlgmr.msra.gmra.mxu2 %vm164_vm3, %v806_v6 }
0x1939   :  { %998 = vmatpush.bf16.msra.mxu2 %v6341_v1 }
0x193d   :  { %999 = vmatpush.bf16.msra.mxu2 %v6356_v7 }
0x19bb   :  { %v819_v8 = vpop.f32.mrf.mxu2 }
0x19bc   :  { %v820_v9 = vadd.f32 %v6421_v51, %v819_v8 }
0x19be   :  { %v823_v10 = vmax.f32 %v820_v9, 0.0 }
0x19c0   :  { %v824_v11 = vpack.c.bf16 %v823_v10, %v823_v10 }
0x19c2   :  { %5842 = vmatmul.msk.bf16.vlgmr.msra.gmra.mxu3 %vm164_vm3, %v824_v11 }
0x19c3   :  { %v821_v63 = vpop.f32.mrf.mxu2  ;;  %1061 = vmatpush.bf16.msra.mxu3 %v6377_v39 }
0x19c4   :  { %v984_v63 = vld [vmem:[#allocation3 + $0x2] sm:$0x3] }
0x19c7   :  { %1062 = vmatpush.bf16.msra.mxu3 %v6383_v40 }
0x1a45   :  { %v837_v12 = vpop.f32.mrf.mxu3 }
0x1a46   :  { %v838_v14 = vadd.f32 %v6430_v57, %v837_v12 }
0x1a48   :  { %v841_v15 = vmul.f32 %v838_v14, %v6432_v59 }
0x1a4a   :  { %843 = vrot.lane.b32.xlu2 %v841_v15, %s6244_s26 }
0x1a4d   :  { %v839_v1 = vpop.f32.mrf.mxu3 }
0x1aa4   :  { %v844_v7 = vpop.permute.xlu2 %843 }
0x1aa5   :  { %v846_v16 = vadd.f32 %v844_v7, %v6582_v5 }
0x1aa7   :  { %v847_v17 = vpack.c.bf16 %v846_v16, %v846_v16 }
0x1aa9   :  { %849 = vrot.lane.b32.xlu0 %v847_v17, %s6243_s7 }
0x1b1b   :  { %v850_v18 = vpop.permute.xlu0 %849 }
0x1b1c   :  { %5843 = vmatmul.msk.bf16.vlgmr.msrb.gmra.mxu0 %vm164_vm3, %v850_v18 }
0x1b1d   :  { %1079 = vmatpush.bf16.msrb.mxu0 %v6403_v49 }
0x1b21   :  { %1080 = vmatpush.bf16.msrb.mxu0 %v6410_v50 }
0x1b99   :  { %v863_v19 = vpop.f32.mrf.mxu0 }
0x1b9a   :  { %v864_v20 = vadd.f32 %v6421_v51, %v863_v19 }
0x1b9c   :  { %v867_v21 = vmax.f32 %v864_v20, 0.0 }
0x1b9e   :  { %v868_v22 = vpack.c.bf16 %v867_v21, %v867_v21 }
0x1ba0   :  { %5844 = vmatmul.msk.bf16.vlgmr.msrb.gmra.mxu1 %vm164_vm3, %v868_v22 }
0x1ba1   :  { %v865_v23 = vpop.f32.mrf.mxu0  ;;  %1106 = vmatpush.bf16.msrb.mxu1 %v6377_v39 }
0x1ba5   :  { %1107 = vmatpush.bf16.msrb.mxu1 %v6383_v40 }
0x1c1d   :  { %v881_v24 = vpop.f32.mrf.mxu1 }
0x1c1e   :  { %v882_v25 = vadd.f32 %v6430_v57, %v881_v24 }
0x1c20   :  { %v887_v27 = vmul.f32 %v882_v25, %v6432_v59  ;;  %v885_v37 = vmul.f32 2.0, %v882_v25 }
0x1c22   :  { %889 = vrot.lane.b32.xlu1 %v887_v27, %s6244_s26  ;;  %v886_v42 = vadd.f32 %v885_v37, %v838_v14 }
0x1c25   :  { %v883_v28 = vpop.f32.mrf.mxu1 }
0x1c94   :  { %v890_v29 = vpop.permute.xlu1 %889 }
0x1c95   :  { %v892_v30 = vadd.f32 %v890_v29, %v6582_v5 }
0x1c97   :  { %v893_v31 = vpack.c.bf16 %v892_v30, %v892_v30 }
0x1c99   :  { %895 = vrot.lane.b32.xlu2 %v893_v31, %s6243_s7 }
0x1cf3   :  { %v896_v32 = vpop.permute.xlu2 %895 }
0x1cf4   :  { %5845 = vmatmul.msk.bf16.vlgmr.msrb.gmra.mxu2 %vm164_vm3, %v896_v32 }
0x1cf5   :  { %1124 = vmatpush.bf16.msrb.mxu2 %v6403_v49 }
0x1cf9   :  { %1125 = vmatpush.bf16.msrb.mxu2 %v6410_v50 }
0x1d77   :  { %v909_v33 = vpop.f32.mrf.mxu2 }
0x1d78   :  { %v910_v34 = vadd.f32 %v6421_v51, %v909_v33 }
0x1d7a   :  { %v913_v59 = vmax.f32 %v910_v34, 0.0 }
0x1d7c   :  { %v914_v35 = vpack.c.bf16 %v913_v59, %v913_v59 }
0x1d7e   :  { %5846 = vmatmul.msk.bf16.vlgmr.msrb.gmra.mxu3 %vm164_vm3, %v914_v35 }
0x1d7f   :  { %v911_v36 = vpop.f32.mrf.mxu2  ;;  %1152 = vmatpush.bf16.msrb.mxu3 %v6377_v39 }
0x1d83   :  { %1153 = vmatpush.bf16.msrb.mxu3 %v6383_v40 }
0x1e01   :  { %v927_v38 = vpop.f32.mrf.mxu3 }
0x1e02   :  { %v928_v41 = vadd.f32 %v6430_v57, %v927_v38 }
0x1e04   :  { %v931_v43 = vmul.f32 2.0, %v928_v41  ;;  %v933_v44 = vmul.f32 %v928_v41, %v6458_v26 }
0x1e06   :  { %935 = vrot.lane.b32.xlu0 %v933_v44, %s6244_s26  ;;  %v932_v45 = vadd.f32 %v931_v43, %v886_v42  ;;  %v6654_v43 = vstv %s5852_s3  ;;  %s5927_s3 = sld [smem:[#allocation10 + $0x3]] }
0x1e09   :  { %v929_v48 = vpop.f32.mrf.mxu3 }
0x1e78   :  { %v936_v52 = vpop.permute.xlu0 %935 }
0x1e79   :  { %v938_v53 = vadd.f32 %v936_v52, %v6582_v5 }
0x1e7b   :  { %v939_v54 = vpack.c.bf16 %v938_v53, %v938_v53 }
0x1e7d   :  { %941 = vrot.lane.b32.xlu1 %v939_v54, %s6243_s7 }
0x1eef   :  { %v942_v56 = vpop.permute.xlu1 %941 }
0x1ef0   :  { %5847 = vmatmul.msk.bf16.vlgmr.msra.gmra.mxu0 %vm164_vm3, %v942_v56 }
0x1ef1   :  { %1170 = vmatpush.bf16.msra.mxu0 %v6403_v49 }
0x1ef5   :  { %1171 = vmatpush.bf16.msra.mxu0 %v6410_v50 }
0x1f6d   :  { %v955_v58 = vpop.f32.mrf.mxu0 }
0x1f6e   :  { %v956_v26 = vadd.f32 %v6421_v51, %v955_v58 }
0x1f70   :  { %v959_v60 = vmax.f32 %v956_v26, 0.0 }
0x1f72   :  { %v960_v61 = vpack.c.bf16 %v959_v60, %v959_v60 }
0x1f74   :  { %5848 = vmatmul.msk.bf16.vlgmr.msra.gmra.mxu1 %vm164_vm3, %v960_v61 }
0x1f75   :  { %v957_v62 = vpop.f32.mrf.mxu0  ;;  %1199 = vmatpush.bf16.msra.mxu1 %v6377_v39 }
0x1f79   :  { %1200 = vmatpush.bf16.msra.mxu1 %v6383_v40 }
0x1ff1   :  { %v973_v46 = vpop.f32.mrf.mxu1 }
0x1ff2   :  { %v974_v0 = vadd.f32 %v6430_v57, %v973_v46 }
0x1ff4   :  { %v977_v2 = vadd.f32 %v974_v0, %v932_v45 }
0x1ff6   :  { %v978_v3 = vmul.f32 %v977_v2, %v6473_v47 }
0x1ff8   :  { %980 = vrot.lane.b32.xlu2 %v978_v3, %s6244_s26 }
0x1ff9   :  { %v975_v4 = vpop.f32.mrf.mxu1 }
0x2052   :  { %v981_v55 = vpop.permute.xlu2 %980 }
0x2053   :  { %v983_v6 = vadd.f32 %v981_v55, %v6582_v5 }
0x2055   :  { %v985_v8 = vpack.c.bf16 %v983_v6, %v983_v6 }
0x2057   :  { %987 = vrot.lane.b32.xlu0 %v985_v8, %s6243_s7 }
0x20c9   :  { %v988_v9 = vpop.permute.xlu0 %987 }
0x20ca   :  { %5849 = vmatmul.msk.bf16.vlgmr.msra.gmra.mxu2 %vm164_vm3, %v988_v9 }
0x20cb   :  { %1217 = vmatpush.bf16.msra.mxu2 %v6403_v49 }
0x20cf   :  { %1218 = vmatpush.bf16.msra.mxu2 %v6410_v50 }
0x214d   :  { %v1001_v10 = vpop.f32.mrf.mxu2 }
0x214e   :  { %v1002_v11 = vadd.f32 %v6367_v13, %v1001_v10 }
0x2150   :  { %1026 = vrot.lane.b32.xlu1 %v1002_v11, %s6242_s25  ;;  %v1005_v12 = vadd.f32 %v1002_v11, %v984_v63 }
0x2152   :  { %v5850_v14 = vmul.f32 -1.442695, %v1005_v12 }
0x2154   :  { %6096 = vpow2.f32 %v5850_v14 }
0x2155   :  { %v1003_v47 = vpop.f32.mrf.mxu2 }
0x215a   :  { %v6097_v5 = vpop.eup %6096 }
0x215b   :  { %v1009_v15 = vadd.f32 1.0, %v6097_v5  ;;  %v6680_v5 = vstv %s5851_s4  ;;  %s5962_s4 = sld [smem:[#allocation4 + $0x4]] }
0x215d   :  { %6098 = vrcp.f32 %v1009_v15  ;;  %v1021_v19 = vand.u32 2147483648, %v1009_v15  ;;  %vm1015_vm11 = vweird.f32 %v1009_v15  ;;  %v1019_v20 = vand.u32 2147483647, %v1009_v15 }
0x215f   :  { %v1022_v21 = vor.u32 1.1754944e-38, %v1021_v19  ;;  %vm1020_vm13 = vcmp.eq.f32.partialorder %v1019_v20, 8.507059e+37 }
0x2163   :  { %v6099_v1 = vpop.eup %6098 }
0x2164   :  { %v1011_v7 = vmul.f32 %v6099_v1, %v1009_v15  ;;  %vm1016_vm10 = vweird.f32 %v6099_v1 }
0x2165   :  { %vm1017_vm12 = vmor %vm1015_vm11, %vm1016_vm10 }
0x2166   :  { %v1012_v16 = vsub.f32 1.0, %v1011_v7 }
0x2168   :  { %v1013_v17 = vmul.f32 %v6099_v1, %v1012_v16 }
0x216a   :  { %v1014_v18 = vadd.f32 %v6099_v1, %v1013_v17 }
0x216c   :  { %v1018_v13 = vsel %vm1017_vm12, %v6099_v1, %v1014_v18 }
0x216d   :  { %v1023_v23 = vsel %vm1020_vm13, %v1022_v21, %v1018_v13 }
0x216e   :  { %v1036_v29 = vsub.f32 1.0, %v1023_v23  ;;  %v1042_v31 = vmul.f32 %v1023_v23, %v983_v6 }
0x21c2   :  { %v1027_v22 = vpop.permute.xlu1 %1026 }
0x21c3   :  { %v1029_v24 = vmul.f32 %v1027_v22, %v1023_v23 }
0x21c5   :  { %1031 = vrot.lane.b32.xlu2 %v1029_v24, %s6242_s25 }
0x221f   :  { %v1032_v25 = vpop.permute.xlu2 %1031 }
0x2220   :  { %v1034_v27 = vadd.f32 %v1032_v25, %v984_v63 }
0x2222   :  { %6100 = vtanh.f32 %v1034_v27 }
0x2228   :  { %v6101_v28 = vpop.eup %6100 }
0x2229   :  { %1038 = vrot.lane.b32.xlu0 %v6101_v28, %s6243_s7 }
0x229b   :  { %v1039_v30 = vpop.permute.xlu0 %1038 }
0x229c   :  { %v1041_v32 = vmul.f32 %v1039_v30, %v1036_v29  ;;  %v6695_v30 = vstv %s5853_s23  ;;  %s5889_s23 = sld [smem:[#allocation8 + $0x2]] }
0x229e   :  { %v6642_v33 = vadd.f32 %v1042_v31, %v1041_v32 }
0x22a0   :  { %v1048_v34 = vpack.c.bf16 %v6642_v33, %v6642_v33 }
0x22a2   :  { %1050 = vrot.lane.b32.xlu1 %v1048_v34, %s6243_s7 }
0x2314   :  { %v1051_v59 = vpop.permute.xlu1 %1050 }
0x2315   :  { %5854 = vmatmul.msk.bf16.vlgmr.msra.gmra.mxu3 %vm164_vm3, %v1051_v59  ;;  %v6709_v59 = vld [vmem:[%s8166_s9 + $0x8] sm:$0xff] }
0x2316   :  { %1245 = vmatpush.bf16.msra.mxu3 %v6377_v39 }
0x231a   :  { %1246 = vmatpush.bf16.msra.mxu3 %v6383_v40 }
0x2398   :  { %v1064_v35 = vpop.f32.mrf.mxu3 }
0x2399   :  { %v1065_v36 = vadd.f32 %v6421_v51, %v1064_v35 }
0x239b   :  { %v1068_v37 = vmax.f32 %v1065_v36, 0.0 }
0x239d   :  { %v1069_v38 = vpack.c.bf16 %v1068_v37, %v1068_v37 }
0x239f   :  { %5855 = vmatmul.msk.bf16.vlgmr.msrb.gmra.mxu0 %vm164_vm3, %v1069_v38 }
0x23a0   :  { %v1066_v41 = vpop.f32.mrf.mxu3  ;;  %1263 = vmatpush.bf16.msrb.mxu0 %v6403_v49 }
0x23a4   :  { %1264 = vmatpush.bf16.msrb.mxu0 %v6410_v50 }
0x241c   :  { %v1082_v42 = vpop.f32.mrf.mxu0 }
0x241d   :  { %v1083_v44 = vadd.f32 %v6430_v57, %v1082_v42  ;;  %v6723_v42 = vld [vmem:[%s8168_s11 + $0x8] sm:$0xff] }
0x241f   :  { %v1087_v45 = vmul.f32 %v6654_v43, %v1083_v44 }
0x2421   :  { %1089 = vrot.lane.b32.xlu2 %v1087_v45, %s6244_s26 }
0x2424   :  { %v1084_v48 = vpop.f32.mrf.mxu0 }
0x247b   :  { %v1090_v52 = vpop.permute.xlu2 %1089 }
0x247c   :  { %v1092_v53 = vadd.f32 %v1090_v52, %v6642_v33 }
0x247e   :  { %v1093_v54 = vpack.c.bf16 %v1092_v53, %v1092_v53 }
0x2480   :  { %1095 = vrot.lane.b32.xlu0 %v1093_v54, %s6243_s7 }
0x24f2   :  { %v1096_v56 = vpop.permute.xlu0 %1095 }
0x24f3   :  { %5856 = vmatmul.msk.bf16.vlgmr.msrb.gmra.mxu1 %vm164_vm3, %v1096_v56 }
0x24f4   :  { %1289 = vmatpush.bf16.msrb.mxu1 %v6377_v39 }
0x24f8   :  { %1290 = vmatpush.bf16.msrb.mxu1 %v6383_v40 }
0x2570   :  { %v1109_v58 = vpop.f32.mrf.mxu1 }
0x2571   :  { %v1110_v26 = vadd.f32 %v6421_v51, %v1109_v58 }
0x2573   :  { %v1113_v60 = vmax.f32 %v1110_v26, 0.0 }
0x2575   :  { %v1114_v61 = vpack.c.bf16 %v1113_v60, %v1113_v60 }
0x2577   :  { %5857 = vmatmul.msk.bf16.vlgmr.msrb.gmra.mxu2 %vm164_vm3, %v1114_v61 }
0x2578   :  { %v1111_v62 = vpop.f32.mrf.mxu1  ;;  %1307 = vmatpush.bf16.msrb.mxu2 %v6403_v49 }
0x257c   :  { %1308 = vmatpush.bf16.msrb.mxu2 %v6410_v50 }
0x25fa   :  { %v1127_v46 = vpop.f32.mrf.mxu2 }
0x25fb   :  { %v1128_v0 = vadd.f32 %v6430_v57, %v1127_v46 }
0x25fd   :  { %v1133_v2 = vmul.f32 %v1128_v0, %v6654_v43  ;;  %v1131_v12 = vmul.f32 2.0, %v1128_v0 }
0x25ff   :  { %1135 = vrot.lane.b32.xlu1 %v1133_v2, %s6244_s26  ;;  %v1132_v1 = vadd.f32 %v1131_v12, %v1083_v44  ;;  %v6729_v44 = vld [vmem:[%s8168_s11] sm:$0xff] }
0x2600   :  { %v6752_v2 = vld [vmem:[%s8169_s12] ss:$0 sm:$0xff] }
0x2602   :  { %v1129_v3 = vpop.f32.mrf.mxu2 }
0x2671   :  { %v1136_v4 = vpop.permute.xlu1 %1135 }
0x2672   :  { %v1138_v55 = vadd.f32 %v1136_v4, %v6642_v33 }
0x2674   :  { %v1139_v6 = vpack.c.bf16 %v1138_v55, %v1138_v55 }
0x2676   :  { %1141 = vrot.lane.b32.xlu2 %v1139_v6, %s6243_s7 }
0x26d0   :  { %v1142_v8 = vpop.permute.xlu2 %1141 }
0x26d1   :  { %5858 = vmatmul.msk.bf16.vlgmr.msrb.gmra.mxu3 %vm164_vm3, %v1142_v8 }
0x26d2   :  { %1335 = vmatpush.bf16.msrb.mxu3 %v6377_v39 }
0x26d6   :  { %1336 = vmatpush.bf16.msrb.mxu3 %v6383_v40 }
0x2754   :  { %v1155_v9 = vpop.f32.mrf.mxu3 }
0x2755   :  { %v1156_v10 = vadd.f32 %v6421_v51, %v1155_v9 }
0x2757   :  { %v1159_v11 = vmax.f32 %v1156_v10, 0.0 }
0x2759   :  { %v1160_v47 = vpack.c.bf16 %v1159_v11, %v1159_v11 }
0x275b   :  { %5859 = vmatmul.msk.bf16.vlgmr.msra.gmra.mxu0 %vm164_vm3, %v1160_v47 }
0x275c   :  { %v1157_v63 = vpop.f32.mrf.mxu3  ;;  %1353 = vmatpush.bf16.msra.mxu0 %v6403_v49 }
0x2760   :  { %1354 = vmatpush.bf16.msra.mxu0 %v6410_v50 }
0x27d8   :  { %v1173_v14 = vpop.f32.mrf.mxu0 }
0x27d9   :  { %v1174_v15 = vadd.f32 %v6430_v57, %v1173_v14 }
0x27db   :  { %v1177_v7 = vmul.f32 2.0, %v1174_v15  ;;  %v1180_v16 = vmul.f32 %v6680_v5, %v1174_v15 }
0x27dd   :  { %1182 = vrot.lane.b32.xlu0 %v1180_v16, %s6244_s26  ;;  %v1178_v17 = vadd.f32 %v1177_v7, %v1132_v1 }
0x27e0   :  { %v1175_v18 = vpop.f32.mrf.mxu0 }
0x284f   :  { %v1183_v19 = vpop.permute.xlu0 %1182 }
0x2850   :  { %v1185_v20 = vadd.f32 %v1183_v19, %v6642_v33 }
0x2852   :  { %v1186_v13 = vpack.c.bf16 %v1185_v20, %v1185_v20 }
0x2854   :  { %1188 = vrot.lane.b32.xlu1 %v1186_v13, %s6243_s7 }
0x28c6   :  { %v1189_v21 = vpop.permute.xlu1 %1188 }
0x28c7   :  { %5860 = vmatmul.msk.bf16.vlgmr.msra.gmra.mxu1 %vm164_vm3, %v1189_v21 }
0x28c8   :  { %1381 = vmatpush.bf16.msra.mxu1 %v6377_v39 }
0x28cc   :  { %1382 = vmatpush.bf16.msra.mxu1 %v6383_v40 }
0x2944   :  { %v1202_v22 = vpop.f32.mrf.mxu1 }
0x2945   :  { %v1203_v23 = vadd.f32 %v6421_v51, %v1202_v22 }
0x2947   :  { %v1206_v24 = vmax.f32 %v1203_v23, 0.0 }
0x2949   :  { %v1207_v25 = vpack.c.bf16 %v1206_v24, %v1206_v24 }
0x294b   :  { %5861 = vmatmul.msk.bf16.vlgmr.msra.gmra.mxu2 %vm164_vm3, %v1207_v25 }
0x294c   :  { %v1204_v27 = vpop.f32.mrf.mxu1  ;;  %1399 = vmatpush.bf16.msra.mxu2 %v6403_v49 }
0x2950   :  { %1400 = vmatpush.bf16.msra.mxu2 %v6410_v50 }
0x29ce   :  { %v1220_v28 = vpop.f32.mrf.mxu2 }
0x29cf   :  { %v1221_v29 = vadd.f32 %v6430_v57, %v1220_v28 }
0x29d1   :  { %v1224_v39 = vadd.f32 %v1221_v29, %v1178_v17 }
0x29d3   :  { %v1226_v40 = vmul.f32 %v6695_v30, %v1224_v39 }
0x29d5   :  { %1228 = vrot.lane.b32.xlu2 %v1226_v40, %s6244_s26 }
0x29d6   :  { %v1222_v31 = vpop.f32.mrf.mxu2 }
0x2a2f   :  { %v1229_v32 = vpop.permute.xlu2 %1228 }
0x2a30   :  { %v6700_v34 = vadd.f32 %v1229_v32, %v6642_v33  ;;  %v6715_v33 = vld [vmem:[%s8166_s9] sm:$0xff] }
0x2a32   :  { %v1232_v49 = vpack.c.bf16 %v6700_v34, %v6700_v34 }
0x2a34   :  { %1234 = vrot.lane.b32.xlu0 %v1232_v49, %s6243_s7 }
0x2aa6   :  { %v1235_v50 = vpop.permute.xlu0 %1234 }
0x2aa7   :  { %5862 = vmatmul.msk.bf16.vlgmr.msra.gmra.mxu3 %vm164_vm3, %v1235_v50 }
0x2aa8   :  { %1426 = vmatpush.bf16.msra.mxu3 %v6709_v59 }
0x2aac   :  { %1427 = vmatpush.bf16.msra.mxu3 %v6715_v33 }
0x2b2a   :  { %v1248_v35 = vpop.f32.mrf.mxu3 }
0x2b2b   :  { %v1249_v36 = vadd.f32 %v6421_v51, %v1248_v35 }
0x2b2d   :  { %v1252_v37 = vmax.f32 %v1249_v36, 0.0 }
0x2b2f   :  { %v1253_v38 = vpack.c.bf16 %v1252_v37, %v1252_v37 }
0x2b31   :  { %5863 = vmatmul.msk.bf16.vlgmr.msrb.gmra.mxu0 %vm164_vm3, %v1253_v38 }
0x2b32   :  { %v1250_v41 = vpop.f32.mrf.mxu3  ;;  %1444 = vmatpush.bf16.msrb.mxu0 %v6723_v42 }
0x2b36   :  { %1445 = vmatpush.bf16.msrb.mxu0 %v6729_v44 }
0x2bae   :  { %v1266_v51 = vpop.f32.mrf.mxu0 }
0x2baf   :  { %v1267_v45 = vadd.f32 %v6430_v57, %v1266_v51  ;;  %v6743_v57 = vld [vmem:[%s8167_s10] ss:$0 sm:$0xff] }
0x2bb1   :  { %v1270_v48 = vmul.f32 %v1267_v45, %v6654_v43 }
0x2bb3   :  { %1272 = vrot.lane.b32.xlu1 %v1270_v48, %s6244_s26 }
0x2bb6   :  { %v1268_v52 = vpop.f32.mrf.mxu0 }
0x2c25   :  { %v1273_v53 = vpop.permute.xlu1 %1272 }
0x2c26   :  { %v1275_v54 = vadd.f32 %v1273_v53, %v6700_v34 }
0x2c28   :  { %v1276_v56 = vpack.c.bf16 %v1275_v54, %v1275_v54 }
0x2c2a   :  { %1278 = vrot.lane.b32.xlu2 %v1276_v56, %s6243_s7 }
0x2c84   :  { %v1279_v58 = vpop.permute.xlu2 %1278 }
0x2c85   :  { %5864 = vmatmul.msk.bf16.vlgmr.msrb.gmra.mxu1 %vm164_vm3, %v1279_v58 }
0x2c86   :  { %1470 = vmatpush.bf16.msrb.mxu1 %v6709_v59 }
0x2c8a   :  { %1471 = vmatpush.bf16.msrb.mxu1 %v6715_v33 }
0x2d02   :  { %v1292_v26 = vpop.f32.mrf.mxu1 }
0x2d03   :  { %v1293_v60 = vadd.f32 %v6743_v57, %v1292_v26 }
0x2d05   :  { %v1296_v61 = vmax.f32 %v1293_v60, 0.0 }
0x2d07   :  { %v1297_v62 = vpack.c.bf16 %v1296_v61, %v1296_v61 }
0x2d09   :  { %5865 = vmatmul.msk.bf16.vlgmr.msrb.gmra.mxu2 %vm164_vm3, %v1297_v62 }
0x2d0a   :  { %v1294_v46 = vpop.f32.mrf.mxu1  ;;  %1488 = vmatpush.bf16.msrb.mxu2 %v6723_v42 }
0x2d0e   :  { %1489 = vmatpush.bf16.msrb.mxu2 %v6729_v44 }
0x2d8c   :  { %v1310_v0 = vpop.f32.mrf.mxu2 }
0x2d8d   :  { %v1311_v3 = vadd.f32 %v6752_v2, %v1310_v0 }
0x2d8f   :  { %v1316_v4 = vmul.f32 %v1311_v3, %v6654_v43  ;;  %v1314_v15 = vmul.f32 2.0, %v1311_v3 }
0x2d91   :  { %1318 = vrot.lane.b32.xlu0 %v1316_v4, %s6244_s26  ;;  %v1315_v16 = vadd.f32 %v1314_v15, %v1267_v45 }
0x2d94   :  { %v1312_v55 = vpop.f32.mrf.mxu2 }
0x2e03   :  { %v1319_v6 = vpop.permute.xlu0 %1318 }
0x2e04   :  { %v1321_v8 = vadd.f32 %v1319_v6, %v6700_v34 }
0x2e06   :  { %v1322_v9 = vpack.c.bf16 %v1321_v8, %v1321_v8 }
0x2e08   :  { %1324 = vrot.lane.b32.xlu1 %v1322_v9, %s6243_s7 }
0x2e7a   :  { %v1325_v10 = vpop.permute.xlu1 %1324 }
0x2e7b   :  { %5866 = vmatmul.msk.bf16.vlgmr.msrb.gmra.mxu3 %vm164_vm3, %v1325_v10 }
0x2e7c   :  { %1516 = vmatpush.bf16.msrb.mxu3 %v6709_v59 }
0x2e80   :  { %1517 = vmatpush.bf16.msrb.mxu3 %v6715_v33 }
0x2efe   :  { %v1338_v11 = vpop.f32.mrf.mxu3 }
0x2eff   :  { %v1339_v47 = vadd.f32 %v6743_v57, %v1338_v11 }
0x2f01   :  { %v1342_v63 = vmax.f32 %v1339_v47, 0.0 }
0x2f03   :  { %v1343_v12 = vpack.c.bf16 %v1342_v63, %v1342_v63 }
0x2f05   :  { %5867 = vmatmul.msk.bf16.vlgmr.msra.gmra.mxu0 %vm164_vm3, %v1343_v12 }
0x2f06   :  { %v1340_v14 = vpop.f32.mrf.mxu3  ;;  %1534 = vmatpush.bf16.msra.mxu0 %v6723_v42 }
0x2f0a   :  { %1535 = vmatpush.bf16.msra.mxu0 %v6729_v44 }
0x2f82   :  { %v1356_v1 = vpop.f32.mrf.mxu0 }
0x2f83   :  { %v1357_v7 = vadd.f32 %v6752_v2, %v1356_v1 }
0x2f85   :  { %v1360_v17 = vmul.f32 2.0, %v1357_v7  ;;  %v1362_v18 = vmul.f32 %v1357_v7, %v6680_v5 }
0x2f87   :  { %1364 = vrot.lane.b32.xlu2 %v1362_v18, %s6244_s26  ;;  %v1361_v19 = vadd.f32 %v1360_v17, %v1315_v16 }
0x2f8a   :  { %v1358_v20 = vpop.f32.mrf.mxu0 }
0x2fe1   :  { %v1365_v13 = vpop.permute.xlu2 %1364 }
0x2fe2   :  { %v1367_v21 = vadd.f32 %v1365_v13, %v6700_v34 }
0x2fe4   :  { %v1368_v22 = vpack.c.bf16 %v1367_v21, %v1367_v21 }
0x2fe6   :  { %1370 = vrot.lane.b32.xlu0 %v1368_v22, %s6243_s7 }
0x3058   :  { %v1371_v23 = vpop.permute.xlu0 %1370 }
0x3059   :  { %5868 = vmatmul.msk.bf16.vlgmr.msra.gmra.mxu1 %vm164_vm3, %v1371_v23 }
0x305a   :  { %1562 = vmatpush.bf16.msra.mxu1 %v6709_v59 }
0x305e   :  { %1563 = vmatpush.bf16.msra.mxu1 %v6715_v33 }
0x30d6   :  { %v1384_v24 = vpop.f32.mrf.mxu1 }
0x30d7   :  { %v1385_v25 = vadd.f32 %v6743_v57, %v1384_v24 }
0x30d9   :  { %v1388_v27 = vmax.f32 %v1385_v25, 0.0 }
0x30db   :  { %v1389_v28 = vpack.c.bf16 %v1388_v27, %v1388_v27 }
0x30dd   :  { %5869 = vmatmul.msk.bf16.vlgmr.msra.gmra.mxu2 %vm164_vm3, %v1389_v28 }
0x30de   :  { %v1386_v29 = vpop.f32.mrf.mxu1  ;;  %1580 = vmatpush.bf16.msra.mxu2 %v6723_v42 }
0x30e2   :  { %1581 = vmatpush.bf16.msra.mxu2 %v6729_v44 }
0x3160   :  { %v1402_v39 = vpop.f32.mrf.mxu2 }
0x3161   :  { %v1403_v40 = vadd.f32 %v6752_v2, %v1402_v39 }
0x3163   :  { %v1406_v31 = vadd.f32 %v1403_v40, %v1361_v19 }
0x3165   :  { %v1407_v32 = vmul.f32 %v1406_v31, %v6695_v30 }
0x3167   :  { %1409 = vrot.lane.b32.xlu1 %v1407_v32, %s6244_s26 }
0x3168   :  { %v1404_v49 = vpop.f32.mrf.mxu2 }
0x31d9   :  { %v1410_v50 = vpop.permute.xlu1 %1409 }
0x31da   :  { %v6782_v35 = vadd.f32 %v1410_v50, %v6700_v34 }
0x31dc   :  { %v1413_v36 = vpack.c.bf16 %v6782_v35, %v6782_v35 }
0x31de   :  { %1415 = vrot.lane.b32.xlu2 %v1413_v36, %s6243_s7 }
0x3238   :  { %v1416_v37 = vpop.permute.xlu2 %1415 }
0x3239   :  { %5870 = vmatmul.msk.bf16.vlgmr.msra.gmra.mxu3 %vm164_vm3, %v1416_v37 }
0x323a   :  { %1607 = vmatpush.bf16.msra.mxu3 %v6709_v59 }
0x323e   :  { %1608 = vmatpush.bf16.msra.mxu3 %v6715_v33 }
0x32bc   :  { %v1429_v38 = vpop.f32.mrf.mxu3 }
0x32bd   :  { %v1430_v41 = vadd.f32 %v6743_v57, %v1429_v38 }
0x32bf   :  { %v1433_v51 = vmax.f32 %v1430_v41, 0.0 }
0x32c1   :  { %v1434_v45 = vpack.c.bf16 %v1433_v51, %v1433_v51 }
0x32c3   :  { %5871 = vmatmul.msk.bf16.vlgmr.msrb.gmra.mxu0 %vm164_vm3, %v1434_v45  ;;  %v6843_v45 = vld [vmem:[%s8163_s6 + $0x8] sm:$0xff] }
0x32c4   :  { %v1431_v34 = vpop.f32.mrf.mxu3  ;;  %1625 = vmatpush.bf16.msrb.mxu0 %v6723_v42 }
0x32c8   :  { %1626 = vmatpush.bf16.msrb.mxu0 %v6729_v44 }
0x3340   :  { %v1447_v48 = vpop.f32.mrf.mxu0 }
0x3341   :  { %v1448_v52 = vadd.f32 %v6752_v2, %v1447_v48 }
0x3343   :  { %v1451_v53 = vmul.f32 %v1448_v52, %v6654_v43 }
0x3345   :  { %1453 = vrot.lane.b32.xlu0 %v1451_v53, %s6244_s26 }
0x3348   :  { %v1449_v54 = vpop.f32.mrf.mxu0 }
0x33b7   :  { %v1454_v56 = vpop.permute.xlu0 %1453 }
0x33b8   :  { %v1456_v58 = vadd.f32 %v1454_v56, %v6782_v35 }
0x33ba   :  { %v1457_v26 = vpack.c.bf16 %v1456_v58, %v1456_v58 }
0x33bc   :  { %1459 = vrot.lane.b32.xlu1 %v1457_v26, %s6243_s7 }
0x342e   :  { %v1460_v60 = vpop.permute.xlu1 %1459 }
0x342f   :  { %5872 = vmatmul.msk.bf16.vlgmr.msrb.gmra.mxu1 %vm164_vm3, %v1460_v60 }
0x3430   :  { %1651 = vmatpush.bf16.msrb.mxu1 %v6709_v59 }
0x3434   :  { %1652 = vmatpush.bf16.msrb.mxu1 %v6715_v33 }
0x34ac   :  { %v1473_v61 = vpop.f32.mrf.mxu1 }
0x34ad   :  { %v1474_v62 = vadd.f32 %v6743_v57, %v1473_v61 }
0x34af   :  { %v1477_v46 = vmax.f32 %v1474_v62, 0.0 }
0x34b1   :  { %v1478_v0 = vpack.c.bf16 %v1477_v46, %v1477_v46 }
0x34b3   :  { %5873 = vmatmul.msk.bf16.vlgmr.msrb.gmra.mxu2 %vm164_vm3, %v1478_v0 }
0x34b4   :  { %v1475_v3 = vpop.f32.mrf.mxu1  ;;  %1669 = vmatpush.bf16.msrb.mxu2 %v6723_v42 }
0x34b8   :  { %1670 = vmatpush.bf16.msrb.mxu2 %v6729_v44 }
0x3536   :  { %v1491_v4 = vpop.f32.mrf.mxu2 }
0x3537   :  { %v1492_v55 = vadd.f32 %v6752_v2, %v1491_v4 }
0x3539   :  { %v1497_v6 = vmul.f32 %v1492_v55, %v6654_v43  ;;  %v1495_v7 = vmul.f32 2.0, %v1492_v55 }
0x353b   :  { %1499 = vrot.lane.b32.xlu2 %v1497_v6, %s6244_s26  ;;  %v1496_v18 = vadd.f32 %v1495_v7, %v1448_v52 }
0x353e   :  { %v1493_v8 = vpop.f32.mrf.mxu2 }
0x3595   :  { %v1500_v9 = vpop.permute.xlu2 %1499 }
0x3596   :  { %v1502_v10 = vadd.f32 %v1500_v9, %v6782_v35 }
0x3598   :  { %v1503_v11 = vpack.c.bf16 %v1502_v10, %v1502_v10 }
0x359a   :  { %1505 = vrot.lane.b32.xlu0 %v1503_v11, %s6243_s7 }
0x360c   :  { %v1506_v47 = vpop.permute.xlu0 %1505 }
0x360d   :  { %5874 = vmatmul.msk.bf16.vlgmr.msrb.gmra.mxu3 %vm164_vm3, %v1506_v47 }
0x360e   :  { %1697 = vmatpush.bf16.msrb.mxu3 %v6709_v59 }
0x3612   :  { %1698 = vmatpush.bf16.msrb.mxu3 %v6715_v33 }
0x3690   :  { %v1519_v63 = vpop.f32.mrf.mxu3 }
0x3691   :  { %v1520_v12 = vadd.f32 %v6743_v57, %v1519_v63 }
0x3693   :  { %v1523_v14 = vmax.f32 %v1520_v12, 0.0 }
0x3695   :  { %v1524_v15 = vpack.c.bf16 %v1523_v14, %v1523_v14 }
0x3697   :  { %5875 = vmatmul.msk.bf16.vlgmr.msra.gmra.mxu0 %vm164_vm3, %v1524_v15 }
0x3698   :  { %v1521_v1 = vpop.f32.mrf.mxu3  ;;  %1715 = vmatpush.bf16.msra.mxu0 %v6723_v42 }
0x369c   :  { %1716 = vmatpush.bf16.msra.mxu0 %v6729_v44 }
0x3714   :  { %v1537_v16 = vpop.f32.mrf.mxu0 }
0x3715   :  { %v1538_v17 = vadd.f32 %v6752_v2, %v1537_v16 }
0x3717   :  { %v1541_v19 = vmul.f32 2.0, %v1538_v17  ;;  %v1543_v20 = vmul.f32 %v1538_v17, %v6680_v5 }
0x3719   :  { %1545 = vrot.lane.b32.xlu1 %v1543_v20, %s6244_s26  ;;  %v1542_v13 = vadd.f32 %v1541_v19, %v1496_v18 }
0x371c   :  { %v1539_v21 = vpop.f32.mrf.mxu0 }
0x378b   :  { %v1546_v22 = vpop.permute.xlu1 %1545 }
0x378c   :  { %v1548_v23 = vadd.f32 %v1546_v22, %v6782_v35 }
0x378e   :  { %v1549_v24 = vpack.c.bf16 %v1548_v23, %v1548_v23 }
0x3790   :  { %1551 = vrot.lane.b32.xlu2 %v1549_v24, %s6243_s7 }
0x37ea   :  { %v1552_v25 = vpop.permute.xlu2 %1551 }
0x37eb   :  { %5876 = vmatmul.msk.bf16.vlgmr.msra.gmra.mxu1 %vm164_vm3, %v1552_v25 }
0x37ec   :  { %1743 = vmatpush.bf16.msra.mxu1 %v6709_v59 }
0x37f0   :  { %1744 = vmatpush.bf16.msra.mxu1 %v6715_v33 }
0x3868   :  { %v1565_v27 = vpop.f32.mrf.mxu1 }
0x3869   :  { %v1566_v28 = vadd.f32 %v6743_v57, %v1565_v27 }
0x386b   :  { %v1569_v29 = vmax.f32 %v1566_v28, 0.0 }
0x386d   :  { %v1570_v39 = vpack.c.bf16 %v1569_v29, %v1569_v29 }
0x386f   :  { %5877 = vmatmul.msk.bf16.vlgmr.msra.gmra.mxu2 %vm164_vm3, %v1570_v39 }
0x3870   :  { %v1567_v40 = vpop.f32.mrf.mxu1  ;;  %1761 = vmatpush.bf16.msra.mxu2 %v6723_v42 }
0x3874   :  { %1762 = vmatpush.bf16.msra.mxu2 %v6729_v44 }
0x38f2   :  { %v1583_v31 = vpop.f32.mrf.mxu2 }
0x38f3   :  { %v1584_v32 = vadd.f32 %v6752_v2, %v1583_v31 }
0x38f5   :  { %v1587_v49 = vadd.f32 %v1584_v32, %v1542_v13 }
0x38f7   :  { %v1588_v50 = vmul.f32 %v1587_v49, %v6695_v30 }
0x38f9   :  { %1590 = vrot.lane.b32.xlu0 %v1588_v50, %s6244_s26 }
0x38fa   :  { %v1585_v36 = vpop.f32.mrf.mxu2 }
0x396b   :  { %v1591_v37 = vpop.permute.xlu0 %1590 }
0x396c   :  { %v6834_v38 = vadd.f32 %v1591_v37, %v6782_v35  ;;  %v6849_v35 = vld [vmem:[%s8163_s6] sm:$0xff] }
0x396e   :  { %v1594_v41 = vpack.c.bf16 %v6834_v38, %v6834_v38 }
0x3970   :  { %1596 = vrot.lane.b32.xlu1 %v1594_v41, %s6243_s7 }
0x39e2   :  { %v1597_v51 = vpop.permute.xlu1 %1596 }
0x39e3   :  { %5878 = vmatmul.msk.bf16.vlgmr.msra.gmra.mxu3 %vm164_vm3, %v1597_v51 }
0x39e4   :  { %1789 = vmatpush.bf16.msra.mxu3 %v6843_v45 }
0x39e8   :  { %1790 = vmatpush.bf16.msra.mxu3 %v6849_v35 }
0x3a66   :  { %v1610_v34 = vpop.f32.mrf.mxu3 }
0x3a67   :  { %v1611_v48 = vadd.f32 %v6743_v57, %v1610_v34 }
0x3a69   :  { %v1614_v52 = vmax.f32 %v1611_v48, 0.0 }
0x3a6b   :  { %v1615_v53 = vpack.c.bf16 %v1614_v52, %v1614_v52 }
0x3a6d   :  { %5879 = vmatmul.msk.bf16.vlgmr.msrb.gmra.mxu0 %vm164_vm3, %v1615_v53 }
0x3a6e   :  { %v1612_v54 = vpop.f32.mrf.mxu3  ;;  %1852 = vmatpush.bf16.msrb.mxu0 %v6709_v59 }
0x3a72   :  { %1853 = vmatpush.bf16.msrb.mxu0 %v6715_v33 }
0x3aea   :  { %v1628_v56 = vpop.f32.mrf.mxu0 }
0x3aeb   :  { %v1629_v58 = vadd.f32 %v6752_v2, %v1628_v56  ;;  %v1775_v56 = vld [vmem:[#allocation3 + $0x4] sm:$0x3] }
0x3aed   :  { %v1632_v26 = vmul.f32 %v1629_v58, %v6654_v43 }
0x3aef   :  { %1634 = vrot.lane.b32.xlu2 %v1632_v26, %s6244_s26 }
0x3af2   :  { %v1630_v60 = vpop.f32.mrf.mxu0 }
0x3b49   :  { %v1635_v61 = vpop.permute.xlu2 %1634 }
0x3b4a   :  { %v1637_v62 = vadd.f32 %v1635_v61, %v6834_v38 }
0x3b4c   :  { %v1638_v46 = vpack.c.bf16 %v1637_v62, %v1637_v62 }
0x3b4e   :  { %1640 = vrot.lane.b32.xlu0 %v1638_v46, %s6243_s7 }
0x3bc0   :  { %v1641_v0 = vpop.permute.xlu0 %1640 }
0x3bc1   :  { %5880 = vmatmul.msk.bf16.vlgmr.msrb.gmra.mxu1 %vm164_vm3, %v1641_v0 }
0x3bc2   :  { %1870 = vmatpush.bf16.msrb.mxu1 %v6723_v42 }
0x3bc6   :  { %1871 = vmatpush.bf16.msrb.mxu1 %v6729_v44 }
0x3c3e   :  { %v1654_v3 = vpop.f32.mrf.mxu1 }
0x3c3f   :  { %v1655_v4 = vadd.f32 %v6743_v57, %v1654_v3 }
0x3c41   :  { %v1658_v55 = vmax.f32 %v1655_v4, 0.0 }
0x3c43   :  { %v1659_v6 = vpack.c.bf16 %v1658_v55, %v1658_v55 }
0x3c45   :  { %5881 = vmatmul.msk.bf16.vlgmr.msrb.gmra.mxu2 %vm164_vm3, %v1659_v6 }
0x3c46   :  { %v1656_v8 = vpop.f32.mrf.mxu1  ;;  %1897 = vmatpush.bf16.msrb.mxu2 %v6709_v59 }
0x3c4a   :  { %1898 = vmatpush.bf16.msrb.mxu2 %v6715_v33 }
0x3cc8   :  { %v1672_v9 = vpop.f32.mrf.mxu2 }
0x3cc9   :  { %v1673_v10 = vadd.f32 %v6752_v2, %v1672_v9 }
0x3ccb   :  { %v1678_v11 = vmul.f32 %v1673_v10, %v6654_v43  ;;  %v1676_v18 = vmul.f32 2.0, %v1673_v10 }
0x3ccd   :  { %1680 = vrot.lane.b32.xlu1 %v1678_v11, %s6244_s26  ;;  %v1677_v13 = vadd.f32 %v1676_v18, %v1629_v58 }
0x3cd0   :  { %v1674_v47 = vpop.f32.mrf.mxu2 }
0x3d3f   :  { %v1681_v63 = vpop.permute.xlu1 %1680 }
0x3d40   :  { %v1683_v12 = vadd.f32 %v1681_v63, %v6834_v38 }
0x3d42   :  { %v1684_v14 = vpack.c.bf16 %v1683_v12, %v1683_v12 }
0x3d44   :  { %1686 = vrot.lane.b32.xlu2 %v1684_v14, %s6243_s7 }
0x3d9e   :  { %v1687_v15 = vpop.permute.xlu2 %1686 }
0x3d9f   :  { %5882 = vmatmul.msk.bf16.vlgmr.msrb.gmra.mxu3 %vm164_vm3, %v1687_v15 }
0x3da0   :  { %1915 = vmatpush.bf16.msrb.mxu3 %v6723_v42 }
0x3da4   :  { %1916 = vmatpush.bf16.msrb.mxu3 %v6729_v44 }
0x3e22   :  { %v1700_v1 = vpop.f32.mrf.mxu3 }
0x3e23   :  { %v1701_v7 = vadd.f32 %v6743_v57, %v1700_v1 }
0x3e25   :  { %v1704_v43 = vmax.f32 %v1701_v7, 0.0 }
0x3e27   :  { %v1705_v16 = vpack.c.bf16 %v1704_v43, %v1704_v43 }
0x3e29   :  { %5883 = vmatmul.msk.bf16.vlgmr.msra.gmra.mxu0 %vm164_vm3, %v1705_v16 }
0x3e2a   :  { %v1702_v17 = vpop.f32.mrf.mxu3  ;;  %1943 = vmatpush.bf16.msra.mxu0 %v6709_v59 }
0x3e2e   :  { %1944 = vmatpush.bf16.msra.mxu0 %v6715_v33 }
0x3ea6   :  { %v1718_v19 = vpop.f32.mrf.mxu0 }
0x3ea7   :  { %v1719_v20 = vadd.f32 %v6752_v2, %v1718_v19 }
0x3ea9   :  { %v1722_v21 = vmul.f32 2.0, %v1719_v20  ;;  %v1724_v22 = vmul.f32 %v1719_v20, %v6680_v5 }
0x3eab   :  { %1726 = vrot.lane.b32.xlu0 %v1724_v22, %s6244_s26  ;;  %v1723_v23 = vadd.f32 %v1722_v21, %v1677_v13 }
0x3eae   :  { %v1720_v24 = vpop.f32.mrf.mxu0 }
0x3eaf   :  { %v6921_v24 = vstv %s5889_s23  ;;  %s5964_s23 = sld [smem:[#allocation10 + $0x4]] }
0x3f1d   :  { %v1727_v25 = vpop.permute.xlu0 %1726 }
0x3f1e   :  { %v1729_v27 = vadd.f32 %v1727_v25, %v6834_v38 }
0x3f20   :  { %v1730_v28 = vpack.c.bf16 %v1729_v27, %v1729_v27 }
0x3f22   :  { %1732 = vrot.lane.b32.xlu1 %v1730_v28, %s6243_s7 }
0x3f94   :  { %v1733_v29 = vpop.permute.xlu1 %1732 }
0x3f95   :  { %5884 = vmatmul.msk.bf16.vlgmr.msra.gmra.mxu1 %vm164_vm3, %v1733_v29 }
0x3f96   :  { %1961 = vmatpush.bf16.msra.mxu1 %v6723_v42 }
0x3f9a   :  { %1962 = vmatpush.bf16.msra.mxu1 %v6729_v44 }
0x4012   :  { %v1746_v39 = vpop.f32.mrf.mxu1 }
0x4013   :  { %v1747_v5 = vadd.f32 %v6743_v57, %v1746_v39 }
0x4015   :  { %v1750_v40 = vmax.f32 %v1747_v5, 0.0 }
0x4017   :  { %v1751_v31 = vpack.c.bf16 %v1750_v40, %v1750_v40 }
0x4019   :  { %5885 = vmatmul.msk.bf16.vlgmr.msra.gmra.mxu2 %vm164_vm3, %v1751_v31 }
0x401a   :  { %v1748_v32 = vpop.f32.mrf.mxu1  ;;  %1990 = vmatpush.bf16.msra.mxu2 %v6709_v59 }
0x401e   :  { %1991 = vmatpush.bf16.msra.mxu2 %v6715_v33 }
0x409c   :  { %v1764_v49 = vpop.f32.mrf.mxu2 }
0x409d   :  { %v1765_v50 = vadd.f32 %v6752_v2, %v1764_v49 }
0x409f   :  { %v1768_v36 = vadd.f32 %v1765_v50, %v1723_v23 }
0x40a1   :  { %v1769_v37 = vmul.f32 %v1768_v36, %v6695_v30  ;;  %v6903_v30 = vld [vmem:[%s8165_s8] ss:$0 sm:$0xff] }
0x40a3   :  { %1771 = vrot.lane.b32.xlu2 %v1769_v37, %s6244_s26 }
0x40a4   :  { %v1766_v41 = vpop.f32.mrf.mxu2 }
0x40fd   :  { %v1772_v51 = vpop.permute.xlu2 %1771 }
0x40fe   :  { %v1774_v34 = vadd.f32 %v1772_v51, %v6834_v38 }
0x4100   :  { %v1776_v48 = vpack.c.bf16 %v1774_v34, %v1774_v34 }
0x4102   :  { %1778 = vrot.lane.b32.xlu0 %v1776_v48, %s6243_s7 }
0x4174   :  { %v1779_v52 = vpop.permute.xlu0 %1778 }
0x4175   :  { %5886 = vmatmul.msk.bf16.vlgmr.msra.gmra.mxu3 %vm164_vm3, %v1779_v52 }
0x4176   :  { %2008 = vmatpush.bf16.msra.mxu3 %v6723_v42 }
0x417a   :  { %2009 = vmatpush.bf16.msra.mxu3 %v6729_v44 }
0x41f8   :  { %v1792_v53 = vpop.f32.mrf.mxu3 }
0x41f9   :  { %v1793_v54 = vadd.f32 %v6903_v30, %v1792_v53 }
0x41fb   :  { %1817 = vrot.lane.b32.xlu1 %v1793_v54, %s6242_s25  ;;  %v1796_v58 = vadd.f32 %v1793_v54, %v1775_v56 }
0x41fd   :  { %v5887_v26 = vmul.f32 -1.442695, %v1796_v58 }
0x41ff   :  { %6102 = vpow2.f32 %v5887_v26 }
0x4200   :  { %v1794_v38 = vpop.f32.mrf.mxu3 }
0x4205   :  { %v6103_v60 = vpop.eup %6102 }
0x4206   :  { %v1800_v61 = vadd.f32 1.0, %v6103_v60 }
0x4208   :  { %6104 = vrcp.f32 %v1800_v61  ;;  %v1812_v55 = vand.u32 2147483648, %v1800_v61  ;;  %vm1806_vm15 = vweird.f32 %v1800_v61  ;;  %v1810_v6 = vand.u32 2147483647, %v1800_v61 }
0x420a   :  { %v1813_v9 = vor.u32 1.1754944e-38, %v1812_v55  ;;  %vm1811_vm1 = vcmp.eq.f32.partialorder %v1810_v6, 8.507059e+37 }
0x420e   :  { %v6105_v62 = vpop.eup %6104 }
0x420f   :  { %v1802_v46 = vmul.f32 %v6105_v62, %v1800_v61  ;;  %vm1807_vm14 = vweird.f32 %v6105_v62 }
0x4210   :  { %vm1808_vm0 = vmor %vm1806_vm15, %vm1807_vm14 }
0x4211   :  { %v1803_v0 = vsub.f32 1.0, %v1802_v46  ;;  %v6947_v46 = vstv %s5888_s24  ;;  %s6000_s24 = sld [smem:[#allocation8 + $0x5]] }
0x4213   :  { %v1804_v3 = vmul.f32 %v6105_v62, %v1803_v0 }
0x4215   :  { %v1805_v4 = vadd.f32 %v6105_v62, %v1804_v3 }
0x4217   :  { %v1809_v8 = vsel %vm1808_vm0, %v6105_v62, %v1805_v4 }
0x4218   :  { %v1814_v11 = vsel %vm1811_vm1, %v1813_v9, %v1809_v8 }
0x4219   :  { %v1827_v15 = vsub.f32 1.0, %v1814_v11  ;;  %v1833_v7 = vmul.f32 %v1814_v11, %v1774_v34 }
0x426d   :  { %v1818_v10 = vpop.permute.xlu1 %1817 }
0x426e   :  { %v1820_v47 = vmul.f32 %v1818_v10, %v1814_v11 }
0x4270   :  { %1822 = vrot.lane.b32.xlu2 %v1820_v47, %s6242_s25 }
0x42ca   :  { %v1823_v63 = vpop.permute.xlu2 %1822 }
0x42cb   :  { %v1825_v12 = vadd.f32 %v1823_v63, %v1775_v56 }
0x42cd   :  { %6106 = vtanh.f32 %v1825_v12 }
0x42d3   :  { %v6107_v14 = vpop.eup %6106 }
0x42d4   :  { %1829 = vrot.lane.b32.xlu0 %v6107_v14, %s6243_s7 }
0x4346   :  { %v1830_v1 = vpop.permute.xlu0 %1829 }
0x4347   :  { %v1832_v43 = vmul.f32 %v1830_v1, %v1827_v15 }
0x4349   :  { %v6909_v16 = vadd.f32 %v1833_v7, %v1832_v43 }
0x434b   :  { %v1839_v17 = vpack.c.bf16 %v6909_v16, %v6909_v16 }
0x434d   :  { %1841 = vrot.lane.b32.xlu1 %v1839_v17, %s6243_s7  ;;  %v6962_v17 = vstv %s5890_s27  ;;  %s6038_s27 = sld [smem:[#allocation10 + $0x6]] }
0x43bf   :  { %v1842_v18 = vpop.permute.xlu1 %1841 }
0x43c0   :  { %5891 = vmatmul.msk.bf16.vlgmr.msrb.gmra.mxu0 %vm164_vm3, %v1842_v18 }
0x43c1   :  { %2036 = vmatpush.bf16.msrb.mxu0 %v6709_v59 }
0x43c5   :  { %2037 = vmatpush.bf16.msrb.mxu0 %v6715_v33 }
0x443d   :  { %v1855_v19 = vpop.f32.mrf.mxu0 }
0x443e   :  { %v1856_v20 = vadd.f32 %v6743_v57, %v1855_v19 }
0x4440   :  { %v1859_v13 = vmax.f32 %v1856_v20, 0.0 }
0x4442   :  { %v1860_v21 = vpack.c.bf16 %v1859_v13, %v1859_v13 }
0x4444   :  { %5892 = vmatmul.msk.bf16.vlgmr.msrb.gmra.mxu1 %vm164_vm3, %v1860_v21 }
0x4445   :  { %v1857_v22 = vpop.f32.mrf.mxu0  ;;  %2054 = vmatpush.bf16.msrb.mxu1 %v6723_v42 }
0x4449   :  { %2055 = vmatpush.bf16.msrb.mxu1 %v6729_v44 }
0x44c1   :  { %v1873_v23 = vpop.f32.mrf.mxu1 }
0x44c2   :  { %v1874_v25 = vadd.f32 %v6752_v2, %v1873_v23 }
0x44c4   :  { %v1878_v27 = vmul.f32 %v6921_v24, %v1874_v25 }
0x44c6   :  { %1880 = vrot.lane.b32.xlu2 %v1878_v27, %s6244_s26 }
0x44c9   :  { %v1875_v28 = vpop.f32.mrf.mxu1 }
0x4520   :  { %v1881_v29 = vpop.permute.xlu2 %1880 }
0x4521   :  { %v1883_v39 = vadd.f32 %v1881_v29, %v6909_v16 }
0x4523   :  { %v1884_v5 = vpack.c.bf16 %v1883_v39, %v1883_v39 }
0x4525   :  { %1886 = vrot.lane.b32.xlu0 %v1884_v5, %s6243_s7 }
0x4597   :  { %v1887_v40 = vpop.permute.xlu0 %1886 }
0x4598   :  { %5893 = vmatmul.msk.bf16.vlgmr.msrb.gmra.mxu2 %vm164_vm3, %v1887_v40 }
0x4599   :  { %2080 = vmatpush.bf16.msrb.mxu2 %v6709_v59 }
0x459d   :  { %2081 = vmatpush.bf16.msrb.mxu2 %v6715_v33 }
0x461b   :  { %v1900_v31 = vpop.f32.mrf.mxu2 }
0x461c   :  { %v1901_v32 = vadd.f32 %v6743_v57, %v1900_v31 }
0x461e   :  { %v1904_v49 = vmax.f32 %v1901_v32, 0.0 }
0x4620   :  { %v1905_v50 = vpack.c.bf16 %v1904_v49, %v1904_v49 }
0x4622   :  { %5894 = vmatmul.msk.bf16.vlgmr.msrb.gmra.mxu3 %vm164_vm3, %v1905_v50 }
0x4623   :  { %v1902_v36 = vpop.f32.mrf.mxu2  ;;  %2098 = vmatpush.bf16.msrb.mxu3 %v6723_v42 }
0x4627   :  { %2099 = vmatpush.bf16.msrb.mxu3 %v6729_v44 }
0x46a5   :  { %v1918_v37 = vpop.f32.mrf.mxu3 }
0x46a6   :  { %v1919_v41 = vadd.f32 %v6752_v2, %v1918_v37 }
0x46a8   :  { %v1924_v51 = vmul.f32 %v1919_v41, %v6921_v24  ;;  %v1922_v61 = vmul.f32 2.0, %v1919_v41 }
0x46aa   :  { %1926 = vrot.lane.b32.xlu1 %v1924_v51, %s6244_s26  ;;  %v1923_v3 = vadd.f32 %v1922_v61, %v1874_v25 }
0x46ad   :  { %v1920_v34 = vpop.f32.mrf.mxu3 }
0x471c   :  { %v1927_v48 = vpop.permute.xlu1 %1926 }
0x471d   :  { %v1929_v52 = vadd.f32 %v1927_v48, %v6909_v16 }
0x471f   :  { %v1930_v53 = vpack.c.bf16 %v1929_v52, %v1929_v52 }
0x4721   :  { %1932 = vrot.lane.b32.xlu2 %v1930_v53, %s6243_s7 }
0x477b   :  { %v1933_v54 = vpop.permute.xlu2 %1932 }
0x477c   :  { %5895 = vmatmul.msk.bf16.vlgmr.msra.gmra.mxu0 %vm164_vm3, %v1933_v54 }
0x477d   :  { %2126 = vmatpush.bf16.msra.mxu0 %v6709_v59 }
0x4781   :  { %2127 = vmatpush.bf16.msra.mxu0 %v6715_v33 }
0x47f9   :  { %v1946_v38 = vpop.f32.mrf.mxu0 }
0x47fa   :  { %v1947_v56 = vadd.f32 %v6743_v57, %v1946_v38 }
0x47fc   :  { %v1950_v58 = vmax.f32 %v1947_v56, 0.0 }
0x47fe   :  { %v1951_v26 = vpack.c.bf16 %v1950_v58, %v1950_v58 }
0x4800   :  { %5896 = vmatmul.msk.bf16.vlgmr.msra.gmra.mxu1 %vm164_vm3, %v1951_v26 }
0x4801   :  { %v1948_v60 = vpop.f32.mrf.mxu0  ;;  %2144 = vmatpush.bf16.msra.mxu1 %v6723_v42 }
0x4805   :  { %2145 = vmatpush.bf16.msra.mxu1 %v6729_v44 }
0x487d   :  { %v1964_v62 = vpop.f32.mrf.mxu1 }
0x487e   :  { %v1965_v0 = vadd.f32 %v6752_v2, %v1964_v62 }
0x4880   :  { %v1968_v4 = vmul.f32 2.0, %v1965_v0  ;;  %v1971_v55 = vmul.f32 %v6947_v46, %v1965_v0 }
0x4882   :  { %1973 = vrot.lane.b32.xlu0 %v1971_v55, %s6244_s26  ;;  %v1969_v6 = vadd.f32 %v1968_v4, %v1923_v3 }
0x4885   :  { %v1966_v8 = vpop.f32.mrf.mxu1 }
0x48f4   :  { %v1974_v9 = vpop.permute.xlu0 %1973 }
0x48f5   :  { %v1976_v10 = vadd.f32 %v1974_v9, %v6909_v16 }
0x48f7   :  { %v1977_v11 = vpack.c.bf16 %v1976_v10, %v1976_v10 }
0x48f9   :  { %1979 = vrot.lane.b32.xlu1 %v1977_v11, %s6243_s7 }
0x496b   :  { %v1980_v47 = vpop.permute.xlu1 %1979 }
0x496c   :  { %5897 = vmatmul.msk.bf16.vlgmr.msra.gmra.mxu2 %vm164_vm3, %v1980_v47 }
0x496d   :  { %2172 = vmatpush.bf16.msra.mxu2 %v6709_v59 }
0x4971   :  { %2173 = vmatpush.bf16.msra.mxu2 %v6715_v33 }
0x49ef   :  { %v1993_v63 = vpop.f32.mrf.mxu2 }
0x49f0   :  { %v1994_v12 = vadd.f32 %v6743_v57, %v1993_v63 }
0x49f2   :  { %v1997_v14 = vmax.f32 %v1994_v12, 0.0 }
0x49f4   :  { %v1998_v15 = vpack.c.bf16 %v1997_v14, %v1997_v14 }
0x49f6   :  { %5898 = vmatmul.msk.bf16.vlgmr.msra.gmra.mxu3 %vm164_vm3, %v1998_v15 }
0x49f7   :  { %v1995_v1 = vpop.f32.mrf.mxu2  ;;  %2190 = vmatpush.bf16.msra.mxu3 %v6723_v42 }
0x49fb   :  { %2191 = vmatpush.bf16.msra.mxu3 %v6729_v44 }
0x4a79   :  { %v2011_v7 = vpop.f32.mrf.mxu3 }
0x4a7a   :  { %v2012_v43 = vadd.f32 %v6752_v2, %v2011_v7 }
0x4a7c   :  { %v2015_v18 = vadd.f32 %v2012_v43, %v1969_v6 }
0x4a7e   :  { %v2017_v19 = vmul.f32 %v6962_v17, %v2015_v18 }
0x4a80   :  { %2019 = vrot.lane.b32.xlu2 %v2017_v19, %s6244_s26 }
0x4a81   :  { %v2013_v20 = vpop.f32.mrf.mxu3 }
0x4ada   :  { %v2020_v13 = vpop.permute.xlu2 %2019 }
0x4adb   :  { %v6967_v21 = vadd.f32 %v2020_v13, %v6909_v16 }
0x4add   :  { %v2023_v22 = vpack.c.bf16 %v6967_v21, %v6967_v21 }
0x4adf   :  { %2025 = vrot.lane.b32.xlu0 %v2023_v22, %s6243_s7 }
0x4b51   :  { %v2026_v23 = vpop.permute.xlu0 %2025 }
0x4b52   :  { %5899 = vmatmul.msk.bf16.vlgmr.msrb.gmra.mxu0 %vm164_vm3, %v2026_v23 }
0x4b53   :  { %2217 = vmatpush.bf16.msrb.mxu0 %v6709_v59 }
0x4b57   :  { %2218 = vmatpush.bf16.msrb.mxu0 %v6715_v33 }
0x4bcf   :  { %v2039_v25 = vpop.f32.mrf.mxu0 }
0x4bd0   :  { %v2040_v27 = vadd.f32 %v6743_v57, %v2039_v25 }
0x4bd2   :  { %v2043_v28 = vmax.f32 %v2040_v27, 0.0 }
0x4bd4   :  { %v2044_v29 = vpack.c.bf16 %v2043_v28, %v2043_v28 }
0x4bd6   :  { %5900 = vmatmul.msk.bf16.vlgmr.msrb.gmra.mxu1 %vm164_vm3, %v2044_v29 }
0x4bd7   :  { %v2041_v16 = vpop.f32.mrf.mxu0  ;;  %2235 = vmatpush.bf16.msrb.mxu1 %v6723_v42 }
0x4bdb   :  { %2236 = vmatpush.bf16.msrb.mxu1 %v6729_v44 }
0x4c53   :  { %v2057_v39 = vpop.f32.mrf.mxu1 }
0x4c54   :  { %v2058_v5 = vadd.f32 %v6752_v2, %v2057_v39 }
0x4c56   :  { %v2061_v40 = vmul.f32 %v2058_v5, %v6921_v24 }
0x4c58   :  { %2063 = vrot.lane.b32.xlu1 %v2061_v40, %s6244_s26 }
0x4c5b   :  { %v2059_v31 = vpop.f32.mrf.mxu1 }
0x4cca   :  { %v2064_v32 = vpop.permute.xlu1 %2063 }
0x4ccb   :  { %v2066_v49 = vadd.f32 %v2064_v32, %v6967_v21 }
0x4ccd   :  { %v2067_v50 = vpack.c.bf16 %v2066_v49, %v2066_v49 }
0x4ccf   :  { %2069 = vrot.lane.b32.xlu2 %v2067_v50, %s6243_s7 }
0x4d29   :  { %v2070_v36 = vpop.permute.xlu2 %2069 }
0x4d2a   :  { %5901 = vmatmul.msk.bf16.vlgmr.msrb.gmra.mxu2 %vm164_vm3, %v2070_v36 }
0x4d2b   :  { %2261 = vmatpush.bf16.msrb.mxu2 %v6709_v59 }
0x4d2f   :  { %2262 = vmatpush.bf16.msrb.mxu2 %v6715_v33 }
0x4dad   :  { %v2083_v37 = vpop.f32.mrf.mxu2 }
0x4dae   :  { %v2084_v41 = vadd.f32 %v6743_v57, %v2083_v37 }
0x4db0   :  { %v2087_v51 = vmax.f32 %v2084_v41, 0.0 }
0x4db2   :  { %v2088_v34 = vpack.c.bf16 %v2087_v51, %v2087_v51 }
0x4db4   :  { %5902 = vmatmul.msk.bf16.vlgmr.msrb.gmra.mxu3 %vm164_vm3, %v2088_v34 }
0x4db5   :  { %v2085_v48 = vpop.f32.mrf.mxu2  ;;  %2279 = vmatpush.bf16.msrb.mxu3 %v6723_v42 }
0x4db9   :  { %2280 = vmatpush.bf16.msrb.mxu3 %v6729_v44 }
0x4e37   :  { %v2101_v52 = vpop.f32.mrf.mxu3 }
0x4e38   :  { %v2102_v53 = vadd.f32 %v6752_v2, %v2101_v52 }
0x4e3a   :  { %v2107_v54 = vmul.f32 %v2102_v53, %v6921_v24  ;;  %v2105_v55 = vmul.f32 2.0, %v2102_v53 }
0x4e3c   :  { %2109 = vrot.lane.b32.xlu0 %v2107_v54, %s6244_s26  ;;  %v2106_v9 = vadd.f32 %v2105_v55, %v2058_v5 }
0x4e3f   :  { %v2103_v38 = vpop.f32.mrf.mxu3 }
0x4e40   :  { %v7054_v38 = vld [vmem:[%s8168_s11 + $0x8] sm:$0xff] }
0x4eae   :  { %v2110_v56 = vpop.permute.xlu0 %2109 }
0x4eaf   :  { %v2112_v58 = vadd.f32 %v2110_v56, %v6967_v21  ;;  %v7060_v56 = vld [vmem:[%s8168_s11] sm:$0xff] }
0x4eb1   :  { %v2113_v26 = vpack.c.bf16 %v2112_v58, %v2112_v58 }
0x4eb3   :  { %2115 = vrot.lane.b32.xlu1 %v2113_v26, %s6243_s7 }
0x4f25   :  { %v2116_v60 = vpop.permute.xlu1 %2115 }
0x4f26   :  { %5903 = vmatmul.msk.bf16.vlgmr.msra.gmra.mxu0 %vm164_vm3, %v2116_v60 }
0x4f27   :  { %2307 = vmatpush.bf16.msra.mxu0 %v6709_v59 }
0x4f2b   :  { %2308 = vmatpush.bf16.msra.mxu0 %v6715_v33 }
0x4fa3   :  { %v2129_v61 = vpop.f32.mrf.mxu0 }
0x4fa4   :  { %v2130_v62 = vadd.f32 %v6743_v57, %v2129_v61 }
0x4fa6   :  { %v2133_v0 = vmax.f32 %v2130_v62, 0.0 }
0x4fa8   :  { %v2134_v3 = vpack.c.bf16 %v2133_v0, %v2133_v0 }
0x4faa   :  { %5904 = vmatmul.msk.bf16.vlgmr.msra.gmra.mxu1 %vm164_vm3, %v2134_v3 }
0x4fab   :  { %v2131_v4 = vpop.f32.mrf.mxu0  ;;  %2325 = vmatpush.bf16.msra.mxu1 %v6723_v42 }
0x4faf   :  { %2326 = vmatpush.bf16.msra.mxu1 %v6729_v44 }
0x5027   :  { %v2147_v6 = vpop.f32.mrf.mxu1 }
0x5028   :  { %v2148_v8 = vadd.f32 %v6752_v2, %v2147_v6 }
0x502a   :  { %v2151_v10 = vmul.f32 2.0, %v2148_v8  ;;  %v2153_v11 = vmul.f32 %v2148_v8, %v6947_v46 }
0x502c   :  { %2155 = vrot.lane.b32.xlu2 %v2153_v11, %s6244_s26  ;;  %v2152_v47 = vadd.f32 %v2151_v10, %v2106_v9 }
0x502f   :  { %v2149_v63 = vpop.f32.mrf.mxu1 }
0x5086   :  { %v2156_v12 = vpop.permute.xlu2 %2155 }
0x5087   :  { %v2158_v14 = vadd.f32 %v2156_v12, %v6967_v21 }
0x5089   :  { %v2159_v15 = vpack.c.bf16 %v2158_v14, %v2158_v14 }
0x508b   :  { %2161 = vrot.lane.b32.xlu0 %v2159_v15, %s6243_s7 }
0x50fd   :  { %v2162_v1 = vpop.permute.xlu0 %2161 }
0x50fe   :  { %5905 = vmatmul.msk.bf16.vlgmr.msra.gmra.mxu2 %vm164_vm3, %v2162_v1 }
0x50ff   :  { %2353 = vmatpush.bf16.msra.mxu2 %v6709_v59 }
0x5103   :  { %2354 = vmatpush.bf16.msra.mxu2 %v6715_v33 }
0x5181   :  { %v2175_v7 = vpop.f32.mrf.mxu2 }
0x5182   :  { %v2176_v43 = vadd.f32 %v6743_v57, %v2175_v7 }
0x5184   :  { %v2179_v18 = vmax.f32 %v2176_v43, 0.0 }
0x5186   :  { %v2180_v19 = vpack.c.bf16 %v2179_v18, %v2179_v18 }
0x5188   :  { %5906 = vmatmul.msk.bf16.vlgmr.msra.gmra.mxu3 %vm164_vm3, %v2180_v19 }
0x5189   :  { %v2177_v20 = vpop.f32.mrf.mxu2  ;;  %2371 = vmatpush.bf16.msra.mxu3 %v6723_v42 }
0x518d   :  { %2372 = vmatpush.bf16.msra.mxu3 %v6729_v44 }
0x520b   :  { %v2193_v13 = vpop.f32.mrf.mxu3 }
0x520c   :  { %v2194_v22 = vadd.f32 %v6752_v2, %v2193_v13 }
0x520e   :  { %v2197_v23 = vadd.f32 %v2194_v22, %v2152_v47  ;;  %v7083_v47 = vld [vmem:[%s8169_s12] ss:$0 sm:$0xff] }
0x5210   :  { %v2198_v25 = vmul.f32 %v2197_v23, %v6962_v17 }
0x5212   :  { %2200 = vrot.lane.b32.xlu1 %v2198_v25, %s6244_s26 }
0x5213   :  { %v2195_v27 = vpop.f32.mrf.mxu3 }
0x5284   :  { %v2201_v28 = vpop.permute.xlu1 %2200 }
0x5285   :  { %v7019_v29 = vadd.f32 %v2201_v28, %v6967_v21 }
0x5287   :  { %v2204_v16 = vpack.c.bf16 %v7019_v29, %v7019_v29 }
0x5289   :  { %2206 = vrot.lane.b32.xlu2 %v2204_v16, %s6243_s7 }
0x52e3   :  { %v2207_v39 = vpop.permute.xlu2 %2206 }
0x52e4   :  { %5907 = vmatmul.msk.bf16.vlgmr.msrb.gmra.mxu0 %vm164_vm3, %v2207_v39 }
0x52e5   :  { %2398 = vmatpush.bf16.msrb.mxu0 %v6709_v59 }
0x52e9   :  { %2399 = vmatpush.bf16.msrb.mxu0 %v6715_v33 }
0x5361   :  { %v2220_v5 = vpop.f32.mrf.mxu0 }
0x5362   :  { %v2221_v40 = vadd.f32 %v6743_v57, %v2220_v5 }
0x5364   :  { %v2224_v31 = vmax.f32 %v2221_v40, 0.0 }
0x5366   :  { %v2225_v32 = vpack.c.bf16 %v2224_v31, %v2224_v31 }
0x5368   :  { %5908 = vmatmul.msk.bf16.vlgmr.msrb.gmra.mxu1 %vm164_vm3, %v2225_v32 }
0x5369   :  { %v2222_v21 = vpop.f32.mrf.mxu0  ;;  %2416 = vmatpush.bf16.msrb.mxu1 %v6723_v42  ;;  %v7040_v42 = vld [vmem:[%s8166_s9 + $0x8] sm:$0xff] }
0x536d   :  { %2417 = vmatpush.bf16.msrb.mxu1 %v6729_v44  ;;  %v7046_v44 = vld [vmem:[%s8166_s9] sm:$0xff] }
0x53e5   :  { %v2238_v49 = vpop.f32.mrf.mxu1 }
0x53e6   :  { %v2239_v50 = vadd.f32 %v6752_v2, %v2238_v49 }
0x53e8   :  { %v2242_v36 = vmul.f32 %v2239_v50, %v6921_v24 }
0x53ea   :  { %2244 = vrot.lane.b32.xlu0 %v2242_v36, %s6244_s26 }
0x53ed   :  { %v2240_v59 = vpop.f32.mrf.mxu1 }
0x545c   :  { %v2245_v33 = vpop.permute.xlu0 %2244 }
0x545d   :  { %v2247_v37 = vadd.f32 %v2245_v33, %v7019_v29 }
0x545f   :  { %v2248_v41 = vpack.c.bf16 %v2247_v37, %v2247_v37 }
0x5461   :  { %2250 = vrot.lane.b32.xlu1 %v2248_v41, %s6243_s7 }
0x54d3   :  { %v2251_v51 = vpop.permute.xlu1 %2250 }
0x54d4   :  { %5909 = vmatmul.msk.bf16.vlgmr.msrb.gmra.mxu2 %vm164_vm3, %v2251_v51 }
0x54d5   :  { %2442 = vmatpush.bf16.msrb.mxu2 %v7040_v42 }
0x54d9   :  { %2443 = vmatpush.bf16.msrb.mxu2 %v7046_v44 }
0x5557   :  { %v2264_v34 = vpop.f32.mrf.mxu2 }
0x5558   :  { %v2265_v48 = vadd.f32 %v6743_v57, %v2264_v34 }
0x555a   :  { %v2268_v52 = vmax.f32 %v2265_v48, 0.0 }
0x555c   :  { %v2269_v53 = vpack.c.bf16 %v2268_v52, %v2268_v52 }
0x555e   :  { %5910 = vmatmul.msk.bf16.vlgmr.msrb.gmra.mxu3 %vm164_vm3, %v2269_v53 }
0x555f   :  { %v2266_v54 = vpop.f32.mrf.mxu2  ;;  %2460 = vmatpush.bf16.msrb.mxu3 %v7054_v38 }
0x5563   :  { %2461 = vmatpush.bf16.msrb.mxu3 %v7060_v56 }
0x55e1   :  { %v2282_v57 = vpop.f32.mrf.mxu3 }
0x55e2   :  { %v2283_v58 = vadd.f32 %v6752_v2, %v2282_v57  ;;  %v7074_v2 = vld [vmem:[%s8167_s10] ss:$0 sm:$0xff] }
0x55e4   :  { %v2288_v26 = vmul.f32 %v2283_v58, %v6921_v24  ;;  %v2286_v10 = vmul.f32 2.0, %v2283_v58 }
0x55e6   :  { %2290 = vrot.lane.b32.xlu2 %v2288_v26, %s6244_s26  ;;  %v2287_v12 = vadd.f32 %v2286_v10, %v2239_v50 }
0x55e9   :  { %v2284_v60 = vpop.f32.mrf.mxu3 }
0x5640   :  { %v2291_v61 = vpop.permute.xlu2 %2290 }
0x5641   :  { %v2293_v62 = vadd.f32 %v2291_v61, %v7019_v29 }
0x5643   :  { %v2294_v0 = vpack.c.bf16 %v2293_v62, %v2293_v62 }
0x5645   :  { %2296 = vrot.lane.b32.xlu0 %v2294_v0, %s6243_s7 }
0x56b7   :  { %v2297_v3 = vpop.permute.xlu0 %2296 }
0x56b8   :  { %5911 = vmatmul.msk.bf16.vlgmr.msra.gmra.mxu0 %vm164_vm3, %v2297_v3 }
0x56b9   :  { %2488 = vmatpush.bf16.msra.mxu0 %v7040_v42 }
0x56bd   :  { %2489 = vmatpush.bf16.msra.mxu0 %v7046_v44 }
0x5735   :  { %v2310_v4 = vpop.f32.mrf.mxu0 }
0x5736   :  { %v2311_v55 = vadd.f32 %v7074_v2, %v2310_v4 }
0x5738   :  { %v2314_v6 = vmax.f32 %v2311_v55, 0.0 }
0x573a   :  { %v2315_v8 = vpack.c.bf16 %v2314_v6, %v2314_v6 }
0x573c   :  { %5912 = vmatmul.msk.bf16.vlgmr.msra.gmra.mxu1 %vm164_vm3, %v2315_v8 }
0x573d   :  { %v2312_v9 = vpop.f32.mrf.mxu0  ;;  %2506 = vmatpush.bf16.msra.mxu1 %v7054_v38 }
0x5741   :  { %2507 = vmatpush.bf16.msra.mxu1 %v7060_v56 }
0x57b9   :  { %v2328_v11 = vpop.f32.mrf.mxu1 }
0x57ba   :  { %v2329_v63 = vadd.f32 %v7083_v47, %v2328_v11 }
0x57bc   :  { %v2332_v14 = vmul.f32 2.0, %v2329_v63  ;;  %v2334_v15 = vmul.f32 %v2329_v63, %v6947_v46 }
0x57be   :  { %2336 = vrot.lane.b32.xlu1 %v2334_v15, %s6244_s26  ;;  %v2333_v1 = vadd.f32 %v2332_v14, %v2287_v12 }
0x57c1   :  { %v2330_v7 = vpop.f32.mrf.mxu1 }
0x5830   :  { %v2337_v43 = vpop.permute.xlu1 %2336 }
0x5831   :  { %v2339_v18 = vadd.f32 %v2337_v43, %v7019_v29 }
0x5833   :  { %v2340_v19 = vpack.c.bf16 %v2339_v18, %v2339_v18 }
0x5835   :  { %2342 = vrot.lane.b32.xlu2 %v2340_v19, %s6243_s7 }
0x588f   :  { %v2343_v20 = vpop.permute.xlu2 %2342 }
0x5890   :  { %5913 = vmatmul.msk.bf16.vlgmr.msra.gmra.mxu2 %vm164_vm3, %v2343_v20 }
0x5891   :  { %2534 = vmatpush.bf16.msra.mxu2 %v7040_v42 }
0x5895   :  { %2535 = vmatpush.bf16.msra.mxu2 %v7046_v44 }
0x5913   :  { %v2356_v13 = vpop.f32.mrf.mxu2 }
0x5914   :  { %v2357_v22 = vadd.f32 %v7074_v2, %v2356_v13 }
0x5916   :  { %v2360_v23 = vmax.f32 %v2357_v22, 0.0 }
0x5918   :  { %v2361_v25 = vpack.c.bf16 %v2360_v23, %v2360_v23 }
0x591a   :  { %5914 = vmatmul.msk.bf16.vlgmr.msra.gmra.mxu3 %vm164_vm3, %v2361_v25 }
0x591b   :  { %v2358_v27 = vpop.f32.mrf.mxu2  ;;  %2552 = vmatpush.bf16.msra.mxu3 %v7054_v38 }
0x591f   :  { %2553 = vmatpush.bf16.msra.mxu3 %v7060_v56 }
0x599d   :  { %v2374_v28 = vpop.f32.mrf.mxu3 }
0x599e   :  { %v2375_v16 = vadd.f32 %v7083_v47, %v2374_v28 }
0x59a0   :  { %v2378_v39 = vadd.f32 %v2375_v16, %v2333_v1 }
0x59a2   :  { %v2379_v5 = vmul.f32 %v2378_v39, %v6962_v17 }
0x59a4   :  { %2381 = vrot.lane.b32.xlu0 %v2379_v5, %s6244_s26 }
0x59a5   :  { %v2376_v40 = vpop.f32.mrf.mxu3 }
0x5a16   :  { %v2382_v31 = vpop.permute.xlu0 %2381 }
0x5a17   :  { %v7101_v32 = vadd.f32 %v2382_v31, %v7019_v29 }
0x5a19   :  { %v2385_v21 = vpack.c.bf16 %v7101_v32, %v7101_v32 }
0x5a1b   :  { %2387 = vrot.lane.b32.xlu1 %v2385_v21, %s6243_s7 }
0x5a8d   :  { %v2388_v49 = vpop.permute.xlu1 %2387 }
0x5a8e   :  { %5915 = vmatmul.msk.bf16.vlgmr.msrb.gmra.mxu0 %vm164_vm3, %v2388_v49 }
0x5a8f   :  { %2580 = vmatpush.bf16.msrb.mxu0 %v6843_v45 }
0x5a93   :  { %2581 = vmatpush.bf16.msrb.mxu0 %v6849_v35 }
0x5b0b   :  { %v2401_v50 = vpop.f32.mrf.mxu0 }
0x5b0c   :  { %v2402_v36 = vadd.f32 %v7074_v2, %v2401_v50 }
0x5b0e   :  { %v2405_v59 = vmax.f32 %v2402_v36, 0.0 }
0x5b10   :  { %v2406_v33 = vpack.c.bf16 %v2405_v59, %v2405_v59 }
0x5b12   :  { %5916 = vmatmul.msk.bf16.vlgmr.msrb.gmra.mxu1 %vm164_vm3, %v2406_v33 }
0x5b13   :  { %v2403_v29 = vpop.f32.mrf.mxu0  ;;  %2643 = vmatpush.bf16.msrb.mxu1 %v7040_v42 }
0x5b14   :  { %v2566_v29 = vld [vmem:[#allocation3 + $0x6] sm:$0x3] }
0x5b17   :  { %2644 = vmatpush.bf16.msrb.mxu1 %v7046_v44 }
0x5b8f   :  { %v2419_v37 = vpop.f32.mrf.mxu1 }
0x5b90   :  { %v2420_v41 = vadd.f32 %v7083_v47, %v2419_v37 }
0x5b92   :  { %v2423_v51 = vmul.f32 %v2420_v41, %v6921_v24 }
0x5b94   :  { %2425 = vrot.lane.b32.xlu2 %v2423_v51, %s6244_s26 }
0x5b97   :  { %v2421_v45 = vpop.f32.mrf.mxu1 }
0x5bee   :  { %v2426_v35 = vpop.permute.xlu2 %2425 }
0x5bef   :  { %v2428_v34 = vadd.f32 %v2426_v35, %v7101_v32 }
0x5bf1   :  { %v2429_v48 = vpack.c.bf16 %v2428_v34, %v2428_v34 }
0x5bf3   :  { %2431 = vrot.lane.b32.xlu0 %v2429_v48, %s6243_s7 }
0x5c65   :  { %v2432_v52 = vpop.permute.xlu0 %2431 }
0x5c66   :  { %5917 = vmatmul.msk.bf16.vlgmr.msrb.gmra.mxu2 %vm164_vm3, %v2432_v52 }
0x5c67   :  { %2661 = vmatpush.bf16.msrb.mxu2 %v7054_v38 }
0x5c6b   :  { %2662 = vmatpush.bf16.msrb.mxu2 %v7060_v56 }
0x5ce9   :  { %v2445_v53 = vpop.f32.mrf.mxu2 }
0x5cea   :  { %v2446_v54 = vadd.f32 %v7074_v2, %v2445_v53 }
0x5cec   :  { %v2449_v57 = vmax.f32 %v2446_v54, 0.0 }
0x5cee   :  { %v2450_v58 = vpack.c.bf16 %v2449_v57, %v2449_v57 }
0x5cf0   :  { %5918 = vmatmul.msk.bf16.vlgmr.msrb.gmra.mxu3 %vm164_vm3, %v2450_v58 }
0x5cf1   :  { %v2447_v26 = vpop.f32.mrf.mxu2  ;;  %2688 = vmatpush.bf16.msrb.mxu3 %v7040_v42 }
0x5cf5   :  { %2689 = vmatpush.bf16.msrb.mxu3 %v7046_v44 }
0x5d73   :  { %v2463_v60 = vpop.f32.mrf.mxu3 }
0x5d74   :  { %v2464_v61 = vadd.f32 %v7083_v47, %v2463_v60 }
0x5d76   :  { %v2469_v62 = vmul.f32 %v2464_v61, %v6921_v24  ;;  %v2467_v63 = vmul.f32 2.0, %v2464_v61 }
0x5d78   :  { %2471 = vrot.lane.b32.xlu1 %v2469_v62, %s6244_s26  ;;  %v2468_v15 = vadd.f32 %v2467_v63, %v2420_v41 }
0x5d7b   :  { %v2465_v0 = vpop.f32.mrf.mxu3 }
0x5dea   :  { %v2472_v3 = vpop.permute.xlu1 %2471 }
0x5deb   :  { %v2474_v4 = vadd.f32 %v2472_v3, %v7101_v32 }
0x5ded   :  { %v2475_v55 = vpack.c.bf16 %v2474_v4, %v2474_v4 }
0x5def   :  { %2477 = vrot.lane.b32.xlu2 %v2475_v55, %s6243_s7 }
0x5e49   :  { %v2478_v6 = vpop.permute.xlu2 %2477 }
0x5e4a   :  { %5919 = vmatmul.msk.bf16.vlgmr.msra.gmra.mxu0 %vm164_vm3, %v2478_v6 }
0x5e4b   :  { %2706 = vmatpush.bf16.msra.mxu0 %v7054_v38 }
0x5e4f   :  { %2707 = vmatpush.bf16.msra.mxu0 %v7060_v56 }
0x5ec7   :  { %v2491_v8 = vpop.f32.mrf.mxu0 }
0x5ec8   :  { %v2492_v9 = vadd.f32 %v7074_v2, %v2491_v8 }
0x5eca   :  { %v2495_v24 = vmax.f32 %v2492_v9, 0.0 }
0x5ecc   :  { %v2496_v10 = vpack.c.bf16 %v2495_v24, %v2495_v24 }
0x5ece   :  { %5920 = vmatmul.msk.bf16.vlgmr.msra.gmra.mxu1 %vm164_vm3, %v2496_v10 }
0x5ecf   :  { %v2493_v11 = vpop.f32.mrf.mxu0  ;;  %2734 = vmatpush.bf16.msra.mxu1 %v7040_v42 }
0x5ed3   :  { %2735 = vmatpush.bf16.msra.mxu1 %v7046_v44 }
0x5f4b   :  { %v2509_v12 = vpop.f32.mrf.mxu1 }
0x5f4c   :  { %v2510_v14 = vadd.f32 %v7083_v47, %v2509_v12 }
0x5f4e   :  { %v2513_v1 = vmul.f32 2.0, %v2510_v14  ;;  %v2515_v7 = vmul.f32 %v2510_v14, %v6947_v46 }
0x5f50   :  { %2517 = vrot.lane.b32.xlu0 %v2515_v7, %s6244_s26  ;;  %v2514_v43 = vadd.f32 %v2513_v1, %v2468_v15  ;;  %v7173_v1 = vstv %s5926_s5  ;;  %s6001_s5 = sld [smem:[#allocation10 + $0x5]] }
0x5f53   :  { %v2511_v18 = vpop.f32.mrf.mxu1 }
0x5fc2   :  { %v2518_v19 = vpop.permute.xlu0 %2517 }
0x5fc3   :  { %v2520_v20 = vadd.f32 %v2518_v19, %v7101_v32 }
0x5fc5   :  { %v2521_v13 = vpack.c.bf16 %v2520_v20, %v2520_v20 }
0x5fc7   :  { %2523 = vrot.lane.b32.xlu1 %v2521_v13, %s6243_s7 }
0x6039   :  { %v2524_v22 = vpop.permute.xlu1 %2523 }
0x603a   :  { %5921 = vmatmul.msk.bf16.vlgmr.msra.gmra.mxu2 %vm164_vm3, %v2524_v22 }
0x603b   :  { %2752 = vmatpush.bf16.msra.mxu2 %v7054_v38 }
0x603f   :  { %2753 = vmatpush.bf16.msra.mxu2 %v7060_v56 }
0x60bd   :  { %v2537_v23 = vpop.f32.mrf.mxu2 }
0x60be   :  { %v2538_v46 = vadd.f32 %v7074_v2, %v2537_v23 }
0x60c0   :  { %v2541_v25 = vmax.f32 %v2538_v46, 0.0 }
0x60c2   :  { %v2542_v27 = vpack.c.bf16 %v2541_v25, %v2541_v25 }
0x60c4   :  { %5922 = vmatmul.msk.bf16.vlgmr.msra.gmra.mxu3 %vm164_vm3, %v2542_v27 }
0x60c5   :  { %v2539_v28 = vpop.f32.mrf.mxu2  ;;  %2781 = vmatpush.bf16.msra.mxu3 %v7040_v42 }
0x60c9   :  { %2782 = vmatpush.bf16.msra.mxu3 %v7046_v44 }
0x6147   :  { %v2555_v16 = vpop.f32.mrf.mxu3 }
0x6148   :  { %v2556_v39 = vadd.f32 %v7083_v47, %v2555_v16 }
0x614a   :  { %v2559_v5 = vadd.f32 %v2556_v39, %v2514_v43 }
0x614c   :  { %v2560_v40 = vmul.f32 %v2559_v5, %v6962_v17 }
0x614e   :  { %2562 = vrot.lane.b32.xlu2 %v2560_v40, %s6244_s26 }
0x614f   :  { %v2557_v31 = vpop.f32.mrf.mxu3 }
0x61a8   :  { %v2563_v21 = vpop.permute.xlu2 %2562 }
0x61a9   :  { %v2565_v49 = vadd.f32 %v2563_v21, %v7101_v32 }
0x61ab   :  { %v2567_v50 = vpack.c.bf16 %v2565_v49, %v2565_v49 }
0x61ad   :  { %2569 = vrot.lane.b32.xlu0 %v2567_v50, %s6243_s7 }
0x621f   :  { %v2570_v36 = vpop.permute.xlu0 %2569 }
0x6220   :  { %5923 = vmatmul.msk.bf16.vlgmr.msrb.gmra.mxu0 %vm164_vm3, %v2570_v36 }
0x6221   :  { %2799 = vmatpush.bf16.msrb.mxu0 %v7054_v38 }
0x6225   :  { %2800 = vmatpush.bf16.msrb.mxu0 %v7060_v56 }
0x629d   :  { %v2583_v59 = vpop.f32.mrf.mxu0 }
0x629e   :  { %v2584_v33 = vadd.f32 %v6903_v30, %v2583_v59 }
0x62a0   :  { %2608 = vrot.lane.b32.xlu1 %v2584_v33, %s6242_s25  ;;  %v2587_v37 = vadd.f32 %v2584_v33, %v2566_v29 }
0x62a2   :  { %v5924_v41 = vmul.f32 -1.442695, %v2587_v37 }
0x62a4   :  { %6108 = vpow2.f32 %v5924_v41 }
0x62a5   :  { %v2585_v17 = vpop.f32.mrf.mxu0 }
0x62aa   :  { %v6109_v32 = vpop.eup %6108 }
0x62ab   :  { %v2591_v51 = vadd.f32 1.0, %v6109_v32  ;;  %v7199_v32 = vstv %s5925_s22 }
0x62ad   :  { %6110 = vrcp.f32 %v2591_v51  ;;  %v2603_v53 = vand.u32 2147483648, %v2591_v51  ;;  %vm2597_vm5 = vweird.f32 %v2591_v51  ;;  %v2601_v54 = vand.u32 2147483647, %v2591_v51 }
0x62af   :  { %v2604_v57 = vor.u32 1.1754944e-38, %v2603_v53  ;;  %vm2602_vm7 = vcmp.eq.f32.partialorder %v2601_v54, 8.507059e+37 }
0x62b3   :  { %v6111_v45 = vpop.eup %6110 }
0x62b4   :  { %v2593_v35 = vmul.f32 %v6111_v45, %v2591_v51  ;;  %vm2598_vm4 = vweird.f32 %v6111_v45 }
0x62b5   :  { %vm2599_vm6 = vmor %vm2597_vm5, %vm2598_vm4 }
0x62b6   :  { %v2594_v34 = vsub.f32 1.0, %v2593_v35 }
0x62b8   :  { %v2595_v48 = vmul.f32 %v6111_v45, %v2594_v34 }
0x62ba   :  { %v2596_v52 = vadd.f32 %v6111_v45, %v2595_v48 }
0x62bc   :  { %v2600_v30 = vsel %vm2599_vm6, %v6111_v45, %v2596_v52  ;;  %vm5769_vm6 = vcmask 58368  }
0x62bd   :  { %v2605_v26 = vsel %vm2602_vm7, %v2604_v57, %v2600_v30 }
0x62be   :  { %v2618_v3 = vsub.f32 1.0, %v2605_v26  ;;  %v2624_v55 = vmul.f32 %v2605_v26, %v2565_v49 }
0x6312   :  { %v2609_v58 = vpop.permute.xlu1 %2608 }
0x6313   :  { %v2611_v60 = vmul.f32 %v2609_v58, %v2605_v26 }
0x6315   :  { %2613 = vrot.lane.b32.xlu2 %v2611_v60, %s6242_s25 }
0x636f   :  { %v2614_v61 = vpop.permute.xlu2 %2613 }
0x6370   :  { %v2616_v62 = vadd.f32 %v2614_v61, %v2566_v29 }
0x6372   :  { %6112 = vtanh.f32 %v2616_v62 }
0x6378   :  { %v6113_v0 = vpop.eup %6112 }
0x6379   :  { %2620 = vrot.lane.b32.xlu0 %v6113_v0, %s6243_s7 }
0x63eb   :  { %v2621_v4 = vpop.permute.xlu0 %2620 }
0x63ec   :  { %v2623_v6 = vmul.f32 %v2621_v4, %v2618_v3  ;;  %v7214_v4 = vstv %s5927_s3  ;;  %s5963_s3 = sld [smem:[#allocation8 + $0x4]] }
0x63ee   :  { %v7161_v8 = vadd.f32 %v2624_v55, %v2623_v6 }
0x63f0   :  { %v2630_v9 = vpack.c.bf16 %v7161_v8, %v7161_v8 }
0x63f2   :  { %2632 = vrot.lane.b32.xlu1 %v2630_v9, %s6243_s7 }
0x6464   :  { %v2633_v24 = vpop.permute.xlu1 %2632 }
0x6465   :  { %5928 = vmatmul.msk.bf16.vlgmr.msrb.gmra.mxu1 %vm164_vm3, %v2633_v24 }
0x6466   :  { %2827 = vmatpush.bf16.msrb.mxu1 %v7040_v42 }
0x646a   :  { %2828 = vmatpush.bf16.msrb.mxu1 %v7046_v44 }
0x64e2   :  { %v2646_v10 = vpop.f32.mrf.mxu1 }
0x64e3   :  { %v2647_v11 = vadd.f32 %v7074_v2, %v2646_v10 }
0x64e5   :  { %v2650_v63 = vmax.f32 %v2647_v11, 0.0 }
0x64e7   :  { %v2651_v12 = vpack.c.bf16 %v2650_v63, %v2650_v63 }
0x64e9   :  { %5929 = vmatmul.msk.bf16.vlgmr.msrb.gmra.mxu2 %vm164_vm3, %v2651_v12 }
0x64ea   :  { %v2648_v14 = vpop.f32.mrf.mxu1  ;;  %2845 = vmatpush.bf16.msrb.mxu2 %v7054_v38 }
0x64ee   :  { %2846 = vmatpush.bf16.msrb.mxu2 %v7060_v56 }
0x656c   :  { %v2664_v15 = vpop.f32.mrf.mxu2 }
0x656d   :  { %v2665_v7 = vadd.f32 %v7083_v47, %v2664_v15 }
0x656f   :  { %v2669_v43 = vmul.f32 %v7173_v1, %v2665_v7 }
0x6571   :  { %2671 = vrot.lane.b32.xlu2 %v2669_v43, %s6244_s26 }
0x6574   :  { %v2666_v18 = vpop.f32.mrf.mxu2 }
0x65cb   :  { %v2672_v19 = vpop.permute.xlu2 %2671 }
0x65cc   :  { %v2674_v20 = vadd.f32 %v2672_v19, %v7161_v8 }
0x65ce   :  { %v2675_v13 = vpack.c.bf16 %v2674_v20, %v2674_v20 }
0x65d0   :  { %2677 = vrot.lane.b32.xlu0 %v2675_v13, %s6243_s7 }
0x6642   :  { %v2678_v22 = vpop.permute.xlu0 %2677 }
0x6643   :  { %5930 = vmatmul.msk.bf16.vlgmr.msrb.gmra.mxu3 %vm164_vm3, %v2678_v22 }
0x6644   :  { %2871 = vmatpush.bf16.msrb.mxu3 %v7040_v42 }
0x6648   :  { %2872 = vmatpush.bf16.msrb.mxu3 %v7046_v44 }
0x66c6   :  { %v2691_v23 = vpop.f32.mrf.mxu3 }
0x66c7   :  { %v2692_v46 = vadd.f32 %v7074_v2, %v2691_v23 }
0x66c9   :  { %v2695_v25 = vmax.f32 %v2692_v46, 0.0 }
0x66cb   :  { %v2696_v27 = vpack.c.bf16 %v2695_v25, %v2695_v25 }
0x66cd   :  { %5931 = vmatmul.msk.bf16.vlgmr.msra.gmra.mxu0 %vm164_vm3, %v2696_v27 }
0x66ce   :  { %v2693_v28 = vpop.f32.mrf.mxu3  ;;  %2889 = vmatpush.bf16.msra.mxu0 %v7054_v38 }
0x66d2   :  { %2890 = vmatpush.bf16.msra.mxu0 %v7060_v56 }
0x674a   :  { %v2709_v16 = vpop.f32.mrf.mxu0 }
0x674b   :  { %v2710_v39 = vadd.f32 %v7083_v47, %v2709_v16 }
0x674d   :  { %v2715_v5 = vmul.f32 %v2710_v39, %v7173_v1  ;;  %v2713_v37 = vmul.f32 2.0, %v2710_v39 }
0x674f   :  { %2717 = vrot.lane.b32.xlu1 %v2715_v5, %s6244_s26  ;;  %v2714_v45 = vadd.f32 %v2713_v37, %v2665_v7 }
0x6752   :  { %v2711_v40 = vpop.f32.mrf.mxu0 }
0x67c1   :  { %v2718_v31 = vpop.permute.xlu1 %2717 }
0x67c2   :  { %v2720_v21 = vadd.f32 %v2718_v31, %v7161_v8 }
0x67c4   :  { %v2721_v49 = vpack.c.bf16 %v2720_v21, %v2720_v21 }
0x67c6   :  { %2723 = vrot.lane.b32.xlu2 %v2721_v49, %s6243_s7 }
0x6820   :  { %v2724_v50 = vpop.permute.xlu2 %2723 }
0x6821   :  { %5932 = vmatmul.msk.bf16.vlgmr.msra.gmra.mxu1 %vm164_vm3, %v2724_v50 }
0x6822   :  { %2917 = vmatpush.bf16.msra.mxu1 %v7040_v42 }
0x6826   :  { %2918 = vmatpush.bf16.msra.mxu1 %v7046_v44 }
0x689e   :  { %v2737_v36 = vpop.f32.mrf.mxu1 }
0x689f   :  { %v2738_v59 = vadd.f32 %v7074_v2, %v2737_v36 }
0x68a1   :  { %v2741_v33 = vmax.f32 %v2738_v59, 0.0 }
0x68a3   :  { %v2742_v17 = vpack.c.bf16 %v2741_v33, %v2741_v33 }
0x68a5   :  { %5933 = vmatmul.msk.bf16.vlgmr.msra.gmra.mxu2 %vm164_vm3, %v2742_v17 }
0x68a6   :  { %v2739_v29 = vpop.f32.mrf.mxu1  ;;  %2935 = vmatpush.bf16.msra.mxu2 %v7054_v38 }
0x68aa   :  { %2936 = vmatpush.bf16.msra.mxu2 %v7060_v56 }
0x6928   :  { %v2755_v41 = vpop.f32.mrf.mxu2 }
0x6929   :  { %v2756_v51 = vadd.f32 %v7083_v47, %v2755_v41 }
0x692b   :  { %v2759_v35 = vmul.f32 2.0, %v2756_v51  ;;  %v2762_v34 = vmul.f32 %v7199_v32, %v2756_v51 }
0x692d   :  { %2764 = vrot.lane.b32.xlu0 %v2762_v34, %s6244_s26  ;;  %v2760_v48 = vadd.f32 %v2759_v35, %v2714_v45 }
0x6930   :  { %v2757_v52 = vpop.f32.mrf.mxu2 }
0x699f   :  { %v2765_v53 = vpop.permute.xlu0 %2764 }
0x69a0   :  { %v2767_v54 = vadd.f32 %v2765_v53, %v7161_v8 }
0x69a2   :  { %v2768_v30 = vpack.c.bf16 %v2767_v54, %v2767_v54 }
0x69a4   :  { %2770 = vrot.lane.b32.xlu1 %v2768_v30, %s6243_s7 }
0x6a16   :  { %v2771_v57 = vpop.permute.xlu1 %2770 }
0x6a17   :  { %5934 = vmatmul.msk.bf16.vlgmr.msra.gmra.mxu3 %vm164_vm3, %v2771_v57 }
0x6a18   :  { %2963 = vmatpush.bf16.msra.mxu3 %v7040_v42 }
0x6a1c   :  { %2964 = vmatpush.bf16.msra.mxu3 %v7046_v44 }
0x6a9a   :  { %v2784_v58 = vpop.f32.mrf.mxu3 }
0x6a9b   :  { %v2785_v26 = vadd.f32 %v7074_v2, %v2784_v58 }
0x6a9d   :  { %v2788_v60 = vmax.f32 %v2785_v26, 0.0 }
0x6a9f   :  { %v2789_v61 = vpack.c.bf16 %v2788_v60, %v2788_v60 }
0x6aa1   :  { %5935 = vmatmul.msk.bf16.vlgmr.msrb.gmra.mxu0 %vm164_vm3, %v2789_v61 }
0x6aa2   :  { %v2786_v62 = vpop.f32.mrf.mxu3  ;;  %2981 = vmatpush.bf16.msrb.mxu0 %v7054_v38 }
0x6aa6   :  { %2982 = vmatpush.bf16.msrb.mxu0 %v7060_v56 }
0x6b1e   :  { %v2802_v0 = vpop.f32.mrf.mxu0 }
0x6b1f   :  { %v2803_v3 = vadd.f32 %v7083_v47, %v2802_v0 }
0x6b21   :  { %v2806_v55 = vadd.f32 %v2803_v3, %v2760_v48 }
0x6b23   :  { %v2808_v6 = vmul.f32 %v7214_v4, %v2806_v55 }
0x6b25   :  { %2810 = vrot.lane.b32.xlu2 %v2808_v6, %s6244_s26 }
0x6b26   :  { %v2804_v9 = vpop.f32.mrf.mxu0 }
0x6b7f   :  { %v2811_v24 = vpop.permute.xlu2 %2810 }
0x6b80   :  { %v7219_v10 = vadd.f32 %v2811_v24, %v7161_v8 }
0x6b82   :  { %v2814_v11 = vpack.c.bf16 %v7219_v10, %v7219_v10 }
0x6b84   :  { %2816 = vrot.lane.b32.xlu0 %v2814_v11, %s6243_s7 }
0x6bf6   :  { %v2817_v63 = vpop.permute.xlu0 %2816 }
0x6bf7   :  { %5936 = vmatmul.msk.bf16.vlgmr.msrb.gmra.mxu1 %vm164_vm3, %v2817_v63 }
0x6bf8   :  { %3008 = vmatpush.bf16.msrb.mxu1 %v7040_v42 }
0x6bfc   :  { %3009 = vmatpush.bf16.msrb.mxu1 %v7046_v44 }
0x6c74   :  { %v2830_v12 = vpop.f32.mrf.mxu1 }
0x6c75   :  { %v2831_v14 = vadd.f32 %v7074_v2, %v2830_v12 }
0x6c77   :  { %v2834_v15 = vmax.f32 %v2831_v14, 0.0 }
0x6c79   :  { %v2835_v7 = vpack.c.bf16 %v2834_v15, %v2834_v15 }
0x6c7b   :  { %5937 = vmatmul.msk.bf16.vlgmr.msrb.gmra.mxu2 %vm164_vm3, %v2835_v7 }
0x6c7c   :  { %v2832_v8 = vpop.f32.mrf.mxu1  ;;  %3026 = vmatpush.bf16.msrb.mxu2 %v7054_v38 }
0x6c80   :  { %3027 = vmatpush.bf16.msrb.mxu2 %v7060_v56 }
0x6cfe   :  { %v2848_v43 = vpop.f32.mrf.mxu2 }
0x6cff   :  { %v2849_v18 = vadd.f32 %v7083_v47, %v2848_v43 }
0x6d01   :  { %v2852_v19 = vmul.f32 %v2849_v18, %v7173_v1 }
0x6d03   :  { %2854 = vrot.lane.b32.xlu1 %v2852_v19, %s6244_s26 }
0x6d06   :  { %v2850_v20 = vpop.f32.mrf.mxu2 }
0x6d75   :  { %v2855_v13 = vpop.permute.xlu1 %2854 }
0x6d76   :  { %v2857_v22 = vadd.f32 %v2855_v13, %v7219_v10 }
0x6d78   :  { %v2858_v23 = vpack.c.bf16 %v2857_v22, %v2857_v22 }
0x6d7a   :  { %2860 = vrot.lane.b32.xlu2 %v2858_v23, %s6243_s7 }
0x6dd4   :  { %v2861_v46 = vpop.permute.xlu2 %2860 }
0x6dd5   :  { %5938 = vmatmul.msk.bf16.vlgmr.msrb.gmra.mxu3 %vm164_vm3, %v2861_v46 }
0x6dd6   :  { %3052 = vmatpush.bf16.msrb.mxu3 %v7040_v42 }
0x6dda   :  { %3053 = vmatpush.bf16.msrb.mxu3 %v7046_v44 }
0x6e58   :  { %v2874_v25 = vpop.f32.mrf.mxu3 }
0x6e59   :  { %v2875_v27 = vadd.f32 %v7074_v2, %v2874_v25 }
0x6e5b   :  { %v2878_v28 = vmax.f32 %v2875_v27, 0.0 }
0x6e5d   :  { %v2879_v16 = vpack.c.bf16 %v2878_v28, %v2878_v28 }
0x6e5f   :  { %5939 = vmatmul.msk.bf16.vlgmr.msra.gmra.mxu0 %vm164_vm3, %v2879_v16 }
0x6e60   :  { %v2876_v39 = vpop.f32.mrf.mxu3  ;;  %3070 = vmatpush.bf16.msra.mxu0 %v7054_v38 }
0x6e64   :  { %3071 = vmatpush.bf16.msra.mxu0 %v7060_v56 }
0x6edc   :  { %v2892_v5 = vpop.f32.mrf.mxu0 }
0x6edd   :  { %v2893_v40 = vadd.f32 %v7083_v47, %v2892_v5 }
0x6edf   :  { %v2898_v31 = vmul.f32 %v2893_v40, %v7173_v1  ;;  %v2896_v51 = vmul.f32 2.0, %v2893_v40 }
0x6ee1   :  { %2900 = vrot.lane.b32.xlu0 %v2898_v31, %s6244_s26  ;;  %v2897_v34 = vadd.f32 %v2896_v51, %v2849_v18 }
0x6ee4   :  { %v2894_v21 = vpop.f32.mrf.mxu0 }
0x6f53   :  { %v2901_v49 = vpop.permute.xlu0 %2900 }
0x6f54   :  { %v2903_v50 = vadd.f32 %v2901_v49, %v7219_v10 }
0x6f56   :  { %v2904_v36 = vpack.c.bf16 %v2903_v50, %v2903_v50 }
0x6f58   :  { %2906 = vrot.lane.b32.xlu1 %v2904_v36, %s6243_s7 }
0x6fca   :  { %v2907_v59 = vpop.permute.xlu1 %2906 }
0x6fcb   :  { %5940 = vmatmul.msk.bf16.vlgmr.msra.gmra.mxu1 %vm164_vm3, %v2907_v59 }
0x6fcc   :  { %3098 = vmatpush.bf16.msra.mxu1 %v7040_v42 }
0x6fd0   :  { %3099 = vmatpush.bf16.msra.mxu1 %v7046_v44 }
0x7048   :  { %v2920_v33 = vpop.f32.mrf.mxu1 }
0x7049   :  { %v2921_v17 = vadd.f32 %v7074_v2, %v2920_v33 }
0x704b   :  { %v2924_v29 = vmax.f32 %v2921_v17, 0.0 }
0x704d   :  { %v2925_v37 = vpack.c.bf16 %v2924_v29, %v2924_v29 }
0x704f   :  { %5941 = vmatmul.msk.bf16.vlgmr.msra.gmra.mxu2 %vm164_vm3, %v2925_v37 }
0x7050   :  { %v2922_v41 = vpop.f32.mrf.mxu1  ;;  %3116 = vmatpush.bf16.msra.mxu2 %v7054_v38 }
0x7054   :  { %3117 = vmatpush.bf16.msra.mxu2 %v7060_v56 }
0x70d2   :  { %v2938_v45 = vpop.f32.mrf.mxu2 }
0x70d3   :  { %v2939_v35 = vadd.f32 %v7083_v47, %v2938_v45 }
0x70d5   :  { %v2942_v48 = vmul.f32 2.0, %v2939_v35  ;;  %v2944_v52 = vmul.f32 %v2939_v35, %v7199_v32 }
0x70d7   :  { %2946 = vrot.lane.b32.xlu2 %v2944_v52, %s6244_s26  ;;  %v2943_v53 = vadd.f32 %v2942_v48, %v2897_v34 }
0x70da   :  { %v2940_v54 = vpop.f32.mrf.mxu2 }
0x7131   :  { %v2947_v30 = vpop.permute.xlu2 %2946 }
0x7132   :  { %v2949_v57 = vadd.f32 %v2947_v30, %v7219_v10 }
0x7134   :  { %v2950_v58 = vpack.c.bf16 %v2949_v57, %v2949_v57 }
0x7136   :  { %2952 = vrot.lane.b32.xlu0 %v2950_v58, %s6243_s7 }
0x71a8   :  { %v2953_v26 = vpop.permute.xlu0 %2952 }
0x71a9   :  { %5942 = vmatmul.msk.bf16.vlgmr.msra.gmra.mxu3 %vm164_vm3, %v2953_v26 }
0x71aa   :  { %3144 = vmatpush.bf16.msra.mxu3 %v7040_v42 }
0x71ae   :  { %3145 = vmatpush.bf16.msra.mxu3 %v7046_v44 }
0x722c   :  { %v2966_v60 = vpop.f32.mrf.mxu3 }
0x722d   :  { %v2967_v61 = vadd.f32 %v7074_v2, %v2966_v60 }
0x722f   :  { %v2970_v62 = vmax.f32 %v2967_v61, 0.0 }
0x7231   :  { %v2971_v0 = vpack.c.bf16 %v2970_v62, %v2970_v62 }
0x7233   :  { %5943 = vmatmul.msk.bf16.vlgmr.msrb.gmra.mxu0 %vm164_vm3, %v2971_v0 }
0x7234   :  { %v2968_v3 = vpop.f32.mrf.mxu3  ;;  %3162 = vmatpush.bf16.msrb.mxu0 %v7054_v38 }
0x7238   :  { %3163 = vmatpush.bf16.msrb.mxu0 %v7060_v56 }
0x72b0   :  { %v2984_v55 = vpop.f32.mrf.mxu0 }
0x72b1   :  { %v2985_v6 = vadd.f32 %v7083_v47, %v2984_v55 }
0x72b3   :  { %v2988_v9 = vadd.f32 %v2985_v6, %v2943_v53 }
0x72b5   :  { %v2989_v24 = vmul.f32 %v2988_v9, %v7214_v4 }
0x72b7   :  { %2991 = vrot.lane.b32.xlu1 %v2989_v24, %s6244_s26 }
0x72b8   :  { %v2986_v11 = vpop.f32.mrf.mxu0 }
0x7329   :  { %v2992_v63 = vpop.permute.xlu1 %2991 }
0x732a   :  { %v7271_v12 = vadd.f32 %v2992_v63, %v7219_v10 }
0x732c   :  { %v2995_v14 = vpack.c.bf16 %v7271_v12, %v7271_v12 }
0x732e   :  { %2997 = vrot.lane.b32.xlu2 %v2995_v14, %s6243_s7 }
0x7388   :  { %v2998_v15 = vpop.permute.xlu2 %2997 }
0x7389   :  { %5944 = vmatmul.msk.bf16.vlgmr.msrb.gmra.mxu1 %vm164_vm3, %v2998_v15 }
0x738a   :  { %3189 = vmatpush.bf16.msrb.mxu1 %v7040_v42 }
0x738e   :  { %3190 = vmatpush.bf16.msrb.mxu1 %v7046_v44 }
0x7406   :  { %v3011_v7 = vpop.f32.mrf.mxu1 }
0x7407   :  { %v3012_v8 = vadd.f32 %v7074_v2, %v3011_v7 }
0x7409   :  { %v3015_v43 = vmax.f32 %v3012_v8, 0.0 }
0x740b   :  { %v3016_v18 = vpack.c.bf16 %v3015_v43, %v3015_v43 }
0x740d   :  { %5945 = vmatmul.msk.bf16.vlgmr.msrb.gmra.mxu2 %vm164_vm3, %v3016_v18  ;;  %v7332_v18 = vld [vmem:[%s8163_s6 + $0x8] sm:$0xff] }
0x740e   :  { %v3013_v10 = vpop.f32.mrf.mxu1  ;;  %3207 = vmatpush.bf16.msrb.mxu2 %v7054_v38 }
0x7412   :  { %3208 = vmatpush.bf16.msrb.mxu2 %v7060_v56 }
0x7490   :  { %v3029_v19 = vpop.f32.mrf.mxu2 }
0x7491   :  { %v3030_v20 = vadd.f32 %v7083_v47, %v3029_v19 }
0x7493   :  { %v3033_v13 = vmul.f32 %v3030_v20, %v7173_v1 }
0x7495   :  { %3035 = vrot.lane.b32.xlu0 %v3033_v13, %s6244_s26 }
0x7498   :  { %v3031_v22 = vpop.f32.mrf.mxu2 }
0x7507   :  { %v3036_v23 = vpop.permute.xlu0 %3035 }
0x7508   :  { %v3038_v46 = vadd.f32 %v3036_v23, %v7271_v12 }
0x750a   :  { %v3039_v25 = vpack.c.bf16 %v3038_v46, %v3038_v46 }
0x750c   :  { %3041 = vrot.lane.b32.xlu1 %v3039_v25, %s6243_s7 }
0x757e   :  { %v3042_v27 = vpop.permute.xlu1 %3041 }
0x757f   :  { %5946 = vmatmul.msk.bf16.vlgmr.msrb.gmra.mxu3 %vm164_vm3, %v3042_v27 }
0x7580   :  { %3233 = vmatpush.bf16.msrb.mxu3 %v7040_v42 }
0x7584   :  { %3234 = vmatpush.bf16.msrb.mxu3 %v7046_v44 }
0x7602   :  { %v3055_v28 = vpop.f32.mrf.mxu3 }
0x7603   :  { %v3056_v16 = vadd.f32 %v7074_v2, %v3055_v28 }
0x7605   :  { %v3059_v39 = vmax.f32 %v3056_v16, 0.0 }
0x7607   :  { %v3060_v5 = vpack.c.bf16 %v3059_v39, %v3059_v39 }
0x7609   :  { %5947 = vmatmul.msk.bf16.vlgmr.msra.gmra.mxu0 %vm164_vm3, %v3060_v5 }
0x760a   :  { %v3057_v40 = vpop.f32.mrf.mxu3  ;;  %3251 = vmatpush.bf16.msra.mxu0 %v7054_v38 }
0x760e   :  { %3252 = vmatpush.bf16.msra.mxu0 %v7060_v56 }
0x7686   :  { %v3073_v31 = vpop.f32.mrf.mxu0 }
0x7687   :  { %v3074_v21 = vadd.f32 %v7083_v47, %v3073_v31 }
0x7689   :  { %v3079_v49 = vmul.f32 %v3074_v21, %v7173_v1  ;;  %v3077_v35 = vmul.f32 2.0, %v3074_v21 }
0x768b   :  { %3081 = vrot.lane.b32.xlu2 %v3079_v49, %s6244_s26  ;;  %v3078_v52 = vadd.f32 %v3077_v35, %v3030_v20 }
0x768e   :  { %v3075_v50 = vpop.f32.mrf.mxu0 }
0x76e5   :  { %v3082_v36 = vpop.permute.xlu2 %3081 }
0x76e6   :  { %v3084_v59 = vadd.f32 %v3082_v36, %v7271_v12 }
0x76e8   :  { %v3085_v33 = vpack.c.bf16 %v3084_v59, %v3084_v59 }
0x76ea   :  { %3087 = vrot.lane.b32.xlu0 %v3085_v33, %s6243_s7 }
0x775c   :  { %v3088_v17 = vpop.permute.xlu0 %3087 }
0x775d   :  { %5948 = vmatmul.msk.bf16.vlgmr.msra.gmra.mxu1 %vm164_vm3, %v3088_v17 }
0x775e   :  { %3279 = vmatpush.bf16.msra.mxu1 %v7040_v42 }
0x7762   :  { %3280 = vmatpush.bf16.msra.mxu1 %v7046_v44 }
0x77da   :  { %v3101_v29 = vpop.f32.mrf.mxu1 }
0x77db   :  { %v3102_v37 = vadd.f32 %v7074_v2, %v3101_v29 }
0x77dd   :  { %v3105_v41 = vmax.f32 %v3102_v37, 0.0 }
0x77df   :  { %v3106_v51 = vpack.c.bf16 %v3105_v41, %v3105_v41 }
0x77e1   :  { %5949 = vmatmul.msk.bf16.vlgmr.msra.gmra.mxu2 %vm164_vm3, %v3106_v51 }
0x77e2   :  { %v3103_v45 = vpop.f32.mrf.mxu1  ;;  %3297 = vmatpush.bf16.msra.mxu2 %v7054_v38 }
0x77e6   :  { %3298 = vmatpush.bf16.msra.mxu2 %v7060_v56 }
0x7864   :  { %v3119_v34 = vpop.f32.mrf.mxu2 }
0x7865   :  { %v3120_v48 = vadd.f32 %v7083_v47, %v3119_v34  ;;  %v7370_v34 = vld [vmem:[%s8166_s9 + $0x8] sm:$0xff] }
0x7867   :  { %v3123_v53 = vmul.f32 2.0, %v3120_v48  ;;  %v3125_v54 = vmul.f32 %v3120_v48, %v7199_v32 }
0x7869   :  { %3127 = vrot.lane.b32.xlu1 %v3125_v54, %s6244_s26  ;;  %v3124_v30 = vadd.f32 %v3123_v53, %v3078_v52 }
0x786c   :  { %v3121_v57 = vpop.f32.mrf.mxu2 }
0x78db   :  { %v3128_v58 = vpop.permute.xlu1 %3127 }
0x78dc   :  { %v3130_v26 = vadd.f32 %v3128_v58, %v7271_v12 }
0x78de   :  { %v3131_v60 = vpack.c.bf16 %v3130_v26, %v3130_v26 }
0x78e0   :  { %3133 = vrot.lane.b32.xlu2 %v3131_v60, %s6243_s7 }
0x793a   :  { %v3134_v61 = vpop.permute.xlu2 %3133 }
0x793b   :  { %5950 = vmatmul.msk.bf16.vlgmr.msra.gmra.mxu3 %vm164_vm3, %v3134_v61 }
0x793c   :  { %3325 = vmatpush.bf16.msra.mxu3 %v7040_v42 }
0x7940   :  { %3326 = vmatpush.bf16.msra.mxu3 %v7046_v44 }
0x79be   :  { %v3147_v62 = vpop.f32.mrf.mxu3 }
0x79bf   :  { %v3148_v0 = vadd.f32 %v7074_v2, %v3147_v62 }
0x79c1   :  { %v3151_v3 = vmax.f32 %v3148_v0, 0.0  ;;  %v7400_v0 = vld [vmem:[%s8167_s10] ss:$0 sm:$0xff] }
0x79c3   :  { %v3152_v55 = vpack.c.bf16 %v3151_v3, %v3151_v3 }
0x79c5   :  { %5951 = vmatmul.msk.bf16.vlgmr.msrb.gmra.mxu0 %vm164_vm3, %v3152_v55 }
0x79c6   :  { %v3149_v6 = vpop.f32.mrf.mxu3  ;;  %3343 = vmatpush.bf16.msrb.mxu0 %v7054_v38 }
0x79ca   :  { %3344 = vmatpush.bf16.msrb.mxu0 %v7060_v56 }
0x7a42   :  { %v3165_v9 = vpop.f32.mrf.mxu0 }
0x7a43   :  { %v3166_v24 = vadd.f32 %v7083_v47, %v3165_v9 }
0x7a45   :  { %v3169_v11 = vadd.f32 %v3166_v24, %v3124_v30 }
0x7a47   :  { %v3170_v63 = vmul.f32 %v3169_v11, %v7214_v4  ;;  %v7409_v11 = vld [vmem:[%s8169_s12] ss:$0 sm:$0xff] }
0x7a49   :  { %3172 = vrot.lane.b32.xlu0 %v3170_v63, %s6244_s26 }
0x7a4a   :  { %v3167_v14 = vpop.f32.mrf.mxu0 }
0x7abb   :  { %v3173_v15 = vpop.permute.xlu0 %3172 }
0x7abc   :  { %v7323_v7 = vadd.f32 %v3173_v15, %v7271_v12  ;;  %v7338_v12 = vld [vmem:[%s8163_s6] sm:$0xff] }
0x7abe   :  { %v3176_v8 = vpack.c.bf16 %v7323_v7, %v7323_v7 }
0x7ac0   :  { %3178 = vrot.lane.b32.xlu1 %v3176_v8, %s6243_s7 }
0x7b32   :  { %v3179_v43 = vpop.permute.xlu1 %3178 }
0x7b33   :  { %5952 = vmatmul.msk.bf16.vlgmr.msrb.gmra.mxu1 %vm164_vm3, %v3179_v43 }
0x7b34   :  { %3371 = vmatpush.bf16.msrb.mxu1 %v7332_v18 }
0x7b38   :  { %3372 = vmatpush.bf16.msrb.mxu1 %v7338_v12 }
0x7bb0   :  { %v3192_v10 = vpop.f32.mrf.mxu1 }
0x7bb1   :  { %v3193_v19 = vadd.f32 %v7074_v2, %v3192_v10 }
0x7bb3   :  { %v3196_v20 = vmax.f32 %v3193_v19, 0.0 }
0x7bb5   :  { %v3197_v13 = vpack.c.bf16 %v3196_v20, %v3196_v20 }
0x7bb7   :  { %5953 = vmatmul.msk.bf16.vlgmr.msrb.gmra.mxu2 %vm164_vm3, %v3197_v13 }
0x7bb8   :  { %v3194_v22 = vpop.f32.mrf.mxu1  ;;  %3434 = vmatpush.bf16.msrb.mxu2 %v7040_v42 }
0x7bbc   :  { %3435 = vmatpush.bf16.msrb.mxu2 %v7046_v44 }
0x7c3a   :  { %v3210_v23 = vpop.f32.mrf.mxu2 }
0x7c3b   :  { %v3211_v46 = vadd.f32 %v7083_v47, %v3210_v23  ;;  %v3357_v23 = vld [vmem:[#allocation3 + $0x8] sm:$0x3] }
0x7c3d   :  { %v3214_v25 = vmul.f32 %v3211_v46, %v7173_v1 }
0x7c3f   :  { %3216 = vrot.lane.b32.xlu2 %v3214_v25, %s6244_s26 }
0x7c42   :  { %v3212_v27 = vpop.f32.mrf.mxu2 }
0x7c99   :  { %v3217_v28 = vpop.permute.xlu2 %3216 }
0x7c9a   :  { %v3219_v16 = vadd.f32 %v3217_v28, %v7323_v7 }
0x7c9c   :  { %v3220_v39 = vpack.c.bf16 %v3219_v16, %v3219_v16 }
0x7c9e   :  { %3222 = vrot.lane.b32.xlu0 %v3220_v39, %s6243_s7 }
0x7d10   :  { %v3223_v5 = vpop.permute.xlu0 %3222 }
0x7d11   :  { %5954 = vmatmul.msk.bf16.vlgmr.msrb.gmra.mxu3 %vm164_vm3, %v3223_v5 }
0x7d12   :  { %3452 = vmatpush.bf16.msrb.mxu3 %v7054_v38 }
0x7d16   :  { %3453 = vmatpush.bf16.msrb.mxu3 %v7060_v56 }
0x7d94   :  { %v3236_v40 = vpop.f32.mrf.mxu3 }
0x7d95   :  { %v3237_v31 = vadd.f32 %v7074_v2, %v3236_v40 }
0x7d97   :  { %v3240_v21 = vmax.f32 %v3237_v31, 0.0 }
0x7d99   :  { %v3241_v49 = vpack.c.bf16 %v3240_v21, %v3240_v21 }
0x7d9b   :  { %5955 = vmatmul.msk.bf16.vlgmr.msra.gmra.mxu0 %vm164_vm3, %v3241_v49 }
0x7d9c   :  { %v3238_v50 = vpop.f32.mrf.mxu3  ;;  %3479 = vmatpush.bf16.msra.mxu0 %v7040_v42 }
0x7da0   :  { %3480 = vmatpush.bf16.msra.mxu0 %v7046_v44 }
0x7e18   :  { %v3254_v36 = vpop.f32.mrf.mxu0 }
0x7e19   :  { %v3255_v59 = vadd.f32 %v7083_v47, %v3254_v36 }
0x7e1b   :  { %v3260_v33 = vmul.f32 %v3255_v59, %v7173_v1 }
0x7e1d   :  { %3262 = vrot.lane.b32.xlu1 %v3260_v33, %s6244_s26 }
0x7e20   :  { %v3256_v17 = vpop.f32.mrf.mxu0 }
0x7e8f   :  { %v3263_v29 = vpop.permute.xlu1 %3262 }
0x7e90   :  { %v3265_v37 = vadd.f32 %v3263_v29, %v7323_v7 }
0x7e92   :  { %v3266_v41 = vpack.c.bf16 %v3265_v37, %v3265_v37 }
0x7e94   :  { %3268 = vrot.lane.b32.xlu2 %v3266_v41, %s6243_s7 }
0x7eee   :  { %v3269_v51 = vpop.permute.xlu2 %3268 }
0x7eef   :  { %5956 = vmatmul.msk.bf16.vlgmr.msra.gmra.mxu1 %vm164_vm3, %v3269_v51 }
0x7ef0   :  { %3497 = vmatpush.bf16.msra.mxu1 %v7054_v38  ;;  %v7376_v38 = vld [vmem:[%s8166_s9] sm:$0xff] }
0x7ef4   :  { %3498 = vmatpush.bf16.msra.mxu1 %v7060_v56  ;;  %v3258_v56 = vmul.f32 2.0, %v3255_v59 }
0x7ef6   :  { %v3259_v52 = vadd.f32 %v3258_v56, %v3211_v46 }
0x7f6c   :  { %v3282_v42 = vpop.f32.mrf.mxu1 }
0x7f6d   :  { %v3283_v44 = vadd.f32 %v7074_v2, %v3282_v42 }
0x7f6f   :  { %v3286_v1 = vmax.f32 %v3283_v44, 0.0 }
0x7f71   :  { %v3287_v45 = vpack.c.bf16 %v3286_v1, %v3286_v1 }
0x7f73   :  { %5957 = vmatmul.msk.bf16.vlgmr.msra.gmra.mxu2 %vm164_vm3, %v3287_v45 }
0x7f74   :  { %v3284_v35 = vpop.f32.mrf.mxu1  ;;  %3525 = vmatpush.bf16.msra.mxu2 %v7370_v34 }
0x7f78   :  { %3526 = vmatpush.bf16.msra.mxu2 %v7376_v38 }
0x7ff6   :  { %v3300_v2 = vpop.f32.mrf.mxu2 }
0x7ff7   :  { %v3301_v48 = vadd.f32 %v7083_v47, %v3300_v2  ;;  %v7388_v47 = vld [vmem:[%s8168_s11 + $0x8] sm:$0xff] }
0x7ff9   :  { %v3304_v53 = vmul.f32 2.0, %v3301_v48  ;;  %v3306_v54 = vmul.f32 %v3301_v48, %v7199_v32  ;;  %v7394_v32 = vld [vmem:[%s8168_s11] sm:$0xff] }
0x7ffb   :  { %3308 = vrot.lane.b32.xlu0 %v3306_v54, %s6244_s26  ;;  %v3305_v30 = vadd.f32 %v3304_v53, %v3259_v52 }
0x7ffe   :  { %v3302_v57 = vpop.f32.mrf.mxu2 }
0x7fff   :  { %v7440_v57 = vstv %s5963_s3 }
0x806d   :  { %v3309_v58 = vpop.permute.xlu0 %3308 }
0x806e   :  { %v3311_v26 = vadd.f32 %v3309_v58, %v7323_v7 }
0x8070   :  { %v3312_v60 = vpack.c.bf16 %v3311_v26, %v3311_v26 }
0x8072   :  { %3314 = vrot.lane.b32.xlu1 %v3312_v60, %s6243_s7 }
0x80e4   :  { %v3315_v61 = vpop.permute.xlu1 %3314 }
0x80e5   :  { %5958 = vmatmul.msk.bf16.vlgmr.msra.gmra.mxu3 %vm164_vm3, %v3315_v61 }
0x80e6   :  { %3543 = vmatpush.bf16.msra.mxu3 %v7388_v47 }
0x80ea   :  { %3544 = vmatpush.bf16.msra.mxu3 %v7394_v32 }
0x8168   :  { %v3328_v62 = vpop.f32.mrf.mxu3 }
0x8169   :  { %v3329_v3 = vadd.f32 %v7400_v0, %v3328_v62 }
0x816b   :  { %v3332_v55 = vmax.f32 %v3329_v3, 0.0 }
0x816d   :  { %v3333_v6 = vpack.c.bf16 %v3332_v55, %v3332_v55 }
0x816f   :  { %5959 = vmatmul.msk.bf16.vlgmr.msrb.gmra.mxu0 %vm164_vm3, %v3333_v6 }
0x8170   :  { %v3330_v9 = vpop.f32.mrf.mxu3  ;;  %3572 = vmatpush.bf16.msrb.mxu0 %v7370_v34 }
0x8174   :  { %3573 = vmatpush.bf16.msrb.mxu0 %v7376_v38 }
0x81ec   :  { %v3346_v24 = vpop.f32.mrf.mxu0 }
0x81ed   :  { %v3347_v63 = vadd.f32 %v7409_v11, %v3346_v24 }
0x81ef   :  { %v3350_v14 = vadd.f32 %v3347_v63, %v3305_v30 }
0x81f1   :  { %v3351_v15 = vmul.f32 %v3350_v14, %v7214_v4  ;;  %v7422_v4 = vld [vmem:[%s8165_s8] ss:$0 sm:$0xff] }
0x81f3   :  { %3353 = vrot.lane.b32.xlu2 %v3351_v15, %s6244_s26 }
0x81f4   :  { %v3348_v8 = vpop.f32.mrf.mxu0 }
0x824d   :  { %v3354_v43 = vpop.permute.xlu2 %3353 }
0x824e   :  { %v3356_v10 = vadd.f32 %v3354_v43, %v7323_v7 }
0x8250   :  { %v3358_v19 = vpack.c.bf16 %v3356_v10, %v3356_v10 }
0x8252   :  { %3360 = vrot.lane.b32.xlu0 %v3358_v19, %s6243_s7 }
0x82c4   :  { %v3361_v20 = vpop.permute.xlu0 %3360 }
0x82c5   :  { %5960 = vmatmul.msk.bf16.vlgmr.msrb.gmra.mxu1 %vm164_vm3, %v3361_v20 }
0x82c6   :  { %3590 = vmatpush.bf16.msrb.mxu1 %v7388_v47 }
0x82ca   :  { %3591 = vmatpush.bf16.msrb.mxu1 %v7394_v32 }
0x8342   :  { %v3374_v13 = vpop.f32.mrf.mxu1 }
0x8343   :  { %v3375_v22 = vadd.f32 %v7422_v4, %v3374_v13 }
0x8345   :  { %3399 = vrot.lane.b32.xlu1 %v3375_v22, %s6242_s25  ;;  %v3378_v46 = vadd.f32 %v3375_v22, %v3357_v23 }
0x8347   :  { %v5961_v25 = vmul.f32 -1.442695, %v3378_v46 }
0x8349   :  { %6114 = vpow2.f32 %v5961_v25 }
0x834a   :  { %v3376_v7 = vpop.f32.mrf.mxu1 }
0x834f   :  { %v6115_v27 = vpop.eup %6114 }
0x8350   :  { %v3382_v28 = vadd.f32 1.0, %v6115_v27 }
0x8352   :  { %6116 = vrcp.f32 %v3382_v28  ;;  %v3394_v21 = vand.u32 2147483648, %v3382_v28  ;;  %vm3388_vm9 = vweird.f32 %v3382_v28  ;;  %v3392_v49 = vand.u32 2147483647, %v3382_v28 }
0x8354   :  { %v3395_v36 = vor.u32 1.1754944e-38, %v3394_v21  ;;  %vm3393_vm11 = vcmp.eq.f32.partialorder %v3392_v49, 8.507059e+37 }
0x8358   :  { %v6117_v16 = vpop.eup %6116 }
0x8359   :  { %v3384_v39 = vmul.f32 %v6117_v16, %v3382_v28  ;;  %vm3389_vm8 = vweird.f32 %v6117_v16 }
0x835a   :  { %vm3390_vm10 = vmor %vm3388_vm9, %vm3389_vm8 }
0x835b   :  { %v3385_v5 = vsub.f32 1.0, %v3384_v39  ;;  %v7466_v39 = vstv %s5962_s4 }
0x835d   :  { %v3386_v40 = vmul.f32 %v6117_v16, %v3385_v5 }
0x835f   :  { %v3387_v31 = vadd.f32 %v6117_v16, %v3386_v40 }
0x8361   :  { %v3391_v50 = vsel %vm3390_vm10, %v6117_v16, %v3387_v31 }
0x8362   :  { %v3396_v33 = vsel %vm3393_vm11, %v3395_v36, %v3391_v50 }
0x8363   :  { %v3409_v51 = vsub.f32 1.0, %v3396_v33  ;;  %v3415_v44 = vmul.f32 %v3396_v33, %v3356_v10 }
0x83b7   :  { %v3400_v59 = vpop.permute.xlu1 %3399 }
0x83b8   :  { %v3402_v17 = vmul.f32 %v3400_v59, %v3396_v33 }
0x83ba   :  { %3404 = vrot.lane.b32.xlu2 %v3402_v17, %s6242_s25 }
0x8414   :  { %v3405_v29 = vpop.permute.xlu2 %3404 }
0x8415   :  { %v3407_v37 = vadd.f32 %v3405_v29, %v3357_v23 }
0x8417   :  { %6118 = vtanh.f32 %v3407_v37 }
0x841d   :  { %v6119_v41 = vpop.eup %6118 }
0x841e   :  { %3411 = vrot.lane.b32.xlu0 %v6119_v41, %s6243_s7 }
0x8490   :  { %v3412_v42 = vpop.permute.xlu0 %3411 }
0x8491   :  { %v3414_v1 = vmul.f32 %v3412_v42, %v3409_v51 }
0x8493   :  { %v7428_v45 = vadd.f32 %v3415_v44, %v3414_v1 }
0x8495   :  { %v3421_v35 = vpack.c.bf16 %v7428_v45, %v7428_v45 }
0x8497   :  { %3423 = vrot.lane.b32.xlu1 %v3421_v35, %s6243_s7  ;;  %v7481_v35 = vstv %s5964_s23 }
0x8509   :  { %v3424_v56 = vpop.permute.xlu1 %3423 }
0x850a   :  { %5965 = vmatmul.msk.bf16.vlgmr.msrb.gmra.mxu2 %vm164_vm3, %v3424_v56 }
0x850b   :  { %3618 = vmatpush.bf16.msrb.mxu2 %v7370_v34 }
0x850f   :  { %3619 = vmatpush.bf16.msrb.mxu2 %v7376_v38 }
0x858d   :  { %v3437_v2 = vpop.f32.mrf.mxu2 }
0x858e   :  { %v3438_v48 = vadd.f32 %v7400_v0, %v3437_v2 }
0x8590   :  { %v3441_v52 = vmax.f32 %v3438_v48, 0.0 }
0x8592   :  { %v3442_v53 = vpack.c.bf16 %v3441_v52, %v3441_v52 }
0x8594   :  { %5966 = vmatmul.msk.bf16.vlgmr.msrb.gmra.mxu3 %vm164_vm3, %v3442_v53 }
0x8595   :  { %v3439_v54 = vpop.f32.mrf.mxu2  ;;  %3636 = vmatpush.bf16.msrb.mxu3 %v7388_v47 }
0x8599   :  { %3637 = vmatpush.bf16.msrb.mxu3 %v7394_v32 }
0x8617   :  { %v3455_v30 = vpop.f32.mrf.mxu3 }
0x8618   :  { %v3456_v58 = vadd.f32 %v7409_v11, %v3455_v30 }
0x861a   :  { %v3460_v26 = vmul.f32 %v7440_v57, %v3456_v58 }
0x861c   :  { %3462 = vrot.lane.b32.xlu2 %v3460_v26, %s6244_s26 }
0x861f   :  { %v3457_v60 = vpop.f32.mrf.mxu3 }
0x8676   :  { %v3463_v61 = vpop.permute.xlu2 %3462 }
0x8677   :  { %v3465_v62 = vadd.f32 %v3463_v61, %v7428_v45 }
0x8679   :  { %v3466_v3 = vpack.c.bf16 %v3465_v62, %v3465_v62 }
0x867b   :  { %3468 = vrot.lane.b32.xlu0 %v3466_v3, %s6243_s7 }
0x86ed   :  { %v3469_v55 = vpop.permute.xlu0 %3468 }
0x86ee   :  { %5967 = vmatmul.msk.bf16.vlgmr.msra.gmra.mxu0 %vm164_vm3, %v3469_v55 }
0x86ef   :  { %3662 = vmatpush.bf16.msra.mxu0 %v7370_v34 }
0x86f3   :  { %3663 = vmatpush.bf16.msra.mxu0 %v7376_v38 }
0x876b   :  { %v3482_v6 = vpop.f32.mrf.mxu0 }
0x876c   :  { %v3483_v9 = vadd.f32 %v7400_v0, %v3482_v6 }
0x876e   :  { %v3486_v24 = vmax.f32 %v3483_v9, 0.0 }
0x8770   :  { %v3487_v63 = vpack.c.bf16 %v3486_v24, %v3486_v24 }
0x8772   :  { %5968 = vmatmul.msk.bf16.vlgmr.msra.gmra.mxu1 %vm164_vm3, %v3487_v63 }
0x8773   :  { %v3484_v14 = vpop.f32.mrf.mxu0  ;;  %3680 = vmatpush.bf16.msra.mxu1 %v7388_v47 }
0x8777   :  { %3681 = vmatpush.bf16.msra.mxu1 %v7394_v32 }
0x87ef   :  { %v3500_v15 = vpop.f32.mrf.mxu1 }
0x87f0   :  { %v3501_v8 = vadd.f32 %v7409_v11, %v3500_v15 }
0x87f2   :  { %v3506_v43 = vmul.f32 %v3501_v8, %v7440_v57  ;;  %v3504_v28 = vmul.f32 2.0, %v3501_v8 }
0x87f4   :  { %3508 = vrot.lane.b32.xlu1 %v3506_v43, %s6244_s26  ;;  %v3505_v40 = vadd.f32 %v3504_v28, %v3456_v58 }
0x87f7   :  { %v3502_v10 = vpop.f32.mrf.mxu1 }
0x8866   :  { %v3509_v19 = vpop.permute.xlu1 %3508 }
0x8867   :  { %v3511_v20 = vadd.f32 %v3509_v19, %v7428_v45 }
0x8869   :  { %v3512_v13 = vpack.c.bf16 %v3511_v20, %v3511_v20 }
0x886b   :  { %3514 = vrot.lane.b32.xlu2 %v3512_v13, %s6243_s7 }
0x88c5   :  { %v3515_v22 = vpop.permute.xlu2 %3514 }
0x88c6   :  { %5969 = vmatmul.msk.bf16.vlgmr.msra.gmra.mxu2 %vm164_vm3, %v3515_v22 }
0x88c7   :  { %3708 = vmatpush.bf16.msra.mxu2 %v7370_v34 }
0x88cb   :  { %3709 = vmatpush.bf16.msra.mxu2 %v7376_v38 }
0x8949   :  { %v3528_v7 = vpop.f32.mrf.mxu2 }
0x894a   :  { %v3529_v23 = vadd.f32 %v7400_v0, %v3528_v7 }
0x894c   :  { %v3532_v46 = vmax.f32 %v3529_v23, 0.0 }
0x894e   :  { %v3533_v25 = vpack.c.bf16 %v3532_v46, %v3532_v46 }
0x8950   :  { %5970 = vmatmul.msk.bf16.vlgmr.msra.gmra.mxu3 %vm164_vm3, %v3533_v25 }
0x8951   :  { %v3530_v27 = vpop.f32.mrf.mxu2  ;;  %3726 = vmatpush.bf16.msra.mxu3 %v7388_v47 }
0x8955   :  { %3727 = vmatpush.bf16.msra.mxu3 %v7394_v32 }
0x89d3   :  { %v3546_v16 = vpop.f32.mrf.mxu3 }
0x89d4   :  { %v3547_v5 = vadd.f32 %v7409_v11, %v3546_v16 }
0x89d6   :  { %v3550_v31 = vmul.f32 2.0, %v3547_v5  ;;  %v3553_v21 = vmul.f32 %v7466_v39, %v3547_v5 }
0x89d8   :  { %3555 = vrot.lane.b32.xlu0 %v3553_v21, %s6244_s26  ;;  %v3551_v49 = vadd.f32 %v3550_v31, %v3505_v40 }
0x89db   :  { %v3548_v50 = vpop.f32.mrf.mxu3 }
0x8a4a   :  { %v3556_v36 = vpop.permute.xlu0 %3555 }
0x8a4b   :  { %v3558_v59 = vadd.f32 %v3556_v36, %v7428_v45 }
0x8a4d   :  { %v3559_v33 = vpack.c.bf16 %v3558_v59, %v3558_v59 }
0x8a4f   :  { %3561 = vrot.lane.b32.xlu1 %v3559_v33, %s6243_s7 }
0x8ac1   :  { %v3562_v17 = vpop.permute.xlu1 %3561 }
0x8ac2   :  { %5971 = vmatmul.msk.bf16.vlgmr.msrb.gmra.mxu0 %vm164_vm3, %v3562_v17 }
0x8ac3   :  { %3754 = vmatpush.bf16.msrb.mxu0 %v7370_v34 }
0x8ac7   :  { %3755 = vmatpush.bf16.msrb.mxu0 %v7376_v38 }
0x8b3f   :  { %v3575_v29 = vpop.f32.mrf.mxu0 }
0x8b40   :  { %v3576_v37 = vadd.f32 %v7400_v0, %v3575_v29 }
0x8b42   :  { %v3579_v41 = vmax.f32 %v3576_v37, 0.0 }
0x8b44   :  { %v3580_v51 = vpack.c.bf16 %v3579_v41, %v3579_v41 }
0x8b46   :  { %5972 = vmatmul.msk.bf16.vlgmr.msrb.gmra.mxu1 %vm164_vm3, %v3580_v51 }
0x8b47   :  { %v3577_v42 = vpop.f32.mrf.mxu0  ;;  %3772 = vmatpush.bf16.msrb.mxu1 %v7388_v47 }
0x8b4b   :  { %3773 = vmatpush.bf16.msrb.mxu1 %v7394_v32 }
0x8bc3   :  { %v3593_v44 = vpop.f32.mrf.mxu1 }
0x8bc4   :  { %v3594_v1 = vadd.f32 %v7409_v11, %v3593_v44 }
0x8bc6   :  { %v3597_v56 = vadd.f32 %v3594_v1, %v3551_v49 }
0x8bc8   :  { %v3599_v2 = vmul.f32 %v7481_v35, %v3597_v56 }
0x8bca   :  { %3601 = vrot.lane.b32.xlu2 %v3599_v2, %s6244_s26 }
0x8bcb   :  { %v3595_v48 = vpop.f32.mrf.mxu1 }
0x8c24   :  { %v3602_v52 = vpop.permute.xlu2 %3601 }
0x8c25   :  { %v7486_v53 = vadd.f32 %v3602_v52, %v7428_v45 }
0x8c27   :  { %v3605_v54 = vpack.c.bf16 %v7486_v53, %v7486_v53 }
0x8c29   :  { %3607 = vrot.lane.b32.xlu0 %v3605_v54, %s6243_s7 }
0x8c9b   :  { %v3608_v30 = vpop.permute.xlu0 %3607 }
0x8c9c   :  { %5973 = vmatmul.msk.bf16.vlgmr.msrb.gmra.mxu2 %vm164_vm3, %v3608_v30 }
0x8c9d   :  { %3799 = vmatpush.bf16.msrb.mxu2 %v7370_v34 }
0x8ca1   :  { %3800 = vmatpush.bf16.msrb.mxu2 %v7376_v38 }
0x8d1f   :  { %v3621_v58 = vpop.f32.mrf.mxu2 }
0x8d20   :  { %v3622_v26 = vadd.f32 %v7400_v0, %v3621_v58 }
0x8d22   :  { %v3625_v60 = vmax.f32 %v3622_v26, 0.0 }
0x8d24   :  { %v3626_v61 = vpack.c.bf16 %v3625_v60, %v3625_v60 }
0x8d26   :  { %5974 = vmatmul.msk.bf16.vlgmr.msrb.gmra.mxu3 %vm164_vm3, %v3626_v61 }
0x8d27   :  { %v3623_v45 = vpop.f32.mrf.mxu2  ;;  %3817 = vmatpush.bf16.msrb.mxu3 %v7388_v47 }
0x8d2b   :  { %3818 = vmatpush.bf16.msrb.mxu3 %v7394_v32 }
0x8da9   :  { %v3639_v62 = vpop.f32.mrf.mxu3 }
0x8daa   :  { %v3640_v3 = vadd.f32 %v7409_v11, %v3639_v62 }
0x8dac   :  { %v3643_v55 = vmul.f32 %v3640_v3, %v7440_v57 }
0x8dae   :  { %3645 = vrot.lane.b32.xlu1 %v3643_v55, %s6244_s26 }
0x8db1   :  { %v3641_v6 = vpop.f32.mrf.mxu3 }
0x8e20   :  { %v3646_v9 = vpop.permute.xlu1 %3645 }
0x8e21   :  { %v3648_v24 = vadd.f32 %v3646_v9, %v7486_v53 }
0x8e23   :  { %v3649_v63 = vpack.c.bf16 %v3648_v24, %v3648_v24 }
0x8e25   :  { %3651 = vrot.lane.b32.xlu2 %v3649_v63, %s6243_s7 }
0x8e7f   :  { %v3652_v14 = vpop.permute.xlu2 %3651 }
0x8e80   :  { %5975 = vmatmul.msk.bf16.vlgmr.msra.gmra.mxu0 %vm164_vm3, %v3652_v14 }
0x8e81   :  { %3843 = vmatpush.bf16.msra.mxu0 %v7370_v34 }
0x8e85   :  { %3844 = vmatpush.bf16.msra.mxu0 %v7376_v38 }
0x8efd   :  { %v3665_v15 = vpop.f32.mrf.mxu0 }
0x8efe   :  { %v3666_v8 = vadd.f32 %v7400_v0, %v3665_v15 }
0x8f00   :  { %v3669_v43 = vmax.f32 %v3666_v8, 0.0 }
0x8f02   :  { %v3670_v10 = vpack.c.bf16 %v3669_v43, %v3669_v43 }
0x8f04   :  { %5976 = vmatmul.msk.bf16.vlgmr.msra.gmra.mxu1 %vm164_vm3, %v3670_v10 }
0x8f05   :  { %v3667_v19 = vpop.f32.mrf.mxu0  ;;  %3861 = vmatpush.bf16.msra.mxu1 %v7388_v47 }
0x8f09   :  { %3862 = vmatpush.bf16.msra.mxu1 %v7394_v32 }
0x8f81   :  { %v3683_v20 = vpop.f32.mrf.mxu1 }
0x8f82   :  { %v3684_v13 = vadd.f32 %v7409_v11, %v3683_v20 }
0x8f84   :  { %v3689_v22 = vmul.f32 %v3684_v13, %v7440_v57  ;;  %v3687_v21 = vmul.f32 2.0, %v3684_v13 }
0x8f86   :  { %3691 = vrot.lane.b32.xlu0 %v3689_v22, %s6244_s26  ;;  %v3688_v36 = vadd.f32 %v3687_v21, %v3640_v3 }
0x8f89   :  { %v3685_v7 = vpop.f32.mrf.mxu1 }
0x8ff8   :  { %v3692_v23 = vpop.permute.xlu0 %3691 }
0x8ff9   :  { %v3694_v46 = vadd.f32 %v3692_v23, %v7486_v53 }
0x8ffb   :  { %v3695_v25 = vpack.c.bf16 %v3694_v46, %v3694_v46 }
0x8ffd   :  { %3697 = vrot.lane.b32.xlu1 %v3695_v25, %s6243_s7 }
0x906f   :  { %v3698_v27 = vpop.permute.xlu1 %3697 }
0x9070   :  { %5977 = vmatmul.msk.bf16.vlgmr.msra.gmra.mxu2 %vm164_vm3, %v3698_v27 }
0x9071   :  { %3889 = vmatpush.bf16.msra.mxu2 %v7370_v34 }
0x9075   :  { %3890 = vmatpush.bf16.msra.mxu2 %v7376_v38 }
0x90f3   :  { %v3711_v28 = vpop.f32.mrf.mxu2 }
0x90f4   :  { %v3712_v16 = vadd.f32 %v7400_v0, %v3711_v28 }
0x90f6   :  { %v3715_v5 = vmax.f32 %v3712_v16, 0.0 }
0x90f8   :  { %v3716_v40 = vpack.c.bf16 %v3715_v5, %v3715_v5 }
0x90fa   :  { %5978 = vmatmul.msk.bf16.vlgmr.msra.gmra.mxu3 %vm164_vm3, %v3716_v40 }
0x90fb   :  { %v3713_v31 = vpop.f32.mrf.mxu2  ;;  %3907 = vmatpush.bf16.msra.mxu3 %v7388_v47 }
0x90ff   :  { %3908 = vmatpush.bf16.msra.mxu3 %v7394_v32 }
0x917d   :  { %v3729_v49 = vpop.f32.mrf.mxu3 }
0x917e   :  { %v3730_v50 = vadd.f32 %v7409_v11, %v3729_v49 }
0x9180   :  { %v3733_v59 = vmul.f32 2.0, %v3730_v50  ;;  %v3735_v33 = vmul.f32 %v3730_v50, %v7466_v39 }
0x9182   :  { %3737 = vrot.lane.b32.xlu2 %v3735_v33, %s6244_s26  ;;  %v3734_v17 = vadd.f32 %v3733_v59, %v3688_v36 }
0x9185   :  { %v3731_v29 = vpop.f32.mrf.mxu3 }
0x91dc   :  { %v3738_v37 = vpop.permute.xlu2 %3737 }
0x91dd   :  { %v3740_v41 = vadd.f32 %v3738_v37, %v7486_v53 }
0x91df   :  { %v3741_v51 = vpack.c.bf16 %v3740_v41, %v3740_v41 }
0x91e1   :  { %3743 = vrot.lane.b32.xlu0 %v3741_v51, %s6243_s7 }
0x9253   :  { %v3744_v42 = vpop.permute.xlu0 %3743 }
0x9254   :  { %5979 = vmatmul.msk.bf16.vlgmr.msrb.gmra.mxu0 %vm164_vm3, %v3744_v42 }
0x9255   :  { %3935 = vmatpush.bf16.msrb.mxu0 %v7370_v34 }
0x9259   :  { %3936 = vmatpush.bf16.msrb.mxu0 %v7376_v38 }
0x92d1   :  { %v3757_v44 = vpop.f32.mrf.mxu0 }
0x92d2   :  { %v3758_v1 = vadd.f32 %v7400_v0, %v3757_v44 }
0x92d4   :  { %v3761_v56 = vmax.f32 %v3758_v1, 0.0 }
0x92d6   :  { %v3762_v2 = vpack.c.bf16 %v3761_v56, %v3761_v56 }
0x92d8   :  { %5980 = vmatmul.msk.bf16.vlgmr.msrb.gmra.mxu1 %vm164_vm3, %v3762_v2 }
0x92d9   :  { %v3759_v48 = vpop.f32.mrf.mxu0  ;;  %3953 = vmatpush.bf16.msrb.mxu1 %v7388_v47 }
0x92dd   :  { %3954 = vmatpush.bf16.msrb.mxu1 %v7394_v32 }
0x9355   :  { %v3775_v52 = vpop.f32.mrf.mxu1 }
0x9356   :  { %v3776_v54 = vadd.f32 %v7409_v11, %v3775_v52 }
0x9358   :  { %v3779_v30 = vadd.f32 %v3776_v54, %v3734_v17 }
0x935a   :  { %v3780_v58 = vmul.f32 %v3779_v30, %v7481_v35 }
0x935c   :  { %3782 = vrot.lane.b32.xlu1 %v3780_v58, %s6244_s26 }
0x935d   :  { %v3777_v26 = vpop.f32.mrf.mxu1 }
0x93ce   :  { %v3783_v60 = vpop.permute.xlu1 %3782 }
0x93cf   :  { %v7538_v61 = vadd.f32 %v3783_v60, %v7486_v53 }
0x93d1   :  { %v3786_v45 = vpack.c.bf16 %v7538_v61, %v7538_v61 }
0x93d3   :  { %3788 = vrot.lane.b32.xlu2 %v3786_v45, %s6243_s7 }
0x942d   :  { %v3789_v62 = vpop.permute.xlu2 %3788 }
0x942e   :  { %5981 = vmatmul.msk.bf16.vlgmr.msrb.gmra.mxu2 %vm164_vm3, %v3789_v62 }
0x942f   :  { %3980 = vmatpush.bf16.msrb.mxu2 %v7370_v34 }
0x9433   :  { %3981 = vmatpush.bf16.msrb.mxu2 %v7376_v38 }
0x94b1   :  { %v3802_v3 = vpop.f32.mrf.mxu2 }
0x94b2   :  { %v3803_v55 = vadd.f32 %v7400_v0, %v3802_v3 }
0x94b4   :  { %v3806_v6 = vmax.f32 %v3803_v55, 0.0 }
0x94b6   :  { %v3807_v9 = vpack.c.bf16 %v3806_v6, %v3806_v6 }
0x94b8   :  { %5982 = vmatmul.msk.bf16.vlgmr.msrb.gmra.mxu3 %vm164_vm3, %v3807_v9 }
0x94b9   :  { %v3804_v53 = vpop.f32.mrf.mxu2  ;;  %3998 = vmatpush.bf16.msrb.mxu3 %v7388_v47 }
0x94bd   :  { %3999 = vmatpush.bf16.msrb.mxu3 %v7394_v32 }
0x953b   :  { %v3820_v24 = vpop.f32.mrf.mxu3 }
0x953c   :  { %v3821_v63 = vadd.f32 %v7409_v11, %v3820_v24 }
0x953e   :  { %v3824_v14 = vmul.f32 %v3821_v63, %v7440_v57 }
0x9540   :  { %3826 = vrot.lane.b32.xlu0 %v3824_v14, %s6244_s26 }
0x9543   :  { %v3822_v15 = vpop.f32.mrf.mxu3 }
0x95b2   :  { %v3827_v8 = vpop.permute.xlu0 %3826 }
0x95b3   :  { %v3829_v43 = vadd.f32 %v3827_v8, %v7538_v61 }
0x95b5   :  { %v3830_v10 = vpack.c.bf16 %v3829_v43, %v3829_v43 }
0x95b7   :  { %3832 = vrot.lane.b32.xlu1 %v3830_v10, %s6243_s7 }
0x9629   :  { %v3833_v19 = vpop.permute.xlu1 %3832 }
0x962a   :  { %5983 = vmatmul.msk.bf16.vlgmr.msra.gmra.mxu0 %vm164_vm3, %v3833_v19 }
0x962b   :  { %4024 = vmatpush.bf16.msra.mxu0 %v7370_v34 }
0x962f   :  { %4025 = vmatpush.bf16.msra.mxu0 %v7376_v38 }
0x96a7   :  { %v3846_v20 = vpop.f32.mrf.mxu0 }
0x96a8   :  { %v3847_v13 = vadd.f32 %v7400_v0, %v3846_v20 }
0x96aa   :  { %v3850_v22 = vmax.f32 %v3847_v13, 0.0 }
0x96ac   :  { %v3851_v7 = vpack.c.bf16 %v3850_v22, %v3850_v22 }
0x96ae   :  { %5984 = vmatmul.msk.bf16.vlgmr.msra.gmra.mxu1 %vm164_vm3, %v3851_v7 }
0x96af   :  { %v3848_v23 = vpop.f32.mrf.mxu0  ;;  %4042 = vmatpush.bf16.msra.mxu1 %v7388_v47 }
0x96b3   :  { %4043 = vmatpush.bf16.msra.mxu1 %v7394_v32 }
0x972b   :  { %v3864_v46 = vpop.f32.mrf.mxu1 }
0x972c   :  { %v3865_v25 = vadd.f32 %v7409_v11, %v3864_v46 }
0x972e   :  { %v3870_v27 = vmul.f32 %v3865_v25, %v7440_v57  ;;  %v3868_v33 = vmul.f32 2.0, %v3865_v25 }
0x9730   :  { %3872 = vrot.lane.b32.xlu2 %v3870_v27, %s6244_s26  ;;  %v3869_v37 = vadd.f32 %v3868_v33, %v3821_v63 }
0x9733   :  { %v3866_v28 = vpop.f32.mrf.mxu1 }
0x978a   :  { %v3873_v16 = vpop.permute.xlu2 %3872 }
0x978b   :  { %v3875_v5 = vadd.f32 %v3873_v16, %v7538_v61 }
0x978d   :  { %v3876_v40 = vpack.c.bf16 %v3875_v5, %v3875_v5 }
0x978f   :  { %3878 = vrot.lane.b32.xlu0 %v3876_v40, %s6243_s7 }
0x9801   :  { %v3879_v31 = vpop.permute.xlu0 %3878 }
0x9802   :  { %5985 = vmatmul.msk.bf16.vlgmr.msra.gmra.mxu2 %vm164_vm3, %v3879_v31 }
0x9803   :  { %4070 = vmatpush.bf16.msra.mxu2 %v7370_v34 }
0x9807   :  { %4071 = vmatpush.bf16.msra.mxu2 %v7376_v38 }
0x9885   :  { %v3892_v21 = vpop.f32.mrf.mxu2 }
0x9886   :  { %v3893_v49 = vadd.f32 %v7400_v0, %v3892_v21 }
0x9888   :  { %v3896_v50 = vmax.f32 %v3893_v49, 0.0 }
0x988a   :  { %v3897_v36 = vpack.c.bf16 %v3896_v50, %v3896_v50 }
0x988c   :  { %5986 = vmatmul.msk.bf16.vlgmr.msra.gmra.mxu3 %vm164_vm3, %v3897_v36 }
0x988d   :  { %v3894_v59 = vpop.f32.mrf.mxu2  ;;  %4088 = vmatpush.bf16.msra.mxu3 %v7388_v47 }
0x9891   :  { %4089 = vmatpush.bf16.msra.mxu3 %v7394_v32 }
0x990f   :  { %v3910_v17 = vpop.f32.mrf.mxu3 }
0x9910   :  { %v3911_v29 = vadd.f32 %v7409_v11, %v3910_v17 }
0x9912   :  { %v3914_v41 = vmul.f32 2.0, %v3911_v29  ;;  %v3916_v51 = vmul.f32 %v3911_v29, %v7466_v39 }
0x9914   :  { %3918 = vrot.lane.b32.xlu1 %v3916_v51, %s6244_s26  ;;  %v3915_v42 = vadd.f32 %v3914_v41, %v3869_v37 }
0x9917   :  { %v3912_v44 = vpop.f32.mrf.mxu3 }
0x9986   :  { %v3919_v1 = vpop.permute.xlu1 %3918 }
0x9987   :  { %v3921_v56 = vadd.f32 %v3919_v1, %v7538_v61 }
0x9989   :  { %v3922_v2 = vpack.c.bf16 %v3921_v56, %v3921_v56 }
0x998b   :  { %3924 = vrot.lane.b32.xlu2 %v3922_v2, %s6243_s7 }
0x99e5   :  { %v3925_v48 = vpop.permute.xlu2 %3924 }
0x99e6   :  { %5987 = vmatmul.msk.bf16.vlgmr.msrb.gmra.mxu0 %vm164_vm3, %v3925_v48 }
0x99e7   :  { %4116 = vmatpush.bf16.msrb.mxu0 %v7370_v34 }
0x99eb   :  { %4117 = vmatpush.bf16.msrb.mxu0 %v7376_v38 }
0x9a63   :  { %v3938_v52 = vpop.f32.mrf.mxu0 }
0x9a64   :  { %v3939_v54 = vadd.f32 %v7400_v0, %v3938_v52 }
0x9a66   :  { %v3942_v30 = vmax.f32 %v3939_v54, 0.0 }
0x9a68   :  { %v3943_v58 = vpack.c.bf16 %v3942_v30, %v3942_v30 }
0x9a6a   :  { %5988 = vmatmul.msk.bf16.vlgmr.msrb.gmra.mxu1 %vm164_vm3, %v3943_v58 }
0x9a6b   :  { %v3940_v26 = vpop.f32.mrf.mxu0  ;;  %4134 = vmatpush.bf16.msrb.mxu1 %v7388_v47 }
0x9a6f   :  { %4135 = vmatpush.bf16.msrb.mxu1 %v7394_v32 }
0x9ae7   :  { %v3956_v60 = vpop.f32.mrf.mxu1 }
0x9ae8   :  { %v3957_v45 = vadd.f32 %v7409_v11, %v3956_v60 }
0x9aea   :  { %v3960_v62 = vadd.f32 %v3957_v45, %v3915_v42 }
0x9aec   :  { %v3961_v3 = vmul.f32 %v3960_v62, %v7481_v35 }
0x9aee   :  { %3963 = vrot.lane.b32.xlu0 %v3961_v3, %s6244_s26 }
0x9aef   :  { %v3958_v55 = vpop.f32.mrf.mxu1 }
0x9b60   :  { %v3964_v6 = vpop.permute.xlu0 %3963 }
0x9b61   :  { %v7590_v9 = vadd.f32 %v3964_v6, %v7538_v61 }
0x9b63   :  { %v3967_v53 = vpack.c.bf16 %v7590_v9, %v7590_v9 }
0x9b65   :  { %3969 = vrot.lane.b32.xlu1 %v3967_v53, %s6243_s7 }
0x9bd7   :  { %v3970_v24 = vpop.permute.xlu1 %3969 }
0x9bd8   :  { %5989 = vmatmul.msk.bf16.vlgmr.msrb.gmra.mxu2 %vm164_vm3, %v3970_v24 }
0x9bd9   :  { %4162 = vmatpush.bf16.msrb.mxu2 %v7332_v18 }
0x9bdd   :  { %4163 = vmatpush.bf16.msrb.mxu2 %v7338_v12 }
0x9c5b   :  { %v3983_v63 = vpop.f32.mrf.mxu2 }
0x9c5c   :  { %v3984_v14 = vadd.f32 %v7400_v0, %v3983_v63 }
0x9c5e   :  { %v3987_v15 = vmax.f32 %v3984_v14, 0.0 }
0x9c60   :  { %v3988_v8 = vpack.c.bf16 %v3987_v15, %v3987_v15 }
0x9c62   :  { %5990 = vmatmul.msk.bf16.vlgmr.msrb.gmra.mxu3 %vm164_vm3, %v3988_v8 }
0x9c63   :  { %v3985_v61 = vpop.f32.mrf.mxu2  ;;  %4225 = vmatpush.bf16.msrb.mxu3 %v7370_v34 }
0x9c64   :  { %v4148_v61 = vld [vmem:[#allocation3 + $0xa] sm:$0x3] }
0x9c67   :  { %4226 = vmatpush.bf16.msrb.mxu3 %v7376_v38 }
0x9ce5   :  { %v4001_v43 = vpop.f32.mrf.mxu3 }
0x9ce6   :  { %v4002_v10 = vadd.f32 %v7409_v11, %v4001_v43 }
0x9ce8   :  { %v4005_v19 = vmul.f32 %v4002_v10, %v7440_v57 }
0x9cea   :  { %4007 = vrot.lane.b32.xlu2 %v4005_v19, %s6244_s26 }
0x9ced   :  { %v4003_v18 = vpop.f32.mrf.mxu3 }
0x9d44   :  { %v4008_v12 = vpop.permute.xlu2 %4007 }
0x9d45   :  { %v4010_v20 = vadd.f32 %v4008_v12, %v7590_v9 }
0x9d47   :  { %v4011_v13 = vpack.c.bf16 %v4010_v20, %v4010_v20 }
0x9d49   :  { %4013 = vrot.lane.b32.xlu0 %v4011_v13, %s6243_s7 }
0x9dbb   :  { %v4014_v22 = vpop.permute.xlu0 %4013 }
0x9dbc   :  { %5991 = vmatmul.msk.bf16.vlgmr.msra.gmra.mxu0 %vm164_vm3, %v4014_v22 }
0x9dbd   :  { %4243 = vmatpush.bf16.msra.mxu0 %v7388_v47 }
0x9dc1   :  { %4244 = vmatpush.bf16.msra.mxu0 %v7394_v32 }
0x9e39   :  { %v4027_v7 = vpop.f32.mrf.mxu0 }
0x9e3a   :  { %v4028_v23 = vadd.f32 %v7400_v0, %v4027_v7 }
0x9e3c   :  { %v4031_v46 = vmax.f32 %v4028_v23, 0.0 }
0x9e3e   :  { %v4032_v25 = vpack.c.bf16 %v4031_v46, %v4031_v46 }
0x9e40   :  { %5992 = vmatmul.msk.bf16.vlgmr.msra.gmra.mxu1 %vm164_vm3, %v4032_v25 }
0x9e41   :  { %v4029_v27 = vpop.f32.mrf.mxu0  ;;  %4270 = vmatpush.bf16.msra.mxu1 %v7370_v34 }
0x9e45   :  { %4271 = vmatpush.bf16.msra.mxu1 %v7376_v38 }
0x9ebd   :  { %v4045_v28 = vpop.f32.mrf.mxu1 }
0x9ebe   :  { %v4046_v16 = vadd.f32 %v7409_v11, %v4045_v28 }
0x9ec0   :  { %v4051_v5 = vmul.f32 %v4046_v16, %v7440_v57  ;;  %v4049_v29 = vmul.f32 2.0, %v4046_v16 }
0x9ec2   :  { %4053 = vrot.lane.b32.xlu1 %v4051_v5, %s6244_s26  ;;  %v4050_v51 = vadd.f32 %v4049_v29, %v4002_v10 }
0x9ec5   :  { %v4047_v40 = vpop.f32.mrf.mxu1 }
0x9f34   :  { %v4054_v31 = vpop.permute.xlu1 %4053 }
0x9f35   :  { %v4056_v21 = vadd.f32 %v4054_v31, %v7590_v9 }
0x9f37   :  { %v4057_v49 = vpack.c.bf16 %v4056_v21, %v4056_v21 }
0x9f39   :  { %4059 = vrot.lane.b32.xlu2 %v4057_v49, %s6243_s7 }
0x9f93   :  { %v4060_v50 = vpop.permute.xlu2 %4059 }
0x9f94   :  { %5993 = vmatmul.msk.bf16.vlgmr.msra.gmra.mxu2 %vm164_vm3, %v4060_v50 }
0x9f95   :  { %4288 = vmatpush.bf16.msra.mxu2 %v7388_v47 }
0x9f99   :  { %4289 = vmatpush.bf16.msra.mxu2 %v7394_v32 }
0xa017   :  { %v4073_v36 = vpop.f32.mrf.mxu2 }
0xa018   :  { %v4074_v59 = vadd.f32 %v7400_v0, %v4073_v36 }
0xa01a   :  { %v4077_v57 = vmax.f32 %v4074_v59, 0.0 }
0xa01c   :  { %v4078_v33 = vpack.c.bf16 %v4077_v57, %v4077_v57 }
0xa01e   :  { %5994 = vmatmul.msk.bf16.vlgmr.msra.gmra.mxu3 %vm164_vm3, %v4078_v33 }
0xa01f   :  { %v4075_v17 = vpop.f32.mrf.mxu2  ;;  %4316 = vmatpush.bf16.msra.mxu3 %v7370_v34 }
0xa023   :  { %4317 = vmatpush.bf16.msra.mxu3 %v7376_v38 }
0xa0a1   :  { %v4091_v37 = vpop.f32.mrf.mxu3 }
0xa0a2   :  { %v4092_v41 = vadd.f32 %v7409_v11, %v4091_v37 }
0xa0a4   :  { %v4095_v42 = vmul.f32 2.0, %v4092_v41  ;;  %v4097_v44 = vmul.f32 %v4092_v41, %v7466_v39 }
0xa0a6   :  { %4099 = vrot.lane.b32.xlu0 %v4097_v44, %s6244_s26  ;;  %v4096_v1 = vadd.f32 %v4095_v42, %v4050_v51  ;;  %v7662_v42 = vstv %s6000_s24 }
0xa0a9   :  { %v4093_v56 = vpop.f32.mrf.mxu3 }
0xa118   :  { %v4100_v2 = vpop.permute.xlu0 %4099 }
0xa119   :  { %v4102_v48 = vadd.f32 %v4100_v2, %v7590_v9 }
0xa11b   :  { %v4103_v52 = vpack.c.bf16 %v4102_v48, %v4102_v48 }
0xa11d   :  { %4105 = vrot.lane.b32.xlu1 %v4103_v52, %s6243_s7  ;;  %v7673_v52 = vld [vmem:[%s8166_s9 + $0x8] sm:$0xff] }
0xa18f   :  { %v4106_v54 = vpop.permute.xlu1 %4105 }
0xa190   :  { %5995 = vmatmul.msk.bf16.vlgmr.msrb.gmra.mxu0 %vm164_vm3, %v4106_v54  ;;  %v7679_v54 = vld [vmem:[%s8166_s9] sm:$0xff] }
0xa191   :  { %4334 = vmatpush.bf16.msrb.mxu0 %v7388_v47 }
0xa195   :  { %4335 = vmatpush.bf16.msrb.mxu0 %v7394_v32 }
0xa20d   :  { %v4119_v30 = vpop.f32.mrf.mxu0 }
0xa20e   :  { %v4120_v39 = vadd.f32 %v7400_v0, %v4119_v30 }
0xa210   :  { %v4123_v58 = vmax.f32 %v4120_v39, 0.0 }
0xa212   :  { %v4124_v26 = vpack.c.bf16 %v4123_v58, %v4123_v58 }
0xa214   :  { %5996 = vmatmul.msk.bf16.vlgmr.msrb.gmra.mxu1 %vm164_vm3, %v4124_v26 }
0xa215   :  { %v4121_v60 = vpop.f32.mrf.mxu0  ;;  %4363 = vmatpush.bf16.msrb.mxu1 %v7370_v34 }
0xa219   :  { %4364 = vmatpush.bf16.msrb.mxu1 %v7376_v38 }
0xa291   :  { %v4137_v45 = vpop.f32.mrf.mxu1 }
0xa292   :  { %v4138_v62 = vadd.f32 %v7409_v11, %v4137_v45 }
0xa294   :  { %v4141_v3 = vadd.f32 %v4138_v62, %v4096_v1 }
0xa296   :  { %v4142_v55 = vmul.f32 %v4141_v3, %v7481_v35 }
0xa298   :  { %4144 = vrot.lane.b32.xlu2 %v4142_v55, %s6244_s26 }
0xa299   :  { %v4139_v6 = vpop.f32.mrf.mxu1 }
0xa2f2   :  { %v4145_v53 = vpop.permute.xlu2 %4144 }
0xa2f3   :  { %v4147_v24 = vadd.f32 %v4145_v53, %v7590_v9 }
0xa2f5   :  { %v4149_v63 = vpack.c.bf16 %v4147_v24, %v4147_v24 }
0xa2f7   :  { %4151 = vrot.lane.b32.xlu0 %v4149_v63, %s6243_s7 }
0xa369   :  { %v4152_v14 = vpop.permute.xlu0 %4151 }
0xa36a   :  { %5997 = vmatmul.msk.bf16.vlgmr.msrb.gmra.mxu2 %vm164_vm3, %v4152_v14 }
0xa36b   :  { %4381 = vmatpush.bf16.msrb.mxu2 %v7388_v47 }
0xa36f   :  { %4382 = vmatpush.bf16.msrb.mxu2 %v7394_v32 }
0xa3ed   :  { %v4165_v15 = vpop.f32.mrf.mxu2 }
0xa3ee   :  { %v4166_v8 = vadd.f32 %v7422_v4, %v4165_v15 }
0xa3f0   :  { %4190 = vrot.lane.b32.xlu1 %v4166_v8, %s6242_s25  ;;  %v4169_v43 = vadd.f32 %v4166_v8, %v4148_v61  ;;  %v7704_v8 = vld [vmem:[%s8168_s11 + $0x8] sm:$0xff] }
0xa3f2   :  { %v5998_v10 = vmul.f32 -1.442695, %v4169_v43 }
0xa3f4   :  { %6120 = vpow2.f32 %v5998_v10  ;;  %v7713_v10 = vstv %s5999_s19 }
0xa3f5   :  { %v4167_v35 = vpop.f32.mrf.mxu2 }
0xa3f6   :  { %v7710_v35 = vld [vmem:[%s8168_s11] sm:$0xff] }
0xa3fa   :  { %v6121_v9 = vpop.eup %6120 }
0xa3fb   :  { %v4173_v19 = vadd.f32 1.0, %v6121_v9  ;;  %v7718_v9 = vld [vmem:[%s8169_s12] ss:$0 sm:$0xff] }
0xa3fd   :  { %6122 = vrcp.f32 %v4173_v19  ;;  %v4185_v7 = vand.u32 2147483648, %v4173_v19  ;;  %vm4179_vm13 = vweird.f32 %v4173_v19  ;;  %v4183_v23 = vand.u32 2147483647, %v4173_v19 }
0xa3ff   :  { %v4186_v46 = vor.u32 1.1754944e-38, %v4185_v7  ;;  %vm4184_vm15 = vcmp.eq.f32.partialorder %v4183_v23, 8.507059e+37 }
0xa403   :  { %v6123_v18 = vpop.eup %6122 }
0xa404   :  { %v4175_v12 = vmul.f32 %v6123_v18, %v4173_v19  ;;  %vm4180_vm12 = vweird.f32 %v6123_v18 }
0xa405   :  { %vm4181_vm14 = vmor %vm4179_vm13, %vm4180_vm12 }
0xa406   :  { %v4176_v20 = vsub.f32 1.0, %v4175_v12 }
0xa408   :  { %v4177_v13 = vmul.f32 %v6123_v18, %v4176_v20 }
0xa40a   :  { %v4178_v22 = vadd.f32 %v6123_v18, %v4177_v13 }
0xa40c   :  { %v4182_v4 = vsel %vm4181_vm14, %v6123_v18, %v4178_v22 }
0xa40d   :  { %v4187_v27 = vsel %vm4184_vm15, %v4186_v46, %v4182_v4 }
0xa40e   :  { %v4200_v31 = vsub.f32 1.0, %v4187_v27  ;;  %v4206_v49 = vmul.f32 %v4187_v27, %v4147_v24 }
0xa462   :  { %v4191_v25 = vpop.permute.xlu1 %4190 }
0xa463   :  { %v4193_v28 = vmul.f32 %v4191_v25, %v4187_v27 }
0xa465   :  { %4195 = vrot.lane.b32.xlu2 %v4193_v28, %s6242_s25 }
0xa4bf   :  { %v4196_v16 = vpop.permute.xlu2 %4195 }
0xa4c0   :  { %v4198_v5 = vadd.f32 %v4196_v16, %v4148_v61 }
0xa4c2   :  { %6124 = vtanh.f32 %v4198_v5 }
0xa4c8   :  { %v6125_v40 = vpop.eup %6124 }
0xa4c9   :  { %4202 = vrot.lane.b32.xlu0 %v6125_v40, %s6243_s7 }
0xa53b   :  { %v4203_v21 = vpop.permute.xlu0 %4202 }
0xa53c   :  { %v4205_v50 = vmul.f32 %v4203_v21, %v4200_v31  ;;  %v7733_v21 = vstv %s6001_s5 }
0xa53e   :  { %v7650_v36 = vadd.f32 %v4206_v49, %v4205_v50 }
0xa540   :  { %v4212_v59 = vpack.c.bf16 %v7650_v36, %v7650_v36 }
0xa542   :  { %4214 = vrot.lane.b32.xlu1 %v4212_v59, %s6243_s7 }
0xa5b4   :  { %v4215_v57 = vpop.permute.xlu1 %4214 }
0xa5b5   :  { %6002 = vmatmul.msk.bf16.vlgmr.msrb.gmra.mxu3 %vm164_vm3, %v4215_v57 }
0xa5b6   :  { %4409 = vmatpush.bf16.msrb.mxu3 %v7370_v34 }
0xa5ba   :  { %4410 = vmatpush.bf16.msrb.mxu3 %v7376_v38 }
0xa638   :  { %v4228_v33 = vpop.f32.mrf.mxu3 }
0xa639   :  { %v4229_v17 = vadd.f32 %v7400_v0, %v4228_v33 }
0xa63b   :  { %v4232_v29 = vmax.f32 %v4229_v17, 0.0 }
0xa63d   :  { %v4233_v37 = vpack.c.bf16 %v4232_v29, %v4232_v29 }
0xa63f   :  { %6003 = vmatmul.msk.bf16.vlgmr.msra.gmra.mxu0 %vm164_vm3, %v4233_v37 }
0xa640   :  { %v4230_v41 = vpop.f32.mrf.mxu3  ;;  %4427 = vmatpush.bf16.msra.mxu0 %v7388_v47 }
0xa644   :  { %4428 = vmatpush.bf16.msra.mxu0 %v7394_v32 }
0xa6bc   :  { %v4246_v51 = vpop.f32.mrf.mxu0 }
0xa6bd   :  { %v4247_v34 = vadd.f32 %v7409_v11, %v4246_v51 }
0xa6bf   :  { %v4251_v38 = vmul.f32 %v7662_v42, %v4247_v34 }
0xa6c1   :  { %4253 = vrot.lane.b32.xlu2 %v4251_v38, %s6244_s26 }
0xa6c4   :  { %v4248_v44 = vpop.f32.mrf.mxu0 }
0xa71b   :  { %v4254_v1 = vpop.permute.xlu2 %4253 }
0xa71c   :  { %v4256_v56 = vadd.f32 %v4254_v1, %v7650_v36 }
0xa71e   :  { %v4257_v2 = vpack.c.bf16 %v4256_v56, %v4256_v56 }
0xa720   :  { %4259 = vrot.lane.b32.xlu0 %v4257_v2, %s6243_s7 }
0xa792   :  { %v4260_v48 = vpop.permute.xlu0 %4259 }
0xa793   :  { %6004 = vmatmul.msk.bf16.vlgmr.msra.gmra.mxu1 %vm164_vm3, %v4260_v48 }
0xa794   :  { %4453 = vmatpush.bf16.msra.mxu1 %v7673_v52 }
0xa798   :  { %4454 = vmatpush.bf16.msra.mxu1 %v7679_v54 }
0xa810   :  { %v4273_v30 = vpop.f32.mrf.mxu1 }
0xa811   :  { %v4274_v39 = vadd.f32 %v7400_v0, %v4273_v30 }
0xa813   :  { %v4277_v58 = vmax.f32 %v4274_v39, 0.0 }
0xa815   :  { %v4278_v26 = vpack.c.bf16 %v4277_v58, %v4277_v58 }
0xa817   :  { %6005 = vmatmul.msk.bf16.vlgmr.msra.gmra.mxu2 %vm164_vm3, %v4278_v26 }
0xa818   :  { %v4275_v60 = vpop.f32.mrf.mxu1  ;;  %4471 = vmatpush.bf16.msra.mxu2 %v7388_v47 }
0xa81c   :  { %4472 = vmatpush.bf16.msra.mxu2 %v7394_v32  ;;  %v7697_v32 = vld [vmem:[%s8167_s10] ss:$0 sm:$0xff] }
0xa89a   :  { %v4291_v45 = vpop.f32.mrf.mxu2 }
0xa89b   :  { %v4292_v62 = vadd.f32 %v7409_v11, %v4291_v45 }
0xa89d   :  { %v4297_v3 = vmul.f32 %v4292_v62, %v7662_v42  ;;  %v4295_v61 = vmul.f32 2.0, %v4292_v62 }
0xa89f   :  { %4299 = vrot.lane.b32.xlu1 %v4297_v3, %s6244_s26  ;;  %v4296_v18 = vadd.f32 %v4295_v61, %v4247_v34 }
0xa8a2   :  { %v4293_v55 = vpop.f32.mrf.mxu2 }
0xa911   :  { %v4300_v6 = vpop.permute.xlu1 %4299 }
0xa912   :  { %v4302_v0 = vadd.f32 %v4300_v6, %v7650_v36 }
0xa914   :  { %v4303_v53 = vpack.c.bf16 %v4302_v0, %v4302_v0 }
0xa916   :  { %4305 = vrot.lane.b32.xlu2 %v4303_v53, %s6243_s7 }
0xa970   :  { %v4306_v24 = vpop.permute.xlu2 %4305 }
0xa971   :  { %6006 = vmatmul.msk.bf16.vlgmr.msra.gmra.mxu3 %vm164_vm3, %v4306_v24 }
0xa972   :  { %4499 = vmatpush.bf16.msra.mxu3 %v7673_v52 }
0xa976   :  { %4500 = vmatpush.bf16.msra.mxu3 %v7679_v54 }
0xa9f4   :  { %v4319_v47 = vpop.f32.mrf.mxu3 }
0xa9f5   :  { %v4320_v11 = vadd.f32 %v7697_v32, %v4319_v47 }
0xa9f7   :  { %v4323_v63 = vmax.f32 %v4320_v11, 0.0 }
0xa9f9   :  { %v4324_v14 = vpack.c.bf16 %v4323_v63, %v4323_v63 }
0xa9fb   :  { %6007 = vmatmul.msk.bf16.vlgmr.msrb.gmra.mxu0 %vm164_vm3, %v4324_v14 }
0xa9fc   :  { %v4321_v15 = vpop.f32.mrf.mxu3  ;;  %4517 = vmatpush.bf16.msrb.mxu0 %v7704_v8 }
0xaa00   :  { %4518 = vmatpush.bf16.msrb.mxu0 %v7710_v35 }
0xaa78   :  { %v4337_v43 = vpop.f32.mrf.mxu0 }
0xaa79   :  { %v4338_v19 = vadd.f32 %v7718_v9, %v4337_v43 }
0xaa7b   :  { %v4341_v12 = vmul.f32 2.0, %v4338_v19  ;;  %v4344_v20 = vmul.f32 %v7713_v10, %v4338_v19 }
0xaa7d   :  { %4346 = vrot.lane.b32.xlu0 %v4344_v20, %s6244_s26  ;;  %v4342_v13 = vadd.f32 %v4341_v12, %v4296_v18 }
0xaa80   :  { %v4339_v22 = vpop.f32.mrf.mxu0 }
0xaaef   :  { %v4347_v7 = vpop.permute.xlu0 %4346 }
0xaaf0   :  { %v4349_v23 = vadd.f32 %v4347_v7, %v7650_v36 }
0xaaf2   :  { %v4350_v4 = vpack.c.bf16 %v4349_v23, %v4349_v23 }
0xaaf4   :  { %4352 = vrot.lane.b32.xlu1 %v4350_v4, %s6243_s7 }
0xab66   :  { %v4353_v46 = vpop.permute.xlu1 %4352 }
0xab67   :  { %6008 = vmatmul.msk.bf16.vlgmr.msrb.gmra.mxu1 %vm164_vm3, %v4353_v46 }
0xab68   :  { %4545 = vmatpush.bf16.msrb.mxu1 %v7673_v52 }
0xab6c   :  { %4546 = vmatpush.bf16.msrb.mxu1 %v7679_v54 }
0xabe4   :  { %v4366_v25 = vpop.f32.mrf.mxu1 }
0xabe5   :  { %v4367_v27 = vadd.f32 %v7697_v32, %v4366_v25 }
0xabe7   :  { %v4370_v28 = vmax.f32 %v4367_v27, 0.0 }
0xabe9   :  { %v4371_v16 = vpack.c.bf16 %v4370_v28, %v4370_v28 }
0xabeb   :  { %6009 = vmatmul.msk.bf16.vlgmr.msrb.gmra.mxu2 %vm164_vm3, %v4371_v16 }
0xabec   :  { %v4368_v5 = vpop.f32.mrf.mxu1  ;;  %4563 = vmatpush.bf16.msrb.mxu2 %v7704_v8 }
0xabf0   :  { %4564 = vmatpush.bf16.msrb.mxu2 %v7710_v35 }
0xac6e   :  { %v4384_v40 = vpop.f32.mrf.mxu2 }
0xac6f   :  { %v4385_v31 = vadd.f32 %v7718_v9, %v4384_v40 }
0xac71   :  { %v4388_v49 = vadd.f32 %v4385_v31, %v4342_v13 }
0xac73   :  { %v4390_v50 = vmul.f32 %v7733_v21, %v4388_v49 }
0xac75   :  { %4392 = vrot.lane.b32.xlu2 %v4390_v50, %s6244_s26 }
0xac76   :  { %v4386_v59 = vpop.f32.mrf.mxu2 }
0xaccf   :  { %v4393_v57 = vpop.permute.xlu2 %4392 }
0xacd0   :  { %v7738_v33 = vadd.f32 %v4393_v57, %v7650_v36 }
0xacd2   :  { %v4396_v17 = vpack.c.bf16 %v7738_v33, %v7738_v33 }
0xacd4   :  { %4398 = vrot.lane.b32.xlu0 %v4396_v17, %s6243_s7 }
0xad46   :  { %v4399_v29 = vpop.permute.xlu0 %4398 }
0xad47   :  { %6010 = vmatmul.msk.bf16.vlgmr.msrb.gmra.mxu3 %vm164_vm3, %v4399_v29 }
0xad48   :  { %4590 = vmatpush.bf16.msrb.mxu3 %v7673_v52 }
0xad4c   :  { %4591 = vmatpush.bf16.msrb.mxu3 %v7679_v54 }
0xadca   :  { %v4412_v37 = vpop.f32.mrf.mxu3 }
0xadcb   :  { %v4413_v41 = vadd.f32 %v7697_v32, %v4412_v37 }
0xadcd   :  { %v4416_v51 = vmax.f32 %v4413_v41, 0.0 }
0xadcf   :  { %v4417_v34 = vpack.c.bf16 %v4416_v51, %v4416_v51 }
0xadd1   :  { %6011 = vmatmul.msk.bf16.vlgmr.msra.gmra.mxu0 %vm164_vm3, %v4417_v34 }
0xadd2   :  { %v4414_v36 = vpop.f32.mrf.mxu3  ;;  %4608 = vmatpush.bf16.msra.mxu0 %v7704_v8 }
0xadd6   :  { %4609 = vmatpush.bf16.msra.mxu0 %v7710_v35 }
0xae4e   :  { %v4430_v38 = vpop.f32.mrf.mxu0 }
0xae4f   :  { %v4431_v44 = vadd.f32 %v7718_v9, %v4430_v38 }
0xae51   :  { %v4434_v1 = vmul.f32 %v4431_v44, %v7662_v42 }
0xae53   :  { %4436 = vrot.lane.b32.xlu1 %v4434_v1, %s6244_s26 }
0xae56   :  { %v4432_v56 = vpop.f32.mrf.mxu0 }
0xaec5   :  { %v4437_v2 = vpop.permute.xlu1 %4436 }
0xaec6   :  { %v4439_v48 = vadd.f32 %v4437_v2, %v7738_v33 }
0xaec8   :  { %v4440_v30 = vpack.c.bf16 %v4439_v48, %v4439_v48 }
0xaeca   :  { %4442 = vrot.lane.b32.xlu2 %v4440_v30, %s6243_s7 }
0xaf24   :  { %v4443_v39 = vpop.permute.xlu2 %4442 }
0xaf25   :  { %6012 = vmatmul.msk.bf16.vlgmr.msra.gmra.mxu1 %vm164_vm3, %v4443_v39 }
0xaf26   :  { %4634 = vmatpush.bf16.msra.mxu1 %v7673_v52 }
0xaf2a   :  { %4635 = vmatpush.bf16.msra.mxu1 %v7679_v54 }
0xafa2   :  { %v4456_v58 = vpop.f32.mrf.mxu1 }
0xafa3   :  { %v4457_v26 = vadd.f32 %v7697_v32, %v4456_v58 }
0xafa5   :  { %v4460_v60 = vmax.f32 %v4457_v26, 0.0 }
0xafa7   :  { %v4461_v45 = vpack.c.bf16 %v4460_v60, %v4460_v60 }
0xafa9   :  { %6013 = vmatmul.msk.bf16.vlgmr.msra.gmra.mxu2 %vm164_vm3, %v4461_v45 }
0xafaa   :  { %v4458_v62 = vpop.f32.mrf.mxu1  ;;  %4652 = vmatpush.bf16.msra.mxu2 %v7704_v8 }
0xafae   :  { %4653 = vmatpush.bf16.msra.mxu2 %v7710_v35 }
0xb02c   :  { %v4474_v3 = vpop.f32.mrf.mxu2 }
0xb02d   :  { %v4475_v55 = vadd.f32 %v7718_v9, %v4474_v3 }
0xb02f   :  { %v4480_v6 = vmul.f32 %v4475_v55, %v7662_v42  ;;  %v4478_v19 = vmul.f32 2.0, %v4475_v55 }
0xb031   :  { %4482 = vrot.lane.b32.xlu0 %v4480_v6, %s6244_s26  ;;  %v4479_v20 = vadd.f32 %v4478_v19, %v4431_v44 }
0xb034   :  { %v4476_v0 = vpop.f32.mrf.mxu2 }
0xb0a3   :  { %v4483_v53 = vpop.permute.xlu0 %4482 }
0xb0a4   :  { %v4485_v24 = vadd.f32 %v4483_v53, %v7738_v33 }
0xb0a6   :  { %v4486_v47 = vpack.c.bf16 %v4485_v24, %v4485_v24 }
0xb0a8   :  { %4488 = vrot.lane.b32.xlu1 %v4486_v47, %s6243_s7 }
0xb11a   :  { %v4489_v11 = vpop.permute.xlu1 %4488 }
0xb11b   :  { %6014 = vmatmul.msk.bf16.vlgmr.msra.gmra.mxu3 %vm164_vm3, %v4489_v11 }
0xb11c   :  { %4680 = vmatpush.bf16.msra.mxu3 %v7673_v52 }
0xb120   :  { %4681 = vmatpush.bf16.msra.mxu3 %v7679_v54 }
0xb19e   :  { %v4502_v63 = vpop.f32.mrf.mxu3 }
0xb19f   :  { %v4503_v14 = vadd.f32 %v7697_v32, %v4502_v63 }
0xb1a1   :  { %v4506_v15 = vmax.f32 %v4503_v14, 0.0 }
0xb1a3   :  { %v4507_v61 = vpack.c.bf16 %v4506_v15, %v4506_v15 }
0xb1a5   :  { %6015 = vmatmul.msk.bf16.vlgmr.msrb.gmra.mxu0 %vm164_vm3, %v4507_v61 }
0xb1a6   :  { %v4504_v43 = vpop.f32.mrf.mxu3  ;;  %4698 = vmatpush.bf16.msrb.mxu0 %v7704_v8 }
0xb1aa   :  { %4699 = vmatpush.bf16.msrb.mxu0 %v7710_v35 }
0xb222   :  { %v4520_v18 = vpop.f32.mrf.mxu0 }
0xb223   :  { %v4521_v12 = vadd.f32 %v7718_v9, %v4520_v18 }
0xb225   :  { %v4524_v13 = vmul.f32 2.0, %v4521_v12  ;;  %v4526_v22 = vmul.f32 %v4521_v12, %v7713_v10 }
0xb227   :  { %4528 = vrot.lane.b32.xlu2 %v4526_v22, %s6244_s26  ;;  %v4525_v7 = vadd.f32 %v4524_v13, %v4479_v20 }
0xb22a   :  { %v4522_v23 = vpop.f32.mrf.mxu0 }
0xb281   :  { %v4529_v4 = vpop.permute.xlu2 %4528 }
0xb282   :  { %v4531_v46 = vadd.f32 %v4529_v4, %v7738_v33 }
0xb284   :  { %v4532_v25 = vpack.c.bf16 %v4531_v46, %v4531_v46 }
0xb286   :  { %4534 = vrot.lane.b32.xlu0 %v4532_v25, %s6243_s7 }
0xb2f8   :  { %v4535_v27 = vpop.permute.xlu0 %4534 }
0xb2f9   :  { %6016 = vmatmul.msk.bf16.vlgmr.msrb.gmra.mxu1 %vm164_vm3, %v4535_v27 }
0xb2fa   :  { %4726 = vmatpush.bf16.msrb.mxu1 %v7673_v52 }
0xb2fe   :  { %4727 = vmatpush.bf16.msrb.mxu1 %v7679_v54 }
0xb376   :  { %v4548_v28 = vpop.f32.mrf.mxu1 }
0xb377   :  { %v4549_v16 = vadd.f32 %v7697_v32, %v4548_v28 }
0xb379   :  { %v4552_v5 = vmax.f32 %v4549_v16, 0.0 }
0xb37b   :  { %v4553_v40 = vpack.c.bf16 %v4552_v5, %v4552_v5 }
0xb37d   :  { %6017 = vmatmul.msk.bf16.vlgmr.msrb.gmra.mxu2 %vm164_vm3, %v4553_v40 }
0xb37e   :  { %v4550_v31 = vpop.f32.mrf.mxu1  ;;  %4744 = vmatpush.bf16.msrb.mxu2 %v7704_v8 }
0xb382   :  { %4745 = vmatpush.bf16.msrb.mxu2 %v7710_v35 }
0xb400   :  { %v4566_v49 = vpop.f32.mrf.mxu2 }
0xb401   :  { %v4567_v50 = vadd.f32 %v7718_v9, %v4566_v49 }
0xb403   :  { %v4570_v59 = vadd.f32 %v4567_v50, %v4525_v7 }
0xb405   :  { %v4571_v57 = vmul.f32 %v4570_v59, %v7733_v21 }
0xb407   :  { %4573 = vrot.lane.b32.xlu1 %v4571_v57, %s6244_s26 }
0xb408   :  { %v4568_v17 = vpop.f32.mrf.mxu2 }
0xb479   :  { %v4574_v29 = vpop.permute.xlu1 %4573 }
0xb47a   :  { %v7790_v37 = vadd.f32 %v4574_v29, %v7738_v33 }
0xb47c   :  { %v4577_v41 = vpack.c.bf16 %v7790_v37, %v7790_v37 }
0xb47e   :  { %4579 = vrot.lane.b32.xlu2 %v4577_v41, %s6243_s7 }
0xb4d8   :  { %v4580_v51 = vpop.permute.xlu2 %4579 }
0xb4d9   :  { %6018 = vmatmul.msk.bf16.vlgmr.msrb.gmra.mxu3 %vm164_vm3, %v4580_v51 }
0xb4da   :  { %4771 = vmatpush.bf16.msrb.mxu3 %v7673_v52 }
0xb4de   :  { %4772 = vmatpush.bf16.msrb.mxu3 %v7679_v54 }
0xb55c   :  { %v4593_v34 = vpop.f32.mrf.mxu3 }
0xb55d   :  { %v4594_v36 = vadd.f32 %v7697_v32, %v4593_v34 }
0xb55f   :  { %v4597_v38 = vmax.f32 %v4594_v36, 0.0 }
0xb561   :  { %v4598_v44 = vpack.c.bf16 %v4597_v38, %v4597_v38 }
0xb563   :  { %6019 = vmatmul.msk.bf16.vlgmr.msra.gmra.mxu0 %vm164_vm3, %v4598_v44  ;;  %v6162_v44 = vld [vmem:[%s8163_s6 + $0x8] sm:$0xff] }
0xb564   :  { %v4595_v33 = vpop.f32.mrf.mxu3  ;;  %4789 = vmatpush.bf16.msra.mxu0 %v7704_v8 }
0xb565   :  { %v6163_v33 = vld [vmem:[%s8163_s6] sm:$0xff]  ;;  %s6245_s6 = smov [#allocation11]  }
0xb566   :  { %s5776_s24 = sshll.u32 %s6245_s6, 4  ;;  %s5777_s24 = int_to_ptr.vmem [resolvable:$true] %s5776_s24 }
0xb568   :  { %4790 = vmatpush.bf16.msra.mxu0 %v7710_v35 }
0xb5e0   :  { %v4611_v1 = vpop.f32.mrf.mxu0 }
0xb5e1   :  { %v4612_v56 = vadd.f32 %v7718_v9, %v4611_v1 }
0xb5e3   :  { %v4615_v2 = vmul.f32 %v4612_v56, %v7662_v42 }
0xb5e5   :  { %4617 = vrot.lane.b32.xlu0 %v4615_v2, %s6244_s26 }
0xb5e8   :  { %v4613_v48 = vpop.f32.mrf.mxu0 }
0xb657   :  { %v4618_v30 = vpop.permute.xlu0 %4617 }
0xb658   :  { %v4620_v39 = vadd.f32 %v4618_v30, %v7790_v37 }
0xb65a   :  { %v4621_v58 = vpack.c.bf16 %v4620_v39, %v4620_v39 }
0xb65c   :  { %4623 = vrot.lane.b32.xlu1 %v4621_v58, %s6243_s7 }
0xb6ce   :  { %v4624_v26 = vpop.permute.xlu1 %4623 }
0xb6cf   :  { %6020 = vmatmul.msk.bf16.vlgmr.msra.gmra.mxu1 %vm164_vm3, %v4624_v26 }
0xb6d0   :  { %4815 = vmatpush.bf16.msra.mxu1 %v7673_v52 }
0xb6d4   :  { %4816 = vmatpush.bf16.msra.mxu1 %v7679_v54 }
0xb74c   :  { %v4637_v60 = vpop.f32.mrf.mxu1 }
0xb74d   :  { %v4638_v45 = vadd.f32 %v7697_v32, %v4637_v60 }
0xb74f   :  { %v4641_v62 = vmax.f32 %v4638_v45, 0.0 }
0xb751   :  { %v4642_v3 = vpack.c.bf16 %v4641_v62, %v4641_v62 }
0xb753   :  { %6021 = vmatmul.msk.bf16.vlgmr.msra.gmra.mxu2 %vm164_vm3, %v4642_v3 }
0xb754   :  { %v4639_v55 = vpop.f32.mrf.mxu1  ;;  %4833 = vmatpush.bf16.msra.mxu2 %v7704_v8 }
0xb758   :  { %4834 = vmatpush.bf16.msra.mxu2 %v7710_v35 }
0xb7d6   :  { %v4655_v6 = vpop.f32.mrf.mxu2 }
0xb7d7   :  { %v4656_v0 = vadd.f32 %v7718_v9, %v4655_v6 }
0xb7d9   :  { %v4661_v53 = vmul.f32 %v4656_v0, %v7662_v42  ;;  %v4659_v12 = vmul.f32 2.0, %v4656_v0 }
0xb7db   :  { %4663 = vrot.lane.b32.xlu2 %v4661_v53, %s6244_s26  ;;  %v4660_v22 = vadd.f32 %v4659_v12, %v4612_v56 }
0xb7de   :  { %v4657_v24 = vpop.f32.mrf.mxu2 }
0xb835   :  { %v4664_v47 = vpop.permute.xlu2 %4663 }
0xb836   :  { %v4666_v11 = vadd.f32 %v4664_v47, %v7790_v37 }
0xb838   :  { %v4667_v63 = vpack.c.bf16 %v4666_v11, %v4666_v11 }
0xb83a   :  { %4669 = vrot.lane.b32.xlu0 %v4667_v63, %s6243_s7 }
0xb8ac   :  { %v4670_v14 = vpop.permute.xlu0 %4669 }
0xb8ad   :  { %6022 = vmatmul.msk.bf16.vlgmr.msra.gmra.mxu3 %vm164_vm3, %v4670_v14 }
0xb8ae   :  { %4861 = vmatpush.bf16.msra.mxu3 %v7673_v52 }
0xb8b2   :  { %4862 = vmatpush.bf16.msra.mxu3 %v7679_v54 }
0xb930   :  { %v4683_v15 = vpop.f32.mrf.mxu3 }
0xb931   :  { %v4684_v61 = vadd.f32 %v7697_v32, %v4683_v15 }
0xb933   :  { %v4687_v43 = vmax.f32 %v4684_v61, 0.0 }
0xb935   :  { %v4688_v19 = vpack.c.bf16 %v4687_v43, %v4687_v43 }
0xb937   :  { %6023 = vmatmul.msk.bf16.vlgmr.msrb.gmra.mxu0 %vm164_vm3, %v4688_v19 }
0xb938   :  { %v4685_v18 = vpop.f32.mrf.mxu3  ;;  %4879 = vmatpush.bf16.msrb.mxu0 %v7704_v8 }
0xb93c   :  { %4880 = vmatpush.bf16.msrb.mxu0 %v7710_v35 }
0xb9b4   :  { %v4701_v20 = vpop.f32.mrf.mxu0 }
0xb9b5   :  { %v4702_v13 = vadd.f32 %v7718_v9, %v4701_v20 }
0xb9b7   :  { %v4705_v7 = vmul.f32 2.0, %v4702_v13  ;;  %v4707_v23 = vmul.f32 %v4702_v13, %v7713_v10 }
0xb9b9   :  { %4709 = vrot.lane.b32.xlu1 %v4707_v23, %s6244_s26  ;;  %v4706_v4 = vadd.f32 %v4705_v7, %v4660_v22 }
0xb9bc   :  { %v4703_v46 = vpop.f32.mrf.mxu0 }
0xba2b   :  { %v4710_v25 = vpop.permute.xlu1 %4709 }
0xba2c   :  { %v4712_v27 = vadd.f32 %v4710_v25, %v7790_v37 }
0xba2e   :  { %v4713_v28 = vpack.c.bf16 %v4712_v27, %v4712_v27 }
0xba30   :  { %4715 = vrot.lane.b32.xlu2 %v4713_v28, %s6243_s7 }
0xba8a   :  { %v4716_v16 = vpop.permute.xlu2 %4715 }
0xba8b   :  { %6024 = vmatmul.msk.bf16.vlgmr.msrb.gmra.mxu1 %vm164_vm3, %v4716_v16 }
0xba8c   :  { %4907 = vmatpush.bf16.msrb.mxu1 %v7673_v52 }
0xba90   :  { %4908 = vmatpush.bf16.msrb.mxu1 %v7679_v54 }
0xbb08   :  { %v4729_v5 = vpop.f32.mrf.mxu1 }
0xbb09   :  { %v4730_v40 = vadd.f32 %v7697_v32, %v4729_v5 }
0xbb0b   :  { %v4733_v31 = vmax.f32 %v4730_v40, 0.0 }
0xbb0d   :  { %v4734_v49 = vpack.c.bf16 %v4733_v31, %v4733_v31 }
0xbb0f   :  { %6025 = vmatmul.msk.bf16.vlgmr.msrb.gmra.mxu2 %vm164_vm3, %v4734_v49 }
0xbb10   :  { %v4731_v50 = vpop.f32.mrf.mxu1  ;;  %4925 = vmatpush.bf16.msrb.mxu2 %v7704_v8 }
0xbb14   :  { %4926 = vmatpush.bf16.msrb.mxu2 %v7710_v35 }
0xbb92   :  { %v4747_v59 = vpop.f32.mrf.mxu2 }
0xbb93   :  { %v4748_v57 = vadd.f32 %v7718_v9, %v4747_v59 }
0xbb95   :  { %v4751_v17 = vadd.f32 %v4748_v57, %v4706_v4 }
0xbb97   :  { %v4752_v29 = vmul.f32 %v4751_v17, %v7733_v21 }
0xbb99   :  { %4754 = vrot.lane.b32.xlu0 %v4752_v29, %s6244_s26 }
0xbb9a   :  { %v4749_v41 = vpop.f32.mrf.mxu2 }
0xbc0b   :  { %v4755_v51 = vpop.permute.xlu0 %4754 }
0xbc0c   :  { %v7842_v34 = vadd.f32 %v4755_v51, %v7790_v37 }
0xbc0e   :  { %v4758_v36 = vpack.c.bf16 %v7842_v34, %v7842_v34 }
0xbc10   :  { %4760 = vrot.lane.b32.xlu1 %v4758_v36, %s6243_s7 }
0xbc82   :  { %v4761_v38 = vpop.permute.xlu1 %4760 }
0xbc83   :  { %6026 = vmatmul.msk.bf16.vlgmr.msrb.gmra.mxu3 %vm164_vm3, %v4761_v38 }
0xbc84   :  { %4953 = vmatpush.bf16.msrb.mxu3 %v6162_v44 }
0xbc88   :  { %4954 = vmatpush.bf16.msrb.mxu3 %v6163_v33 }
0xbd06   :  { %v4774_v37 = vpop.f32.mrf.mxu3 }
0xbd07   :  { %v4775_v1 = vadd.f32 %v7697_v32, %v4774_v37 }
0xbd09   :  { %v4778_v56 = vmax.f32 %v4775_v1, 0.0 }
0xbd0b   :  { %v4779_v2 = vpack.c.bf16 %v4778_v56, %v4778_v56 }
0xbd0d   :  { %6027 = vmatmul.msk.bf16.vlgmr.msra.gmra.mxu0 %vm164_vm3, %v4779_v2 }
0xbd0e   :  { %v4776_v48 = vpop.f32.mrf.mxu3  ;;  %5016 = vmatpush.bf16.msra.mxu0 %v7673_v52 }
0xbd12   :  { %5017 = vmatpush.bf16.msra.mxu0 %v7679_v54 }
0xbd8a   :  { %v4792_v30 = vpop.f32.mrf.mxu0 }
0xbd8b   :  { %v4793_v39 = vadd.f32 %v7718_v9, %v4792_v30 }
0xbd8d   :  { %v4796_v58 = vmul.f32 %v4793_v39, %v7662_v42 }
0xbd8f   :  { %4798 = vrot.lane.b32.xlu2 %v4796_v58, %s6244_s26 }
0xbd92   :  { %v4794_v26 = vpop.f32.mrf.mxu0 }
0xbde9   :  { %v4799_v60 = vpop.permute.xlu2 %4798 }
0xbdea   :  { %v4801_v45 = vadd.f32 %v4799_v60, %v7842_v34 }
0xbdec   :  { %v4802_v62 = vpack.c.bf16 %v4801_v45, %v4801_v45 }
0xbdee   :  { %4804 = vrot.lane.b32.xlu0 %v4802_v62, %s6243_s7 }
0xbe60   :  { %v4805_v3 = vpop.permute.xlu0 %4804 }
0xbe61   :  { %6028 = vmatmul.msk.bf16.vlgmr.msra.gmra.mxu1 %vm164_vm3, %v4805_v3 }
0xbe62   :  { %5034 = vmatpush.bf16.msra.mxu1 %v7704_v8 }
0xbe66   :  { %5035 = vmatpush.bf16.msra.mxu1 %v7710_v35 }
0xbede   :  { %v4818_v55 = vpop.f32.mrf.mxu1 }
0xbedf   :  { %v4819_v6 = vadd.f32 %v7697_v32, %v4818_v55 }
0xbee1   :  { %v4822_v0 = vmax.f32 %v4819_v6, 0.0 }
0xbee3   :  { %v4823_v53 = vpack.c.bf16 %v4822_v0, %v4822_v0 }
0xbee5   :  { %6029 = vmatmul.msk.bf16.vlgmr.msra.gmra.mxu2 %vm164_vm3, %v4823_v53 }
0xbee6   :  { %v4820_v24 = vpop.f32.mrf.mxu1  ;;  %5061 = vmatpush.bf16.msra.mxu2 %v7673_v52 }
0xbeea   :  { %5062 = vmatpush.bf16.msra.mxu2 %v7679_v54 }
0xbf68   :  { %v4836_v47 = vpop.f32.mrf.mxu2 }
0xbf69   :  { %v4837_v11 = vadd.f32 %v7718_v9, %v4836_v47 }
0xbf6b   :  { %v4842_v63 = vmul.f32 %v4837_v11, %v7662_v42  ;;  %v4840_v22 = vmul.f32 2.0, %v4837_v11 }
0xbf6d   :  { %4844 = vrot.lane.b32.xlu1 %v4842_v63, %s6244_s26  ;;  %v4841_v4 = vadd.f32 %v4840_v22, %v4793_v39 }
0xbf70   :  { %v4838_v14 = vpop.f32.mrf.mxu2 }
0xbfdf   :  { %v4845_v15 = vpop.permute.xlu1 %4844 }
0xbfe0   :  { %v4847_v61 = vadd.f32 %v4845_v15, %v7842_v34 }
0xbfe2   :  { %v4848_v43 = vpack.c.bf16 %v4847_v61, %v4847_v61 }
0xbfe4   :  { %4850 = vrot.lane.b32.xlu2 %v4848_v43, %s6243_s7 }
0xc03e   :  { %v4851_v19 = vpop.permute.xlu2 %4850 }
0xc03f   :  { %6030 = vmatmul.msk.bf16.vlgmr.msra.gmra.mxu3 %vm164_vm3, %v4851_v19 }
0xc040   :  { %5079 = vmatpush.bf16.msra.mxu3 %v7704_v8 }
0xc044   :  { %5080 = vmatpush.bf16.msra.mxu3 %v7710_v35 }
0xc0c2   :  { %v4864_v18 = vpop.f32.mrf.mxu3 }
0xc0c3   :  { %v4865_v12 = vadd.f32 %v7697_v32, %v4864_v18 }
0xc0c5   :  { %v4868_v42 = vmax.f32 %v4865_v12, 0.0 }
0xc0c7   :  { %v4869_v20 = vpack.c.bf16 %v4868_v42, %v4868_v42 }
0xc0c9   :  { %6031 = vmatmul.msk.bf16.vlgmr.msrb.gmra.mxu0 %vm164_vm3, %v4869_v20 }
0xc0ca   :  { %v4866_v13 = vpop.f32.mrf.mxu3  ;;  %5107 = vmatpush.bf16.msrb.mxu0 %v7673_v52 }
0xc0ce   :  { %5108 = vmatpush.bf16.msrb.mxu0 %v7679_v54 }
0xc146   :  { %v4882_v7 = vpop.f32.mrf.mxu0 }
0xc147   :  { %v4883_v23 = vadd.f32 %v7718_v9, %v4882_v7 }
0xc149   :  { %v4886_v46 = vmul.f32 2.0, %v4883_v23  ;;  %v4888_v25 = vmul.f32 %v4883_v23, %v7713_v10 }
0xc14b   :  { %4890 = vrot.lane.b32.xlu0 %v4888_v25, %s6244_s26  ;;  %v4887_v27 = vadd.f32 %v4886_v46, %v4841_v4 }
0xc14e   :  { %v4884_v28 = vpop.f32.mrf.mxu0 }
0xc1bd   :  { %v4891_v16 = vpop.permute.xlu0 %4890 }
0xc1be   :  { %v4893_v5 = vadd.f32 %v4891_v16, %v7842_v34 }
0xc1c0   :  { %v4894_v40 = vpack.c.bf16 %v4893_v5, %v4893_v5 }
0xc1c2   :  { %4896 = vrot.lane.b32.xlu1 %v4894_v40, %s6243_s7 }
0xc234   :  { %v4897_v31 = vpop.permute.xlu1 %4896 }
0xc235   :  { %6032 = vmatmul.msk.bf16.vlgmr.msrb.gmra.mxu1 %vm164_vm3, %v4897_v31 }
0xc236   :  { %5125 = vmatpush.bf16.msrb.mxu1 %v7704_v8 }
0xc23a   :  { %5126 = vmatpush.bf16.msrb.mxu1 %v7710_v35 }
0xc2b2   :  { %v4910_v49 = vpop.f32.mrf.mxu1 }
0xc2b3   :  { %v4911_v10 = vadd.f32 %v7697_v32, %v4910_v49 }
0xc2b5   :  { %v4914_v50 = vmax.f32 %v4911_v10, 0.0 }
0xc2b7   :  { %v4915_v59 = vpack.c.bf16 %v4914_v50, %v4914_v50 }
0xc2b9   :  { %6033 = vmatmul.msk.bf16.vlgmr.msrb.gmra.mxu2 %vm164_vm3, %v4915_v59 }
0xc2ba   :  { %v4912_v57 = vpop.f32.mrf.mxu1  ;;  %5154 = vmatpush.bf16.msrb.mxu2 %v7673_v52 }
0xc2be   :  { %5155 = vmatpush.bf16.msrb.mxu2 %v7679_v54 }
0xc33c   :  { %v4928_v17 = vpop.f32.mrf.mxu2 }
0xc33d   :  { %v4929_v29 = vadd.f32 %v7718_v9, %v4928_v17 }
0xc33f   :  { %v4932_v41 = vadd.f32 %v4929_v29, %v4887_v27 }
0xc341   :  { %v4933_v51 = vmul.f32 %v4932_v41, %v7733_v21  ;;  %v6164_v21 = vld [vmem:[%s8165_s8] ss:$0 sm:$0xff]  ;;  %s6037_s8 = sld [smem:[#allocation8 + $0x6]] }
0xc343   :  { %4935 = vrot.lane.b32.xlu2 %v4933_v51, %s6244_s26 }
0xc344   :  { %v4930_v36 = vpop.f32.mrf.mxu2 }
0xc347   :  { %v7920_v25 = vstv %s6037_s8 }
0xc39d   :  { %v4936_v38 = vpop.permute.xlu2 %4935 }
0xc39e   :  { %v4938_v44 = vadd.f32 %v4936_v38, %v7842_v34  ;;  %v4939_v34 = vld [vmem:[#allocation3 + $0xc] sm:$0x3] }
0xc3a0   :  { %v4940_v33 = vpack.c.bf16 %v4938_v44, %v4938_v44 }
0xc3a2   :  { %4942 = vrot.lane.b32.xlu0 %v4940_v33, %s6243_s7 }
0xc414   :  { %v4943_v37 = vpop.permute.xlu0 %4942 }
0xc415   :  { %6034 = vmatmul.msk.bf16.vlgmr.msrb.gmra.mxu3 %vm164_vm3, %v4943_v37 }
0xc416   :  { %5172 = vmatpush.bf16.msrb.mxu3 %v7704_v8 }
0xc41a   :  { %5173 = vmatpush.bf16.msrb.mxu3 %v7710_v35 }
0xc498   :  { %v4956_v1 = vpop.f32.mrf.mxu3 }
0xc499   :  { %v4957_v56 = vadd.f32 %v6164_v21, %v4956_v1 }
0xc49b   :  { %4981 = vrot.lane.b32.xlu1 %v4957_v56, %s6242_s25  ;;  %v4960_v48 = vadd.f32 %v4957_v56, %v4939_v34 }
0xc49d   :  { %v6035_v30 = vmul.f32 -1.442695, %v4960_v48 }
0xc49f   :  { %6126 = vpow2.f32 %v6035_v30 }
0xc4a0   :  { %v4958_v2 = vpop.f32.mrf.mxu3 }
0xc4a5   :  { %v6127_v39 = vpop.eup %6126 }
0xc4a6   :  { %v4964_v58 = vadd.f32 1.0, %v6127_v39 }
0xc4a8   :  { %6128 = vrcp.f32 %v4964_v58  ;;  %v4976_v55 = vand.u32 2147483648, %v4964_v58  ;;  %vm4970_vm1 = vweird.f32 %v4964_v58  ;;  %v4974_v6 = vand.u32 2147483647, %v4964_v58 }
0xc4aa   :  { %v4977_v53 = vor.u32 1.1754944e-38, %v4976_v55  ;;  %vm4975_vm5 = vcmp.eq.f32.partialorder %v4974_v6, 8.507059e+37 }
0xc4ae   :  { %v6129_v26 = vpop.eup %6128 }
0xc4af   :  { %v4966_v60 = vmul.f32 %v6129_v26, %v4964_v58  ;;  %vm4971_vm0 = vweird.f32 %v6129_v26 }
0xc4b0   :  { %vm4972_vm4 = vmor %vm4970_vm1, %vm4971_vm0 }
0xc4b1   :  { %v4967_v45 = vsub.f32 1.0, %v4966_v60 }
0xc4b3   :  { %v4968_v62 = vmul.f32 %v6129_v26, %v4967_v45 }
0xc4b5   :  { %v4969_v3 = vadd.f32 %v6129_v26, %v4968_v62 }
0xc4b7   :  { %v4973_v0 = vsel %vm4972_vm4, %v6129_v26, %v4969_v3 }
0xc4b8   :  { %v4978_v47 = vsel %vm4975_vm5, %v4977_v53, %v4973_v0 }
0xc4b9   :  { %v4991_v61 = vsub.f32 1.0, %v4978_v47  ;;  %v4997_v19 = vmul.f32 %v4978_v47, %v4938_v44 }
0xc50d   :  { %v4982_v24 = vpop.permute.xlu1 %4981 }
0xc50e   :  { %v4984_v11 = vmul.f32 %v4982_v24, %v4978_v47 }
0xc510   :  { %4986 = vrot.lane.b32.xlu2 %v4984_v11, %s6242_s25  ;;  %s6036_s25 = sld [smem:[#allocation4 + $0x6]] }
0xc516   :  { %v7946_v39 = vstv %s6036_s25  ;;  %s5778_s25 = sshll.u32 %s8172_s15, 4  ;;  %s5779_s25 = int_to_ptr.hbm [resolvable:$true] %s5778_s25 }
0xc56a   :  { %v4987_v63 = vpop.permute.xlu2 %4986 }
0xc56b   :  { %v4989_v14 = vadd.f32 %v4987_v63, %v4939_v34 }
0xc56d   :  { %6130 = vtanh.f32 %v4989_v14 }
0xc573   :  { %v6131_v15 = vpop.eup %6130 }
0xc574   :  { %4993 = vrot.lane.b32.xlu0 %v6131_v15, %s6243_s7 }
0xc5e6   :  { %v4994_v43 = vpop.permute.xlu0 %4993 }
0xc5e7   :  { %v4996_v18 = vmul.f32 %v4994_v43, %v4991_v61  ;;  %v7961_v43 = vstv %s6038_s27 }
0xc5e9   :  { %v7908_v12 = vadd.f32 %v4997_v19, %v4996_v18 }
0xc5eb   :  { %v5003_v42 = vpack.c.bf16 %v7908_v12, %v7908_v12 }
0xc5ed   :  { %5005 = vrot.lane.b32.xlu1 %v5003_v42, %s6243_s7 }
0xc65f   :  { %v5006_v20 = vpop.permute.xlu1 %5005 }
0xc660   :  { %6039 = vmatmul.msk.bf16.vlgmr.msra.gmra.mxu0 %vm164_vm3, %v5006_v20 }
0xc661   :  { %5200 = vmatpush.bf16.msra.mxu0 %v7673_v52 }
0xc665   :  { %5201 = vmatpush.bf16.msra.mxu0 %v7679_v54 }
0xc6dd   :  { %v5019_v13 = vpop.f32.mrf.mxu0 }
0xc6de   :  { %v5020_v22 = vadd.f32 %v7697_v32, %v5019_v13 }
0xc6e0   :  { %v5023_v7 = vmax.f32 %v5020_v22, 0.0 }
0xc6e2   :  { %v5024_v23 = vpack.c.bf16 %v5023_v7, %v5023_v7 }
0xc6e4   :  { %6040 = vmatmul.msk.bf16.vlgmr.msra.gmra.mxu1 %vm164_vm3, %v5024_v23 }
0xc6e5   :  { %v5021_v4 = vpop.f32.mrf.mxu0  ;;  %5218 = vmatpush.bf16.msra.mxu1 %v7704_v8 }
0xc6e9   :  { %5219 = vmatpush.bf16.msra.mxu1 %v7710_v35 }
0xc761   :  { %v5037_v46 = vpop.f32.mrf.mxu1 }
0xc762   :  { %v5038_v27 = vadd.f32 %v7718_v9, %v5037_v46 }
0xc764   :  { %v5042_v28 = vmul.f32 %v7920_v25, %v5038_v27 }
0xc766   :  { %5044 = vrot.lane.b32.xlu2 %v5042_v28, %s6244_s26 }
0xc769   :  { %v5039_v16 = vpop.f32.mrf.mxu1 }
0xc7c0   :  { %v5045_v5 = vpop.permute.xlu2 %5044 }
0xc7c1   :  { %v5047_v40 = vadd.f32 %v5045_v5, %v7908_v12 }
0xc7c3   :  { %v5048_v31 = vpack.c.bf16 %v5047_v40, %v5047_v40 }
0xc7c5   :  { %5050 = vrot.lane.b32.xlu0 %v5048_v31, %s6243_s7 }
0xc837   :  { %v5051_v49 = vpop.permute.xlu0 %5050 }
0xc838   :  { %6041 = vmatmul.msk.bf16.vlgmr.msra.gmra.mxu2 %vm164_vm3, %v5051_v49 }
0xc839   :  { %5244 = vmatpush.bf16.msra.mxu2 %v7673_v52 }
0xc83d   :  { %5245 = vmatpush.bf16.msra.mxu2 %v7679_v54 }
0xc8bb   :  { %v5064_v10 = vpop.f32.mrf.mxu2 }
0xc8bc   :  { %v5065_v50 = vadd.f32 %v7697_v32, %v5064_v10 }
0xc8be   :  { %v5068_v59 = vmax.f32 %v5065_v50, 0.0 }
0xc8c0   :  { %v5069_v57 = vpack.c.bf16 %v5068_v59, %v5068_v59 }
0xc8c2   :  { %6042 = vmatmul.msk.bf16.vlgmr.msra.gmra.mxu3 %vm164_vm3, %v5069_v57 }
0xc8c3   :  { %v5066_v17 = vpop.f32.mrf.mxu2  ;;  %5262 = vmatpush.bf16.msra.mxu3 %v7704_v8 }
0xc8c7   :  { %5263 = vmatpush.bf16.msra.mxu3 %v7710_v35 }
0xc945   :  { %v5082_v29 = vpop.f32.mrf.mxu3 }
0xc946   :  { %v5083_v41 = vadd.f32 %v7718_v9, %v5082_v29 }
0xc948   :  { %v5088_v51 = vmul.f32 %v5083_v41, %v7920_v25  ;;  %v5086_v48 = vmul.f32 2.0, %v5083_v41 }
0xc94a   :  { %5090 = vrot.lane.b32.xlu1 %v5088_v51, %s6244_s26  ;;  %v5087_v26 = vadd.f32 %v5086_v48, %v5038_v27 }
0xc94d   :  { %v5084_v36 = vpop.f32.mrf.mxu3 }
0xc9bc   :  { %v5091_v38 = vpop.permute.xlu1 %5090 }
0xc9bd   :  { %v5093_v44 = vadd.f32 %v5091_v38, %v7908_v12 }
0xc9bf   :  { %v5094_v33 = vpack.c.bf16 %v5093_v44, %v5093_v44 }
0xc9c1   :  { %5096 = vrot.lane.b32.xlu2 %v5094_v33, %s6243_s7 }
0xca1b   :  { %v5097_v37 = vpop.permute.xlu2 %5096 }
0xca1c   :  { %6043 = vmatmul.msk.bf16.vlgmr.msrb.gmra.mxu0 %vm164_vm3, %v5097_v37 }
0xca1d   :  { %5290 = vmatpush.bf16.msrb.mxu0 %v7673_v52 }
0xca21   :  { %5291 = vmatpush.bf16.msrb.mxu0 %v7679_v54 }
0xca99   :  { %v5110_v1 = vpop.f32.mrf.mxu0 }
0xca9a   :  { %v5111_v21 = vadd.f32 %v7697_v32, %v5110_v1  ;;  %v7999_v1 = vld [vmem:[%s8166_s9 + $0x8] sm:$0xff] }
0xca9c   :  { %v5114_v56 = vmax.f32 %v5111_v21, 0.0  ;;  %v8005_v21 = vld [vmem:[%s8166_s9] sm:$0xff] }
0xca9e   :  { %v5115_v2 = vpack.c.bf16 %v5114_v56, %v5114_v56 }
0xcaa0   :  { %6044 = vmatmul.msk.bf16.vlgmr.msrb.gmra.mxu1 %vm164_vm3, %v5115_v2 }
0xcaa1   :  { %v5112_v34 = vpop.f32.mrf.mxu0  ;;  %5308 = vmatpush.bf16.msrb.mxu1 %v7704_v8 }
0xcaa5   :  { %5309 = vmatpush.bf16.msrb.mxu1 %v7710_v35 }
0xcb1d   :  { %v5128_v30 = vpop.f32.mrf.mxu1 }
0xcb1e   :  { %v5129_v58 = vadd.f32 %v7718_v9, %v5128_v30 }
0xcb20   :  { %v5132_v60 = vmul.f32 2.0, %v5129_v58  ;;  %v5135_v45 = vmul.f32 %v7946_v39, %v5129_v58 }
0xcb22   :  { %5137 = vrot.lane.b32.xlu0 %v5135_v45, %s6244_s26  ;;  %v5133_v62 = vadd.f32 %v5132_v60, %v5087_v26 }
0xcb25   :  { %v5130_v3 = vpop.f32.mrf.mxu1 }
0xcb94   :  { %v5138_v55 = vpop.permute.xlu0 %5137 }
0xcb95   :  { %v5140_v6 = vadd.f32 %v5138_v55, %v7908_v12 }
0xcb97   :  { %v5141_v0 = vpack.c.bf16 %v5140_v6, %v5140_v6 }
0xcb99   :  { %5143 = vrot.lane.b32.xlu1 %v5141_v0, %s6243_s7 }
0xcc0b   :  { %v5144_v53 = vpop.permute.xlu1 %5143 }
0xcc0c   :  { %6045 = vmatmul.msk.bf16.vlgmr.msrb.gmra.mxu2 %vm164_vm3, %v5144_v53 }
0xcc0d   :  { %5336 = vmatpush.bf16.msrb.mxu2 %v7673_v52 }
0xcc11   :  { %5337 = vmatpush.bf16.msrb.mxu2 %v7679_v54 }
0xcc8f   :  { %v5157_v24 = vpop.f32.mrf.mxu2 }
0xcc90   :  { %v5158_v47 = vadd.f32 %v7697_v32, %v5157_v24 }
0xcc92   :  { %v5161_v11 = vmax.f32 %v5158_v47, 0.0 }
0xcc94   :  { %v5162_v63 = vpack.c.bf16 %v5161_v11, %v5161_v11 }
0xcc96   :  { %6046 = vmatmul.msk.bf16.vlgmr.msrb.gmra.mxu3 %vm164_vm3, %v5162_v63 }
0xcc97   :  { %v5159_v14 = vpop.f32.mrf.mxu2  ;;  %5354 = vmatpush.bf16.msrb.mxu3 %v7704_v8 }
0xcc98   :  { %v8030_v14 = vld [vmem:[%s8168_s11 + $0x8] sm:$0xff] }
0xcc9b   :  { %5355 = vmatpush.bf16.msrb.mxu3 %v7710_v35 }
0xcd19   :  { %v5175_v15 = vpop.f32.mrf.mxu3 }
0xcd1a   :  { %v5176_v61 = vadd.f32 %v7718_v9, %v5175_v15  ;;  %v8036_v15 = vld [vmem:[%s8168_s11] sm:$0xff] }
0xcd1c   :  { %v5179_v19 = vadd.f32 %v5176_v61, %v5133_v62 }
0xcd1e   :  { %v5181_v18 = vmul.f32 %v7961_v43, %v5179_v19  ;;  %v8042_v19 = vld [vmem:[%s8169_s12] ss:$0 sm:$0xff] }
0xcd20   :  { %5183 = vrot.lane.b32.xlu2 %v5181_v18, %s6244_s26 }
0xcd21   :  { %v5177_v42 = vpop.f32.mrf.mxu3 }
0xcd7a   :  { %v5184_v20 = vpop.permute.xlu2 %5183 }
0xcd7b   :  { %v7966_v13 = vadd.f32 %v5184_v20, %v7908_v12 }
0xcd7d   :  { %v5187_v22 = vpack.c.bf16 %v7966_v13, %v7966_v13 }
0xcd7f   :  { %5189 = vrot.lane.b32.xlu0 %v5187_v22, %s6243_s7 }
0xcdf1   :  { %v5190_v7 = vpop.permute.xlu0 %5189 }
0xcdf2   :  { %6047 = vmatmul.msk.bf16.vlgmr.msra.gmra.mxu0 %vm164_vm3, %v5190_v7 }
0xcdf3   :  { %5381 = vmatpush.bf16.msra.mxu0 %v7673_v52 }
0xcdf7   :  { %5382 = vmatpush.bf16.msra.mxu0 %v7679_v54 }
0xce6f   :  { %v5203_v23 = vpop.f32.mrf.mxu0 }
0xce70   :  { %v5204_v4 = vadd.f32 %v7697_v32, %v5203_v23 }
0xce72   :  { %v5207_v46 = vmax.f32 %v5204_v4, 0.0 }
0xce74   :  { %v5208_v27 = vpack.c.bf16 %v5207_v46, %v5207_v46 }
0xce76   :  { %6048 = vmatmul.msk.bf16.vlgmr.msra.gmra.mxu1 %vm164_vm3, %v5208_v27 }
0xce77   :  { %v5205_v12 = vpop.f32.mrf.mxu0  ;;  %5399 = vmatpush.bf16.msra.mxu1 %v7704_v8 }
0xce7b   :  { %5400 = vmatpush.bf16.msra.mxu1 %v7710_v35 }
0xcef3   :  { %v5221_v28 = vpop.f32.mrf.mxu1 }
0xcef4   :  { %v5222_v16 = vadd.f32 %v7718_v9, %v5221_v28 }
0xcef6   :  { %v5225_v5 = vmul.f32 %v5222_v16, %v7920_v25 }
0xcef8   :  { %5227 = vrot.lane.b32.xlu1 %v5225_v5, %s6244_s26 }
0xcefb   :  { %v5223_v40 = vpop.f32.mrf.mxu1 }
0xcf6a   :  { %v5228_v31 = vpop.permute.xlu1 %5227 }
0xcf6b   :  { %v5230_v49 = vadd.f32 %v5228_v31, %v7966_v13 }
0xcf6d   :  { %v5231_v10 = vpack.c.bf16 %v5230_v49, %v5230_v49 }
0xcf6f   :  { %5233 = vrot.lane.b32.xlu2 %v5231_v10, %s6243_s7 }
0xcfc9   :  { %v5234_v50 = vpop.permute.xlu2 %5233 }
0xcfca   :  { %6049 = vmatmul.msk.bf16.vlgmr.msra.gmra.mxu2 %vm164_vm3, %v5234_v50 }
0xcfcb   :  { %5425 = vmatpush.bf16.msra.mxu2 %v7673_v52 }
0xcfcf   :  { %5426 = vmatpush.bf16.msra.mxu2 %v7679_v54 }
0xd04d   :  { %v5247_v59 = vpop.f32.mrf.mxu2 }
0xd04e   :  { %v5248_v57 = vadd.f32 %v7697_v32, %v5247_v59 }
0xd050   :  { %v5251_v17 = vmax.f32 %v5248_v57, 0.0 }
0xd052   :  { %v5252_v29 = vpack.c.bf16 %v5251_v17, %v5251_v17 }
0xd054   :  { %6050 = vmatmul.msk.bf16.vlgmr.msra.gmra.mxu3 %vm164_vm3, %v5252_v29 }
0xd055   :  { %v5249_v41 = vpop.f32.mrf.mxu2  ;;  %5443 = vmatpush.bf16.msra.mxu3 %v7704_v8 }
0xd059   :  { %5444 = vmatpush.bf16.msra.mxu3 %v7710_v35 }
0xd0d7   :  { %v5265_v51 = vpop.f32.mrf.mxu3 }
0xd0d8   :  { %v5266_v36 = vadd.f32 %v7718_v9, %v5265_v51 }
0xd0da   :  { %v5271_v38 = vmul.f32 %v5266_v36, %v7920_v25  ;;  %v5269_v58 = vmul.f32 2.0, %v5266_v36 }
0xd0dc   :  { %5273 = vrot.lane.b32.xlu0 %v5271_v38, %s6244_s26  ;;  %v5270_v45 = vadd.f32 %v5269_v58, %v5222_v16 }
0xd0df   :  { %v5267_v52 = vpop.f32.mrf.mxu3 }
0xd14e   :  { %v5274_v54 = vpop.permute.xlu0 %5273 }
0xd14f   :  { %v5276_v44 = vadd.f32 %v5274_v54, %v7966_v13 }
0xd151   :  { %v5277_v33 = vpack.c.bf16 %v5276_v44, %v5276_v44 }
0xd153   :  { %5279 = vrot.lane.b32.xlu1 %v5277_v33, %s6243_s7 }
0xd1c5   :  { %v5280_v37 = vpop.permute.xlu1 %5279 }
0xd1c6   :  { %6051 = vmatmul.msk.bf16.vlgmr.msrb.gmra.mxu0 %vm164_vm3, %v5280_v37 }
0xd1c7   :  { %5471 = vmatpush.bf16.msrb.mxu0 %v7999_v1 }
0xd1cb   :  { %5472 = vmatpush.bf16.msrb.mxu0 %v8005_v21 }
0xd243   :  { %v5293_v56 = vpop.f32.mrf.mxu0 }
0xd244   :  { %v5294_v2 = vadd.f32 %v7697_v32, %v5293_v56 }
0xd246   :  { %v5297_v34 = vmax.f32 %v5294_v2, 0.0 }
0xd248   :  { %v5298_v48 = vpack.c.bf16 %v5297_v34, %v5297_v34 }
0xd24a   :  { %6052 = vmatmul.msk.bf16.vlgmr.msrb.gmra.mxu1 %vm164_vm3, %v5298_v48 }
0xd24b   :  { %v5295_v30 = vpop.f32.mrf.mxu0  ;;  %5489 = vmatpush.bf16.msrb.mxu1 %v7704_v8 }
0xd24f   :  { %5490 = vmatpush.bf16.msrb.mxu1 %v7710_v35 }
0xd2c7   :  { %v5311_v26 = vpop.f32.mrf.mxu1 }
0xd2c8   :  { %v5312_v60 = vadd.f32 %v7718_v9, %v5311_v26  ;;  %v8023_v9 = vld [vmem:[%s8167_s10] ss:$0 sm:$0xff] }
0xd2ca   :  { %v5315_v62 = vmul.f32 2.0, %v5312_v60  ;;  %v5317_v3 = vmul.f32 %v5312_v60, %v7946_v39 }
0xd2cc   :  { %5319 = vrot.lane.b32.xlu2 %v5317_v3, %s6244_s26  ;;  %v5316_v32 = vadd.f32 %v5315_v62, %v5270_v45 }
0xd2cf   :  { %v5313_v55 = vpop.f32.mrf.mxu1 }
0xd326   :  { %v5320_v6 = vpop.permute.xlu2 %5319 }
0xd327   :  { %v5322_v0 = vadd.f32 %v5320_v6, %v7966_v13 }
0xd329   :  { %v5323_v53 = vpack.c.bf16 %v5322_v0, %v5322_v0 }
0xd32b   :  { %5325 = vrot.lane.b32.xlu0 %v5323_v53, %s6243_s7 }
0xd39d   :  { %v5326_v8 = vpop.permute.xlu0 %5325 }
0xd39e   :  { %6053 = vmatmul.msk.bf16.vlgmr.msrb.gmra.mxu2 %vm164_vm3, %v5326_v8 }
0xd39f   :  { %5517 = vmatpush.bf16.msrb.mxu2 %v7999_v1 }
0xd3a3   :  { %5518 = vmatpush.bf16.msrb.mxu2 %v8005_v21 }
0xd421   :  { %v5339_v35 = vpop.f32.mrf.mxu2 }
0xd422   :  { %v5340_v24 = vadd.f32 %v8023_v9, %v5339_v35 }
0xd424   :  { %v5343_v47 = vmax.f32 %v5340_v24, 0.0 }
0xd426   :  { %v5344_v11 = vpack.c.bf16 %v5343_v47, %v5343_v47 }
0xd428   :  { %6054 = vmatmul.msk.bf16.vlgmr.msrb.gmra.mxu3 %vm164_vm3, %v5344_v11 }
0xd429   :  { %v5341_v63 = vpop.f32.mrf.mxu2  ;;  %5535 = vmatpush.bf16.msrb.mxu3 %v8030_v14 }
0xd42d   :  { %5536 = vmatpush.bf16.msrb.mxu3 %v8036_v15 }
0xd4ab   :  { %v5357_v61 = vpop.f32.mrf.mxu3 }
0xd4ac   :  { %v5358_v18 = vadd.f32 %v8042_v19, %v5357_v61 }
0xd4ae   :  { %v5361_v42 = vadd.f32 %v5358_v18, %v5316_v32 }
0xd4b0   :  { %v5362_v20 = vmul.f32 %v5361_v42, %v7961_v43 }
0xd4b2   :  { %5364 = vrot.lane.b32.xlu1 %v5362_v20, %s6244_s26 }
0xd4b3   :  { %v5359_v22 = vpop.f32.mrf.mxu3 }
0xd524   :  { %v5365_v7 = vpop.permute.xlu1 %5364 }
0xd525   :  { %v8048_v23 = vadd.f32 %v5365_v7, %v7966_v13 }
0xd527   :  { %v5368_v4 = vpack.c.bf16 %v8048_v23, %v8048_v23 }
0xd529   :  { %5370 = vrot.lane.b32.xlu2 %v5368_v4, %s6243_s7 }
0xd583   :  { %v5371_v46 = vpop.permute.xlu2 %5370 }
0xd584   :  { %6055 = vmatmul.msk.bf16.vlgmr.msra.gmra.mxu0 %vm164_vm3, %v5371_v46 }
0xd585   :  { %5562 = vmatpush.bf16.msra.mxu0 %v7999_v1 }
0xd589   :  { %5563 = vmatpush.bf16.msra.mxu0 %v8005_v21 }
0xd601   :  { %v5384_v27 = vpop.f32.mrf.mxu0 }
0xd602   :  { %v5385_v12 = vadd.f32 %v8023_v9, %v5384_v27 }
0xd604   :  { %v5388_v28 = vmax.f32 %v5385_v12, 0.0 }
0xd606   :  { %v5389_v16 = vpack.c.bf16 %v5388_v28, %v5388_v28 }
0xd608   :  { %6056 = vmatmul.msk.bf16.vlgmr.msra.gmra.mxu1 %vm164_vm3, %v5389_v16 }
0xd609   :  { %v5386_v13 = vpop.f32.mrf.mxu0  ;;  %5580 = vmatpush.bf16.msra.mxu1 %v8030_v14 }
0xd60d   :  { %5581 = vmatpush.bf16.msra.mxu1 %v8036_v15 }
0xd685   :  { %v5402_v5 = vpop.f32.mrf.mxu1 }
0xd686   :  { %v5403_v40 = vadd.f32 %v8042_v19, %v5402_v5 }
0xd688   :  { %v5406_v31 = vmul.f32 %v5403_v40, %v7920_v25 }
0xd68a   :  { %5408 = vrot.lane.b32.xlu0 %v5406_v31, %s6244_s26 }
0xd68d   :  { %v5404_v49 = vpop.f32.mrf.mxu1 }
0xd6fc   :  { %v5409_v10 = vpop.permute.xlu0 %5408 }
0xd6fd   :  { %v5411_v50 = vadd.f32 %v5409_v10, %v8048_v23 }
0xd6ff   :  { %v5412_v59 = vpack.c.bf16 %v5411_v50, %v5411_v50 }
0xd701   :  { %5414 = vrot.lane.b32.xlu1 %v5412_v59, %s6243_s7 }
0xd773   :  { %v5415_v57 = vpop.permute.xlu1 %5414 }
0xd774   :  { %6057 = vmatmul.msk.bf16.vlgmr.msra.gmra.mxu2 %vm164_vm3, %v5415_v57 }
0xd775   :  { %5606 = vmatpush.bf16.msra.mxu2 %v7999_v1 }
0xd779   :  { %5607 = vmatpush.bf16.msra.mxu2 %v8005_v21 }
0xd7f7   :  { %v5428_v17 = vpop.f32.mrf.mxu2 }
0xd7f8   :  { %v5429_v29 = vadd.f32 %v8023_v9, %v5428_v17 }
0xd7fa   :  { %v5432_v41 = vmax.f32 %v5429_v29, 0.0 }
0xd7fc   :  { %v5433_v51 = vpack.c.bf16 %v5432_v41, %v5432_v41 }
0xd7fe   :  { %6058 = vmatmul.msk.bf16.vlgmr.msra.gmra.mxu3 %vm164_vm3, %v5433_v51 }
0xd7ff   :  { %v5430_v36 = vpop.f32.mrf.mxu2  ;;  %5624 = vmatpush.bf16.msra.mxu3 %v8030_v14 }
0xd803   :  { %5625 = vmatpush.bf16.msra.mxu3 %v8036_v15 }
0xd881   :  { %v5446_v38 = vpop.f32.mrf.mxu3 }
0xd882   :  { %v5447_v52 = vadd.f32 %v8042_v19, %v5446_v38 }
0xd884   :  { %v5452_v54 = vmul.f32 %v5447_v52, %v7920_v25  ;;  %v5450_v60 = vmul.f32 2.0, %v5447_v52 }
0xd886   :  { %5454 = vrot.lane.b32.xlu2 %v5452_v54, %s6244_s26  ;;  %v5451_v3 = vadd.f32 %v5450_v60, %v5403_v40 }
0xd889   :  { %v5448_v44 = vpop.f32.mrf.mxu3 }
0xd8e0   :  { %v5455_v33 = vpop.permute.xlu2 %5454 }
0xd8e1   :  { %v5457_v37 = vadd.f32 %v5455_v33, %v8048_v23 }
0xd8e3   :  { %v5458_v56 = vpack.c.bf16 %v5457_v37, %v5457_v37 }
0xd8e5   :  { %5460 = vrot.lane.b32.xlu0 %v5458_v56, %s6243_s7 }
0xd957   :  { %v5461_v2 = vpop.permute.xlu0 %5460 }
0xd958   :  { %6059 = vmatmul.msk.bf16.vlgmr.msrb.gmra.mxu0 %vm164_vm3, %v5461_v2 }
0xd959   :  { %5652 = vmatpush.bf16.msrb.mxu0 %v7999_v1 }
0xd95d   :  { %5653 = vmatpush.bf16.msrb.mxu0 %v8005_v21 }
0xd9d5   :  { %v5474_v34 = vpop.f32.mrf.mxu0 }
0xd9d6   :  { %v5475_v48 = vadd.f32 %v8023_v9, %v5474_v34 }
0xd9d8   :  { %v5478_v30 = vmax.f32 %v5475_v48, 0.0 }
0xd9da   :  { %v5479_v58 = vpack.c.bf16 %v5478_v30, %v5478_v30 }
0xd9dc   :  { %6060 = vmatmul.msk.bf16.vlgmr.msrb.gmra.mxu1 %vm164_vm3, %v5479_v58 }
0xd9dd   :  { %v5476_v26 = vpop.f32.mrf.mxu0  ;;  %5670 = vmatpush.bf16.msrb.mxu1 %v8030_v14 }
0xd9e1   :  { %5671 = vmatpush.bf16.msrb.mxu1 %v8036_v15 }
0xda59   :  { %v5492_v45 = vpop.f32.mrf.mxu1 }
0xda5a   :  { %v5493_v62 = vadd.f32 %v8042_v19, %v5492_v45 }
0xda5c   :  { %v5496_v32 = vmul.f32 2.0, %v5493_v62  ;;  %v5498_v55 = vmul.f32 %v5493_v62, %v7946_v39 }
0xda5e   :  { %5500 = vrot.lane.b32.xlu1 %v5498_v55, %s6244_s26  ;;  %v5497_v6 = vadd.f32 %v5496_v32, %v5451_v3 }
0xda61   :  { %v5494_v0 = vpop.f32.mrf.mxu1 }
0xdad0   :  { %v5501_v53 = vpop.permute.xlu1 %5500 }
0xdad1   :  { %v5503_v8 = vadd.f32 %v5501_v53, %v8048_v23 }
0xdad3   :  { %v5504_v35 = vpack.c.bf16 %v5503_v8, %v5503_v8 }
0xdad5   :  { %5506 = vrot.lane.b32.xlu2 %v5504_v35, %s6243_s7 }
0xdb2f   :  { %v5507_v24 = vpop.permute.xlu2 %5506 }
0xdb30   :  { %6061 = vmatmul.msk.bf16.vlgmr.msrb.gmra.mxu2 %vm164_vm3, %v5507_v24 }
0xdb31   :  { %5698 = vmatpush.bf16.msrb.mxu2 %v7999_v1 }
0xdb35   :  { %5699 = vmatpush.bf16.msrb.mxu2 %v8005_v21 }
0xdbb3   :  { %v5520_v47 = vpop.f32.mrf.mxu2 }
0xdbb4   :  { %v5521_v11 = vadd.f32 %v8023_v9, %v5520_v47 }
0xdbb6   :  { %v5524_v63 = vmax.f32 %v5521_v11, 0.0 }
0xdbb8   :  { %v5525_v61 = vpack.c.bf16 %v5524_v63, %v5524_v63 }
0xdbba   :  { %6062 = vmatmul.msk.bf16.vlgmr.msrb.gmra.mxu3 %vm164_vm3, %v5525_v61 }
0xdbbb   :  { %v5522_v18 = vpop.f32.mrf.mxu2  ;;  %5716 = vmatpush.bf16.msrb.mxu3 %v8030_v14 }
0xdbbf   :  { %5717 = vmatpush.bf16.msrb.mxu3 %v8036_v15 }
0xdc3d   :  { %v5538_v42 = vpop.f32.mrf.mxu3 }
0xdc3e   :  { %v5539_v20 = vadd.f32 %v8042_v19, %v5538_v42 }
0xdc40   :  { %v5542_v22 = vadd.f32 %v5539_v20, %v5497_v6  ;;  %v5742_v20 = vld [vmem:[%s8170_s13 + $0x18] sm:$0xff] }
0xdc42   :  { %v5543_v1 = vmul.f32 %v5542_v22, %v7961_v43  ;;  %v5740_v22 = vld [vmem:[%s8170_s13 + $0x8] sm:$0xff] }
0xdc44   :  { %5545 = vrot.lane.b32.xlu0 %v5543_v1, %s6244_s26 }
0xdc45   :  { %v5540_v21 = vpop.f32.mrf.mxu3 }
0xdcb6   :  { %v5546_v7 = vpop.permute.xlu0 %5545 }
0xdcb7   :  { %v8100_v4 = vadd.f32 %v5546_v7, %v8048_v23  ;;  %v6089_v7 = vld [vmem:[%s8171_s14] ss:$0 sm:$0xff] }
0xdcb9   :  { %v5549_v46 = vpack.c.bf16 %v8100_v4, %v8100_v4 }
0xdcbb   :  { %5551 = vrot.lane.b32.xlu1 %v5549_v46, %s6243_s7 }
0xdd2d   :  { %v5552_v14 = vpop.permute.xlu1 %5551 }
0xdd2e   :  { %6063 = vmatmul.msk.bf16.vlgmr.msra.gmra.mxu0 %vm164_vm3, %v5552_v14 }
0xdd2f   :  { %5761 = vmatpush.msra.mxu0 %v5742_v20 }
0xddab   :  { %v5565_v15 = vpop.f32.mrf.mxu0 }
0xddac   :  { %v5566_v27 = vadd.f32 %v8023_v9, %v5565_v15 }
0xddae   :  { %v5569_v12 = vmax.f32 %v5566_v27, 0.0 }
0xddb0   :  { %v5570_v28 = vpack.c.bf16 %v5569_v12, %v5569_v12 }
0xddb2   :  { %6064 = vmatmul.msk.bf16.vlgmr.msra.gmra.mxu1 %vm164_vm3, %v5570_v28 }
0xddb3   :  { %v5567_v16 = vpop.f32.mrf.mxu0 }
0xde2f   :  { %v5583_v13 = vpop.f32.mrf.mxu1 }
0xde30   :  { %v5584_v23 = vadd.f32 %v8042_v19, %v5583_v13 }
0xde32   :  { %v5587_v5 = vmul.f32 %v5584_v23, %v7920_v25 }
0xde34   :  { %5589 = vrot.lane.b32.xlu2 %v5587_v5, %s6244_s26 }
0xde37   :  { %v5585_v40 = vpop.f32.mrf.mxu1 }
0xde8e   :  { %v5590_v31 = vpop.permute.xlu2 %5589 }
0xde8f   :  { %v5592_v49 = vadd.f32 %v5590_v31, %v8100_v4 }
0xde91   :  { %v5593_v10 = vpack.c.bf16 %v5592_v49, %v5592_v49 }
0xde93   :  { %5595 = vrot.lane.b32.xlu0 %v5593_v10, %s6243_s7 }
0xdf05   :  { %v5596_v50 = vpop.permute.xlu0 %5595 }
0xdf06   :  { %6065 = vmatmul.msk.bf16.vlgmr.msra.gmra.mxu2 %vm164_vm3, %v5596_v50 }
0xdf89   :  { %v5609_v59 = vpop.f32.mrf.mxu2 }
0xdf8a   :  { %v5610_v57 = vadd.f32 %v8023_v9, %v5609_v59 }
0xdf8c   :  { %v5613_v17 = vmax.f32 %v5610_v57, 0.0 }
0xdf8e   :  { %v5614_v29 = vpack.c.bf16 %v5613_v17, %v5613_v17 }
0xdf90   :  { %6066 = vmatmul.msk.bf16.vlgmr.msra.gmra.mxu3 %vm164_vm3, %v5614_v29 }
0xdf91   :  { %v5611_v41 = vpop.f32.mrf.mxu2 }
0xe013   :  { %v5627_v51 = vpop.f32.mrf.mxu3 }
0xe014   :  { %v5628_v36 = vadd.f32 %v8042_v19, %v5627_v51 }
0xe016   :  { %v5633_v38 = vmul.f32 %v5628_v36, %v7920_v25  ;;  %v5631_v30 = vmul.f32 2.0, %v5628_v36 }
0xe018   :  { %5635 = vrot.lane.b32.xlu1 %v5633_v38, %s6244_s26  ;;  %v5632_v60 = vadd.f32 %v5631_v30, %v5584_v23 }
0xe01b   :  { %v5629_v52 = vpop.f32.mrf.mxu3 }
0xe08a   :  { %v5636_v54 = vpop.permute.xlu1 %5635 }
0xe08b   :  { %v5638_v44 = vadd.f32 %v5636_v54, %v8100_v4 }
0xe08d   :  { %v5639_v33 = vpack.c.bf16 %v5638_v44, %v5638_v44 }
0xe08f   :  { %5641 = vrot.lane.b32.xlu2 %v5639_v33, %s6243_s7 }
0xe0e9   :  { %v5642_v37 = vpop.permute.xlu2 %5641 }
0xe0ea   :  { %6067 = vmatmul.msk.bf16.vlgmr.msrb.gmra.mxu0 %vm164_vm3, %v5642_v37 }
0xe167   :  { %v5655_v56 = vpop.f32.mrf.mxu0 }
0xe168   :  { %v5656_v2 = vadd.f32 %v8023_v9, %v5655_v56 }
0xe16a   :  { %v5659_v34 = vmax.f32 %v5656_v2, 0.0 }
0xe16c   :  { %v5660_v48 = vpack.c.bf16 %v5659_v34, %v5659_v34 }
0xe16e   :  { %6068 = vmatmul.msk.bf16.vlgmr.msrb.gmra.mxu1 %vm164_vm3, %v5660_v48 }
0xe16f   :  { %v5657_v25 = vpop.f32.mrf.mxu0 }
0xe1eb   :  { %v5673_v58 = vpop.f32.mrf.mxu1 }
0xe1ec   :  { %v5674_v26 = vadd.f32 %v8042_v19, %v5673_v58 }
0xe1ee   :  { %v5677_v45 = vmul.f32 2.0, %v5674_v26  ;;  %v5679_v62 = vmul.f32 %v5674_v26, %v7946_v39 }
0xe1f0   :  { %5681 = vrot.lane.b32.xlu0 %v5679_v62, %s6244_s26  ;;  %v5678_v3 = vadd.f32 %v5677_v45, %v5632_v60 }
0xe1f3   :  { %v5675_v32 = vpop.f32.mrf.mxu1 }
0xe262   :  { %v5682_v55 = vpop.permute.xlu0 %5681 }
0xe263   :  { %v5684_v6 = vadd.f32 %v5682_v55, %v8100_v4 }
0xe265   :  { %v5685_v0 = vpack.c.bf16 %v5684_v6, %v5684_v6 }
0xe267   :  { %5687 = vrot.lane.b32.xlu1 %v5685_v0, %s6243_s7 }
0xe2d9   :  { %v5688_v53 = vpop.permute.xlu1 %5687 }
0xe2da   :  { %6069 = vmatmul.msk.bf16.vlgmr.msrb.gmra.mxu2 %vm164_vm3, %v5688_v53 }
0xe35d   :  { %v5701_v8 = vpop.f32.mrf.mxu2 }
0xe35e   :  { %v5702_v35 = vadd.f32 %v8023_v9, %v5701_v8  ;;  %v5741_v9 = vld [vmem:[%s8170_s13 + $0x10] sm:$0xff] }
0xe35f   :  { %5762 = vmatpush.msra.mxu0 %v5741_v9 }
0xe360   :  { %v5705_v24 = vmax.f32 %v5702_v35, 0.0 }
0xe361   :  { %5763 = vmatpush.msra.mxu0 %v5740_v22 }
0xe362   :  { %v5706_v47 = vpack.c.bf16 %v5705_v24, %v5705_v24 }
0xe364   :  { %6070 = vmatmul.msk.bf16.vlgmr.msrb.gmra.mxu3 %vm164_vm3, %v5706_v47 }
0xe365   :  { %v5703_v39 = vpop.f32.mrf.mxu2 }
0xe3e7   :  { %v5719_v11 = vpop.f32.mrf.mxu3 }
0xe3e8   :  { %v5720_v63 = vadd.f32 %v8042_v19, %v5719_v11 }
0xe3ea   :  { %v5723_v61 = vadd.f32 %v5720_v63, %v5678_v3 }
0xe3ec   :  { %v5724_v18 = vmul.f32 %v5723_v61, %v7961_v43  ;;  %v5739_v43 = vld [vmem:[%s8170_s13] sm:$0xff] }
0xe3ed   :  { %5764 = vmatpush.msra.mxu0 %v5739_v43 }
0xe3ee   :  { %5726 = vrot.lane.b32.xlu2 %v5724_v18, %s6244_s26 }
0xe3ef   :  { %v5721_v42 = vpop.f32.mrf.mxu3 }
0xe448   :  { %v5727_v19 = vpop.permute.xlu2 %5726 }
0xe449   :  { %v5729_v1 = vadd.f32 %v5727_v19, %v8100_v4 }
0xe44b   :  { %5731 = vrot.lane.b32.xlu0 %v5729_v1, %s6243_s7 }
0xe4bd   :  { %v5732_v21 = vpop.permute.xlu0 %5731 }
0xe4be   :  { %5735 = vst.msk [vmem:[#allocation2] sm:$0x3] %vm95_vm2, %v5732_v21  ;;  %6071 = vmatmul.msk.f32.vlgmr.msra.gmra.mxu0 %vm164_vm3, %v5732_v21 }
0xe53b   :  { %v5766_v46 = vpop.f32.mrf.mxu0 }
0xe53c   :  { %v5767_v4 = vadd.f32 %v6089_v7, %v5766_v46 }
0xe53e   :  { %5770 = vst.msk [vmem:[#allocation11] sm:$0x3] %vm5769_vm6, %v5767_v4 }
0xe53f   :  { %5781 = dma.vmem_to_hbm [thread:$0]  %s5777_s24, 32, %s5779_s25, [#allocation5]  }
0xe540   :  { %6237 = dma.done.wait [#allocation5], 32  }
0xe541   :  { %6238 = vsyncadd [#allocation5], 4294967264 }
0xe542   :  { %5786 = vsyncpa [#allocation5], 1 }
0xe543   :  { %5787 = vsyncpa [#allocation6], 1 }
0xe544   :  { %5788 = vsyncpa [#allocation9], 1 }
0xe545   :  { %5789 = vsyncpa [#allocation7], 1 }

</bundles_post_ra>
